<compile_context>
chip_gen: v5e
topology: v5e:2x2
jax: 0.10.0
libtpu: 0.0.40
codegen_flags: <defaults>
</compile_context>

<pallas_src>
import numpy as np
import jax
import jax.numpy as jnp
from jax.experimental import pallas as pl
from jax.experimental.pallas import tpu as pltpu

EPS = 1e-6


def _ln_c(x, w, b):
    # channels_first LayerNorm over the channel (sublane) axis:
    # biased variance, eps inside the sqrt; rsqrt runs on the EUP slot.
    u = jnp.mean(x, axis=0, keepdims=True)
    d = x - u
    s = jnp.mean(d * d, axis=0, keepdims=True)
    return d * jax.lax.rsqrt(s + EPS) * w + b


def _dot(a, b):
    return jnp.dot(a, b, preferred_element_type=jnp.float32)


def _tiny_matmul(w, t):
    # (Cout, K) @ (K, N) for tiny K / degenerate M via sublane-broadcast MACs
    # (keeps the 2- and 4-wide contractions off degenerate MXU tiles).
    acc = w[:, 0:1] * t[0:1, :]
    for k in range(1, t.shape[0]):
        acc = acc + w[:, k:k + 1] * t[k:k + 1, :]
    return acc


# ----------------------------- Pallas kernels -----------------------------

def make_stage_a_kernel(C, d0, sd):
    # norm1 -> proj_in (split into pwa / abc halves) -> ThreeFFT.pre_norm
    def kernel(x_ref, pia_ref, va_ref, pwa_ref, z_ref):
        n1w = va_ref[0:C, 0:1]
        n1b = va_ref[0:C, 1:2]
        prew = va_ref[0:sd, 2:3]
        preb = va_ref[0:sd, 3:4]
        y = _ln_c(x_ref[...], n1w, n1b)
        # proj_in == Conv3d(C, 2C, 1): first d0 output channels are pwa,
        # remaining sd channels are abc (two lane-dense outputs).
        w_pwa = pia_ref[0:d0, 0:C]
        b_pwa = pia_ref[0:d0, C:C + 1]
        w_abc = pia_ref[d0:d0 + sd, 0:C]
        b_abc = pia_ref[d0:d0 + sd, C:C + 1]
        pwa_ref[...] = _tiny_matmul(w_pwa, y) + b_pwa
        abc = _dot(w_abc, y) + b_abc
        z_ref[...] = _ln_c(abc, prew, preb)          # ThreeFFT.pre_norm
    return kernel


def make_stage_b_kernel(C, dims, W, L, scale):
    d0, d1, d2 = dims
    sd = d0 + d1 + d2
    c4 = 4 * C
    WL = W * L
    # packed weight-slab column offsets: pw0 | pw1 | proj_out | pwconv1 | pwconv2
    o1, o2 = d0, d0 + d1
    o3, o4, o5 = o2 + C, o2 + 2 * C, o2 + 2 * C + c4

    def kernel(x_ref, pwa_ref, z_ref, x2_ref, m_ref, dwk_ref, wm_ref, vb_ref, o_ref):
        nb = z_ref.shape[1]
        z = z_ref[...]

        # --- ThreeFFT branch 1: Conv3d(sd, sd, (1,3,3), pad (0,1,1), bias=False) ---
        # Each (oh, ow) tap is a lane shift of oh*W*L + ow*L within a batch block.
        # pltpu.roll (XLU) does the shift; the precomputed mask zeroes both
        # out-of-window taps and the padded tail lanes, so wrapped lanes never leak.
        x1 = jnp.zeros((sd, nb), jnp.float32)
        for kh in range(3):
            for kw in range(3):
                t = kh * 3 + kw
                delta = (kh - 1) * WL + (kw - 1) * L
                sh = z if delta == 0 else pltpu.roll(z, shift=(-delta) % nb, axis=1)
                x1 = x1 + _dot(dwk_ref[t], sh * m_ref[t:t + 1, :])

        # --- post_norm(x1 + x2_fft), fused with the gnconv scale s = 1/3 ---
        dw_abc = scale * _ln_c(x1 + x2_ref[...], vb_ref[0:sd, 0:1], vb_ref[0:sd, 1:2])
        dw0 = dw_abc[0:d0]
        dw1 = dw_abc[d0:d0 + d1]
        dw2 = dw_abc[d0 + d1:sd]

        # --- recursive gating chain + proj_out + gamma1 layer-scale residual ---
        t0 = pwa_ref[...] * dw0
        t1 = (_tiny_matmul(wm_ref[0:d1, 0:o1], t0) + vb_ref[0:d1, 2:3]) * dw1
        t2 = (_tiny_matmul(wm_ref[0:d2, o1:o2], t1) + vb_ref[0:d2, 3:4]) * dw2
        g = _dot(wm_ref[0:C, o2:o3], t2) + vb_ref[0:C, 4:5]
        x_gn = x_ref[...] + vb_ref[0:C, 5:6] * g     # DropPath == identity (eval)

        # --- ConvNeXt MLP: norm2 -> pwconv1 -> exact GELU -> pwconv2 -> gamma2 ---
        h = _ln_c(x_gn, vb_ref[0:C, 6:7], vb_ref[0:C, 7:8])
        h = _dot(wm_ref[0:c4, o3:o4], h) + vb_ref[0:c4, 8:9]
        h = 0.5 * h * (1.0 + jax.lax.erf(h * 0.7071067811865476))   # nn.GELU()
        h = _dot(wm_ref[0:C, o4:o5], h) + vb_ref[0:C, 9:10]
        o_ref[...] = x_gn + vb_ref[0:C, 10:11] * h
    return kernel


# ------------------------------- parameters -------------------------------

def init_params(key, c1=8, fh=14, fw=8, fl=4):
    d0, d1, d2 = c1 // 4, c1 // 2, c1          # order=3 dims, reversed
    sd = d0 + d1 + d2                          # channels seen by ThreeFFT
    ks = jax.random.split(key, 16)

    def nrm(k, shape, scl=0.1):
        return scl * jax.random.normal(k, shape, jnp.float32)

    return dict(
        # Block
        norm1_w=jnp.ones((c1,), jnp.float32), norm1_b=jnp.zeros((c1,), jnp.float32),
        norm2_w=jnp.ones((c1,), jnp.float32), norm2_b=jnp.zeros((c1,), jnp.float32),
        pwconv1_w=nrm(ks[10], (4 * c1, c1)), pwconv1_b=nrm(ks[11], (4 * c1,), 0.02),
        pwconv2_w=nrm(ks[12], (c1, 4 * c1)), pwconv2_b=nrm(ks[13], (c1,), 0.02),
        gamma1=1e-6 * jnp.ones((c1,), jnp.float32),
        gamma2=1e-6 * jnp.ones((c1,), jnp.float32),
        # gnconv3D 1x1x1 convs, torch (Cout, Cin) layout
        proj_in_w=nrm(ks[0], (2 * c1, c1)), proj_in_b=nrm(ks[1], (2 * c1,), 0.02),
        pw0_w=nrm(ks[4], (d1, d0)), pw0_b=nrm(ks[5], (d1,), 0.02),
        pw1_w=nrm(ks[6], (d2, d1)), pw1_b=nrm(ks[7], (d2,), 0.02),
        proj_out_w=nrm(ks[8], (c1, c1)), proj_out_b=nrm(ks[9], (c1,), 0.02),
        # ThreeFFT
        pre_norm_w=jnp.ones((sd,), jnp.float32), pre_norm_b=jnp.zeros((sd,), jnp.float32),
        post_norm_w=jnp.ones((sd,), jnp.float32), post_norm_b=jnp.zeros((sd,), jnp.float32),
        dw_w=nrm(ks[2], (sd, sd, 3, 3)),            # Conv3d(sd, sd, (1,3,3)), depth squeezed
        complex_weight=0.02 * jax.random.normal(ks[3], (sd, fh, fw, fl, 2), jnp.float32),
    )


# -------------------------------- forward --------------------------------

def three_ft3_block_forward(x, p):
    B, C, H, W, L = x.shape
    d0, d1, d2 = C // 4, C // 2, C
    dims = (d0, d1, d2)
    sd = d0 + d1 + d2
    c4 = 4 * C
    scale = 1.0 / 3.0
    Nb = H * W * L
    Nb_pad = ((Nb + 127) // 128) * 128            # lane-dense per-batch block
    Nt = B * Nb_pad
    f32 = jnp.float32

    def colpad(v, rows):
        return jnp.pad(v.astype(f32), (0, rows - v.shape[0])).reshape(rows, 1)

    # NCHWL -> (C, B*Nb_pad) channels-on-sublanes slab, per-batch lane padding.
    x_c = jnp.transpose(x, (1, 0, 2, 3, 4)).reshape(C, B, Nb)
    x_cn = jnp.pad(x_c, ((0, 0), (0, 0), (0, Nb_pad - Nb))).reshape(C, Nt)

    # ---- packed parameter slabs: a few medium DMAs instead of ~30 tiny ones ----
    pia = jnp.concatenate([p['proj_in_w'], p['proj_in_b'].reshape(-1, 1)], axis=1)    # (2C, C+1)
    va = jnp.concatenate([colpad(p['norm1_w'], sd), colpad(p['norm1_b'], sd),
                          colpad(p['pre_norm_w'], sd), colpad(p['pre_norm_b'], sd)],
                         axis=1)                                                      # (sd, 4)
    vb = jnp.concatenate([colpad(p['post_norm_w'], c4), colpad(p['post_norm_b'], c4),
                          colpad(p['pw0_b'], c4), colpad(p['pw1_b'], c4),
                          colpad(p['proj_out_b'], c4), colpad(p['gamma1'], c4),
                          colpad(p['norm2_w'], c4), colpad(p['norm2_b'], c4),
                          colpad(p['pwconv1_b'], c4), colpad(p['pwconv2_b'], c4),
                          colpad(p['gamma2'], c4)], axis=1)                           # (4C, 11)
    wm = jnp.zeros((c4, d0 + d1 + 2 * C + c4), f32)                                   # (4C, 54)
    wm = wm.at[:d1, 0:d0].set(p['pw0_w'])
    wm = wm.at[:d2, d0:d0 + d1].set(p['pw1_w'])
    wm = wm.at[:C, d0 + d1:d0 + d1 + C].set(p['proj_out_w'])
    wm = wm.at[:c4, d0 + d1 + C:d0 + d1 + 2 * C].set(p['pwconv1_w'])
    wm = wm.at[:C, d0 + d1 + 2 * C:].set(p['pwconv2_w'])

    # (1,3,3) conv taps reorganized to (tap, Cout, Cin), tap = kh*3 + kw.
    dwk = jnp.transpose(p['dw_w'], (2, 3, 0, 1)).reshape(9, sd, sd)

    # Per-tap validity masks, hoisted out of the kernel as trace-time constants.
    # Also zero the padded tail lanes, so rolled/wrapped lanes never contribute.
    j = np.arange(Nb_pad)
    hh = j // (W * L)
    ww = (j // L) % W
    masks = []
    for kh in range(3):
        for kw in range(3):
            oh, ow = kh - 1, kw - 1
            m = (j < Nb) & (hh + oh >= 0) & (hh + oh < H) & (ww + ow >= 0) & (ww + ow < W)
            masks.append(m)
    mask9 = jnp.asarray(np.stack(masks, 0).astype(np.float32))                        # (9, Nb_pad)

    cparams = pltpu.CompilerParams(dimension_semantics=("parallel",),
                                   vmem_limit_bytes=32 * 1024 * 1024)
    lane = lambda b: (0, b)       # batch-blocked on the lane axis
    full2 = lambda b: (0, 0)      # parameter slabs: fetched once, reused per step

    # ---------------- stage A: norm1 -> proj_in -> pre_norm ----------------
    ce_a = pl.CostEstimate(flops=2 * Nt * (d0 * C + sd * C), transcendentals=Nt,
                           bytes_accessed=4 * Nt * (C + d0 + sd))
    pwa, z = pl.pallas_call(
        make_stage_a_kernel(C, d0, sd),
        grid=(B,),
        out_shape=(jax.ShapeDtypeStruct((d0, Nt), f32),
                   jax.ShapeDtypeStruct((sd, Nt), f32)),
        in_specs=[pl.BlockSpec((C, Nb_pad), lane),
                  pl.BlockSpec((2 * C, C + 1), full2),
                  pl.BlockSpec((sd, 4), full2)],
        out_specs=(pl.BlockSpec((d0, Nb_pad), lane),
                   pl.BlockSpec((sd, Nb_pad), lane)),
        compiler_params=cparams,
        cost_estimate=ce_a,
    )(x_cn, pia, va)

    # ---- ThreeFFT branch 2: 3D spectral filter ----
    # TODO(synk): rfftn/irfftn have no Pallas TPU equivalent; they stay as jnp.fft glue.
    z5 = jnp.transpose(z.reshape(sd, B, Nb_pad)[:, :, :Nb].reshape(sd, B, H, W, L),
                       (1, 0, 2, 3, 4))
    zf = jnp.fft.rfftn(z5, axes=(2, 3, 4), norm='ortho')
    cw = p['complex_weight']
    assert cw.shape[1:4] == zf.shape[2:5], "input sizes chosen to skip the F.interpolate path"
    wc = cw[..., 0] + 1j * cw[..., 1]
    x2b5 = jnp.fft.irfftn(zf * wc[None], s=(H, W, L), axes=(2, 3, 4), norm='ortho')
    x2 = jnp.transpose(x2b5.astype(f32), (1, 0, 2, 3, 4)).reshape(sd, B, Nb)
    x2 = jnp.pad(x2, ((0, 0), (0, 0), (0, Nb_pad - Nb))).reshape(sd, Nt)

    # ------ stage B: conv taps + post_norm + gating + proj_out + MLP -------
    ce_b = pl.CostEstimate(
        flops=2 * Nt * (9 * sd * sd + d1 * d0 + d2 * d1 + C * C + 8 * C * C),
        transcendentals=(c4 + 4) * Nt,
        bytes_accessed=4 * Nt * (2 * C + d0 + 2 * sd + 9))
    out_cn = pl.pallas_call(
        make_stage_b_kernel(C, dims, W, L, scale),
        grid=(B,),
        out_shape=jax.ShapeDtypeStruct((C, Nt), f32),
        in_specs=[pl.BlockSpec((C, Nb_pad), lane),
                  pl.BlockSpec((d0, Nb_pad), lane),
                  pl.BlockSpec((sd, Nb_pad), lane),
                  pl.BlockSpec((sd, Nb_pad), lane),
                  pl.BlockSpec((9, Nb_pad), full2),
                  pl.BlockSpec((9, sd, sd), lambda b: (0, 0, 0)),
                  pl.BlockSpec(wm.shape, full2),
                  pl.BlockSpec(vb.shape, full2)],
        out_specs=pl.BlockSpec((C, Nb_pad), lane),
        compiler_params=cparams,
        cost_estimate=ce_b,
    )(x_cn, pwa, z, x2, mask9, dwk, wm, vb)

    out = out_cn.reshape(C, B, Nb_pad)[:, :, :Nb].reshape(C, B, H, W, L)
    return jnp.transpose(out, (1, 0, 2, 3, 4))


if __name__ == "__main__":
    key = jax.random.PRNGKey(0)
    kx, kp = jax.random.split(key)
    # H=14, W=8, L=6 -> rfftn spatial (14, 8, 4) matches ThreeFFT's (h=14, w=8, l=4) filter
    B, C, H, W, L = 2, 8, 14, 8, 6
    x = jax.random.normal(kx, (B, C, H, W, L), jnp.float32)
    params = init_params(kp, c1=C, fh=14, fw=8, fl=4)

    fwd = jax.jit(three_ft3_block_forward)
    out = jax.block_until_ready(fwd(x, params))
    assert out.shape == (B, C, H, W, L) and out.dtype == jnp.float32
    assert bool(jnp.all(jnp.isfinite(out)))
    print("KERNEL_OK")
</pallas_src>

<mosaic_0001>
module attributes {stable_mosaic.version = 11 : i64} {
  func.func @kernel(%arg0: i32, %arg1: memref<8x768xf32, #tpu.memory_space<vmem>>, %arg2: memref<16x9xf32, #tpu.memory_space<vmem>>, %arg3: memref<14x4xf32, #tpu.memory_space<vmem>>, %arg4: memref<2x768xf32, #tpu.memory_space<vmem>>, %arg5: memref<14x768xf32, #tpu.memory_space<vmem>>) attributes {dimension_semantics = [#tpu.dimension_semantics<parallel>], iteration_bounds = array<i64: 2>, scalar_prefetch = 0 : i64, scratch_operands = 0 : i64, tpu.core_type = #tpu.core_type<tc>, window_params = [{transform_indices = @transform_0, window_bounds = array<i64: 8, 768>}, {pipeline_mode = #tpu.pipeline_mode<synchronous>, transform_indices = @transform_1, window_bounds = array<i64: 16, 9>}, {pipeline_mode = #tpu.pipeline_mode<synchronous>, transform_indices = @transform_2, window_bounds = array<i64: 14, 4>}, {transform_indices = @transform_3, window_bounds = array<i64: 2, 768>}, {transform_indices = @transform_4, window_bounds = array<i64: 14, 768>}]} {
    %c0 = arith.constant 0 : index
    %c0_0 = arith.constant 0 : index
    %0 = vector.load %arg3[%c0, %c0_0] : memref<14x4xf32, #tpu.memory_space<vmem>>, vector<8x1xf32>
    %c0_1 = arith.constant 0 : index
    %c1 = arith.constant 1 : index
    %1 = vector.load %arg3[%c0_1, %c1] : memref<14x4xf32, #tpu.memory_space<vmem>>, vector<8x1xf32>
    %c0_2 = arith.constant 0 : index
    %c2 = arith.constant 2 : index
    %2 = vector.load %arg3[%c0_2, %c2] : memref<14x4xf32, #tpu.memory_space<vmem>>, vector<14x1xf32>
    %c0_3 = arith.constant 0 : index
    %c3 = arith.constant 3 : index
    %3 = vector.load %arg3[%c0_3, %c3] : memref<14x4xf32, #tpu.memory_space<vmem>>, vector<14x1xf32>
    %c0_4 = arith.constant 0 : index
    %c0_5 = arith.constant 0 : index
    %4 = vector.load %arg1[%c0_4, %c0_5] : memref<8x768xf32, #tpu.memory_space<vmem>>, vector<8x768xf32>
    %cst = arith.constant dense<0.000000e+00> : vector<768xf32>
    %5 = vector.multi_reduction <add>, %4, %cst [0] : vector<8x768xf32> to vector<768xf32>
    %6 = vector.shape_cast %5 : vector<768xf32> to vector<1x768xf32>
    %cst_6 = arith.constant 8.000000e+00 : f32
    %7 = vector.broadcast %cst_6 : f32 to vector<1x768xf32>
    %8 = arith.divf %6, %7 : vector<1x768xf32>
    %9 = vector.broadcast %8 : vector<1x768xf32> to vector<8x768xf32>
    %10 = arith.subf %4, %9 : vector<8x768xf32>
    %11 = arith.mulf %10, %10 : vector<8x768xf32>
    %cst_7 = arith.constant dense<0.000000e+00> : vector<768xf32>
    %12 = vector.multi_reduction <add>, %11, %cst_7 [0] : vector<8x768xf32> to vector<768xf32>
    %13 = vector.shape_cast %12 : vector<768xf32> to vector<1x768xf32>
    %cst_8 = arith.constant 8.000000e+00 : f32
    %14 = vector.broadcast %cst_8 : f32 to vector<1x768xf32>
    %15 = arith.divf %13, %14 : vector<1x768xf32>
    %cst_9 = arith.constant 9.99999997E-7 : f32
    %16 = vector.broadcast %cst_9 : f32 to vector<1x768xf32>
    %17 = arith.addf %15, %16 : vector<1x768xf32>
    %18 = math.rsqrt %17 : vector<1x768xf32>
    %19 = vector.broadcast %18 : vector<1x768xf32> to vector<8x768xf32>
    %20 = arith.mulf %10, %19 : vector<8x768xf32>
    %21 = vector.broadcast %0 : vector<8x1xf32> to vector<8x768xf32>
    %22 = arith.mulf %20, %21 : vector<8x768xf32>
    %23 = vector.broadcast %1 : vector<8x1xf32> to vector<8x768xf32>
    %24 = arith.addf %22, %23 : vector<8x768xf32>
    %c0_10 = arith.constant 0 : index
    %c0_11 = arith.constant 0 : index
    %25 = vector.load %arg2[%c0_10, %c0_11] : memref<16x9xf32, #tpu.memory_space<vmem>>, vector<2x8xf32>
    %c0_12 = arith.constant 0 : index
    %c8 = arith.constant 8 : index
    %26 = vector.load %arg2[%c0_12, %c8] : memref<16x9xf32, #tpu.memory_space<vmem>>, vector<2x1xf32>
    %c2_13 = arith.constant 2 : index
    %c0_14 = arith.constant 0 : index
    %27 = vector.load %arg2[%c2_13, %c0_14] : memref<16x9xf32, #tpu.memory_space<vmem>>, vector<14x8xf32>
    %c2_15 = arith.constant 2 : index
    %c8_16 = arith.constant 8 : index
    %28 = vector.load %arg2[%c2_15, %c8_16] : memref<16x9xf32, #tpu.memory_space<vmem>>, vector<14x1xf32>
    %29 = vector.extract_strided_slice %25 {offsets = [0, 0], sizes = [2, 1], strides = [1, 1]} : vector<2x8xf32> to vector<2x1xf32>
    %30 = vector.extract_strided_slice %24 {offsets = [0, 0], sizes = [1, 768], strides = [1, 1]} : vector<8x768xf32> to vector<1x768xf32>
    %31 = vector.broadcast %29 : vector<2x1xf32> to vector<2x768xf32>
    %32 = vector.broadcast %30 : vector<1x768xf32> to vector<2x768xf32>
    %33 = arith.mulf %31, %32 : vector<2x768xf32>
    %34 = vector.extract_strided_slice %25 {offsets = [0, 1], sizes = [2, 1], strides = [1, 1]} : vector<2x8xf32> to vector<2x1xf32>
    %35 = vector.extract_strided_slice %24 {offsets = [1, 0], sizes = [1, 768], strides = [1, 1]} : vector<8x768xf32> to vector<1x768xf32>
    %36 = vector.broadcast %34 : vector<2x1xf32> to vector<2x768xf32>
    %37 = vector.broadcast %35 : vector<1x768xf32> to vector<2x768xf32>
    %38 = arith.mulf %36, %37 : vector<2x768xf32>
    %39 = arith.addf %33, %38 : vector<2x768xf32>
    %40 = vector.extract_strided_slice %25 {offsets = [0, 2], sizes = [2, 1], strides = [1, 1]} : vector<2x8xf32> to vector<2x1xf32>
    %41 = vector.extract_strided_slice %24 {offsets = [2, 0], sizes = [1, 768], strides = [1, 1]} : vector<8x768xf32> to vector<1x768xf32>
    %42 = vector.broadcast %40 : vector<2x1xf32> to vector<2x768xf32>
    %43 = vector.broadcast %41 : vector<1x768xf32> to vector<2x768xf32>
    %44 = arith.mulf %42, %43 : vector<2x768xf32>
    %45 = arith.addf %39, %44 : vector<2x768xf32>
    %46 = vector.extract_strided_slice %25 {offsets = [0, 3], sizes = [2, 1], strides = [1, 1]} : vector<2x8xf32> to vector<2x1xf32>
    %47 = vector.extract_strided_slice %24 {offsets = [3, 0], sizes = [1, 768], strides = [1, 1]} : vector<8x768xf32> to vector<1x768xf32>
    %48 = vector.broadcast %46 : vector<2x1xf32> to vector<2x768xf32>
    %49 = vector.broadcast %47 : vector<1x768xf32> to vector<2x768xf32>
    %50 = arith.mulf %48, %49 : vector<2x768xf32>
    %51 = arith.addf %45, %50 : vector<2x768xf32>
    %52 = vector.extract_strided_slice %25 {offsets = [0, 4], sizes = [2, 1], strides = [1, 1]} : vector<2x8xf32> to vector<2x1xf32>
    %53 = vector.extract_strided_slice %24 {offsets = [4, 0], sizes = [1, 768], strides = [1, 1]} : vector<8x768xf32> to vector<1x768xf32>
    %54 = vector.broadcast %52 : vector<2x1xf32> to vector<2x768xf32>
    %55 = vector.broadcast %53 : vector<1x768xf32> to vector<2x768xf32>
    %56 = arith.mulf %54, %55 : vector<2x768xf32>
    %57 = arith.addf %51, %56 : vector<2x768xf32>
    %58 = vector.extract_strided_slice %25 {offsets = [0, 5], sizes = [2, 1], strides = [1, 1]} : vector<2x8xf32> to vector<2x1xf32>
    %59 = vector.extract_strided_slice %24 {offsets = [5, 0], sizes = [1, 768], strides = [1, 1]} : vector<8x768xf32> to vector<1x768xf32>
    %60 = vector.broadcast %58 : vector<2x1xf32> to vector<2x768xf32>
    %61 = vector.broadcast %59 : vector<1x768xf32> to vector<2x768xf32>
    %62 = arith.mulf %60, %61 : vector<2x768xf32>
    %63 = arith.addf %57, %62 : vector<2x768xf32>
    %64 = vector.extract_strided_slice %25 {offsets = [0, 6], sizes = [2, 1], strides = [1, 1]} : vector<2x8xf32> to vector<2x1xf32>
    %65 = vector.extract_strided_slice %24 {offsets = [6, 0], sizes = [1, 768], strides = [1, 1]} : vector<8x768xf32> to vector<1x768xf32>
    %66 = vector.broadcast %64 : vector<2x1xf32> to vector<2x768xf32>
    %67 = vector.broadcast %65 : vector<1x768xf32> to vector<2x768xf32>
    %68 = arith.mulf %66, %67 : vector<2x768xf32>
    %69 = arith.addf %63, %68 : vector<2x768xf32>
    %70 = vector.extract_strided_slice %25 {offsets = [0, 7], sizes = [2, 1], strides = [1, 1]} : vector<2x8xf32> to vector<2x1xf32>
    %71 = vector.extract_strided_slice %24 {offsets = [7, 0], sizes = [1, 768], strides = [1, 1]} : vector<8x768xf32> to vector<1x768xf32>
    %72 = vector.broadcast %70 : vector<2x1xf32> to vector<2x768xf32>
    %73 = vector.broadcast %71 : vector<1x768xf32> to vector<2x768xf32>
    %74 = arith.mulf %72, %73 : vector<2x768xf32>
    %75 = arith.addf %69, %74 : vector<2x768xf32>
    %76 = vector.broadcast %26 : vector<2x1xf32> to vector<2x768xf32>
    %77 = arith.addf %75, %76 : vector<2x768xf32>
    %c0_17 = arith.constant 0 : index
    %c0_18 = arith.constant 0 : index
    %78 = vector.load %arg4[%c0_17, %c0_18] : memref<2x768xf32, #tpu.memory_space<vmem>>, vector<2x768xf32>
    tpu.vector_store %arg4[%c0_17, %c0_18], %77 {strides = array<i32>} : memref<2x768xf32, #tpu.memory_space<vmem>>, vector<2x768xf32>,
    %cst_19 = arith.constant dense<0.000000e+00> : vector<14x768xf32>
    %79 = tpu.matmul %27, %24, %cst_19 {dimension_numbers = #tpu.dot_dimension_numbers<[1], [0], [0], [1], [0, 0, 1, 1], [], []>} : vector<14x8xf32>, vector<8x768xf32>, vector<14x768xf32> -> vector<14x768xf32>
    %80 = vector.broadcast %28 : vector<14x1xf32> to vector<14x768xf32>
    %81 = arith.addf %79, %80 : vector<14x768xf32>
    %cst_20 = arith.constant dense<0.000000e+00> : vector<768xf32>
    %82 = vector.multi_reduction <add>, %81, %cst_20 [0] : vector<14x768xf32> to vector<768xf32>
    %83 = vector.shape_cast %82 : vector<768xf32> to vector<1x768xf32>
    %cst_21 = arith.constant 1.400000e+01 : f32
    %84 = vector.broadcast %cst_21 : f32 to vector<1x768xf32>
    %85 = arith.divf %83, %84 : vector<1x768xf32>
    %86 = vector.broadcast %85 : vector<1x768xf32> to vector<14x768xf32>
    %87 = arith.subf %81, %86 : vector<14x768xf32>
    %88 = arith.mulf %87, %87 : vector<14x768xf32>
    %cst_22 = arith.constant dense<0.000000e+00> : vector<768xf32>
    %89 = vector.multi_reduction <add>, %88, %cst_22 [0] : vector<14x768xf32> to vector<768xf32>
    %90 = vector.shape_cast %89 : vector<768xf32> to vector<1x768xf32>
    %cst_23 = arith.constant 1.400000e+01 : f32
    %91 = vector.broadcast %cst_23 : f32 to vector<1x768xf32>
    %92 = arith.divf %90, %91 : vector<1x768xf32>
    %cst_24 = arith.constant 9.99999997E-7 : f32
    %93 = vector.broadcast %cst_24 : f32 to vector<1x768xf32>
    %94 = arith.addf %92, %93 : vector<1x768xf32>
    %95 = math.rsqrt %94 : vector<1x768xf32>
    %96 = vector.broadcast %95 : vector<1x768xf32> to vector<14x768xf32>
    %97 = arith.mulf %87, %96 : vector<14x768xf32>
    %98 = vector.broadcast %2 : vector<14x1xf32> to vector<14x768xf32>
    %99 = arith.mulf %97, %98 : vector<14x768xf32>
    %100 = vector.broadcast %3 : vector<14x1xf32> to vector<14x768xf32>
    %101 = arith.addf %99, %100 : vector<14x768xf32>
    %c0_25 = arith.constant 0 : index
    %c0_26 = arith.constant 0 : index
    %102 = vector.load %arg5[%c0_25, %c0_26] : memref<14x768xf32, #tpu.memory_space<vmem>>, vector<14x768xf32>
    tpu.vector_store %arg5[%c0_25, %c0_26], %101 {strides = array<i32>} : memref<14x768xf32, #tpu.memory_space<vmem>>, vector<14x768xf32>,
    return
  }
  func.func @transform_0(%arg0: i32) -> (i32, i32) {
    %c0_i32 = arith.constant 0 : i32
    %c0_i32_0 = arith.constant 0 : i32
    return %c0_i32, %arg0 : i32, i32
  }
  func.func @transform_1(%arg0: i32) -> (i32, i32) {
    %c0_i32 = arith.constant 0 : i32
    %c0_i32_0 = arith.constant 0 : i32
    %c0_i32_1 = arith.constant 0 : i32
    return %c0_i32, %c0_i32_0 : i32, i32
  }
  func.func @transform_2(%arg0: i32) -> (i32, i32) {
    %c0_i32 = arith.constant 0 : i32
    %c0_i32_0 = arith.constant 0 : i32
    %c0_i32_1 = arith.constant 0 : i32
    return %c0_i32, %c0_i32_0 : i32, i32
  }
  func.func @transform_3(%arg0: i32) -> (i32, i32) {
    %c0_i32 = arith.constant 0 : i32
    %c0_i32_0 = arith.constant 0 : i32
    return %c0_i32, %arg0 : i32, i32
  }
  func.func @transform_4(%arg0: i32) -> (i32, i32) {
    %c0_i32 = arith.constant 0 : i32
    %c0_i32_0 = arith.constant 0 : i32
    return %c0_i32, %arg0 : i32, i32
  }
}

module attributes {stable_mosaic.version = 11 : i64} {
  func.func @kernel(%arg0: i32, %arg1: memref<8x768xf32, #tpu.memory_space<vmem>>, %arg2: memref<2x768xf32, #tpu.memory_space<vmem>>, %arg3: memref<14x768xf32, #tpu.memory_space<vmem>>, %arg4: memref<14x768xf32, #tpu.memory_space<vmem>>, %arg5: memref<9x768xf32, #tpu.memory_space<vmem>>, %arg6: memref<9x14x14xf32, #tpu.memory_space<vmem>>, %arg7: memref<32x54xf32, #tpu.memory_space<vmem>>, %arg8: memref<32x11xf32, #tpu.memory_space<vmem>>, %arg9: memref<8x768xf32, #tpu.memory_space<vmem>>) attributes {dimension_semantics = [#tpu.dimension_semantics<parallel>], iteration_bounds = array<i64: 2>, scalar_prefetch = 0 : i64, scratch_operands = 0 : i64, tpu.core_type = #tpu.core_type<tc>, window_params = [{transform_indices = @transform_0, window_bounds = array<i64: 8, 768>}, {transform_indices = @transform_1, window_bounds = array<i64: 2, 768>}, {transform_indices = @transform_2, window_bounds = array<i64: 14, 768>}, {transform_indices = @transform_3, window_bounds = array<i64: 14, 768>}, {pipeline_mode = #tpu.pipeline_mode<synchronous>, transform_indices = @transform_4, window_bounds = array<i64: 9, 768>}, {pipeline_mode = #tpu.pipeline_mode<synchronous>, transform_indices = @transform_5, window_bounds = array<i64: 9, 14, 14>}, {pipeline_mode = #tpu.pipeline_mode<synchronous>, transform_indices = @transform_6, window_bounds = array<i64: 32, 54>}, {pipeline_mode = #tpu.pipeline_mode<synchronous>, transform_indices = @transform_7, window_bounds = array<i64: 32, 11>}, {transform_indices = @transform_8, window_bounds = array<i64: 8, 768>}]} {
    %c0 = arith.constant 0 : index
    %c0_0 = arith.constant 0 : index
    %0 = vector.load %arg3[%c0, %c0_0] : memref<14x768xf32, #tpu.memory_space<vmem>>, vector<14x768xf32>
    %cst = arith.constant 0.000000e+00 : f32
    %1 = vector.broadcast %cst : f32 to vector<14x768xf32>
    %c54_i32 = arith.constant 54 : i32
    %2 = tpu.dynamic_rotate %0 by %c54_i32 dim 1 : vector<14x768xf32>, i32 -> vector<14x768xf32>
    %c0_1 = arith.constant 0 : index
    %c0_2 = arith.constant 0 : index
    %c0_3 = arith.constant 0 : index
    %3 = vector.load %arg6[%c0_1, %c0_2, %c0_3] : memref<9x14x14xf32, #tpu.memory_space<vmem>>, vector<1x14x14xf32>
    %4 = vector.shape_cast %3 : vector<1x14x14xf32> to vector<14x14xf32>
    %c0_4 = arith.constant 0 : index
    %c0_5 = arith.constant 0 : index
    %5 = vector.load %arg5[%c0_4, %c0_5] : memref<9x768xf32, #tpu.memory_space<vmem>>, vector<1x768xf32>
    %6 = vector.broadcast %5 : vector<1x768xf32> to vector<14x768xf32>
    %7 = arith.mulf %2, %6 : vector<14x768xf32>
    %cst_6 = arith.constant dense<0.000000e+00> : vector<14x768xf32>
    %8 = tpu.matmul %4, %7, %cst_6 {dimension_numbers = #tpu.dot_dimension_numbers<[1], [0], [0], [1], [0, 0, 1, 1], [], []>} : vector<14x14xf32>, vector<14x768xf32>, vector<14x768xf32> -> vector<14x768xf32>
    %9 = arith.addf %1, %8 : vector<14x768xf32>
    %c48_i32 = arith.constant 48 : i32
    %10 = tpu.dynamic_rotate %0 by %c48_i32 dim 1 : vector<14x768xf32>, i32 -> vector<14x768xf32>
    %c1 = arith.constant 1 : index
    %c0_7 = arith.constant 0 : index
    %c0_8 = arith.constant 0 : index
    %11 = vector.load %arg6[%c1, %c0_7, %c0_8] : memref<9x14x14xf32, #tpu.memory_space<vmem>>, vector<1x14x14xf32>
    %12 = vector.shape_cast %11 : vector<1x14x14xf32> to vector<14x14xf32>
    %c1_9 = arith.constant 1 : index
    %c0_10 = arith.constant 0 : index
    %13 = vector.load %arg5[%c1_9, %c0_10] : memref<9x768xf32, #tpu.memory_space<vmem>>, vector<1x768xf32>
    %14 = vector.broadcast %13 : vector<1x768xf32> to vector<14x768xf32>
    %15 = arith.mulf %10, %14 : vector<14x768xf32>
    %cst_11 = arith.constant dense<0.000000e+00> : vector<14x768xf32>
    %16 = tpu.matmul %12, %15, %cst_11 {dimension_numbers = #tpu.dot_dimension_numbers<[1], [0], [0], [1], [0, 0, 1, 1], [], []>} : vector<14x14xf32>, vector<14x768xf32>, vector<14x768xf32> -> vector<14x768xf32>
    %17 = arith.addf %9, %16 : vector<14x768xf32>
    %c42_i32 = arith.constant 42 : i32
    %18 = tpu.dynamic_rotate %0 by %c42_i32 dim 1 : vector<14x768xf32>, i32 -> vector<14x768xf32>
    %c2 = arith.constant 2 : index
    %c0_12 = arith.constant 0 : index
    %c0_13 = arith.constant 0 : index
    %19 = vector.load %arg6[%c2, %c0_12, %c0_13] : memref<9x14x14xf32, #tpu.memory_space<vmem>>, vector<1x14x14xf32>
    %20 = vector.shape_cast %19 : vector<1x14x14xf32> to vector<14x14xf32>
    %c2_14 = arith.constant 2 : index
    %c0_15 = arith.constant 0 : index
    %21 = vector.load %arg5[%c2_14, %c0_15] : memref<9x768xf32, #tpu.memory_space<vmem>>, vector<1x768xf32>
    %22 = vector.broadcast %21 : vector<1x768xf32> to vector<14x768xf32>
    %23 = arith.mulf %18, %22 : vector<14x768xf32>
    %cst_16 = arith.constant dense<0.000000e+00> : vector<14x768xf32>
    %24 = tpu.matmul %20, %23, %cst_16 {dimension_numbers = #tpu.dot_dimension_numbers<[1], [0], [0], [1], [0, 0, 1, 1], [], []>} : vector<14x14xf32>, vector<14x768xf32>, vector<14x768xf32> -> vector<14x768xf32>
    %25 = arith.addf %17, %24 : vector<14x768xf32>
    %c6_i32 = arith.constant 6 : i32
    %26 = tpu.dynamic_rotate %0 by %c6_i32 dim 1 : vector<14x768xf32>, i32 -> vector<14x768xf32>
    %c3 = arith.constant 3 : index
    %c0_17 = arith.constant 0 : index
    %c0_18 = arith.constant 0 : index
    %27 = vector.load %arg6[%c3, %c0_17, %c0_18] : memref<9x14x14xf32, #tpu.memory_space<vmem>>, vector<1x14x14xf32>
    %28 = vector.shape_cast %27 : vector<1x14x14xf32> to vector<14x14xf32>
    %c3_19 = arith.constant 3 : index
    %c0_20 = arith.constant 0 : index
    %29 = vector.load %arg5[%c3_19, %c0_20] : memref<9x768xf32, #tpu.memory_space<vmem>>, vector<1x768xf32>
    %30 = vector.broadcast %29 : vector<1x768xf32> to vector<14x768xf32>
    %31 = arith.mulf %26, %30 : vector<14x768xf32>
    %cst_21 = arith.constant dense<0.000000e+00> : vector<14x768xf32>
    %32 = tpu.matmul %28, %31, %cst_21 {dimension_numbers = #tpu.dot_dimension_numbers<[1], [0], [0], [1], [0, 0, 1, 1], [], []>} : vector<14x14xf32>, vector<14x768xf32>, vector<14x768xf32> -> vector<14x768xf32>
    %33 = arith.addf %25, %32 : vector<14x768xf32>
    %c4 = arith.constant 4 : index
    %c0_22 = arith.constant 0 : index
    %c0_23 = arith.constant 0 : index
    %34 = vector.load %arg6[%c4, %c0_22, %c0_23] : memref<9x14x14xf32, #tpu.memory_space<vmem>>, vector<1x14x14xf32>
    %35 = vector.shape_cast %34 : vector<1x14x14xf32> to vector<14x14xf32>
    %c4_24 = arith.constant 4 : index
    %c0_25 = arith.constant 0 : index
    %36 = vector.load %arg5[%c4_24, %c0_25] : memref<9x768xf32, #tpu.memory_space<vmem>>, vector<1x768xf32>
    %37 = vector.broadcast %36 : vector<1x768xf32> to vector<14x768xf32>
    %38 = arith.mulf %0, %37 : vector<14x768xf32>
    %cst_26 = arith.constant dense<0.000000e+00> : vector<14x768xf32>
    %39 = tpu.matmul %35, %38, %cst_26 {dimension_numbers = #tpu.dot_dimension_numbers<[1], [0], [0], [1], [0, 0, 1, 1], [], []>} : vector<14x14xf32>, vector<14x768xf32>, vector<14x768xf32> -> vector<14x768xf32>
    %40 = arith.addf %33, %39 : vector<14x768xf32>
    %c762_i32 = arith.constant 762 : i32
    %41 = tpu.dynamic_rotate %0 by %c762_i32 dim 1 : vector<14x768xf32>, i32 -> vector<14x768xf32>
    %c5 = arith.constant 5 : index
    %c0_27 = arith.constant 0 : index
    %c0_28 = arith.constant 0 : index
    %42 = vector.load %arg6[%c5, %c0_27, %c0_28] : memref<9x14x14xf32, #tpu.memory_space<vmem>>, vector<1x14x14xf32>
    %43 = vector.shape_cast %42 : vector<1x14x14xf32> to vector<14x14xf32>
    %c5_29 = arith.constant 5 : index
    %c0_30 = arith.constant 0 : index
    %44 = vector.load %arg5[%c5_29, %c0_30] : memref<9x768xf32, #tpu.memory_space<vmem>>, vector<1x768xf32>
    %45 = vector.broadcast %44 : vector<1x768xf32> to vector<14x768xf32>
    %46 = arith.mulf %41, %45 : vector<14x768xf32>
    %cst_31 = arith.constant dense<0.000000e+00> : vector<14x768xf32>
    %47 = tpu.matmul %43, %46, %cst_31 {dimension_numbers = #tpu.dot_dimension_numbers<[1], [0], [0], [1], [0, 0, 1, 1], [], []>} : vector<14x14xf32>, vector<14x768xf32>, vector<14x768xf32> -> vector<14x768xf32>
    %48 = arith.addf %40, %47 : vector<14x768xf32>
    %c726_i32 = arith.constant 726 : i32
    %49 = tpu.dynamic_rotate %0 by %c726_i32 dim 1 : vector<14x768xf32>, i32 -> vector<14x768xf32>
    %c6 = arith.constant 6 : index
    %c0_32 = arith.constant 0 : index
    %c0_33 = arith.constant 0 : index
    %50 = vector.load %arg6[%c6, %c0_32, %c0_33] : memref<9x14x14xf32, #tpu.memory_space<vmem>>, vector<1x14x14xf32>
    %51 = vector.shape_cast %50 : vector<1x14x14xf32> to vector<14x14xf32>
    %c6_34 = arith.constant 6 : index
    %c0_35 = arith.constant 0 : index
    %52 = vector.load %arg5[%c6_34, %c0_35] : memref<9x768xf32, #tpu.memory_space<vmem>>, vector<1x768xf32>
    %53 = vector.broadcast %52 : vector<1x768xf32> to vector<14x768xf32>
    %54 = arith.mulf %49, %53 : vector<14x768xf32>
    %cst_36 = arith.constant dense<0.000000e+00> : vector<14x768xf32>
    %55 = tpu.matmul %51, %54, %cst_36 {dimension_numbers = #tpu.dot_dimension_numbers<[1], [0], [0], [1], [0, 0, 1, 1], [], []>} : vector<14x14xf32>, vector<14x768xf32>, vector<14x768xf32> -> vector<14x768xf32>
    %56 = arith.addf %48, %55 : vector<14x768xf32>
    %c720_i32 = arith.constant 720 : i32
    %57 = tpu.dynamic_rotate %0 by %c720_i32 dim 1 : vector<14x768xf32>, i32 -> vector<14x768xf32>
    %c7 = arith.constant 7 : index
    %c0_37 = arith.constant 0 : index
    %c0_38 = arith.constant 0 : index
    %58 = vector.load %arg6[%c7, %c0_37, %c0_38] : memref<9x14x14xf32, #tpu.memory_space<vmem>>, vector<1x14x14xf32>
    %59 = vector.shape_cast %58 : vector<1x14x14xf32> to vector<14x14xf32>
    %c7_39 = arith.constant 7 : index
    %c0_40 = arith.constant 0 : index
    %60 = vector.load %arg5[%c7_39, %c0_40] : memref<9x768xf32, #tpu.memory_space<vmem>>, vector<1x768xf32>
    %61 = vector.broadcast %60 : vector<1x768xf32> to vector<14x768xf32>
    %62 = arith.mulf %57, %61 : vector<14x768xf32>
    %cst_41 = arith.constant dense<0.000000e+00> : vector<14x768xf32>
    %63 = tpu.matmul %59, %62, %cst_41 {dimension_numbers = #tpu.dot_dimension_numbers<[1], [0], [0], [1], [0, 0, 1, 1], [], []>} : vector<14x14xf32>, vector<14x768xf32>, vector<14x768xf32> -> vector<14x768xf32>
    %64 = arith.addf %56, %63 : vector<14x768xf32>
    %c714_i32 = arith.constant 714 : i32
    %65 = tpu.dynamic_rotate %0 by %c714_i32 dim 1 : vector<14x768xf32>, i32 -> vector<14x768xf32>
    %c8 = arith.constant 8 : index
    %c0_42 = arith.constant 0 : index
    %c0_43 = arith.constant 0 : index
    %66 = vector.load %arg6[%c8, %c0_42, %c0_43] : memref<9x14x14xf32, #tpu.memory_space<vmem>>, vector<1x14x14xf32>
    %67 = vector.shape_cast %66 : vector<1x14x14xf32> to vector<14x14xf32>
    %c8_44 = arith.constant 8 : index
    %c0_45 = arith.constant 0 : index
    %68 = vector.load %arg5[%c8_44, %c0_45] : memref<9x768xf32, #tpu.memory_space<vmem>>, vector<1x768xf32>
    %69 = vector.broadcast %68 : vector<1x768xf32> to vector<14x768xf32>
    %70 = arith.mulf %65, %69 : vector<14x768xf32>
    %cst_46 = arith.constant dense<0.000000e+00> : vector<14x768xf32>
    %71 = tpu.matmul %67, %70, %cst_46 {dimension_numbers = #tpu.dot_dimension_numbers<[1], [0], [0], [1], [0, 0, 1, 1], [], []>} : vector<14x14xf32>, vector<14x768xf32>, vector<14x768xf32> -> vector<14x768xf32>
    %72 = arith.addf %64, %71 : vector<14x768xf32>
    %c0_47 = arith.constant 0 : index
    %c0_48 = arith.constant 0 : index
    %73 = vector.load %arg4[%c0_47, %c0_48] : memref<14x768xf32, #tpu.memory_space<vmem>>, vector<14x768xf32>
    %74 = arith.addf %72, %73 : vector<14x768xf32>
    %c0_49 = arith.constant 0 : index
    %c0_50 = arith.constant 0 : index
    %75 = vector.load %arg8[%c0_49, %c0_50] : memref<32x11xf32, #tpu.memory_space<vmem>>, vector<14x1xf32>
    %c0_51 = arith.constant 0 : index
    %c1_52 = arith.constant 1 : index
    %76 = vector.load %arg8[%c0_51, %c1_52] : memref<32x11xf32, #tpu.memory_space<vmem>>, vector<14x1xf32>
    %cst_53 = arith.constant dense<0.000000e+00> : vector<768xf32>
    %77 = vector.multi_reduction <add>, %74, %cst_53 [0] : vector<14x768xf32> to vector<768xf32>
    %78 = vector.shape_cast %77 : vector<768xf32> to vector<1x768xf32>
    %cst_54 = arith.constant 1.400000e+01 : f32
    %79 = vector.broadcast %cst_54 : f32 to vector<1x768xf32>
    %80 = arith.divf %78, %79 : vector<1x768xf32>
    %81 = vector.broadcast %80 : vector<1x768xf32> to vector<14x768xf32>
    %82 = arith.subf %74, %81 : vector<14x768xf32>
    %83 = arith.mulf %82, %82 : vector<14x768xf32>
    %cst_55 = arith.constant dense<0.000000e+00> : vector<768xf32>
    %84 = vector.multi_reduction <add>, %83, %cst_55 [0] : vector<14x768xf32> to vector<768xf32>
    %85 = vector.shape_cast %84 : vector<768xf32> to vector<1x768xf32>
    %cst_56 = arith.constant 1.400000e+01 : f32
    %86 = vector.broadcast %cst_56 : f32 to vector<1x768xf32>
    %87 = arith.divf %85, %86 : vector<1x768xf32>
    %cst_57 = arith.constant 9.99999997E-7 : f32
    %88 = vector.broadcast %cst_57 : f32 to vector<1x768xf32>
    %89 = arith.addf %87, %88 : vector<1x768xf32>
    %90 = math.rsqrt %89 : vector<1x768xf32>
    %91 = vector.broadcast %90 : vector<1x768xf32> to vector<14x768xf32>
    %92 = arith.mulf %82, %91 : vector<14x768xf32>
    %93 = vector.broadcast %75 : vector<14x1xf32> to vector<14x768xf32>
    %94 = arith.mulf %92, %93 : vector<14x768xf32>
    %95 = vector.broadcast %76 : vector<14x1xf32> to vector<14x768xf32>
    %96 = arith.addf %94, %95 : vector<14x768xf32>
    %cst_58 = arith.constant 0.333333343 : f32
    %97 = vector.broadcast %cst_58 : f32 to vector<14x768xf32>
    %98 = arith.mulf %97, %96 : vector<14x768xf32>
    %99 = vector.extract_strided_slice %98 {offsets = [0, 0], sizes = [2, 768], strides = [1, 1]} : vector<14x768xf32> to vector<2x768xf32>
    %100 = vector.extract_strided_slice %98 {offsets = [2, 0], sizes = [4, 768], strides = [1, 1]} : vector<14x768xf32> to vector<4x768xf32>
    %101 = vector.extract_strided_slice %98 {offsets = [6, 0], sizes = [8, 768], strides = [1, 1]} : vector<14x768xf32> to vector<8x768xf32>
    %c0_59 = arith.constant 0 : index
    %c0_60 = arith.constant 0 : index
    %102 = vector.load %arg2[%c0_59, %c0_60] : memref<2x768xf32, #tpu.memory_space<vmem>>, vector<2x768xf32>
    %103 = arith.mulf %102, %99 : vector<2x768xf32>
    %c0_61 = arith.constant 0 : index
    %c0_62 = arith.constant 0 : index
    %104 = vector.load %arg7[%c0_61, %c0_62] : memref<32x54xf32, #tpu.memory_space<vmem>>, vector<4x2xf32>
    %105 = vector.extract_strided_slice %104 {offsets = [0, 0], sizes = [4, 1], strides = [1, 1]} : vector<4x2xf32> to vector<4x1xf32>
    %106 = vector.extract_strided_slice %103 {offsets = [0, 0], sizes = [1, 768], strides = [1, 1]} : vector<2x768xf32> to vector<1x768xf32>
    %107 = vector.broadcast %105 : vector<4x1xf32> to vector<4x768xf32>
    %108 = vector.broadcast %106 : vector<1x768xf32> to vector<4x768xf32>
    %109 = arith.mulf %107, %108 : vector<4x768xf32>
    %110 = vector.extract_strided_slice %104 {offsets = [0, 1], sizes = [4, 1], strides = [1, 1]} : vector<4x2xf32> to vector<4x1xf32>
    %111 = vector.extract_strided_slice %103 {offsets = [1, 0], sizes = [1, 768], strides = [1, 1]} : vector<2x768xf32> to vector<1x768xf32>
    %112 = vector.broadcast %110 : vector<4x1xf32> to vector<4x768xf32>
    %113 = vector.broadcast %111 : vector<1x768xf32> to vector<4x768xf32>
    %114 = arith.mulf %112, %113 : vector<4x768xf32>
    %115 = arith.addf %109, %114 : vector<4x768xf32>
    %c0_63 = arith.constant 0 : index
    %c2_64 = arith.constant 2 : index
    %116 = vector.load %arg8[%c0_63, %c2_64] : memref<32x11xf32, #tpu.memory_space<vmem>>, vector<4x1xf32>
    %117 = vector.broadcast %116 : vector<4x1xf32> to vector<4x768xf32>
    %118 = arith.addf %115, %117 : vector<4x768xf32>
    %119 = arith.mulf %118, %100 : vector<4x768xf32>
    %c0_65 = arith.constant 0 : index
    %c2_66 = arith.constant 2 : index
    %120 = vector.load %arg7[%c0_65, %c2_66] : memref<32x54xf32, #tpu.memory_space<vmem>>, vector<8x4xf32>
    %121 = vector.extract_strided_slice %120 {offsets = [0, 0], sizes = [8, 1], strides = [1, 1]} : vector<8x4xf32> to vector<8x1xf32>
    %122 = vector.extract_strided_slice %119 {offsets = [0, 0], sizes = [1, 768], strides = [1, 1]} : vector<4x768xf32> to vector<1x768xf32>
    %123 = vector.broadcast %121 : vector<8x1xf32> to vector<8x768xf32>
    %124 = vector.broadcast %122 : vector<1x768xf32> to vector<8x768xf32>
    %125 = arith.mulf %123, %124 : vector<8x768xf32>
    %126 = vector.extract_strided_slice %120 {offsets = [0, 1], sizes = [8, 1], strides = [1, 1]} : vector<8x4xf32> to vector<8x1xf32>
    %127 = vector.extract_strided_slice %119 {offsets = [1, 0], sizes = [1, 768], strides = [1, 1]} : vector<4x768xf32> to vector<1x768xf32>
    %128 = vector.broadcast %126 : vector<8x1xf32> to vector<8x768xf32>
    %129 = vector.broadcast %127 : vector<1x768xf32> to vector<8x768xf32>
    %130 = arith.mulf %128, %129 : vector<8x768xf32>
    %131 = arith.addf %125, %130 : vector<8x768xf32>
    %132 = vector.extract_strided_slice %120 {offsets = [0, 2], sizes = [8, 1], strides = [1, 1]} : vector<8x4xf32> to vector<8x1xf32>
    %133 = vector.extract_strided_slice %119 {offsets = [2, 0], sizes = [1, 768], strides = [1, 1]} : vector<4x768xf32> to vector<1x768xf32>
    %134 = vector.broadcast %132 : vector<8x1xf32> to vector<8x768xf32>
    %135 = vector.broadcast %133 : vector<1x768xf32> to vector<8x768xf32>
    %136 = arith.mulf %134, %135 : vector<8x768xf32>
    %137 = arith.addf %131, %136 : vector<8x768xf32>
    %138 = vector.extract_strided_slice %120 {offsets = [0, 3], sizes = [8, 1], strides = [1, 1]} : vector<8x4xf32> to vector<8x1xf32>
    %139 = vector.extract_strided_slice %119 {offsets = [3, 0], sizes = [1, 768], strides = [1, 1]} : vector<4x768xf32> to vector<1x768xf32>
    %140 = vector.broadcast %138 : vector<8x1xf32> to vector<8x768xf32>
    %141 = vector.broadcast %139 : vector<1x768xf32> to vector<8x768xf32>
    %142 = arith.mulf %140, %141 : vector<8x768xf32>
    %143 = arith.addf %137, %142 : vector<8x768xf32>
    %c0_67 = arith.constant 0 : index
    %c3_68 = arith.constant 3 : index
    %144 = vector.load %arg8[%c0_67, %c3_68] : memref<32x11xf32, #tpu.memory_space<vmem>>, vector<8x1xf32>
    %145 = vector.broadcast %144 : vector<8x1xf32> to vector<8x768xf32>
    %146 = arith.addf %143, %145 : vector<8x768xf32>
    %147 = arith.mulf %146, %101 : vector<8x768xf32>
    %c0_69 = arith.constant 0 : index
    %c6_70 = arith.constant 6 : index
    %148 = vector.load %arg7[%c0_69, %c6_70] : memref<32x54xf32, #tpu.memory_space<vmem>>, vector<8x8xf32>
    %cst_71 = arith.constant dense<0.000000e+00> : vector<8x768xf32>
    %149 = tpu.matmul %148, %147, %cst_71 {dimension_numbers = #tpu.dot_dimension_numbers<[1], [0], [0], [1], [0, 0, 1, 1], [], []>} : vector<8x8xf32>, vector<8x768xf32>, vector<8x768xf32> -> vector<8x768xf32>
    %c0_72 = arith.constant 0 : index
    %c4_73 = arith.constant 4 : index
    %150 = vector.load %arg8[%c0_72, %c4_73] : memref<32x11xf32, #tpu.memory_space<vmem>>, vector<8x1xf32>
    %151 = vector.broadcast %150 : vector<8x1xf32> to vector<8x768xf32>
    %152 = arith.addf %149, %151 : vector<8x768xf32>
    %c0_74 = arith.constant 0 : index
    %c0_75 = arith.constant 0 : index
    %153 = vector.load %arg1[%c0_74, %c0_75] : memref<8x768xf32, #tpu.memory_space<vmem>>, vector<8x768xf32>
    %c0_76 = arith.constant 0 : index
    %c5_77 = arith.constant 5 : index
    %154 = vector.load %arg8[%c0_76, %c5_77] : memref<32x11xf32, #tpu.memory_space<vmem>>, vector<8x1xf32>
    %155 = vector.broadcast %154 : vector<8x1xf32> to vector<8x768xf32>
    %156 = arith.mulf %155, %152 : vector<8x768xf32>
    %157 = arith.addf %153, %156 : vector<8x768xf32>
    %c0_78 = arith.constant 0 : index
    %c6_79 = arith.constant 6 : index
    %158 = vector.load %arg8[%c0_78, %c6_79] : memref<32x11xf32, #tpu.memory_space<vmem>>, vector<8x1xf32>
    %c0_80 = arith.constant 0 : index
    %c7_81 = arith.constant 7 : index
    %159 = vector.load %arg8[%c0_80, %c7_81] : memref<32x11xf32, #tpu.memory_space<vmem>>, vector<8x1xf32>
    %cst_82 = arith.constant dense<0.000000e+00> : vector<768xf32>
    %160 = vector.multi_reduction <add>, %157, %cst_82 [0] : vector<8x768xf32> to vector<768xf32>
    %161 = vector.shape_cast %160 : vector<768xf32> to vector<1x768xf32>
    %cst_83 = arith.constant 8.000000e+00 : f32
    %162 = vector.broadcast %cst_83 : f32 to vector<1x768xf32>
    %163 = arith.divf %161, %162 : vector<1x768xf32>
    %164 = vector.broadcast %163 : vector<1x768xf32> to vector<8x768xf32>
    %165 = arith.subf %157, %164 : vector<8x768xf32>
    %166 = arith.mulf %165, %165 : vector<8x768xf32>
    %cst_84 = arith.constant dense<0.000000e+00> : vector<768xf32>
    %167 = vector.multi_reduction <add>, %166, %cst_84 [0] : vector<8x768xf32> to vector<768xf32>
    %168 = vector.shape_cast %167 : vector<768xf32> to vector<1x768xf32>
    %cst_85 = arith.constant 8.000000e+00 : f32
    %169 = vector.broadcast %cst_85 : f32 to vector<1x768xf32>
    %170 = arith.divf %168, %169 : vector<1x768xf32>
    %cst_86 = arith.constant 9.99999997E-7 : f32
    %171 = vector.broadcast %cst_86 : f32 to vector<1x768xf32>
    %172 = arith.addf %170, %171 : vector<1x768xf32>
    %173 = math.rsqrt %172 : vector<1x768xf32>
    %174 = vector.broadcast %173 : vector<1x768xf32> to vector<8x768xf32>
    %175 = arith.mulf %165, %174 : vector<8x768xf32>
    %176 = vector.broadcast %158 : vector<8x1xf32> to vector<8x768xf32>
    %177 = arith.mulf %175, %176 : vector<8x768xf32>
    %178 = vector.broadcast %159 : vector<8x1xf32> to vector<8x768xf32>
    %179 = arith.addf %177, %178 : vector<8x768xf32>
    %c0_87 = arith.constant 0 : index
    %c14 = arith.constant 14 : index
    %180 = vector.load %arg7[%c0_87, %c14] : memref<32x54xf32, #tpu.memory_space<vmem>>, vector<32x8xf32>
    %cst_88 = arith.constant dense<0.000000e+00> : vector<32x768xf32>
    %181 = tpu.matmul %180, %179, %cst_88 {dimension_numbers = #tpu.dot_dimension_numbers<[1], [0], [0], [1], [0, 0, 1, 1], [], []>} : vector<32x8xf32>, vector<8x768xf32>, vector<32x768xf32> -> vector<32x768xf32>
    %c0_89 = arith.constant 0 : index
    %c8_90 = arith.constant 8 : index
    %182 = vector.load %arg8[%c0_89, %c8_90] : memref<32x11xf32, #tpu.memory_space<vmem>>, vector<32x1xf32>
    %183 = vector.broadcast %182 : vector<32x1xf32> to vector<32x768xf32>
    %184 = arith.addf %181, %183 : vector<32x768xf32>
    %cst_91 = arith.constant 5.000000e-01 : f32
    %185 = vector.broadcast %cst_91 : f32 to vector<32x768xf32>
    %186 = arith.mulf %185, %184 : vector<32x768xf32>
    %cst_92 = arith.constant 0.707106769 : f32
    %187 = vector.broadcast %cst_92 : f32 to vector<32x768xf32>
    %188 = arith.mulf %184, %187 : vector<32x768xf32>
    %189 = math.erf %188 : vector<32x768xf32>
    %cst_93 = arith.constant 1.000000e+00 : f32
    %190 = vector.broadcast %cst_93 : f32 to vector<32x768xf32>
    %191 = arith.addf %190, %189 : vector<32x768xf32>
    %192 = arith.mulf %186, %191 : vector<32x768xf32>
    %c0_94 = arith.constant 0 : index
    %c22 = arith.constant 22 : index
    %193 = vector.load %arg7[%c0_94, %c22] : memref<32x54xf32, #tpu.memory_space<vmem>>, vector<8x32xf32>
    %cst_95 = arith.constant dense<0.000000e+00> : vector<8x768xf32>
    %194 = tpu.matmul %193, %192, %cst_95 {dimension_numbers = #tpu.dot_dimension_numbers<[1], [0], [0], [1], [0, 0, 1, 1], [], []>} : vector<8x32xf32>, vector<32x768xf32>, vector<8x768xf32> -> vector<8x768xf32>
    %c0_96 = arith.constant 0 : index
    %c9 = arith.constant 9 : index
    %195 = vector.load %arg8[%c0_96, %c9] : memref<32x11xf32, #tpu.memory_space<vmem>>, vector<8x1xf32>
    %196 = vector.broadcast %195 : vector<8x1xf32> to vector<8x768xf32>
    %197 = arith.addf %194, %196 : vector<8x768xf32>
    %c0_97 = arith.constant 0 : index
    %c10 = arith.constant 10 : index
    %198 = vector.load %arg8[%c0_97, %c10] : memref<32x11xf32, #tpu.memory_space<vmem>>, vector<8x1xf32>
    %199 = vector.broadcast %198 : vector<8x1xf32> to vector<8x768xf32>
    %200 = arith.mulf %199, %197 : vector<8x768xf32>
    %201 = arith.addf %157, %200 : vector<8x768xf32>
    %c0_98 = arith.constant 0 : index
    %c0_99 = arith.constant 0 : index
    %202 = vector.load %arg9[%c0_98, %c0_99] : memref<8x768xf32, #tpu.memory_space<vmem>>, vector<8x768xf32>
    tpu.vector_store %arg9[%c0_98, %c0_99], %201 {strides = array<i32>} : memref<8x768xf32, #tpu.memory_space<vmem>>, vector<8x768xf32>,
    return
  }
  func.func @transform_0(%arg0: i32) -> (i32, i32) {
    %c0_i32 = arith.constant 0 : i32
    %c0_i32_0 = arith.constant 0 : i32
    return %c0_i32, %arg0 : i32, i32
  }
  func.func @transform_1(%arg0: i32) -> (i32, i32) {
    %c0_i32 = arith.constant 0 : i32
    %c0_i32_0 = arith.constant 0 : i32
    return %c0_i32, %arg0 : i32, i32
  }
  func.func @transform_2(%arg0: i32) -> (i32, i32) {
    %c0_i32 = arith.constant 0 : i32
    %c0_i32_0 = arith.constant 0 : i32
    return %c0_i32, %arg0 : i32, i32
  }
  func.func @transform_3(%arg0: i32) -> (i32, i32) {
    %c0_i32 = arith.constant 0 : i32
    %c0_i32_0 = arith.constant 0 : i32
    return %c0_i32, %arg0 : i32, i32
  }
  func.func @transform_4(%arg0: i32) -> (i32, i32) {
    %c0_i32 = arith.constant 0 : i32
    %c0_i32_0 = arith.constant 0 : i32
    %c0_i32_1 = arith.constant 0 : i32
    return %c0_i32, %c0_i32_0 : i32, i32
  }
  func.func @transform_5(%arg0: i32) -> (i32, i32, i32) {
    %c0_i32 = arith.constant 0 : i32
    %c0_i32_0 = arith.constant 0 : i32
    %c0_i32_1 = arith.constant 0 : i32
    %c0_i32_2 = arith.constant 0 : i32
    return %c0_i32, %c0_i32_0, %c0_i32_1 : i32, i32, i32
  }
  func.func @transform_6(%arg0: i32) -> (i32, i32) {
    %c0_i32 = arith.constant 0 : i32
    %c0_i32_0 = arith.constant 0 : i32
    %c0_i32_1 = arith.constant 0 : i32
    return %c0_i32, %c0_i32_0 : i32, i32
  }
  func.func @transform_7(%arg0: i32) -> (i32, i32) {
    %c0_i32 = arith.constant 0 : i32
    %c0_i32_0 = arith.constant 0 : i32
    %c0_i32_1 = arith.constant 0 : i32
    return %c0_i32, %c0_i32_0 : i32, i32
  }
  func.func @transform_8(%arg0: i32) -> (i32, i32) {
    %c0_i32 = arith.constant 0 : i32
    %c0_i32_0 = arith.constant 0 : i32
    return %c0_i32, %arg0 : i32, i32
  }
}

</mosaic_0001>

<bundles_post_ra>
// kernel: three_ft3_block_forward.2
= control target key start
LH: loop header
LB: loop body
LE: loop exit
PB: predicated region body
PF: predicated region fallthrough
CT: control target
= control target key end

     0   :  { %s1341_s15 = smov 0   ;;  %s1343_s16 = smov 0   ;;  %s1916_s0 = inlined_call_operand.vmem [shape: f32[8,1536], index: 0, kind: input, shape index: {}]   ;;  %s1917_s1 = inlined_call_operand.vmem [shape: f32[16,9], index: 1, kind: input, shape index: {}]   ;;  %s1918_s2 = inlined_call_operand.vmem [shape: f32[14,4], index: 2, kind: input, shape index: {}]   ;;  %s1919_s3 = inlined_call_operand.vmem [shape: f32[2,1536], index: 3, kind: output, shape index: {0}]   ;;  %s1920_s4 = inlined_call_operand.vmem [shape: f32[14,1536], index: 4, kind: output, shape index: {1}]  }
   0x1   :  { %s1345_s17 = smov 0  }
   0x2 LB: > { %s1354_s18 = sadd.s32 4294967295, %s1303_s17   ;;  %s1356_s19 = sadd.s32 1, %s1303_s17   ;;  %s1303_s17 = sphi %s1345_s17, %s1934_s17   ;;  %s1299_s16 = sphi %s1343_s16, %s1933_s16   ;;  %s1295_s15 = sphi %s1341_s15, %s1932_s15  }
   0x3   : > { %s113_s20 = ssub.s32 %s1303_s17, %s1356_s19  ;;  %s116_s21 = sadd.s32 1, %s1299_s16 }
   0x4   : > { %p114_p0 = scmp.eq.s32.totalorder %s113_s20, 0  ;;  %p126_p1 = scmp.ne.s32.totalorder %s1299_s16, %s1295_s15 }
   0x5   : > { %p127_p2 = scmp.eq.s32.totalorder %s1354_s18, 1  ;;  %p1179_p3 = scmp.ge.s32.totalorder %s1303_s17, 1 }
   0x6   : > { %s1364_s22 = scalar_select %p114_p0, %s1299_s16, %s116_s21  }
   0x7   : > { %p1366_p4 = por %p127_p2, %p126_p1  ;;  %p166_p5 = scmp.lt.s32.totalorder %s1303_s17, 3 }
   0x9   : > { %p167_p6 = pnand %p1179_p3, %p166_p5 }
   0xa   : > { %s196_s6 = smul.u32 (!%p167_p6), 6, %s1354_s18  ;;  %s193_s21 = sand.u32 (!%p167_p6), 1, %s1295_s15  }
   0xb   : > { %170 = sbr.rel (%p167_p6) target bundleno = 376 (0x178), region = 32 }
   0xc   : > { %p197_p7 = scmp.lt.s32.totalorder (!%p167_p6), %s196_s6, 11  ;;  %s1200_s24 = smul.u32 (!%p167_p6), 96, %s193_s21 }
   0xe   : > { %s1844_s15 = scalar_lea.vmem (!%p167_p6), [#allocation2], %s1200_s24 }
  0x10   : > { %v1373_v0 = vld [vmem:[%s1917_s1 + $0xa] sm:$0x3f]  ;;  %v1378_v1 = vld [vmem:[%s1918_s2] sm:$0xff]  ;;  %v1305_v2 = vmov 8   ;;  %v1306_v3 = vmov 0   ;;  %v1307_v6 = vmov 1  }
  0x11   : > { %1238 = vset.pattern.permute.xlu1 %v1305_v2  ;;  %1236 = vset.pattern.permute.xlu0 %v1306_v3  ;;  %v1384_v4 = vld [vmem:[%s1917_s1] sm:$0x3]  ;;  %v1392_v5 = vld [vmem:[%s1917_s1 + $0x2] sm:$0xff]  ;;  %v1308_v7 = vmov 2   ;;  %v1309_v8 = vmov 4   ;;  %s1936_s6 = smov (!%p197_p7, %s196_s6), 11 }
  0x12   : > { %625 = vperm.xlu1 %1238, %v1373_v0   ;;  %394 = vperm.xlu0 %1236, %v1378_v1   ;;  %v1310_v9 = vmov 3   ;;  %s1180_s7 = sshll.u32 %s1936_s6, 3  ;;  %v1311_v10 = vmov 5   ;;  %v1312_v11 = vmov 8.0   ;;  %v1313_v12 = vmov 6   ;;  %s1181_s13 = sshll.u32 %s1936_s6, 1 }
  0x13   : > { %1239 = vset.pattern.permute.xlu2 %v1306_v3  ;;  %1253 = vrcp.f32 %v1312_v11  ;;  %s200_s10 = scalar_lea.vmem %s1916_s0, %s1180_s7  ;;  %v1314_v36 = vmov 7   ;;  %s206_s20 = scalar_lea.vmem %s1919_s3, %s1181_s13 }
  0x14   : > { %418 = vperm.xlu2 %1239, %v1384_v4   ;;  %v211_v13 = vld [vmem:[%s200_s10] sm:$0xff]  ;;  %v212_v14 = vld [vmem:[%s200_s10 + $0x8] sm:$0xff]  ;;  %v1412_v15 = vld [vmem:[%s200_s10 + $0x10] sm:$0xff]  ;;  %s1197_s25 = smul.u32 (%p1366_p4), 48, %s1354_s18 }
  0x15   : > { %v214_v16 = vld [vmem:[%s200_s10 + $0x18] sm:$0xff]  ;;  %v215_v17 = vld [vmem:[%s200_s10 + $0x20] sm:$0xff]  ;;  %v1415_v18 = vld [vmem:[%s200_s10 + $0x28] sm:$0xff]  ;;  %v217_v19 = vrot.slane %v211_v13, 4  ;;  %v223_v20 = vrot.slane %v212_v14, 4  ;;  %v229_v21 = vrot.slane %v1412_v15, 4 }
  0x16   : > { %v235_v22 = vrot.slane %v214_v16, 4  ;;  %v241_v23 = vrot.slane %v215_v17, 4  ;;  %v247_v24 = vrot.slane %v1415_v18, 4  ;;  %s1060_s28 = scalar_lea.vmem (%p1366_p4), %s1920_s4, %s1197_s25 }
  0x17   : > { %v218_v26 = vadd.f32 %v217_v19, %v211_v13  ;;  %v224_v27 = vadd.f32 %v223_v20, %v212_v14  ;;  %v230_v28 = vadd.f32 %v229_v21, %v1412_v15 }
  0x18   : > { %v236_v30 = vadd.f32 %v235_v22, %v214_v16  ;;  %v242_v31 = vadd.f32 %v241_v23, %v215_v17  ;;  %v248_v32 = vadd.f32 %v247_v24, %v1415_v18 }
  0x19   : > { %v1254_v25 = vpop.eup %1253  ;;  %v219_v33 = vrot.slane %v218_v26, 2  ;;  %v225_v34 = vrot.slane %v224_v27, 2  ;;  %v231_v35 = vrot.slane %v230_v28, 2 }
  0x1a   : > { %620 = vperm.xlu1 %1238, %v1392_v5   ;;  %1237 = vset.pattern.permute.xlu0 %v1307_v6  ;;  %v254_v29 = vmul.f32 8.0, %v1254_v25  ;;  %v237_v38 = vrot.slane %v236_v30, 2  ;;  %v243_v39 = vrot.slane %v242_v31, 2  ;;  %v249_v40 = vrot.slane %v248_v32, 2 }
  0x1b   : > { %404 = vperm.xlu0 %1237, %v1378_v1   ;;  %v220_v41 = vadd.f32 %v219_v33, %v218_v26  ;;  %v226_v42 = vadd.f32 %v225_v34, %v224_v27  ;;  %v232_v43 = vadd.f32 %v231_v35, %v230_v28  ;;  %vm258_vm0 = vweird.f32 %v1254_v25 }
  0x1c   : > { %1240 = vset.pattern.permute.xlu2 %v1307_v6  ;;  %v255_v37 = vsub.f32 1.0, %v254_v29  ;;  %v238_v45 = vadd.f32 %v237_v38, %v236_v30  ;;  %v244_v46 = vadd.f32 %v243_v39, %v242_v31  ;;  %v250_v47 = vadd.f32 %v249_v40, %v248_v32 }
  0x1d   : > { %434 = vperm.xlu2 %1240, %v1384_v4   ;;  %v221_v48 = vrot.slane %v220_v41, 1  ;;  %v227_v49 = vrot.slane %v226_v42, 1  ;;  %v233_v50 = vrot.slane %v232_v43, 1 }
  0x1e   : > { %v256_v44 = vmul.f32 %v1254_v25, %v255_v37  ;;  %v239_v52 = vrot.slane %v238_v45, 1  ;;  %v245_v53 = vrot.slane %v244_v46, 1  ;;  %v251_v54 = vrot.slane %v250_v47, 1 }
  0x1f   : > { %v222_v55 = vadd.f32 %v221_v48, %v220_v41  ;;  %v228_v56 = vadd.f32 %v227_v49, %v226_v42  ;;  %v234_v57 = vadd.f32 %v233_v50, %v232_v43 }
  0x20   : > { %v257_v51 = vadd.f32 %v1254_v25, %v256_v44  ;;  %v240_v59 = vadd.f32 %v239_v52, %v238_v45  ;;  %v246_v60 = vadd.f32 %v245_v53, %v244_v46  ;;  %v252_v61 = vadd.f32 %v251_v54, %v250_v47 }
  0x22   : > { %1241 = vset.pattern.permute.xlu1 %v1308_v7  ;;  %v1425_v58 = vsel %vm258_vm0, %v1254_v25, %v257_v51 }
  0x23   : > { %456 = vperm.xlu1 %1241, %v1384_v4   ;;  %1243 = vset.pattern.permute.xlu0 %v1309_v8  ;;  %v260_v62 = vmul.f32 %v1425_v58, %v222_v55  ;;  %v261_v63 = vmul.f32 %v1425_v58, %v228_v56  ;;  %v263_v3 = vmul.f32 %v1425_v58, %v240_v59 }
  0x24   : > { %500 = vperm.xlu0 %1243, %v1384_v4   ;;  %v265_v6 = vmul.f32 %v1425_v58, %v252_v61 }
  0x25   : > { %1242 = vset.pattern.permute.xlu2 %v1310_v9  ;;  %v1433_v8 = vsub.f32 %v211_v13, %v260_v62 }
  0x26   : > { %478 = vperm.xlu2 %1242, %v1384_v4   ;;  %v1449_v21 = vsub.f32 %v1415_v18, %v265_v6 }
  0x27   : > { %v272_v20 = vmul.f32 %v1433_v8, %v1433_v8 }
  0x2b   : > { %1244 = vset.pattern.permute.xlu1 %v1311_v10  ;;  %v1435_v10 = vsub.f32 %v212_v14, %v261_v63 }
  0x2c   : > { %522 = vperm.xlu1 %1244, %v1384_v4   ;;  %1248 = vset.pattern.permute.xlu0 %v1308_v7 }
  0x2d   : > { %990 = vperm.xlu0 %1248, %v1378_v1   ;;  %v273_v13 = vmul.f32 %v1435_v10, %v1435_v10 }
  0x2e   : > { %1245 = vset.pattern.permute.xlu2 %v1313_v12  ;;  %v1441_v12 = vsub.f32 %v214_v16, %v263_v3  ;;  %v278_v16 = vrot.slane %v272_v20, 4 }
  0x2f   : > { %544 = vperm.xlu2 %1245, %v1384_v4   ;;  %v284_v18 = vrot.slane %v273_v13, 4 }
  0x30   : > { %v275_v14 = vmul.f32 %v1441_v12, %v1441_v12  ;;  %v279_v24 = vadd.f32 %v278_v16, %v272_v20 }
  0x31   : > { %v285_v26 = vadd.f32 %v284_v18, %v273_v13 }
  0x32   : > { %v296_v23 = vrot.slane %v275_v14, 4  ;;  %v280_v29 = vrot.slane %v279_v24, 2 }
  0x33   : > { %v286_v31 = vrot.slane %v285_v26, 2 }
  0x34   : > { %1246 = vset.pattern.permute.xlu1 %v1314_v36  ;;  %v297_v28 = vadd.f32 %v296_v23, %v275_v14  ;;  %v281_v35 = vadd.f32 %v280_v29, %v279_v24 }
  0x35   : > { %566 = vperm.xlu1 %1246, %v1384_v4   ;;  %1252 = vset.pattern.permute.xlu0 %v1310_v9  ;;  %v287_v37 = vadd.f32 %v286_v31, %v285_v26 }
  0x36   : > { %v298_v34 = vrot.slane %v297_v28, 2  ;;  %v282_v41 = vrot.slane %v281_v35, 1 }
  0x37   : > { %1247 = vset.pattern.permute.xlu2 %v1305_v2  ;;  %v262_v2 = vmul.f32 %v1425_v58, %v234_v57  ;;  %v288_v43 = vrot.slane %v287_v37, 1 }
  0x38   : > { %588 = vperm.xlu2 %1247, %v1384_v4   ;;  %v264_v4 = vmul.f32 %v1425_v58, %v246_v60  ;;  %v299_v40 = vadd.f32 %v298_v34, %v297_v28  ;;  %v283_v47 = vadd.f32 %v282_v41, %v281_v35 }
  0x39   : > { %v1439_v11 = vsub.f32 %v1412_v15, %v262_v2  ;;  %v289_v49 = vadd.f32 %v288_v43, %v287_v37 }
  0x3a   : > { %v1443_v19 = vsub.f32 %v215_v17, %v264_v4  ;;  %v277_v17 = vmul.f32 %v1449_v21, %v1449_v21  ;;  %v300_v46 = vrot.slane %v299_v40, 1  ;;  %v314_v54 = vmul.f32 %v283_v47, %v1425_v58 }
  0x3b   : > { %v315_v56 = vmul.f32 %v289_v49, %v1425_v58 }
  0x3c   : > { %v276_v15 = vmul.f32 %v1443_v19, %v1443_v19  ;;  %v301_v52 = vadd.f32 %v300_v46, %v299_v40  ;;  %v320_v61 = vadd.f32 1e-06, %v314_v54 }
  0x3d   : > { %1249 = vset.pattern.permute.xlu1 %v1308_v7  ;;  %v274_v7 = vmul.f32 %v1439_v11, %v1439_v11  ;;  %v321_v63 = vadd.f32 1e-06, %v315_v56 }
  0x3e   : > { %v302_v25 = vrot.slane %v276_v15, 4  ;;  %v317_v59 = vmul.f32 %v301_v52, %v1425_v58  ;;  %1255 = vrsqrt.f32 %v320_v61  ;;  %vm332_vm1 = vweird.f32 %v320_v61 }
  0x3f   : > { %v290_v22 = vrot.slane %v274_v7, 4  ;;  %1257 = vrsqrt.f32 %v321_v63  ;;  %vm342_vm3 = vweird.f32 %v321_v63 }
  0x40   : > { %1250 = vset.pattern.permute.xlu2 %v1310_v9  ;;  %v303_v30 = vadd.f32 %v302_v25, %v276_v15  ;;  %v323_v3 = vadd.f32 1e-06, %v317_v59 }
  0x41   : > { %1011 = vperm.xlu2 %1250, %v1378_v1   ;;  %v308_v1 = vrot.slane %v277_v17, 4  ;;  %v291_v27 = vadd.f32 %v290_v22, %v274_v7 }
  0x42   : > { %v304_v36 = vrot.slane %v303_v30, 2  ;;  %vm362_vm8 = vweird.f32 %v323_v3 }
  0x43   : > { %v309_v32 = vadd.f32 %v308_v1, %v277_v17  ;;  %v292_v33 = vrot.slane %v291_v27, 2 }
  0x44   : > { %v305_v42 = vadd.f32 %v304_v36, %v303_v30  ;;  %v1468_v20 = vpop.eup %1255 }
  0x45   : > { %v310_v38 = vrot.slane %v309_v32, 2  ;;  %v293_v39 = vadd.f32 %v292_v33, %v291_v27  ;;  %v1470_v13 = vpop.eup %1257  ;;  %v327_v16 = vmul.f32 %v1468_v20, %v320_v61  ;;  %vm333_vm2 = vweird.f32 %v1468_v20 }
  0x46   : > { %v306_v48 = vrot.slane %v305_v42, 1  ;;  %v337_v17 = vmul.f32 %v1470_v13, %v321_v63  ;;  %vm343_vm4 = vweird.f32 %v1470_v13  ;;  %vm1499_vm7 = vmor %vm332_vm1, %vm333_vm2 }
  0x47   : > { %v311_v44 = vadd.f32 %v310_v38, %v309_v32  ;;  %v294_v45 = vrot.slane %v293_v39, 1  ;;  %v328_v26 = vmul.f32 %v1468_v20, %v327_v16  ;;  %vm1504_vm10 = vmor %vm342_vm3, %vm343_vm4  ;;  %vm628_vm3 = vcmask 64512  }
  0x48   : > { %v307_v53 = vadd.f32 %v306_v48, %v305_v42  ;;  %v338_v1 = vmul.f32 %v1470_v13, %v337_v17  ;;  %vm607_vm4 = vcmask 1041408  }
  0x49   : > { %v312_v50 = vrot.slane %v311_v44, 1  ;;  %v295_v51 = vadd.f32 %v294_v45, %v293_v39  ;;  %v329_v31 = vmul.f32 0.5, %v328_v26 }
  0x4a   : > { %v318_v60 = vmul.f32 %v307_v53, %v1425_v58  ;;  %v339_v32 = vmul.f32 0.5, %v338_v1 }
  0x4b   : > { %v313_v55 = vadd.f32 %v312_v50, %v311_v44  ;;  %v316_v57 = vmul.f32 %v295_v51, %v1425_v58  ;;  %v330_v38 = vsub.f32 1.5, %v329_v31 }
  0x4c   : > { %v324_v4 = vadd.f32 1e-06, %v318_v60  ;;  %v340_v39 = vsub.f32 1.5, %v339_v32 }
  0x4d   : > { %v319_v62 = vmul.f32 %v313_v55, %v1425_v58  ;;  %v322_v2 = vadd.f32 1e-06, %v316_v57  ;;  %v331_v47 = vmul.f32 %v1468_v20, %v330_v38 }
  0x4e   : > { %vm372_vm11 = vweird.f32 %v324_v4  ;;  %v341_v48 = vmul.f32 %v1470_v13, %v340_v39 }
  0x4f   : > { %v325_v6 = vadd.f32 1e-06, %v319_v62  ;;  %1259 = vrsqrt.f32 %v322_v2  ;;  %vm352_vm5 = vweird.f32 %v322_v2  ;;  %v335_v57 = vsel %vm1499_vm7, %v1468_v20, %v331_v47 }
  0x50   : > { %1261 = vrsqrt.f32 %v323_v3  ;;  %v345_v59 = vsel %vm1504_vm10, %v1470_v13, %v341_v48  ;;  %vm771_vm7 = vcmask 1045504  }
  0x51   : > { %1263 = vrsqrt.f32 %v324_v4  ;;  %vm382_vm14 = vweird.f32 %v325_v6 }
  0x52   : > { %1265 = vrsqrt.f32 %v325_v6 }
  0x55   : > { %v1472_v7 = vpop.eup %1259 }
  0x56   : > { %v1474_v14 = vpop.eup %1261  ;;  %v347_v22 = vmul.f32 %v1472_v7, %v322_v2  ;;  %vm353_vm6 = vweird.f32 %v1472_v7 }
  0x57   : > { %v1476_v58 = vpop.eup %1263  ;;  %v357_v23 = vmul.f32 %v1474_v14, %v323_v3  ;;  %vm363_vm9 = vweird.f32 %v1474_v14  ;;  %vm1509_vm13 = vmor %vm352_vm5, %vm353_vm6  ;;  %v386_v3 = vmul.f32 %v335_v57, %v1433_v8  ;;  %vm609_vm5 = vcmask 1045508  }
  0x58   : > { %v1478_v15 = vpop.eup %1265  ;;  %v367_v24 = vmul.f32 %v1476_v58, %v324_v4  ;;  %v348_v27 = vmul.f32 %v1472_v7, %v347_v22  ;;  %vm373_vm12 = vweird.f32 %v1476_v58  ;;  %vm1518_vm0 = vmor %vm362_vm8, %vm363_vm9  ;;  %v387_v4 = vmul.f32 %v345_v59, %v1435_v10 }
  0x59   : > { %v377_v25 = vmul.f32 %v1478_v15, %v325_v6  ;;  %v358_v28 = vmul.f32 %v1474_v14, %v357_v23  ;;  %vm383_vm15 = vweird.f32 %v1478_v15  ;;  %vm1523_vm1 = vmor %vm372_vm11, %vm373_vm12  ;;  %vm611_vm6 = vcmask 1043456  }
  0x5a   : > { %v368_v29 = vmul.f32 %v1476_v58, %v367_v24  ;;  %v349_v33 = vmul.f32 0.5, %v348_v27  ;;  %vm384_vm2 = vmor %vm382_vm14, %vm383_vm15 }
  0x5b   : > { %v378_v30 = vmul.f32 %v1478_v15, %v377_v25  ;;  %v359_v34 = vmul.f32 0.5, %v358_v28 }
  0x5c   : > { %v369_v35 = vmul.f32 0.5, %v368_v29  ;;  %v350_v40 = vsub.f32 1.5, %v349_v33 }
  0x5d   : > { %v379_v36 = vmul.f32 0.5, %v378_v30  ;;  %v360_v41 = vsub.f32 1.5, %v359_v34 }
  0x5e   : > { %v370_v43 = vsub.f32 1.5, %v369_v35  ;;  %v351_v49 = vmul.f32 %v1472_v7, %v350_v40 }
  0x5f   : > { %v380_v44 = vsub.f32 1.5, %v379_v36  ;;  %v361_v50 = vmul.f32 %v1474_v14, %v360_v41 }
  0x60   : > { %v371_v52 = vmul.f32 %v1476_v58, %v370_v43  ;;  %v355_v60 = vsel %vm1509_vm13, %v1472_v7, %v351_v49 }
  0x61   : > { %v381_v54 = vmul.f32 %v1478_v15, %v380_v44  ;;  %v365_v61 = vsel %vm1518_vm0, %v1474_v14, %v361_v50  ;;  %v388_v6 = vmul.f32 %v355_v60, %v1439_v11 }
  0x62   : > { %v375_v63 = vsel %vm1523_vm1, %v1476_v58, %v371_v52  ;;  %v389_v20 = vmul.f32 %v365_v61, %v1441_v12 }
  0x63   : > { %v385_v2 = vsel %vm384_vm2, %v1478_v15, %v381_v54  ;;  %v390_v13 = vmul.f32 %v375_v63, %v1443_v19 }
  0x64   : > { %v391_v7 = vmul.f32 %v385_v2, %v1449_v21 }
  0x6e   : > { %v1482_v18 = vpop.permute.xlu2 %418 }
  0x77   : > { %v1494_v37 = vpop.permute.xlu2 %434 }
  0x80   : > { %v1542_v62 = vpop.permute.xlu2 %478 }
  0x84   : > { %v395_v55 = vpop.permute.xlu0 %394  ;;  %v1528_v56 = vpop.permute.xlu1 %625 }
  0x85   : > { %v397_v14 = vmul.f32 %v395_v55, %v386_v3  ;;  %v398_v16 = vmul.f32 %v395_v55, %v387_v4  ;;  %v399_v17 = vmul.f32 %v395_v55, %v388_v6  ;;  %v400_v22 = vmul.f32 %v395_v55, %v389_v20 }
  0x86   : > { %v401_v23 = vmul.f32 %v395_v55, %v390_v13  ;;  %v402_v58 = vmul.f32 %v395_v55, %v391_v7 }
  0x89   : > { %v1568_v25 = vpop.permute.xlu2 %544 }
  0x8c   : > { %v1554_v24 = vpop.permute.xlu1 %620 }
  0x8d   : > { %v405_v15 = vpop.permute.xlu0 %404 }
  0x8e   : > { %v1556_v8 = vadd.f32 %v405_v15, %v397_v14  ;;  %v1558_v10 = vadd.f32 %v405_v15, %v398_v16  ;;  %v1560_v11 = vadd.f32 %v405_v15, %v399_v17  ;;  %v1562_v12 = vadd.f32 %v405_v15, %v400_v22 }
  0x8f   : > { %v1564_v19 = vadd.f32 %v405_v15, %v401_v23  ;;  %v1566_v21 = vadd.f32 %v405_v15, %v402_v58 }
  0x90   : > { %648 = vmatpush.msra.mxu0 %v1556_v8  ;;  %1198 = vmatpush.msra.mxu2 %v1556_v8  ;;  %v547_v26 = vperm.slane %v1556_v8, 6  ;;  %v548_v1 = vperm.slane %v1558_v10, 6  ;;  %v549_v27 = vperm.slane %v1560_v11, 6  ;;  %v550_v28 = vperm.slane %v1562_v12, 6 }
  0x91   : > { %671 = vmatpush.msra.mxu1 %v1558_v10  ;;  %1199 = vmatpush.msra.mxu3 %v1558_v10  ;;  %v421_v29 = vperm.slane %v1556_v8, 0  ;;  %v422_v30 = vperm.slane %v1558_v10, 0  ;;  %v551_v31 = vperm.slane %v1564_v19, 6  ;;  %v552_v32 = vperm.slane %v1566_v21, 6 }
  0x92   : > { %v1583_v33 = vmul.f32 %v547_v26, %v1568_v25  ;;  %v1586_v34 = vmul.f32 %v548_v1, %v1568_v25  ;;  %1182 = vmatmul.msk.f32.vlgmr.msra.gmra.mxu0 %vm628_vm3, %v1392_v5  ;;  %v1591_v35 = vmul.f32 %v549_v27, %v1568_v25  ;;  %v1594_v36 = vmul.f32 %v550_v28, %v1568_v25 }
  0x93   : > { %1183 = vmatmul.msk.f32.vlgmr.msra.gmra.mxu2 %vm628_vm3, %v1373_v0  ;;  %1184 = vmatmul.msk.f32.vlgmr.msra.gmra.mxu1 %vm628_vm3, %v1392_v5  ;;  %v423_v38 = vperm.slane %v1560_v11, 0  ;;  %v424_v39 = vperm.slane %v1562_v12, 0  ;;  %v425_v40 = vperm.slane %v1564_v19, 0  ;;  %v426_v41 = vperm.slane %v1566_v21, 0 }
  0x94   : > { %1185 = vmatmul.msk.f32.vlgmr.msra.gmra.mxu3 %vm628_vm3, %v1373_v0  ;;  %694 = vmatpush.msrb.mxu2 %v1560_v11  ;;  %v427_v42 = vmul.f32 %v421_v29, %v1482_v18  ;;  %v428_v43 = vmul.f32 %v422_v30, %v1482_v18  ;;  %v437_v46 = vperm.slane %v1556_v8, 1  ;;  %v438_v47 = vperm.slane %v1558_v10, 1 }
  0x95   : > { %717 = vmatpush.msrb.mxu3 %v1562_v12  ;;  %740 = vmatpush.msrb.mxu0 %v1564_v19  ;;  %v429_v44 = vmul.f32 %v423_v38, %v1482_v18  ;;  %v430_v45 = vmul.f32 %v424_v39, %v1482_v18  ;;  %v431_v48 = vmul.f32 %v425_v40, %v1482_v18  ;;  %v439_v50 = vperm.slane %v1560_v11, 1  ;;  %v457_v52 = vpop.permute.xlu1 %456 }
  0x96   : > { %763 = vmatpush.msrb.mxu1 %v1566_v21  ;;  %v432_v49 = vmul.f32 %v426_v41, %v1482_v18  ;;  %v440_v51 = vperm.slane %v1562_v12, 1  ;;  %v441_v53 = vperm.slane %v1564_v19, 1  ;;  %v442_v54 = vperm.slane %v1566_v21, 1 }
  0x97   : > { %v443_v55 = vmul.f32 %v437_v46, %v1494_v37  ;;  %v444_v57 = vmul.f32 %v438_v47, %v1494_v37  ;;  %v445_v59 = vmul.f32 %v439_v50, %v1494_v37  ;;  %v459_v61 = vperm.slane %v1556_v8, 2 }
  0x98   : > { %v446_v60 = vmul.f32 %v440_v51, %v1494_v37  ;;  %v460_v18 = vperm.slane %v1558_v10, 2  ;;  %v447_v63 = vmul.f32 %v441_v53, %v1494_v37  ;;  %v448_v2 = vmul.f32 %v442_v54, %v1494_v37  ;;  %v210_v37 = vld [vmem:[%s1918_s2 + $0x8] sm:$0x3f]  ;;  %v501_v53 = vpop.permute.xlu0 %500 }
  0x99   : > { %v449_v3 = vadd.f32 %v443_v55, %v427_v42  ;;  %v450_v4 = vadd.f32 %v444_v57, %v428_v43  ;;  %v451_v6 = vadd.f32 %v445_v59, %v429_v44  ;;  %v461_v13 = vperm.slane %v1560_v11, 2  ;;  %995 = vperm.xlu1 %1249, %v210_v37  }
  0x9a   : > { %v452_v20 = vadd.f32 %v446_v60, %v430_v45  ;;  %v462_v7 = vperm.slane %v1562_v12, 2  ;;  %1190 = vmatmul.msk.f32.vlgmr.msrb.gmra.mxu0 %vm628_vm3, %v1392_v5  ;;  %v453_v14 = vadd.f32 %v447_v63, %v431_v48  ;;  %v454_v16 = vadd.f32 %v448_v2, %v432_v49 }
  0x9b   : > { %v463_v17 = vperm.slane %v1564_v19, 2  ;;  %v464_v22 = vperm.slane %v1566_v21, 2  ;;  %1186 = vmatmul.msk.f32.vlgmr.msrb.gmra.mxu2 %vm628_vm3, %v1392_v5  ;;  %1192 = vmatmul.msk.f32.vlgmr.msrb.gmra.mxu1 %vm628_vm3, %v1392_v5  ;;  %v465_v23 = vmul.f32 %v459_v61, %v457_v52  ;;  %v466_v58 = vmul.f32 %v460_v18, %v457_v52 }
  0x9c   : > { %v467_v15 = vmul.f32 %v461_v13, %v457_v52  ;;  %v468_v26 = vmul.f32 %v462_v7, %v457_v52  ;;  %1188 = vmatmul.msk.f32.vlgmr.msrb.gmra.mxu3 %vm628_vm3, %v1392_v5  ;;  %v481_v28 = vperm.slane %v1556_v8, 3  ;;  %v482_v29 = vperm.slane %v1558_v10, 3 }
  0x9d   : > { %v469_v1 = vmul.f32 %v463_v17, %v457_v52  ;;  %v470_v27 = vmul.f32 %v464_v22, %v457_v52  ;;  %v471_v30 = vadd.f32 %v465_v23, %v449_v3  ;;  %v472_v38 = vadd.f32 %v466_v58, %v450_v4 }
  0x9e   : > { %v473_v39 = vadd.f32 %v467_v15, %v451_v6  ;;  %v474_v40 = vadd.f32 %v468_v26, %v452_v20  ;;  %v483_v43 = vperm.slane %v1560_v11, 3  ;;  %v484_v44 = vperm.slane %v1562_v12, 3  ;;  %v523_v52 = vpop.permute.xlu1 %522 }
  0x9f   : > { %v475_v41 = vadd.f32 %v469_v1, %v453_v14  ;;  %v476_v42 = vadd.f32 %v470_v27, %v454_v16  ;;  %v485_v45 = vperm.slane %v1564_v19, 3  ;;  %v486_v5 = vperm.slane %v1566_v21, 3 }
  0xa0   : > { %v487_v46 = vmul.f32 %v481_v28, %v1542_v62  ;;  %v488_v47 = vmul.f32 %v482_v29, %v1542_v62  ;;  %v489_v48 = vmul.f32 %v483_v43, %v1542_v62  ;;  %v490_v49 = vmul.f32 %v484_v44, %v1542_v62 }
  0xa1   : > { %v503_v50 = vperm.slane %v1556_v8, 4  ;;  %v504_v51 = vperm.slane %v1558_v10, 4  ;;  %v491_v54 = vmul.f32 %v485_v45, %v1542_v62  ;;  %v492_v55 = vmul.f32 %v486_v5, %v1542_v62  ;;  %1251 = vset.pattern.permute.xlu1 %v1310_v9 }
  0xa2   : > { %v493_v57 = vadd.f32 %v487_v46, %v471_v30  ;;  %v494_v59 = vadd.f32 %v488_v47, %v472_v38  ;;  %1191 = vmatmul.msk.f32.gmra.mxu0 %vm628_vm3, %v1373_v0  ;;  %v495_v60 = vadd.f32 %v489_v48, %v473_v39  ;;  %v496_v61 = vadd.f32 %v490_v49, %v474_v40 }
  0xa3   : > { %v505_v18 = vperm.slane %v1560_v11, 4  ;;  %v506_v63 = vperm.slane %v1562_v12, 4  ;;  %1187 = vmatmul.msk.f32.gmra.mxu2 %vm628_vm3, %v1373_v0  ;;  %1193 = vmatmul.msk.f32.gmra.mxu1 %vm628_vm3, %v1373_v0  ;;  %v497_v2 = vadd.f32 %v491_v54, %v475_v41  ;;  %v498_v3 = vadd.f32 %v492_v55, %v476_v42 }
  0xa4   : > { %v507_v62 = vperm.slane %v1564_v19, 4  ;;  %v508_v4 = vperm.slane %v1566_v21, 4  ;;  %1189 = vmatmul.msk.f32.gmra.mxu3 %vm628_vm3, %v1373_v0  ;;  %v509_v6 = vmul.f32 %v503_v50, %v501_v53  ;;  %v510_v20 = vmul.f32 %v504_v51, %v501_v53  ;;  %1015 = vperm.xlu1 %1251, %v210_v37  }
  0xa5   : > { %v511_v13 = vmul.f32 %v505_v18, %v501_v53  ;;  %v512_v7 = vmul.f32 %v506_v63, %v501_v53  ;;  %v525_v17 = vperm.slane %v1556_v8, 5  ;;  %v526_v22 = vperm.slane %v1558_v10, 5 }
  0xa6   : > { %v513_v14 = vmul.f32 %v507_v62, %v501_v53  ;;  %v514_v16 = vmul.f32 %v508_v4, %v501_v53  ;;  %v515_v23 = vadd.f32 %v509_v6, %v493_v57  ;;  %v516_v58 = vadd.f32 %v510_v20, %v494_v59 }
  0xa7   : > { %v517_v15 = vadd.f32 %v511_v13, %v495_v60  ;;  %v518_v26 = vadd.f32 %v512_v7, %v496_v61  ;;  %v527_v0 = vperm.slane %v1560_v11, 5  ;;  %v528_v28 = vperm.slane %v1562_v12, 5  ;;  %v567_v5 = vpop.permute.xlu1 %566 }
  0xa8   : > { %v519_v1 = vadd.f32 %v513_v14, %v497_v2  ;;  %v520_v27 = vadd.f32 %v514_v16, %v498_v3  ;;  %v529_v29 = vperm.slane %v1564_v19, 5  ;;  %v530_v9 = vperm.slane %v1566_v21, 5  ;;  %v589_v2 = vpop.permute.xlu2 %588 }
  0xa9   : > { %v531_v30 = vmul.f32 %v525_v17, %v523_v52  ;;  %v532_v38 = vmul.f32 %v526_v22, %v523_v52  ;;  %v533_v39 = vmul.f32 %v527_v0, %v523_v52  ;;  %v534_v40 = vmul.f32 %v528_v28, %v523_v52 }
  0xaa   : > { %v569_v37 = vperm.slane %v1556_v8, 7  ;;  %v570_v41 = vperm.slane %v1558_v10, 7  ;;  %v535_v42 = vmul.f32 %v529_v29, %v523_v52  ;;  %v536_v43 = vmul.f32 %v530_v9, %v523_v52 }
  0xab   : > { %v537_v44 = vadd.f32 %v531_v30, %v515_v23  ;;  %v538_v45 = vadd.f32 %v532_v38, %v516_v58  ;;  %v539_v46 = vadd.f32 %v533_v39, %v517_v15  ;;  %v540_v47 = vadd.f32 %v534_v40, %v518_v26 }
  0xac   : > { %v571_v48 = vperm.slane %v1560_v11, 7  ;;  %v572_v49 = vperm.slane %v1562_v12, 7  ;;  %v541_v50 = vadd.f32 %v535_v42, %v519_v1  ;;  %v542_v51 = vadd.f32 %v536_v43, %v520_v27 }
  0xad   : > { %v573_v53 = vperm.slane %v1564_v19, 7  ;;  %v574_v54 = vperm.slane %v1566_v21, 7  ;;  %v575_v8 = vmul.f32 %v569_v37, %v567_v5  ;;  %v576_v55 = vmul.f32 %v570_v41, %v567_v5 }
  0xae   : > { %v577_v10 = vmul.f32 %v571_v48, %v567_v5  ;;  %v578_v57 = vmul.f32 %v572_v49, %v567_v5  ;;  %v557_v52 = vmul.f32 %v551_v31, %v1568_v25  ;;  %v558_v11 = vmul.f32 %v552_v32, %v1568_v25 }
  0xaf   : > { %v579_v12 = vmul.f32 %v573_v53, %v567_v5  ;;  %v580_v59 = vmul.f32 %v574_v54, %v567_v5  ;;  %v559_v60 = vadd.f32 %v1583_v33, %v537_v44  ;;  %v560_v61 = vadd.f32 %v1586_v34, %v538_v45 }
  0xb0   : > { %v561_v18 = vadd.f32 %v1591_v35, %v539_v46  ;;  %v562_v63 = vadd.f32 %v1594_v36, %v540_v47  ;;  %v563_v3 = vadd.f32 %v557_v52, %v541_v50  ;;  %v564_v62 = vadd.f32 %v558_v11, %v542_v51 }
  0xb1   : > { %v581_v19 = vadd.f32 %v575_v8, %v559_v60  ;;  %v582_v31 = vadd.f32 %v576_v55, %v560_v61  ;;  %v1315_v15 = vmov 14.0  }
  0xb2   : > { %v583_v4 = vadd.f32 %v577_v10, %v561_v18  ;;  %v584_v6 = vadd.f32 %v578_v57, %v562_v63  ;;  %v585_v21 = vadd.f32 %v579_v12, %v563_v3  ;;  %v586_v25 = vadd.f32 %v580_v59, %v564_v62 }
  0xb3   : > { %v592_v32 = vadd.f32 %v589_v2, %v582_v31  ;;  %v591_v34 = vadd.f32 %v589_v2, %v581_v19  ;;  %1267 = vrcp.f32 %v1315_v15 }
  0xb4   : > { %v593_v20 = vadd.f32 %v589_v2, %v583_v4  ;;  %v594_v13 = vadd.f32 %v589_v2, %v584_v6  ;;  %v596_v33 = vadd.f32 %v589_v2, %v586_v25  ;;  %v595_v14 = vadd.f32 %v589_v2, %v585_v21 }
  0xb5   : > { %v603_v35 = vrot.slane %v592_v32, 6 }
  0xb6   : > { %v604_v36 = vrot.slane %v593_v20, 4  ;;  %v605_v7 = vrot.slane %v594_v13, 2  ;;  %v606_v16 = vrot.slane %v596_v33, 6 }
  0xb7   : > { %v608_v17 = vsel %vm607_vm4, %v591_v34, %v603_v35 }
  0xb8   : > { %v610_v22 = vsel %vm609_vm5, %v604_v36, %v605_v7  ;;  %v613_v58 = vsel %vm607_vm4, %v595_v14, %v606_v16 }
  0xb9   : > { %v612_v23 = vsel %vm611_vm6, %v608_v17, %v610_v22  ;;  %617 = vst [vmem:[%s206_s20 + $0x8] sm:$0xf] %v613_v58  ;;  %v1268_v27 = vpop.eup %1267 }
  0xba   : > { %616 = vst [vmem:[%s206_s20] sm:$0xff] %v612_v23  ;;  %v821_v0 = vmul.f32 14.0, %v1268_v27  ;;  %vm825_vm8 = vweird.f32 %v1268_v27 }
  0xbc   : > { %v822_v42 = vsub.f32 1.0, %v821_v0 }
  0xbe   : > { %v823_v46 = vmul.f32 %v1268_v27, %v822_v42 }
  0xc0   : > { %v824_v10 = vadd.f32 %v1268_v27, %v823_v46 }
  0xc2   : > { %v1716_v62 = vsel %vm825_vm8, %v1268_v27, %v824_v10 }
 0x10f   : > { %v650_v26 = vpop.f32.mrf.mxu0 }
 0x110   : > { %v673_v1 = vpop.f32.mrf.mxu1  ;;  %v651_v28 = vadd.f32 %v650_v26, %v1554_v24 }
 0x111   : > { %v674_v9 = vadd.f32 %v673_v1, %v1554_v24 }
 0x116   : > { %v653_v29 = vpop.f32.mrf.mxu2 }
 0x117   : > { %v654_v30 = vadd.f32 %v653_v29, %v1528_v56  ;;  %v676_v38 = vpop.f32.mrf.mxu3  ;;  %v742_v39 = vpop.f32.mrf.mxu0 }
 0x118   : > { %v677_v40 = vadd.f32 %v676_v38, %v1528_v56  ;;  %v765_v37 = vpop.f32.mrf.mxu1  ;;  %v743_v52 = vadd.f32 %v742_v39, %v1554_v24 }
 0x119   : > { %v772_v41 = vsel %vm771_vm7, %v654_v30, 0.0  ;;  %v766_v59 = vadd.f32 %v765_v37, %v1554_v24 }
 0x11a   : > { %v773_v43 = vadd.f32 %v772_v41, %v651_v28  ;;  %v780_v44 = vsel %vm771_vm7, %v677_v40, 0.0 }
 0x11b   : > { %v781_v45 = vadd.f32 %v780_v44, %v674_v9 }
 0x11c   : > { %v774_v5 = vrot.slane %v773_v43, 4 }
 0x11d   : > { %v782_v47 = vrot.slane %v781_v45, 4 }
 0x11e   : > { %v775_v48 = vadd.f32 %v774_v5, %v773_v43  ;;  %v696_v49 = vpop.f32.mrf.mxu2 }
 0x11f   : > { %v783_v50 = vadd.f32 %v782_v47, %v781_v45  ;;  %v719_v51 = vpop.f32.mrf.mxu3  ;;  %v745_v53 = vpop.f32.mrf.mxu0  ;;  %v1723_v34 = vadd.f32 %v696_v49, %v1554_v24 }
 0x120   : > { %v776_v54 = vrot.slane %v775_v48, 2  ;;  %v1705_v8 = vadd.f32 %v745_v53, %v1528_v56  ;;  %v768_v55 = vpop.f32.mrf.mxu1  ;;  %v1730_v14 = vadd.f32 %v719_v51, %v1554_v24 }
 0x121   : > { %v784_v57 = vrot.slane %v783_v50, 2  ;;  %v1709_v11 = vadd.f32 %v768_v55, %v1528_v56 }
 0x122   : > { %v777_v12 = vadd.f32 %v776_v54, %v775_v48  ;;  %v804_v60 = vsel %vm771_vm7, %v1705_v8, 0.0 }
 0x123   : > { %v785_v61 = vadd.f32 %v784_v57, %v783_v50  ;;  %v805_v18 = vadd.f32 %v804_v60, %v743_v52  ;;  %v812_v63 = vsel %vm771_vm7, %v1709_v11, 0.0 }
 0x124   : > { %v778_v2 = vrot.slane %v777_v12, 1  ;;  %v813_v3 = vadd.f32 %v812_v63, %v766_v59 }
 0x125   : > { %v786_v19 = vrot.slane %v785_v61, 1  ;;  %v806_v31 = vrot.slane %v805_v18, 4 }
 0x126   : > { %v779_v4 = vadd.f32 %v778_v2, %v777_v12  ;;  %v814_v6 = vrot.slane %v813_v3, 4  ;;  %v699_v21 = vpop.f32.mrf.mxu2 }
 0x127   : > { %v787_v25 = vadd.f32 %v786_v19, %v785_v61  ;;  %v807_v32 = vadd.f32 %v806_v31, %v805_v18  ;;  %v1719_v20 = vadd.f32 %v699_v21, %v1528_v56  ;;  %v722_v13 = vpop.f32.mrf.mxu3 }
 0x128   : > { %v827_v33 = vmul.f32 %v1716_v62, %v779_v4  ;;  %v815_v35 = vadd.f32 %v814_v6, %v813_v3  ;;  %v1726_v36 = vadd.f32 %v722_v13, %v1528_v56 }
 0x129   : > { %v828_v7 = vmul.f32 %v1716_v62, %v787_v25  ;;  %v808_v16 = vrot.slane %v807_v32, 2  ;;  %v788_v17 = vsel %vm771_vm7, %v1719_v20, 0.0 }
 0x12a   : > { %v1734_v22 = vsub.f32 %v651_v28, %v827_v33  ;;  %v1736_v23 = vsub.f32 %v654_v30, %v827_v33  ;;  %v816_v58 = vrot.slane %v815_v35, 2  ;;  %v789_v15 = vadd.f32 %v788_v17, %v1723_v34 }
 0x12b   : > { %v1739_v26 = vsub.f32 %v674_v9, %v828_v7  ;;  %v1741_v56 = vsub.f32 %v677_v40, %v828_v7  ;;  %v809_v1 = vadd.f32 %v808_v16, %v807_v32  ;;  %v796_v24 = vsel %vm771_vm7, %v1726_v36, 0.0 }
 0x12c   : > { %v845_v27 = vmul.f32 %v1734_v22, %v1734_v22  ;;  %v851_v0 = vmul.f32 %v1736_v23, %v1736_v23  ;;  %v817_v28 = vadd.f32 %v816_v58, %v815_v35  ;;  %v790_v29 = vrot.slane %v789_v15, 4 }
 0x12d   : > { %v846_v30 = vmul.f32 %v1739_v26, %v1739_v26  ;;  %v852_v9 = vmul.f32 %v1741_v56, %v1741_v56  ;;  %v810_v38 = vrot.slane %v809_v1, 1  ;;  %v797_v39 = vadd.f32 %v796_v24, %v1730_v14 }
 0x12e   : > { %v857_v40 = vsel %vm771_vm7, %v851_v0, 0.0  ;;  %v818_v37 = vrot.slane %v817_v28, 1  ;;  %v791_v41 = vadd.f32 %v790_v29, %v789_v15 }
 0x12f   : > { %v858_v42 = vadd.f32 %v857_v40, %v845_v27  ;;  %v865_v43 = vsel %vm771_vm7, %v852_v9, 0.0  ;;  %v811_v44 = vadd.f32 %v810_v38, %v809_v1  ;;  %v798_v45 = vrot.slane %v797_v39, 4 }
 0x130   : > { %v866_v5 = vadd.f32 %v865_v43, %v846_v30  ;;  %v819_v46 = vadd.f32 %v818_v37, %v817_v28  ;;  %v792_v47 = vrot.slane %v791_v41, 2 }
 0x131   : > { %v859_v48 = vrot.slane %v858_v42, 4  ;;  %v831_v49 = vmul.f32 %v1716_v62, %v811_v44  ;;  %v799_v50 = vadd.f32 %v798_v45, %v797_v39 }
 0x132   : > { %v867_v51 = vrot.slane %v866_v5, 4  ;;  %v832_v53 = vmul.f32 %v1716_v62, %v819_v46  ;;  %v793_v54 = vadd.f32 %v792_v47, %v791_v41 }
 0x133   : > { %v860_v55 = vadd.f32 %v859_v48, %v858_v42  ;;  %v1758_v10 = vsub.f32 %v743_v52, %v831_v49  ;;  %v1761_v57 = vsub.f32 %v1705_v8, %v831_v49  ;;  %v800_v12 = vrot.slane %v799_v50, 2 }
 0x134   : > { %v868_v60 = vadd.f32 %v867_v51, %v866_v5  ;;  %v1763_v61 = vsub.f32 %v766_v59, %v832_v53  ;;  %v1766_v18 = vsub.f32 %v1709_v11, %v832_v53  ;;  %v794_v63 = vrot.slane %v793_v54, 1 }
 0x135   : > { %v861_v2 = vrot.slane %v860_v55, 2  ;;  %v849_v3 = vmul.f32 %v1758_v10, %v1758_v10  ;;  %v855_v19 = vmul.f32 %v1761_v57, %v1761_v57  ;;  %v801_v52 = vadd.f32 %v800_v12, %v799_v50 }
 0x136   : > { %v869_v31 = vrot.slane %v868_v60, 2  ;;  %v850_v8 = vmul.f32 %v1763_v61, %v1763_v61  ;;  %v856_v59 = vmul.f32 %v1766_v18, %v1766_v18  ;;  %v795_v4 = vadd.f32 %v794_v63, %v793_v54 }
 0x137   : > { %v862_v6 = vadd.f32 %v861_v2, %v860_v55  ;;  %v889_v11 = vsel %vm771_vm7, %v855_v19, 0.0  ;;  %v802_v21 = vrot.slane %v801_v52, 1 }
 0x138   : > { %v870_v25 = vadd.f32 %v869_v31, %v868_v60  ;;  %v890_v32 = vadd.f32 %v889_v11, %v849_v3  ;;  %v897_v13 = vsel %vm771_vm7, %v856_v59, 0.0  ;;  %v829_v33 = vmul.f32 %v1716_v62, %v795_v4 }
 0x139   : > { %v863_v35 = vrot.slane %v862_v6, 1  ;;  %v898_v7 = vadd.f32 %v897_v13, %v850_v8  ;;  %v803_v16 = vadd.f32 %v802_v21, %v801_v52 }
 0x13a   : > { %v871_v17 = vrot.slane %v870_v25, 1  ;;  %v891_v58 = vrot.slane %v890_v32, 4  ;;  %v1780_v15 = vsub.f32 %v1723_v34, %v829_v33  ;;  %v1783_v1 = vsub.f32 %v1719_v20, %v829_v33 }
 0x13b   : > { %v864_v24 = vadd.f32 %v863_v35, %v862_v6  ;;  %v899_v27 = vrot.slane %v898_v7, 4  ;;  %v830_v0 = vmul.f32 %v1716_v62, %v803_v16 }
 0x13c   : > { %v872_v28 = vadd.f32 %v871_v17, %v870_v25  ;;  %v892_v29 = vadd.f32 %v891_v58, %v890_v32  ;;  %v847_v30 = vmul.f32 %v1780_v15, %v1780_v15  ;;  %v853_v9 = vmul.f32 %v1783_v1, %v1783_v1  ;;  %v1811_v32 = vpop.permute.xlu1 %995 }
 0x13d   : > { %v905_v38 = vmul.f32 %v864_v24, %v1716_v62  ;;  %v900_v39 = vadd.f32 %v899_v27, %v898_v7  ;;  %v1792_v34 = vsub.f32 %v1730_v14, %v830_v0  ;;  %v1795_v20 = vsub.f32 %v1726_v36, %v830_v0 }
 0x13e   : > { %v906_v40 = vmul.f32 %v872_v28, %v1716_v62  ;;  %v893_v37 = vrot.slane %v892_v29, 2  ;;  %v873_v41 = vsel %vm771_vm7, %v853_v9, 0.0 }
 0x13f   : > { %v911_v42 = vadd.f32 1e-06, %v905_v38  ;;  %v901_v43 = vrot.slane %v900_v39, 2  ;;  %v874_v44 = vadd.f32 %v873_v41, %v847_v30  ;;  %v848_v45 = vmul.f32 %v1792_v34, %v1792_v34  ;;  %v1821_v41 = vpop.permute.xlu0 %990 }
 0x140   : > { %v912_v5 = vadd.f32 1e-06, %v906_v40  ;;  %v894_v46 = vadd.f32 %v893_v37, %v892_v29  ;;  %v854_v14 = vmul.f32 %v1795_v20, %v1795_v20 }
 0x141   : > { %1269 = vrsqrt.f32 %v911_v42  ;;  %v902_v47 = vadd.f32 %v901_v43, %v900_v39  ;;  %v875_v36 = vrot.slane %v874_v44, 4  ;;  %vm923_vm11 = vweird.f32 %v911_v42 }
 0x142   : > { %1271 = vrsqrt.f32 %v912_v5  ;;  %v895_v48 = vrot.slane %v894_v46, 1  ;;  %v881_v49 = vsel %vm771_vm7, %v854_v14, 0.0  ;;  %vm933_vm13 = vweird.f32 %v912_v5 }
 0x143   : > { %v903_v50 = vrot.slane %v902_v47, 1  ;;  %v876_v51 = vadd.f32 %v875_v36, %v874_v44  ;;  %v882_v53 = vadd.f32 %v881_v49, %v848_v45 }
 0x144   : > { %v896_v54 = vadd.f32 %v895_v48, %v894_v46  ;;  %v1828_v36 = vpop.permute.xlu1 %1015  ;;  %v1830_v48 = vpop.permute.xlu2 %1011 }
 0x145   : > { %v904_v55 = vadd.f32 %v903_v50, %v902_v47  ;;  %v877_v12 = vrot.slane %v876_v51, 2  ;;  %v883_v60 = vrot.slane %v882_v53, 4 }
 0x146   : > { %v909_v63 = vmul.f32 %v896_v54, %v1716_v62 }
 0x147   : > { %v1270_v2 = vpop.eup %1269  ;;  %v910_v3 = vmul.f32 %v904_v55, %v1716_v62  ;;  %v878_v19 = vadd.f32 %v877_v12, %v876_v51  ;;  %v884_v52 = vadd.f32 %v883_v60, %v882_v53 }
 0x148   : > { %v1272_v31 = vpop.eup %1271  ;;  %v918_v8 = vmul.f32 %v1270_v2, %v911_v42  ;;  %v1806_v59 = vadd.f32 1e-06, %v909_v63  ;;  %vm924_vm9 = vweird.f32 %v1270_v2 }
 0x149   : > { %v928_v4 = vmul.f32 %v1272_v31, %v912_v5  ;;  %v1808_v6 = vadd.f32 1e-06, %v910_v3  ;;  %v879_v11 = vrot.slane %v878_v19, 1  ;;  %v885_v25 = vrot.slane %v884_v52, 2  ;;  %vm925_vm12 = vmor %vm923_vm11, %vm924_vm9 }
 0x14a   : > { %v919_v21 = vmul.f32 %v1270_v2, %v918_v8  ;;  %1273 = vrsqrt.f32 %v1806_v59  ;;  %vm934_vm10 = vweird.f32 %v1272_v31  ;;  %vm963_vm1 = vweird.f32 %v1806_v59 }
 0x14b   : > { %v929_v13 = vmul.f32 %v1272_v31, %v928_v4  ;;  %1275 = vrsqrt.f32 %v1808_v6  ;;  %v880_v33 = vadd.f32 %v879_v11, %v878_v19  ;;  %v886_v7 = vadd.f32 %v885_v25, %v884_v52  ;;  %vm935_vm14 = vmor %vm933_vm13, %vm934_vm10 }
 0x14c   : > { %v920_v35 = vmul.f32 0.5, %v919_v21  ;;  %vm973_vm3 = vweird.f32 %v1808_v6 }
 0x14d   : > { %v930_v16 = vmul.f32 0.5, %v929_v13  ;;  %v907_v17 = vmul.f32 %v880_v33, %v1716_v62  ;;  %v887_v24 = vrot.slane %v886_v7, 1 }
 0x14e   : > { %v921_v58 = vsub.f32 1.5, %v920_v35 }
 0x14f   : > { %v931_v27 = vsub.f32 1.5, %v930_v16  ;;  %v1815_v0 = vadd.f32 1e-06, %v907_v17  ;;  %v888_v30 = vadd.f32 %v887_v24, %v886_v7 }
 0x150   : > { %v1274_v28 = vpop.eup %1273  ;;  %v922_v29 = vmul.f32 %v1270_v2, %v921_v58 }
 0x151   : > { %v1276_v9 = vpop.eup %1275  ;;  %v932_v38 = vmul.f32 %v1272_v31, %v931_v27  ;;  %v958_v39 = vmul.f32 %v1274_v28, %v1806_v59  ;;  %1277 = vrsqrt.f32 %v1815_v0  ;;  %v908_v47 = vmul.f32 %v888_v30, %v1716_v62 }
 0x152   : > { %v926_v40 = vsel %vm925_vm12, %v1270_v2, %v922_v29  ;;  %v968_v37 = vmul.f32 %v1276_v9, %v1808_v6  ;;  %vm964_vm15 = vweird.f32 %v1274_v28  ;;  %vm974_vm0 = vweird.f32 %v1276_v9 }
 0x153   : > { %v977_v43 = vmul.f32 %v926_v40, %v1734_v22  ;;  %v983_v42 = vmul.f32 %v926_v40, %v1736_v23  ;;  %v936_v44 = vsel %vm935_vm14, %v1272_v31, %v932_v38  ;;  %v959_v45 = vmul.f32 %v1274_v28, %v958_v39  ;;  %vm965_vm2 = vmor %vm963_vm1, %vm964_vm15 }
 0x154   : > { %v978_v46 = vmul.f32 %v936_v44, %v1739_v26  ;;  %v984_v5 = vmul.f32 %v936_v44, %v1741_v56  ;;  %v969_v14 = vmul.f32 %v1276_v9, %v968_v37  ;;  %v1834_v23 = vadd.f32 1e-06, %v908_v47  ;;  %vm975_vm4 = vmor %vm973_vm3, %vm974_vm0 }
 0x155   : > { %v960_v49 = vmul.f32 0.5, %v959_v45  ;;  %v998_v50 = vmul.f32 %v1821_v41, %v977_v43  ;;  %v1004_v22 = vmul.f32 %v1811_v32, %v983_v42  ;;  %vm943_vm6 = vweird.f32 %v1815_v0 }
 0x156   : > { %v970_v51 = vmul.f32 0.5, %v969_v14  ;;  %v999_v53 = vmul.f32 %v1821_v41, %v978_v46  ;;  %v1005_v26 = vmul.f32 %v1811_v32, %v984_v5  ;;  %1279 = vrsqrt.f32 %v1834_v23 }
 0x157   : > { %v1278_v56 = vpop.eup %1277  ;;  %v961_v54 = vsub.f32 1.5, %v960_v49  ;;  %v1024_v62 = vadd.f32 %v1828_v36, %v1004_v22  ;;  %v1018_v55 = vadd.f32 %v1830_v48, %v998_v50  ;;  %vm953_vm9 = vweird.f32 %v1834_v23 }
 0x158   : > { %v971_v12 = vsub.f32 1.5, %v970_v51  ;;  %v938_v60 = vmul.f32 %v1278_v56, %v1815_v0  ;;  %v1025_v2 = vadd.f32 %v1828_v36, %v1005_v26  ;;  %v1019_v3 = vadd.f32 %v1830_v48, %v999_v53 }
 0x159   : > { %v962_v63 = vmul.f32 %v1274_v28, %v961_v54  ;;  %1036 = vst [vmem:[%s1844_s15 + $0x30] sm:$0x3f] %v1024_v62  ;;  %vm944_vm5 = vweird.f32 %v1278_v56 }
 0x15a   : > { %v972_v19 = vmul.f32 %v1276_v9, %v971_v12  ;;  %v939_v52 = vmul.f32 %v1278_v56, %v938_v60  ;;  %1030 = vst [vmem:[%s1844_s15] sm:$0xff] %v1018_v55  ;;  %vm945_vm7 = vmor %vm943_vm6, %vm944_vm5 }
 0x15b   : > { %v966_v31 = vsel %vm965_vm2, %v1274_v28, %v962_v63  ;;  %1037 = vst [vmem:[%s1844_s15 + $0x38] sm:$0x3f] %v1025_v2 }
 0x15c   : > { %v981_v8 = vmul.f32 %v966_v31, %v1758_v10  ;;  %v987_v59 = vmul.f32 %v966_v31, %v1761_v57  ;;  %v976_v4 = vsel %vm975_vm4, %v1276_v9, %v972_v19  ;;  %v940_v11 = vmul.f32 0.5, %v939_v52  ;;  %1031 = vst [vmem:[%s1844_s15 + $0x8] sm:$0xff] %v1019_v3  ;;  %v1280_v13 = vpop.eup %1279 }
 0x15d   : > { %v982_v21 = vmul.f32 %v976_v4, %v1763_v61  ;;  %v988_v25 = vmul.f32 %v976_v4, %v1766_v18  ;;  %v948_v7 = vmul.f32 %v1280_v13, %v1834_v23  ;;  %vm954_vm8 = vweird.f32 %v1280_v13 }
 0x15e   : > { %v941_v33 = vsub.f32 1.5, %v940_v11  ;;  %v1002_v6 = vmul.f32 %v1821_v41, %v981_v8  ;;  %v1008_v35 = vmul.f32 %v1811_v32, %v987_v59  ;;  %vm955_vm10 = vmor %vm953_vm9, %vm954_vm8 }
 0x15f   : > { %v1003_v10 = vmul.f32 %v1821_v41, %v982_v21  ;;  %v1009_v57 = vmul.f32 %v1811_v32, %v988_v25  ;;  %v949_v17 = vmul.f32 %v1280_v13, %v948_v7 }
 0x160   : > { %v942_v16 = vmul.f32 %v1278_v56, %v941_v33  ;;  %v1028_v61 = vadd.f32 %v1828_v36, %v1008_v35  ;;  %v1022_v18 = vadd.f32 %v1830_v48, %v1002_v6  ;;  %v1085_v47 = vld [vmem:[%s1844_s15 + $0x30] sm:$0xff] (%p1366_p4) }
 0x161   : > { %v1029_v58 = vadd.f32 %v1828_v36, %v1009_v57  ;;  %v1023_v24 = vadd.f32 %v1830_v48, %v1003_v10  ;;  %v950_v30 = vmul.f32 0.5, %v949_v17  ;;  %1086 = vst [vmem:[%s1060_s28 + $0x60] sm:$0xff] (%p1366_p4), %v1085_v47 }
 0x162   : > { %v946_v27 = vsel %vm945_vm7, %v1278_v56, %v942_v16  ;;  %1040 = vst [vmem:[%s1844_s15 + $0x50] sm:$0x3f] %v1028_v61 }
 0x163   : > { %v979_v28 = vmul.f32 %v946_v27, %v1780_v15  ;;  %v985_v29 = vmul.f32 %v946_v27, %v1783_v1  ;;  %1041 = vst [vmem:[%s1844_s15 + $0x58] sm:$0x3f] %v1029_v58  ;;  %v951_v0 = vsub.f32 1.5, %v950_v30 }
 0x164   : > { %1034 = vst [vmem:[%s1844_s15 + $0x20] sm:$0xff] %v1022_v18 }
 0x165   : > { %v1000_v9 = vmul.f32 %v1821_v41, %v979_v28  ;;  %v1006_v38 = vmul.f32 %v1811_v32, %v985_v29  ;;  %1035 = vst [vmem:[%s1844_s15 + $0x28] sm:$0xff] %v1023_v24  ;;  %v952_v39 = vmul.f32 %v1280_v13, %v951_v0 }
 0x167   : > { %v1026_v15 = vadd.f32 %v1828_v36, %v1006_v38  ;;  %v1020_v1 = vadd.f32 %v1830_v48, %v1000_v9  ;;  %v956_v40 = vsel %vm955_vm10, %v1280_v13, %v952_v39 }
 0x168   : > { %v980_v37 = vmul.f32 %v956_v40, %v1792_v34  ;;  %v986_v43 = vmul.f32 %v956_v40, %v1795_v20  ;;  %v1073_v34 = vld [vmem:[%s1844_s15] sm:$0xff] (%p1366_p4)  ;;  %v1075_v20 = vld [vmem:[%s1844_s15 + $0x8] sm:$0xff] (%p1366_p4) }
 0x169   : > { %1038 = vst [vmem:[%s1844_s15 + $0x40] sm:$0x3f] %v1026_v15  ;;  %v1093_v50 = vld [vmem:[%s1844_s15 + $0x50] sm:$0xff] (%p1366_p4) }
 0x16a   : > { %1032 = vst [vmem:[%s1844_s15 + $0x10] sm:$0xff] %v1020_v1  ;;  %v1001_v42 = vmul.f32 %v1821_v41, %v980_v37  ;;  %v1007_v44 = vmul.f32 %v1811_v32, %v986_v43  ;;  %v1095_v22 = vld [vmem:[%s1844_s15 + $0x58] sm:$0xff] (%p1366_p4) }
 0x16b   : > { %1057 = sbr.rel (!%p1366_p4) target bundleno = 376 (0x178), region = 40  ;;  %1074 = vst [vmem:[%s1060_s28] sm:$0xff] (%p1366_p4), %v1073_v34  ;;  %v1081_v5 = vld [vmem:[%s1844_s15 + $0x20] sm:$0xff] (%p1366_p4) }
 0x16c   : > { %v1027_v45 = vadd.f32 %v1828_v36, %v1007_v44  ;;  %v1021_v46 = vadd.f32 %v1830_v48, %v1001_v42  ;;  %1076 = vst [vmem:[%s1060_s28 + $0x8] sm:$0xff] (%p1366_p4), %v1075_v20  ;;  %v1083_v14 = vld [vmem:[%s1844_s15 + $0x28] sm:$0xff] (%p1366_p4)  ;;  %v1087_v36 = vld [vmem:[%s1844_s15 + $0x38] sm:$0xff] (%p1366_p4) }
 0x16d   : > { %1082 = vst [vmem:[%s1060_s28 + $0x20] sm:$0xff] (%p1366_p4), %v1081_v5 }
 0x16e   : > { %1039 = vst [vmem:[%s1844_s15 + $0x48] sm:$0x3f] %v1027_v45 }
 0x16f   : > { %1033 = vst [vmem:[%s1844_s15 + $0x18] sm:$0xff] %v1021_v46 }
 0x170   : > { %1084 = vst [vmem:[%s1060_s28 + $0x28] sm:$0xff] %v1083_v14  ;;  %v1089_v48 = vld [vmem:[%s1844_s15 + $0x40] sm:$0xff] }
 0x171   : > { %v1077_v32 = vld [vmem:[%s1844_s15 + $0x10] sm:$0xff]  ;;  %1088 = vst [vmem:[%s1060_s28 + $0x68] sm:$0xff] %v1087_v36 }
 0x172   : > { %1078 = vst [vmem:[%s1060_s28 + $0x10] sm:$0xff] %v1077_v32 }
 0x173   : > { %1090 = vst [vmem:[%s1060_s28 + $0x70] sm:$0xff] %v1089_v48 }
 0x174   : > { %1094 = vst [vmem:[%s1060_s28 + $0x80] sm:$0xff] %v1093_v50 }
 0x175   : > { %v1091_v49 = vld [vmem:[%s1844_s15 + $0x48] sm:$0xff]  ;;  %1096 = vst [vmem:[%s1060_s28 + $0x88] sm:$0xff] %v1095_v22 }
 0x176   : > { %v1079_v41 = vld [vmem:[%s1844_s15 + $0x18] sm:$0xff]  ;;  %1092 = vst [vmem:[%s1060_s28 + $0x78] sm:$0xff] %v1091_v49 }
 0x177   : > { %1080 = vst [vmem:[%s1060_s28 + $0x18] sm:$0xff] %v1079_v41 }
 0x178 PF: > { %p12_p8 = scmp.ge.s32.totalorder %s1356_s19, 4   ;;  %s1932_s15 = smov %s1299_s16 }
 0x179   : > { %s1933_s16 = smov %s1364_s22  ;;  %s1934_s17 = smov %s1356_s19 }
 0x17a   :  { %14 = sbr.rel (!%p12_p8) target bundleno = 2 (0x2), region = 97 }

// kernel: reverse.1
= control target key start
LH: loop header
LB: loop body
LE: loop exit
PB: predicated region body
PF: predicated region fallthrough
CT: control target
= control target key end

     0   :  { %s680_s0 = inlined_call_operand.vmem [shape: f32[2,14,14,8,2], index: 0, kind: input, shape index: {}]   ;;  %s681_s1 = inlined_call_operand.vmem [shape: f32[2,14,14,8,2], index: 1, kind: output, shape index: {}]  }
   0x1   :  { %v224_v0 = vld [vmem:[%s680_s0 + $0x8] sm:$0xff]  ;;  %v227_v2 = vld [vmem:[%s680_s0 + $0x18] sm:$0xff]  ;;  %v113_v28 = vld [vmem:[%s680_s0] sm:$0xff] }
   0x2   :  { %v225_v1 = vld [vmem:[%s680_s0 + $0xe8] sm:$0xff]  ;;  %4 = vst [vmem:[%s681_s1] sm:$0xff] %v224_v0  ;;  %v229_v3 = vld [vmem:[%s680_s0 + $0xf8] sm:$0xff]  ;;  %v280_v29 = vld [vmem:[%s680_s0 + $0xe0] sm:$0xff] }
   0x3   :  { %226 = vst [vmem:[%s681_s1 + $0xe0] sm:$0xff] %v225_v1  ;;  %v231_v4 = vld [vmem:[%s680_s0 + $0x28] sm:$0xff]  ;;  %v235_v6 = vld [vmem:[%s680_s0 + $0x38] sm:$0xff]  ;;  %v282_v30 = vld [vmem:[%s680_s0 + $0x10] sm:$0xff] }
   0x4   :  { %228 = vst [vmem:[%s681_s1 + $0x10] sm:$0xff] %v227_v2  ;;  %v233_v5 = vld [vmem:[%s680_s0 + $0x108] sm:$0xff]  ;;  %v237_v7 = vld [vmem:[%s680_s0 + $0x118] sm:$0xff]  ;;  %v284_v31 = vld [vmem:[%s680_s0 + $0xf0] sm:$0xff] }
   0x5   :  { %230 = vst [vmem:[%s681_s1 + $0xf0] sm:$0xff] %v229_v3  ;;  %v239_v8 = vld [vmem:[%s680_s0 + $0x48] sm:$0xff]  ;;  %v243_v10 = vld [vmem:[%s680_s0 + $0x58] sm:$0xff]  ;;  %v286_v32 = vld [vmem:[%s680_s0 + $0x20] sm:$0xff] }
   0x6   :  { %232 = vst [vmem:[%s681_s1 + $0x20] sm:$0xff] %v231_v4  ;;  %v241_v9 = vld [vmem:[%s680_s0 + $0x128] sm:$0xff]  ;;  %v245_v11 = vld [vmem:[%s680_s0 + $0x138] sm:$0xff]  ;;  %v288_v33 = vld [vmem:[%s680_s0 + $0x100] sm:$0xff] }
   0x7   :  { %234 = vst [vmem:[%s681_s1 + $0x100] sm:$0xff] %v233_v5  ;;  %v247_v12 = vld [vmem:[%s680_s0 + $0x68] sm:$0xff]  ;;  %v251_v14 = vld [vmem:[%s680_s0 + $0x78] sm:$0xff]  ;;  %v290_v34 = vld [vmem:[%s680_s0 + $0x30] sm:$0xff] }
   0x8   :  { %236 = vst [vmem:[%s681_s1 + $0x30] sm:$0xff] %v235_v6  ;;  %v249_v13 = vld [vmem:[%s680_s0 + $0x148] sm:$0xff]  ;;  %v253_v15 = vld [vmem:[%s680_s0 + $0x158] sm:$0xff]  ;;  %v292_v35 = vld [vmem:[%s680_s0 + $0x110] sm:$0xff] }
   0x9   :  { %238 = vst [vmem:[%s681_s1 + $0x110] sm:$0xff] %v237_v7  ;;  %v255_v16 = vld [vmem:[%s680_s0 + $0x88] sm:$0xff]  ;;  %v259_v18 = vld [vmem:[%s680_s0 + $0x98] sm:$0xff]  ;;  %v294_v36 = vld [vmem:[%s680_s0 + $0x40] sm:$0xff] }
   0xa   :  { %240 = vst [vmem:[%s681_s1 + $0x40] sm:$0xff] %v239_v8  ;;  %v257_v17 = vld [vmem:[%s680_s0 + $0x168] sm:$0xff]  ;;  %v261_v19 = vld [vmem:[%s680_s0 + $0x178] sm:$0xff]  ;;  %v296_v37 = vld [vmem:[%s680_s0 + $0x120] sm:$0xff] }
   0xb   :  { %242 = vst [vmem:[%s681_s1 + $0x120] sm:$0xff] %v241_v9  ;;  %v263_v20 = vld [vmem:[%s680_s0 + $0xa8] sm:$0xff]  ;;  %v267_v22 = vld [vmem:[%s680_s0 + $0xb8] sm:$0xff]  ;;  %v298_v38 = vld [vmem:[%s680_s0 + $0x50] sm:$0xff] }
   0xc   :  { %244 = vst [vmem:[%s681_s1 + $0x50] sm:$0xff] %v243_v10  ;;  %v265_v21 = vld [vmem:[%s680_s0 + $0x188] sm:$0xff]  ;;  %v269_v23 = vld [vmem:[%s680_s0 + $0x198] sm:$0xff]  ;;  %v300_v39 = vld [vmem:[%s680_s0 + $0x130] sm:$0xff] }
   0xd   :  { %246 = vst [vmem:[%s681_s1 + $0x130] sm:$0xff] %v245_v11  ;;  %v271_v24 = vld [vmem:[%s680_s0 + $0xc8] sm:$0xff]  ;;  %v275_v26 = vld [vmem:[%s680_s0 + $0xd8] sm:$0xff]  ;;  %v302_v40 = vld [vmem:[%s680_s0 + $0x60] sm:$0xff] }
   0xe   :  { %248 = vst [vmem:[%s681_s1 + $0x60] sm:$0xff] %v247_v12  ;;  %v273_v25 = vld [vmem:[%s680_s0 + $0x1a8] sm:$0xff]  ;;  %v277_v27 = vld [vmem:[%s680_s0 + $0x1b8] sm:$0xff]  ;;  %v304_v41 = vld [vmem:[%s680_s0 + $0x140] sm:$0xff] }
   0xf   :  { %250 = vst [vmem:[%s681_s1 + $0x140] sm:$0xff] %v249_v13  ;;  %v306_v42 = vld [vmem:[%s680_s0 + $0x70] sm:$0xff]  ;;  %v310_v44 = vld [vmem:[%s680_s0 + $0x80] sm:$0xff] }
  0x10   :  { %252 = vst [vmem:[%s681_s1 + $0x70] sm:$0xff] %v251_v14  ;;  %v308_v43 = vld [vmem:[%s680_s0 + $0x150] sm:$0xff]  ;;  %v312_v45 = vld [vmem:[%s680_s0 + $0x160] sm:$0xff] }
  0x11   :  { %254 = vst [vmem:[%s681_s1 + $0x150] sm:$0xff] %v253_v15  ;;  %v314_v46 = vld [vmem:[%s680_s0 + $0x90] sm:$0xff]  ;;  %v318_v48 = vld [vmem:[%s680_s0 + $0xa0] sm:$0xff] }
  0x12   :  { %256 = vst [vmem:[%s681_s1 + $0x80] sm:$0xff] %v255_v16  ;;  %v316_v47 = vld [vmem:[%s680_s0 + $0x170] sm:$0xff]  ;;  %v320_v49 = vld [vmem:[%s680_s0 + $0x180] sm:$0xff] }
  0x13   :  { %258 = vst [vmem:[%s681_s1 + $0x160] sm:$0xff] %v257_v17  ;;  %v322_v50 = vld [vmem:[%s680_s0 + $0xb0] sm:$0xff]  ;;  %v326_v52 = vld [vmem:[%s680_s0 + $0xc0] sm:$0xff] }
  0x14   :  { %260 = vst [vmem:[%s681_s1 + $0x90] sm:$0xff] %v259_v18  ;;  %v324_v51 = vld [vmem:[%s680_s0 + $0x190] sm:$0xff]  ;;  %v328_v53 = vld [vmem:[%s680_s0 + $0x1a0] sm:$0xff] }
  0x15   :  { %262 = vst [vmem:[%s681_s1 + $0x170] sm:$0xff] %v261_v19  ;;  %v330_v54 = vld [vmem:[%s680_s0 + $0xd0] sm:$0xff] }
  0x16   :  { %264 = vst [vmem:[%s681_s1 + $0xa0] sm:$0xff] %v263_v20  ;;  %v332_v55 = vld [vmem:[%s680_s0 + $0x1b0] sm:$0xff] }
  0x17   :  { %266 = vst [vmem:[%s681_s1 + $0x180] sm:$0xff] %v265_v21 }
  0x18   :  { %268 = vst [vmem:[%s681_s1 + $0xb0] sm:$0xff] %v267_v22 }
  0x19   :  { %270 = vst [vmem:[%s681_s1 + $0x190] sm:$0xff] %v269_v23 }
  0x1a   :  { %272 = vst [vmem:[%s681_s1 + $0xc0] sm:$0xff] %v271_v24 }
  0x1b   :  { %274 = vst [vmem:[%s681_s1 + $0x1a0] sm:$0xff] %v273_v25 }
  0x1c   :  { %276 = vst [vmem:[%s681_s1 + $0xd0] sm:$0xff] %v275_v26 }
  0x1d   :  { %278 = vst [vmem:[%s681_s1 + $0x1b0] sm:$0xff] %v277_v27 }
  0x1e   :  { %279 = vst [vmem:[%s681_s1 + $0x8] sm:$0xff] %v113_v28 }
  0x1f   :  { %281 = vst [vmem:[%s681_s1 + $0xe8] sm:$0xff] %v280_v29 }
  0x20   :  { %283 = vst [vmem:[%s681_s1 + $0x18] sm:$0xff] %v282_v30 }
  0x21   :  { %285 = vst [vmem:[%s681_s1 + $0xf8] sm:$0xff] %v284_v31 }
  0x22   :  { %287 = vst [vmem:[%s681_s1 + $0x28] sm:$0xff] %v286_v32 }
  0x23   :  { %289 = vst [vmem:[%s681_s1 + $0x108] sm:$0xff] %v288_v33 }
  0x24   :  { %291 = vst [vmem:[%s681_s1 + $0x38] sm:$0xff] %v290_v34 }
  0x25   :  { %293 = vst [vmem:[%s681_s1 + $0x118] sm:$0xff] %v292_v35 }
  0x26   :  { %295 = vst [vmem:[%s681_s1 + $0x48] sm:$0xff] %v294_v36 }
  0x27   :  { %297 = vst [vmem:[%s681_s1 + $0x128] sm:$0xff] %v296_v37 }
  0x28   :  { %299 = vst [vmem:[%s681_s1 + $0x58] sm:$0xff] %v298_v38 }
  0x29   :  { %301 = vst [vmem:[%s681_s1 + $0x138] sm:$0xff] %v300_v39 }
  0x2a   :  { %303 = vst [vmem:[%s681_s1 + $0x68] sm:$0xff] %v302_v40 }
  0x2b   :  { %305 = vst [vmem:[%s681_s1 + $0x148] sm:$0xff] %v304_v41 }
  0x2c   :  { %307 = vst [vmem:[%s681_s1 + $0x78] sm:$0xff] %v306_v42 }
  0x2d   :  { %309 = vst [vmem:[%s681_s1 + $0x158] sm:$0xff] %v308_v43 }
  0x2e   :  { %311 = vst [vmem:[%s681_s1 + $0x88] sm:$0xff] %v310_v44 }
  0x2f   :  { %313 = vst [vmem:[%s681_s1 + $0x168] sm:$0xff] %v312_v45 }
  0x30   :  { %315 = vst [vmem:[%s681_s1 + $0x98] sm:$0xff] %v314_v46 }
  0x31   :  { %317 = vst [vmem:[%s681_s1 + $0x178] sm:$0xff] %v316_v47 }
  0x32   :  { %319 = vst [vmem:[%s681_s1 + $0xa8] sm:$0xff] %v318_v48 }
  0x33   :  { %321 = vst [vmem:[%s681_s1 + $0x188] sm:$0xff] %v320_v49 }
  0x34   :  { %323 = vst [vmem:[%s681_s1 + $0xb8] sm:$0xff] %v322_v50 }
  0x35   :  { %325 = vst [vmem:[%s681_s1 + $0x198] sm:$0xff] %v324_v51 }
  0x36   :  { %327 = vst [vmem:[%s681_s1 + $0xc8] sm:$0xff] %v326_v52 }
  0x37   :  { %329 = vst [vmem:[%s681_s1 + $0x1a8] sm:$0xff] %v328_v53 }
  0x38   :  { %331 = vst [vmem:[%s681_s1 + $0xd8] sm:$0xff] %v330_v54 }
  0x39   :  { %333 = vst [vmem:[%s681_s1 + $0x1b8] sm:$0xff] %v332_v55 }

// kernel: three_ft3_block_forward.3
= control target key start
LH: loop header
LB: loop body
LE: loop exit
PB: predicated region body
PF: predicated region fallthrough
CT: control target
= control target key end

     0   :  { %s5531_s27 = smov 0   ;;  %s5533_s28 = smov 0   ;;  %s8673_s0 = inlined_call_operand.vmem [shape: f32[8,1536], index: 0, kind: input, shape index: {}]   ;;  %s8674_s1 = inlined_call_operand.vmem [shape: f32[2,1536], index: 1, kind: input, shape index: {}]   ;;  %s8675_s2 = inlined_call_operand.vmem [shape: f32[14,1536], index: 2, kind: input, shape index: {}]   ;;  %s8676_s3 = inlined_call_operand.vmem [shape: f32[14,1536], index: 3, kind: input, shape index: {}]   ;;  %s8677_s4 = inlined_call_operand.vmem [shape: f32[9,768], index: 4, kind: input, shape index: {}]   ;;  %s8678_s5 = inlined_call_operand.vmem [shape: f32[9,14,14], index: 5, kind: input, shape index: {}]   ;;  %s8679_s6 = inlined_call_operand.vmem [shape: f32[32,54], index: 6, kind: input, shape index: {}]   ;;  %s8680_s7 = inlined_call_operand.vmem [shape: f32[32,11], index: 7, kind: input, shape index: {}]   ;;  %s8681_s8 = inlined_call_operand.vmem [shape: f32[8,1536], index: 8, kind: output, shape index: {}]  }
   0x1   :  { %s5535_s29 = smov 0  }
   0x2 LB: > { %s5021_s30 = sadd.s32 4294967295, %s5461_s29   ;;  %s5548_s9 = sadd.s32 1, %s5461_s29   ;;  %s5461_s29 = sphi %s5535_s29, %s8818_s29   ;;  %s5457_s28 = sphi %s5533_s28, %s8817_s28   ;;  %s5453_s27 = sphi %s5531_s27, %s8816_s27  }
   0x3   : > { %s74_s10 = ssub.s32 %s5461_s29, %s5548_s9  ;;  %s77_s11 = sadd.s32 1, %s5457_s28 }
   0x4   : > { %p75_p0 = scmp.eq.s32.totalorder %s74_s10, 0  ;;  %p84_p1 = scmp.ne.s32.totalorder %s5457_s28, %s5453_s27 }
   0x5   : > { %p85_p2 = scmp.eq.s32.totalorder %s5461_s29, 0  ;;  %p5024_p4 = scmp.ge.s32.totalorder %s5461_s29, 2 }
   0x6   : > { %s5557_s12 = scalar_select %p75_p0, %s5457_s28, %s77_s11  }
   0x7   : > { %p5559_p3 = por %p85_p2, %p84_p1  ;;  %258 = sbr.rel (%p5024_p4) target bundleno = 46 (0x2e), region = 32 }
   0xc   : > { %279 = sbr.rel (!%p5559_p3) target bundleno = 29 (0x1d), region = 44  ;;  %s281_s14 = sand.u32 (%p5559_p3), 1, %s5457_s28  }
   0xd   : > { %s5287_s15 = smul.u32 (%p5559_p3), 48, %s5461_s29 }
   0xe   : > { %s5289_s16 = smul.u32 (%p5559_p3), 96, %s281_s14 }
   0xf   : > { %s286_s19 = scalar_lea.vmem (%p5559_p3), %s8675_s2, %s5287_s15 }
  0x10   : > { %v299_v0 = vld [vmem:[%s286_s19] sm:$0xff] (%p5559_p3)  ;;  %v301_v1 = vld [vmem:[%s286_s19 + $0x8] sm:$0xff] (%p5559_p3)  ;;  %v303_v2 = vld [vmem:[%s286_s19 + $0x10] sm:$0xff] (%p5559_p3)  ;;  %s283_s20 = scalar_lea.vmem (%p5559_p3), [#allocation2], %s5289_s16 }
  0x11   : > { %300 = vst [vmem:[%s283_s20] sm:$0xff] %v299_v0  ;;  %v305_v3 = vld [vmem:[%s286_s19 + $0x18] sm:$0xff]  ;;  %v307_v4 = vld [vmem:[%s286_s19 + $0x20] sm:$0xff]  ;;  %v309_v5 = vld [vmem:[%s286_s19 + $0x28] sm:$0xff] }
  0x12   : > { %302 = vst [vmem:[%s283_s20 + $0x8] sm:$0xff] %v301_v1  ;;  %v311_v6 = vld [vmem:[%s286_s19 + $0x60] sm:$0xff]  ;;  %v313_v7 = vld [vmem:[%s286_s19 + $0x68] sm:$0xff]  ;;  %v315_v8 = vld [vmem:[%s286_s19 + $0x70] sm:$0xff] }
  0x13   : > { %304 = vst [vmem:[%s283_s20 + $0x10] sm:$0xff] %v303_v2  ;;  %v317_v9 = vld [vmem:[%s286_s19 + $0x78] sm:$0xff]  ;;  %v319_v10 = vld [vmem:[%s286_s19 + $0x80] sm:$0xff]  ;;  %v321_v11 = vld [vmem:[%s286_s19 + $0x88] sm:$0xff] }
  0x14   : > { %306 = vst [vmem:[%s283_s20 + $0x18] sm:$0xff] %v305_v3 }
  0x15   : > { %308 = vst [vmem:[%s283_s20 + $0x20] sm:$0xff] %v307_v4 }
  0x16   : > { %310 = vst [vmem:[%s283_s20 + $0x28] sm:$0xff] %v309_v5 }
  0x17   : > { %312 = vst [vmem:[%s283_s20 + $0x30] sm:$0xff] %v311_v6 }
  0x18   : > { %314 = vst [vmem:[%s283_s20 + $0x38] sm:$0xff] %v313_v7 }
  0x19   : > { %316 = vst [vmem:[%s283_s20 + $0x40] sm:$0xff] %v315_v8 }
  0x1a   : > { %318 = vst [vmem:[%s283_s20 + $0x48] sm:$0xff] %v317_v9 }
  0x1b   : > { %320 = vst [vmem:[%s283_s20 + $0x50] sm:$0xff] %v319_v10 }
  0x1c   : > { %322 = vst [vmem:[%s283_s20 + $0x58] sm:$0xff] %v321_v11 }
  0x1d PF: > { %328 = sbr.rel (!%p5559_p3) target bundleno = 46 (0x2e), region = 67  ;;  %s330_s21 = sand.u32 (%p5559_p3), 1, %s5457_s28  }
  0x1e   : > { %s5288_s22 = smul.u32 (%p5559_p3), 48, %s5461_s29 }
  0x1f   : > { %s5290_s23 = smul.u32 (%p5559_p3), 96, %s330_s21 }
  0x20   : > { %s335_s26 = scalar_lea.vmem (%p5559_p3), %s8676_s3, %s5288_s22 }
  0x21   : > { %v348_v12 = vld [vmem:[%s335_s26] sm:$0xff] (%p5559_p3)  ;;  %v350_v13 = vld [vmem:[%s335_s26 + $0x8] sm:$0xff] (%p5559_p3)  ;;  %v352_v14 = vld [vmem:[%s335_s26 + $0x10] sm:$0xff] (%p5559_p3)  ;;  %s332_s10 = scalar_lea.vmem (%p5559_p3), [#allocation3], %s5290_s23 }
  0x22   : > { %349 = vst [vmem:[%s332_s10] sm:$0xff] %v348_v12  ;;  %v354_v15 = vld [vmem:[%s335_s26 + $0x18] sm:$0xff]  ;;  %v356_v16 = vld [vmem:[%s335_s26 + $0x20] sm:$0xff]  ;;  %v358_v17 = vld [vmem:[%s335_s26 + $0x28] sm:$0xff] }
  0x23   : > { %351 = vst [vmem:[%s332_s10 + $0x8] sm:$0xff] %v350_v13  ;;  %v360_v18 = vld [vmem:[%s335_s26 + $0x60] sm:$0xff]  ;;  %v362_v19 = vld [vmem:[%s335_s26 + $0x68] sm:$0xff]  ;;  %v364_v20 = vld [vmem:[%s335_s26 + $0x70] sm:$0xff] }
  0x24   : > { %353 = vst [vmem:[%s332_s10 + $0x10] sm:$0xff] %v352_v14  ;;  %v366_v21 = vld [vmem:[%s335_s26 + $0x78] sm:$0xff]  ;;  %v368_v22 = vld [vmem:[%s335_s26 + $0x80] sm:$0xff]  ;;  %v370_v23 = vld [vmem:[%s335_s26 + $0x88] sm:$0xff] }
  0x25   : > { %355 = vst [vmem:[%s332_s10 + $0x18] sm:$0xff] %v354_v15 }
  0x26   : > { %357 = vst [vmem:[%s332_s10 + $0x20] sm:$0xff] %v356_v16 }
  0x27   : > { %359 = vst [vmem:[%s332_s10 + $0x28] sm:$0xff] %v358_v17 }
  0x28   : > { %361 = vst [vmem:[%s332_s10 + $0x30] sm:$0xff] %v360_v18 }
  0x29   : > { %363 = vst [vmem:[%s332_s10 + $0x38] sm:$0xff] %v362_v19 }
  0x2a   : > { %365 = vst [vmem:[%s332_s10 + $0x40] sm:$0xff] %v364_v20 }
  0x2b   : > { %367 = vst [vmem:[%s332_s10 + $0x48] sm:$0xff] %v366_v21 }
  0x2c   : > { %369 = vst [vmem:[%s332_s10 + $0x50] sm:$0xff] %v368_v22 }
  0x2d   : > { %371 = vst [vmem:[%s332_s10 + $0x58] sm:$0xff] %v370_v23 }
  0x2e PF: > { %p5027_p5 = scmp.ge.s32.totalorder %s5461_s29, 1  ;;  %p376_p6 = scmp.lt.s32.totalorder %s5461_s29, 3 }
  0x30   : > { %p377_p7 = pnand %p5027_p5, %p376_p6 }
  0x32   : > { %380 = sbr.rel (%p377_p7) target bundleno = 1415 (0x587), region = 90 }
  0x37   : > { %s383_s11 = sand.u32 1, %s5453_s27   ;;  %s5463_s15 = smov 48   ;;  %v493_v39 = vlaneseq  ;;  %v5033_v43 = vld [vmem:[%s8677_s4 + $0x1] ss:$8 sm:$0xf]  ;;  %vm614_vm1 = vcmask 1045504  }
  0x38   : > { %s5581_s13 = smul.u32 96, %s383_s11  ;;  %s5464_s27 = smov 54   ;;  %v5034_v44 = vld [vmem:[%s8677_s4 + $0x1] ss:$8 sm:$0x30]  ;;  %v5694_v60 = vld [vmem:[%s8678_s5 + $0x10] sm:$0xff] }
  0x39   : > { %s5465_s16 = smov 42   ;;  %s5466_s17 = smov 6   ;;  %v5667_v45 = vand.u32 127, %v493_v39  ;;  %v5669_v46 = vor.u32 %v5034_v44, %v5033_v43  ;;  %vm607_vm2 = vcmask 113664   ;;  %v5730_v11 = vld [vmem:[%s8678_s5 + $0x18] sm:$0x3f] }
  0x3a   : > { %s385_s14 = scalar_lea.vmem [#allocation2], %s5581_s13  ;;  %s5467_s24 = smov 122   ;;  %v510_v63 = vld [vmem:[%s8677_s4] ss:$8 sm:$0xf] }
  0x3b   : > { %v5584_v24 = vld [vmem:[%s385_s14 + $0x48] sm:$0x3f]  ;;  %v5586_v25 = vld [vmem:[%s385_s14 + $0x38] sm:$0x3f]  ;;  %v5588_v26 = vld [vmem:[%s385_s14 + $0x10] sm:$0xff]  ;;  %vm562_vm0 = vcmp.lt.s32.totalorder %v5667_v45, 48 }
  0x3c   : > { %552 = vrot.lane.b32.xlu1 %v5584_v24, %s5463_s15  ;;  %544 = vrot.lane.b32.xlu0 %v5586_v25, %s5463_s15  ;;  %v5593_v27 = vld [vmem:[%s385_s14 + $0x40] sm:$0x3f]  ;;  %v5595_v28 = vld [vmem:[%s385_s14 + $0x8] sm:$0xff]  ;;  %v585_v47 = vperm.slane %v5669_v46, 2  ;;  %v586_v50 = vperm.slane %v5669_v46, 3  ;;  %v583_v61 = vperm.slane %v5669_v46, 0 }
  0x3d   : > { %546 = vrot.lane.b32.xlu2 %v5588_v26, %s5463_s15  ;;  %v5597_v29 = vld [vmem:[%s385_s14 + $0x18] sm:$0xff]  ;;  %v5602_v30 = vld [vmem:[%s385_s14 + $0x30] sm:$0x3f]  ;;  %v5604_v31 = vld [vmem:[%s385_s14] sm:$0xff]  ;;  %v584_v62 = vperm.slane %v5669_v46, 1  ;;  %vm495_vm3 = vcmp.lt.s32.totalorder %v5667_v45, 54 }
  0x3e   : > { %v5606_v32 = vld [vmem:[%s385_s14 + $0x58] sm:$0x3f]  ;;  %v5611_v33 = vld [vmem:[%s385_s14 + $0x28] sm:$0xff]  ;;  %v5619_v34 = vld [vmem:[%s385_s14 + $0x50] sm:$0x3f]  ;;  %s5468_s19 = smov 86  }
  0x3f   : > { %v5621_v35 = vld [vmem:[%s385_s14 + $0x20] sm:$0xff]  ;;  %vm957_vm4 = vcmp.lt.s32.totalorder %v5667_v45, 42  ;;  %s5469_s25 = smov 80   ;;  %vm1200_vm5 = vcmp.lt.s32.totalorder %v5667_v45, 6  ;;  %s5470_s22 = smov 74   ;;  %vm1649_vm6 = vcmp.lt.s32.totalorder %v5667_v45, 122 }
  0x40   : > { %v511_v0 = vld [vmem:[%s8677_s4] ss:$8 sm:$0x30]  ;;  %vm1892_vm7 = vcmp.lt.s32.totalorder %v5667_v45, 86  ;;  %vm2135_vm8 = vcmp.lt.s32.totalorder %v5667_v45, 80  ;;  %vm2378_vm9 = vcmp.lt.s32.totalorder %v5667_v45, 74 }
  0x41   : > { %v5723_v9 = vor.u32 %v511_v0, %v510_v63  ;;  %v5775_v44 = vld [vmem:[%s8678_s5] sm:$0xff] }
  0x43   : > { %v515_v12 = vperm.slane %v5723_v9, 1  ;;  %v514_v20 = vperm.slane %v5723_v9, 0 }
  0x44   : > { %548 = vrot.lane.b32.xlu0 %v5593_v27, %s5463_s15  ;;  %542 = vrot.lane.b32.xlu1 %v5595_v28, %s5463_s15 }
  0x45   : > { %550 = vrot.lane.b32.xlu2 %v5597_v29, %s5463_s15 }
  0x4c   : > { %540 = vrot.lane.b32.xlu0 %v5602_v30, %s5463_s15  ;;  %538 = vrot.lane.b32.xlu1 %v5604_v31, %s5463_s15 }
  0x4d   : > { %560 = vrot.lane.b32.xlu2 %v5606_v32, %s5463_s15 }
  0x54   : > { %558 = vrot.lane.b32.xlu0 %v5611_v33, %s5463_s15  ;;  %471 = vrot.lane.b32.xlu1 %v5602_v30, %s5464_s27 }
  0x55   : > { %475 = vrot.lane.b32.xlu2 %v5586_v25, %s5464_s27 }
  0x5c   : > { %491 = vrot.lane.b32.xlu0 %v5606_v32, %s5464_s27  ;;  %469 = vrot.lane.b32.xlu1 %v5604_v31, %s5464_s27 }
  0x5d   : > { %473 = vrot.lane.b32.xlu2 %v5595_v28, %s5464_s27 }
  0x64   : > { %489 = vrot.lane.b32.xlu0 %v5611_v33, %s5464_s27  ;;  %556 = vrot.lane.b32.xlu1 %v5619_v34, %s5463_s15 }
  0x65   : > { %554 = vrot.lane.b32.xlu2 %v5621_v35, %s5463_s15 }
  0x6c   : > { %483 = vrot.lane.b32.xlu0 %v5584_v24, %s5464_s27  ;;  %487 = vrot.lane.b32.xlu1 %v5619_v34, %s5464_s27 }
  0x6d   : > { %481 = vrot.lane.b32.xlu2 %v5597_v29, %s5464_s27 }
  0x74   : > { %485 = vrot.lane.b32.xlu0 %v5621_v35, %s5464_s27  ;;  %479 = vrot.lane.b32.xlu1 %v5593_v27, %s5464_s27 }
  0x75   : > { %477 = vrot.lane.b32.xlu2 %v5588_v26, %s5464_s27 }
  0x7c   : > { %939 = vrot.lane.b32.xlu0 %v5586_v25, %s5465_s16  ;;  %943 = vrot.lane.b32.xlu1 %v5593_v27, %s5465_s16 }
  0x7d   : > { %947 = vrot.lane.b32.xlu2 %v5584_v24, %s5465_s16 }
  0x84   : > { %937 = vrot.lane.b32.xlu0 %v5595_v28, %s5465_s16  ;;  %941 = vrot.lane.b32.xlu1 %v5588_v26, %s5465_s16 }
  0x85   : > { %945 = vrot.lane.b32.xlu2 %v5597_v29, %s5465_s16 }
  0x8c   : > { %935 = vrot.lane.b32.xlu0 %v5602_v30, %s5465_s16  ;;  %933 = vrot.lane.b32.xlu1 %v5604_v31, %s5465_s16 }
  0x8d   : > { %955 = vrot.lane.b32.xlu2 %v5606_v32, %s5465_s16 }
  0x94   : > { %953 = vrot.lane.b32.xlu0 %v5611_v33, %s5465_s16  ;;  %1178 = vrot.lane.b32.xlu1 %v5602_v30, %s5466_s17 }
  0x95   : > { %1182 = vrot.lane.b32.xlu2 %v5586_v25, %s5466_s17 }
  0x97   : > { %v547_v36 = vpop.permute.xlu2 %546 }
  0x9c   : > { %1198 = vrot.lane.b32.xlu0 %v5606_v32, %s5466_s17  ;;  %1176 = vrot.lane.b32.xlu1 %v5604_v31, %s5466_s17 }
  0x9d   : > { %1180 = vrot.lane.b32.xlu2 %v5595_v28, %s5466_s17 }
  0x9f   : > { %v5647_v37 = vpop.permute.xlu2 %550 }
  0xa0   : > { %v567_v51 = vsel %vm562_vm0, %v547_v36, %v5647_v37 }
  0xa1   : > { %v598_v58 = vmul.f32 %v586_v50, %v567_v51 }
  0xa4   : > { %1196 = vrot.lane.b32.xlu0 %v5611_v33, %s5466_s17  ;;  %951 = vrot.lane.b32.xlu1 %v5619_v34, %s5465_s16 }
  0xa5   : > { %949 = vrot.lane.b32.xlu2 %v5621_v35, %s5465_s16 }
  0xa7   : > { %v5652_v38 = vpop.permute.xlu2 %560 }
  0xac   : > { %1190 = vrot.lane.b32.xlu0 %v5584_v24, %s5466_s17  ;;  %1194 = vrot.lane.b32.xlu1 %v5619_v34, %s5466_s17 }
  0xad   : > { %1188 = vrot.lane.b32.xlu2 %v5597_v29, %s5466_s17 }
  0xae   : > { %v5657_v40 = vpop.permute.xlu1 %552  ;;  %v545_v41 = vpop.permute.xlu0 %544 }
  0xaf   : > { %v5659_v42 = vpop.permute.xlu2 %475 }
  0xb4   : > { %1192 = vrot.lane.b32.xlu0 %v5621_v35, %s5466_s17  ;;  %1186 = vrot.lane.b32.xlu1 %v5593_v27, %s5466_s17 }
  0xb5   : > { %1184 = vrot.lane.b32.xlu2 %v5588_v26, %s5466_s17  ;;  %s5478_s17 = smov 114  }
  0xb6   : > { %v549_v48 = vpop.permute.xlu0 %548  ;;  %v543_v49 = vpop.permute.xlu1 %542 }
  0xb7   : > { %v568_v52 = vsel %vm562_vm0, %v549_v48, %v5657_v40  ;;  %v570_v53 = vsel %vm562_vm0, %v545_v41, %v549_v48  ;;  %v5685_v54 = vpop.permute.xlu2 %473  ;;  %v569_v55 = vsel %vm562_vm0, %v543_v49, %v547_v36  ;;  %v587_v48 = vperm.slane %v5669_v46, 4 }
  0xb8   : > { %v603_v56 = vmul.f32 %v585_v47, %v570_v53  ;;  %v604_v57 = vmul.f32 %v586_v50, %v568_v52  ;;  %v597_v59 = vmul.f32 %v585_v47, %v569_v55 }
  0xba   : > { %5041 = vmatpush.msk.msra.mxu2 %vm614_vm1, %v603_v56  ;;  %5044 = vmatpush.msk.msra.mxu3 %vm614_vm1, %v604_v57 }
  0xbc   : > { %717 = vmatpush.msra.mxu3 %v598_v58  ;;  %1627 = vrot.lane.b32.xlu0 %v5602_v30, %s5467_s24 }
  0xbd   : > { %1635 = vrot.lane.b32.xlu2 %v5593_v27, %s5467_s24  ;;  %694 = vmatpush.msra.mxu2 %v597_v59  ;;  %v5807_v59 = vld [vmem:[%s8678_s5 + $0x8] sm:$0x3f] }
  0xbe   : > { %1631 = vrot.lane.b32.xlu1 %v5586_v25, %s5467_s24  ;;  %v541_v1 = vpop.permute.xlu0 %540  ;;  %v539_v2 = vpop.permute.xlu1 %538  ;;  %5042 = vmatmul.msk.f32.vlgmr.msra.gmra.mxu2 %vm607_vm2, %v5694_v60 }
  0xbf   : > { %v572_v3 = vsel %vm562_vm0, %v541_v1, %v545_v41  ;;  %v574_v4 = vsel %vm562_vm0, %v5652_v38, %v541_v1  ;;  %v5717_v5 = vpop.permute.xlu2 %554  ;;  %v571_v6 = vsel %vm562_vm0, %v539_v2, %v543_v49  ;;  %5045 = vmatmul.msk.f32.vlgmr.msra.gmra.mxu3 %vm607_vm2, %v5694_v60  ;;  %v588_v49 = vperm.slane %v5669_v46, 5 }
  0xc0   : > { %v601_v7 = vmul.f32 %v583_v61, %v574_v4  ;;  %v602_v8 = vmul.f32 %v584_v62, %v572_v3  ;;  %v596_v10 = vmul.f32 %v584_v62, %v571_v6  ;;  %v565_v56 = vsel %vm562_vm0, %v5647_v37, %v5717_v5  ;;  %v5073_v6 = vld [vmem:[%s8677_s4 + $0x2] ss:$8 sm:$0xf] }
  0xc1   : > { %v519_v62 = vperm.slane %v5723_v9, 5 }
  0xc2   : > { %5035 = vmatpush.msk.msra.mxu0 %vm614_vm1, %v601_v7  ;;  %5038 = vmatpush.msk.msra.mxu1 %vm614_vm1, %v602_v8  ;;  %v517_v7 = vperm.slane %v5723_v9, 3 }
  0xc4   : > { %1625 = vrot.lane.b32.xlu0 %v5604_v31, %s5467_s24  ;;  %671 = vmatpush.msra.mxu1 %v596_v10 }
  0xc5   : > { %1633 = vrot.lane.b32.xlu2 %v5588_v26, %s5467_s24  ;;  %5039 = vmatmul.msk.f32.vlgmr.msra.gmra.mxu1 %vm607_vm2, %v5694_v60 }
  0xc6   : > { %1629 = vrot.lane.b32.xlu1 %v5595_v28, %s5467_s24  ;;  %v559_v13 = vpop.permute.xlu0 %558  ;;  %v472_v14 = vpop.permute.xlu1 %471  ;;  %5043 = vmatmul.msk.f32.gmra.mxu2 %vm607_vm2, %v5730_v11 }
  0xc7   : > { %v573_v15 = vsel %vm562_vm0, %v559_v13, %v539_v2  ;;  %v5746_v16 = vpop.permute.xlu2 %481  ;;  %v505_v17 = vsel %vm495_vm3, %v472_v14, %v5659_v42  ;;  %5046 = vmatmul.msk.f32.gmra.mxu3 %vm607_vm2, %v5730_v11 }
  0xc8   : > { %v533_v18 = vmul.f32 %v515_v12, %v505_v17  ;;  %v595_v19 = vmul.f32 %v583_v61, %v573_v15  ;;  %v518_v61 = vperm.slane %v5723_v9, 4 }
  0xca   : > { %648 = vmatpush.msra.mxu0 %v595_v19  ;;  %5056 = vmatpush.msk.msrb.mxu3 %vm614_vm1, %v533_v18 }
  0xcb   : > { %5036 = vmatmul.msk.f32.vlgmr.msra.gmra.mxu0 %vm607_vm2, %v5694_v60 }
  0xcc   : > { %1643 = vrot.lane.b32.xlu0 %v5619_v34, %s5467_s24 }
  0xcd   : > { %1641 = vrot.lane.b32.xlu2 %v5621_v35, %s5467_s24  ;;  %5040 = vmatmul.msk.f32.gmra.mxu1 %vm607_vm2, %v5730_v11 }
  0xce   : > { %1647 = vrot.lane.b32.xlu1 %v5606_v32, %s5467_s24  ;;  %v492_v21 = vpop.permute.xlu0 %491  ;;  %v470_v22 = vpop.permute.xlu1 %469 }
  0xcf   : > { %v507_v23 = vsel %vm495_vm3, %v492_v21, %v472_v14  ;;  %v5767_v36 = vpop.permute.xlu2 %477  ;;  %v504_v39 = vsel %vm495_vm3, %v470_v22, %v5685_v54 }
  0xd0   : > { %v532_v41 = vmul.f32 %v514_v20, %v507_v23  ;;  %v527_v43 = vmul.f32 %v515_v12, %v504_v39  ;;  %v500_v23 = vsel %vm495_vm3, %v5767_v36, %v5746_v16 }
  0xd2   : > { %5053 = vmatpush.msk.msrb.mxu2 %vm614_vm1, %v532_v41  ;;  %833 = vmatpush.msrb.mxu3 %v527_v43 }
  0xd3   : > { %5037 = vmatmul.msk.f32.gmra.mxu0 %vm607_vm2, %v5730_v11  ;;  %5057 = vmatmul.msk.f32.vlgmr.msrb.gmra.mxu3 %vm607_vm2, %v5775_v44 }
  0xd4   : > { %1645 = vrot.lane.b32.xlu0 %v5611_v33, %s5467_s24 }
  0xd5   : > { %1637 = vrot.lane.b32.xlu2 %v5597_v29, %s5467_s24 }
  0xd6   : > { %1639 = vrot.lane.b32.xlu1 %v5584_v24, %s5467_s24  ;;  %v490_v47 = vpop.permute.xlu0 %489  ;;  %v557_v50 = vpop.permute.xlu1 %556 }
  0xd7   : > { %v506_v51 = vsel %vm495_vm3, %v490_v47, %v470_v22  ;;  %v5792_v52 = vpop.permute.xlu2 %947  ;;  %v564_v53 = vsel %vm562_vm0, %v557_v50, %v5652_v38  ;;  %v566_v55 = vsel %vm562_vm0, %v5657_v40, %v557_v50  ;;  %v563_v38 = vsel %vm562_vm0, %v5717_v5, %v559_v13 }
  0xd8   : > { %v605_v46 = vmul.f32 %v587_v48, %v566_v55  ;;  %v606_v57 = vmul.f32 %v588_v49, %v564_v53  ;;  %v526_v58 = vmul.f32 %v514_v20, %v506_v51  ;;  %v599_v40 = vmul.f32 %v587_v48, %v565_v56 }
  0xd9   : > { %v600_v37 = vmul.f32 %v588_v49, %v563_v38  ;;  %v516_v13 = vperm.slane %v5723_v9, 2 }
  0xda   : > { %5047 = vmatpush.msk.msrb.mxu0 %vm614_vm1, %v605_v46  ;;  %5050 = vmatpush.msk.msrb.mxu1 %vm614_vm1, %v606_v57 }
  0xdb   : > { %810 = vmatpush.msrb.mxu2 %v526_v58  ;;  %5058 = vmatmul.msk.f32.gmra.mxu3 %vm607_vm2, %v5807_v59  ;;  %v5932_v58 = vld [vmem:[%s8678_s5 + $0x20] sm:$0xff] }
  0xdc   : > { %5054 = vmatmul.msk.f32.vlgmr.msrb.gmra.mxu2 %vm607_vm2, %v5775_v44  ;;  %1878 = vrot.lane.b32.xlu0 %v5593_v27, %s5468_s19 }
  0xdd   : > { %1886 = vrot.lane.b32.xlu2 %v5619_v34, %s5468_s19  ;;  %740 = vmatpush.msrb.mxu0 %v599_v40 }
  0xde   : > { %1882 = vrot.lane.b32.xlu1 %v5584_v24, %s5468_s19  ;;  %763 = vmatpush.msrb.mxu1 %v600_v37  ;;  %v484_v63 = vpop.permute.xlu0 %483  ;;  %v488_v0 = vpop.permute.xlu1 %487  ;;  %v5096_v37 = vld [vmem:[%s8677_s4 + $0x3] ss:$8 sm:$0x30] }
  0xdf   : > { %5048 = vmatmul.msk.f32.vlgmr.msrb.gmra.mxu0 %vm607_vm2, %v5694_v60  ;;  %5051 = vmatmul.msk.f32.vlgmr.msrb.gmra.mxu1 %vm607_vm2, %v5694_v60  ;;  %v5830_v1 = vpop.permute.xlu2 %945  ;;  %v497_v2 = vsel %vm495_vm3, %v488_v0, %v492_v21  ;;  %v499_v3 = vsel %vm495_vm3, %v484_v63, %v488_v0  ;;  %v5074_v60 = vld [vmem:[%s8677_s4 + $0x2] ss:$8 sm:$0x30] }
  0xe0   : > { %v536_v4 = vmul.f32 %v518_v61, %v499_v3  ;;  %v537_v5 = vmul.f32 %v519_v62, %v497_v2  ;;  %v5853_v12 = vor.u32 %v5074_v60, %v5073_v6  ;;  %v5964_v60 = vld [vmem:[%s8678_s5 + $0x28] sm:$0x3f] }
  0xe2   : > { %5065 = vmatpush.msk.msra.mxu2 %vm614_vm1, %v536_v4  ;;  %5068 = vmatpush.msk.msra.mxu3 %vm614_vm1, %v537_v5  ;;  %v978_v38 = vperm.slane %v5853_v12, 0  ;;  %v979_v40 = vperm.slane %v5853_v12, 1 }
  0xe4   : > { %5055 = vmatmul.msk.f32.gmra.mxu2 %vm607_vm2, %v5807_v59  ;;  %1876 = vrot.lane.b32.xlu0 %v5588_v26, %s5468_s19 }
  0xe5   : > { %1884 = vrot.lane.b32.xlu2 %v5621_v35, %s5468_s19 }
  0xe6   : > { %1880 = vrot.lane.b32.xlu1 %v5597_v29, %s5468_s19  ;;  %v486_v8 = vpop.permute.xlu0 %485  ;;  %v480_v10 = vpop.permute.xlu1 %479 }
  0xe7   : > { %5049 = vmatmul.msk.f32.gmra.mxu0 %vm607_vm2, %v5730_v11  ;;  %5052 = vmatmul.msk.f32.gmra.mxu1 %vm607_vm2, %v5730_v11  ;;  %v496_v14 = vsel %vm495_vm3, %v486_v8, %v490_v47  ;;  %v498_v15 = vsel %vm495_vm3, %v5746_v16, %v486_v8  ;;  %v5865_v17 = vpop.permute.xlu2 %955  ;;  %v501_v18 = vsel %vm495_vm3, %v480_v10, %v484_v63 }
  0xe8   : > { %v530_v19 = vmul.f32 %v518_v61, %v498_v15  ;;  %v531_v9 = vmul.f32 %v519_v62, %v496_v14  ;;  %v503_v20 = vsel %vm495_vm3, %v5659_v42, %v480_v10  ;;  %v535_v21 = vmul.f32 %v517_v7, %v501_v18 }
  0xe9   : > { %v502_v11 = vsel %vm495_vm3, %v5685_v54, %v5767_v36  ;;  %v534_v22 = vmul.f32 %v516_v13, %v503_v20  ;;  %v980_v42 = vperm.slane %v5853_v12, 2  ;;  %v981_v54 = vperm.slane %v5853_v12, 3 }
  0xea   : > { %5062 = vmatpush.msk.msra.mxu1 %vm614_vm1, %v535_v21  ;;  %902 = vmatpush.msra.mxu2 %v530_v19  ;;  %v528_v39 = vmul.f32 %v516_v13, %v502_v11  ;;  %v529_v16 = vmul.f32 %v517_v7, %v500_v23 }
  0xeb   : > { %5059 = vmatpush.msk.msra.mxu0 %vm614_vm1, %v534_v22  ;;  %925 = vmatpush.msra.mxu3 %v531_v9 }
  0xec   : > { %5066 = vmatmul.msk.f32.vlgmr.msra.gmra.mxu2 %vm607_vm2, %v5775_v44  ;;  %5069 = vmatmul.msk.f32.vlgmr.msra.gmra.mxu3 %vm607_vm2, %v5775_v44 }
  0xed   : > { %1872 = vrot.lane.b32.xlu2 %v5595_v28, %s5468_s19  ;;  %1874 = vrot.lane.b32.xlu0 %v5586_v25, %s5468_s19 }
  0xee   : > { %1870 = vrot.lane.b32.xlu1 %v5602_v30, %s5468_s19  ;;  %856 = vmatpush.msra.mxu0 %v528_v39  ;;  %v940_v36 = vpop.permute.xlu0 %939  ;;  %v944_v41 = vpop.permute.xlu1 %943 }
  0xef   : > { %879 = vmatpush.msra.mxu1 %v529_v16  ;;  %5060 = vmatmul.msk.f32.vlgmr.msra.gmra.mxu0 %vm607_vm2, %v5775_v44  ;;  %v5897_v43 = vpop.permute.xlu2 %1182  ;;  %v963_v47 = vsel %vm957_vm4, %v944_v41, %v5792_v52  ;;  %v965_v48 = vsel %vm957_vm4, %v940_v36, %v944_v41  ;;  %v6011_v16 = vld [vmem:[%s8678_s5 + $0x30] sm:$0xff]  ;;  %v983_v41 = vperm.slane %v5853_v12, 5 }
  0xf0   : > { %5063 = vmatmul.msk.f32.vlgmr.msra.gmra.mxu1 %vm607_vm2, %v5775_v44  ;;  %v998_v49 = vmul.f32 %v980_v42, %v965_v48  ;;  %v999_v50 = vmul.f32 %v981_v54, %v963_v47 }
  0xf2   : > { %5081 = vmatpush.msk.msrb.mxu2 %vm614_vm1, %v998_v49  ;;  %5084 = vmatpush.msk.msrb.mxu3 %vm614_vm1, %v999_v50 }
  0xf4   : > { %5067 = vmatmul.msk.f32.gmra.mxu2 %vm607_vm2, %v5807_v59  ;;  %5070 = vmatmul.msk.f32.gmra.mxu3 %vm607_vm2, %v5807_v59 }
  0xf5   : > { %2117 = vrot.lane.b32.xlu2 %v5586_v25, %s5469_s25  ;;  %1868 = vrot.lane.b32.xlu0 %v5604_v31, %s5468_s19 }
  0xf6   : > { %2113 = vrot.lane.b32.xlu1 %v5602_v30, %s5469_s25  ;;  %v938_v44 = vpop.permute.xlu0 %937  ;;  %v942_v51 = vpop.permute.xlu1 %941 }
  0xf7   : > { %5061 = vmatmul.msk.f32.gmra.mxu0 %vm607_vm2, %v5807_v59  ;;  %v5920_v53 = vpop.permute.xlu2 %1180  ;;  %v962_v55 = vsel %vm957_vm4, %v942_v51, %v5830_v1  ;;  %v964_v56 = vsel %vm957_vm4, %v938_v44, %v942_v51 }
  0xf8   : > { %5064 = vmatmul.msk.f32.gmra.mxu1 %vm607_vm2, %v5807_v59  ;;  %v992_v46 = vmul.f32 %v980_v42, %v964_v56  ;;  %v993_v57 = vmul.f32 %v981_v54, %v962_v55  ;;  %v5095_v59 = vld [vmem:[%s8677_s4 + $0x3] ss:$8 sm:$0xf] }
  0xf9   : > { %v5957_v5 = vor.u32 %v5096_v37, %v5095_v59 }
  0xfa   : > { %1087 = vmatpush.msrb.mxu2 %v992_v46  ;;  %1110 = vmatpush.msrb.mxu3 %v993_v57 }
  0xfb   : > { %v1222_v8 = vperm.slane %v5957_v5, 1  ;;  %v1221_v20 = vperm.slane %v5957_v5, 0 }
  0xfc   : > { %5082 = vmatmul.msk.f32.vlgmr.msrb.gmra.mxu2 %vm607_vm2, %v5932_v58  ;;  %5085 = vmatmul.msk.f32.vlgmr.msrb.gmra.mxu3 %vm607_vm2, %v5932_v58 }
  0xfd   : > { %2115 = vrot.lane.b32.xlu2 %v5595_v28, %s5469_s25  ;;  %2121 = vrot.lane.b32.xlu0 %v5593_v27, %s5469_s25 }
  0xfe   : > { %2111 = vrot.lane.b32.xlu1 %v5604_v31, %s5469_s25  ;;  %v936_v61 = vpop.permute.xlu0 %935  ;;  %v934_v62 = vpop.permute.xlu1 %933 }
  0xff   : > { %v967_v63 = vsel %vm957_vm4, %v936_v61, %v940_v36  ;;  %v969_v0 = vsel %vm957_vm4, %v5865_v17, %v936_v61  ;;  %v950_v2 = vpop.permute.xlu2 %949  ;;  %v966_v6 = vsel %vm957_vm4, %v934_v62, %v938_v44  ;;  %v982_v36 = vperm.slane %v5853_v12, 4 }
 0x100   : > { %v996_v3 = vmul.f32 %v978_v38, %v969_v0  ;;  %v997_v4 = vmul.f32 %v979_v40, %v967_v63  ;;  %v991_v7 = vmul.f32 %v979_v40, %v966_v6  ;;  %v960_v49 = vsel %vm957_vm4, %v5830_v1, %v950_v2  ;;  %v6044_v1 = vld [vmem:[%s8678_s5 + $0x38] sm:$0x3f] }
 0x101   : > { %v1226_v40 = vperm.slane %v5957_v5, 5  ;;  %v5117_v0 = vld [vmem:[%s8677_s4 + $0x4] ss:$8 sm:$0xf]  ;;  %v1223_v6 = vperm.slane %v5957_v5, 2 }
 0x102   : > { %5075 = vmatpush.msk.msrb.mxu0 %vm614_vm1, %v996_v3  ;;  %5078 = vmatpush.msk.msrb.mxu1 %vm614_vm1, %v997_v4 }
 0x104   : > { %5083 = vmatmul.msk.f32.gmra.mxu2 %vm607_vm2, %v5964_v60  ;;  %5086 = vmatmul.msk.f32.gmra.mxu3 %vm607_vm2, %v5964_v60 }
 0x105   : > { %1888 = vrot.lane.b32.xlu2 %v5611_v33, %s5468_s19  ;;  %2119 = vrot.lane.b32.xlu0 %v5588_v26, %s5469_s25 }
 0x106   : > { %1890 = vrot.lane.b32.xlu1 %v5606_v32, %s5468_s19  ;;  %1064 = vmatpush.msrb.mxu1 %v991_v7  ;;  %v954_v10 = vpop.permute.xlu0 %953  ;;  %v1179_v13 = vpop.permute.xlu1 %1178  ;;  %v1224_v7 = vperm.slane %v5957_v5, 3 }
 0x107   : > { %5079 = vmatmul.msk.f32.vlgmr.msrb.gmra.mxu1 %vm607_vm2, %v5932_v58  ;;  %v968_v14 = vsel %vm957_vm4, %v954_v10, %v934_v62  ;;  %v5984_v15 = vpop.permute.xlu2 %1188  ;;  %v1210_v18 = vsel %vm1200_vm5, %v1179_v13, %v5897_v43  ;;  %v958_v55 = vsel %vm957_vm4, %v950_v2, %v954_v10  ;;  %v5118_v2 = vld [vmem:[%s8677_s4 + $0x4] ss:$8 sm:$0x30] }
 0x108   : > { %v990_v19 = vmul.f32 %v978_v38, %v968_v14  ;;  %v1240_v9 = vmul.f32 %v1222_v8, %v1210_v18  ;;  %v994_v38 = vmul.f32 %v982_v36, %v960_v49  ;;  %v6078_v4 = vor.u32 %v5118_v2, %v5117_v0 }
 0x10a   : > { %1041 = vmatpush.msrb.mxu0 %v990_v19  ;;  %5100 = vmatpush.msk.msra.mxu3 %vm614_vm1, %v1240_v9  ;;  %v1429_v14 = vperm.slane %v6078_v4, 2  ;;  %v1430_v18 = vperm.slane %v6078_v4, 3 }
 0x10b   : > { %5076 = vmatmul.msk.f32.vlgmr.msrb.gmra.mxu0 %vm607_vm2, %v5932_v58 }
 0x10d   : > { %2129 = vrot.lane.b32.xlu0 %v5619_v34, %s5469_s25  ;;  %2127 = vrot.lane.b32.xlu2 %v5621_v35, %s5469_s25 }
 0x10e   : > { %2133 = vrot.lane.b32.xlu1 %v5606_v32, %s5469_s25  ;;  %v1199_v21 = vpop.permute.xlu0 %1198  ;;  %v1177_v11 = vpop.permute.xlu1 %1176 }
 0x10f   : > { %5080 = vmatmul.msk.f32.gmra.mxu1 %vm607_vm2, %v5964_v60  ;;  %v1212_v22 = vsel %vm1200_vm5, %v1199_v21, %v1179_v13  ;;  %v6003_v23 = vpop.permute.xlu2 %1184  ;;  %v1209_v39 = vsel %vm1200_vm5, %v1177_v11, %v5920_v53 }
 0x110   : > { %v1239_v42 = vmul.f32 %v1221_v20, %v1212_v22  ;;  %v1234_v54 = vmul.f32 %v1222_v8, %v1209_v39  ;;  %v1207_v8 = vsel %vm1200_vm5, %v5920_v53, %v6003_v23 }
 0x112   : > { %5097 = vmatpush.msk.msra.mxu2 %vm614_vm1, %v1239_v42  ;;  %1307 = vmatpush.msra.mxu3 %v1234_v54 }
 0x113   : > { %5077 = vmatmul.msk.f32.gmra.mxu0 %vm607_vm2, %v5964_v60  ;;  %5101 = vmatmul.msk.f32.vlgmr.msra.gmra.mxu3 %vm607_vm2, %v6011_v16 }
 0x115   : > { %2131 = vrot.lane.b32.xlu0 %v5611_v33, %s5469_s25  ;;  %2123 = vrot.lane.b32.xlu2 %v5597_v29, %s5469_s25 }
 0x116   : > { %2125 = vrot.lane.b32.xlu1 %v5584_v24, %s5469_s25  ;;  %v1197_v47 = vpop.permute.xlu0 %1196  ;;  %v952_v48 = vpop.permute.xlu1 %951 }
 0x117   : > { %v1211_v50 = vsel %vm1200_vm5, %v1197_v47, %v1177_v11  ;;  %v6031_v44 = vpop.permute.xlu2 %1635  ;;  %v959_v51 = vsel %vm957_vm4, %v952_v48, %v5865_v17  ;;  %v961_v12 = vsel %vm957_vm4, %v5792_v52, %v952_v48  ;;  %v995_v17 = vmul.f32 %v983_v41, %v958_v55 }
 0x118   : > { %v1233_v56 = vmul.f32 %v1221_v20, %v1211_v50  ;;  %v1000_v46 = vmul.f32 %v982_v36, %v961_v12  ;;  %v1001_v57 = vmul.f32 %v983_v41, %v959_v51  ;;  %v1225_v52 = vperm.slane %v5957_v5, 4 }
 0x119   : > { %v1235_v36 = vmul.f32 %v1223_v6, %v1207_v8  ;;  %v1427_v41 = vperm.slane %v6078_v4, 0  ;;  %v5116_v8 = vld [vmem:[%s8678_s5 + $0x48] sm:$0x3f] }
 0x11a   : > { %5087 = vmatpush.msk.msra.mxu0 %vm614_vm1, %v1000_v46  ;;  %5090 = vmatpush.msk.msra.mxu1 %vm614_vm1, %v1001_v57  ;;  %v1432_v57 = vperm.slane %v6078_v4, 5 }
 0x11b   : > { %1284 = vmatpush.msra.mxu2 %v1233_v56  ;;  %5102 = vmatmul.msk.f32.gmra.mxu3 %vm607_vm2, %v6044_v1  ;;  %v1445_v12 = vmul.f32 %v1427_v41, %v5602_v30 }
 0x11c   : > { %5098 = vmatmul.msk.f32.vlgmr.msra.gmra.mxu2 %vm607_vm2, %v6011_v16  ;;  %1133 = vmatpush.msra.mxu0 %v994_v38  ;;  %v1439_v38 = vmul.f32 %v1427_v41, %v5604_v31 }
 0x11d   : > { %2364 = vrot.lane.b32.xlu0 %v5593_v27, %s5470_s22  ;;  %1156 = vmatpush.msra.mxu1 %v995_v17 }
 0x11e   : > { %2368 = vrot.lane.b32.xlu1 %v5584_v24, %s5470_s22  ;;  %5088 = vmatmul.msk.f32.vlgmr.msra.gmra.mxu0 %vm607_vm2, %v5932_v58  ;;  %v1191_v59 = vpop.permute.xlu0 %1190  ;;  %v1195_v37 = vpop.permute.xlu1 %1194 }
 0x11f   : > { %5091 = vmatmul.msk.f32.vlgmr.msra.gmra.mxu1 %vm607_vm2, %v5932_v58  ;;  %v6062_v61 = vpop.permute.xlu2 %1633  ;;  %v1202_v62 = vsel %vm1200_vm5, %v1195_v37, %v1199_v21  ;;  %v1204_v63 = vsel %vm1200_vm5, %v1191_v59, %v1195_v37  ;;  %2372 = vrot.lane.b32.xlu2 %v5619_v34, %s5470_s22  ;;  %v5140_v21 = vld [vmem:[%s8677_s4 + $0x5] ss:$8 sm:$0x30] }
 0x120   : > { %v1243_v58 = vmul.f32 %v1225_v52, %v1204_v63  ;;  %v1244_v3 = vmul.f32 %v1226_v40, %v1202_v62  ;;  %v1444_v62 = vmul.f32 %v1432_v57, %v5611_v33 }
 0x122   : > { %5109 = vmatpush.msk.msrb.mxu2 %vm614_vm1, %v1243_v58  ;;  %5112 = vmatpush.msk.msrb.mxu3 %vm614_vm1, %v1244_v3 }
 0x124   : > { %5099 = vmatmul.msk.f32.gmra.mxu2 %vm607_vm2, %v6044_v1 }
 0x125   : > { %2362 = vrot.lane.b32.xlu0 %v5588_v26, %s5470_s22 }
 0x126   : > { %2366 = vrot.lane.b32.xlu1 %v5597_v29, %s5470_s22  ;;  %5089 = vmatmul.msk.f32.gmra.mxu0 %vm607_vm2, %v5964_v60  ;;  %v1193_v10 = vpop.permute.xlu0 %1192  ;;  %v1187_v13 = vpop.permute.xlu1 %1186 }
 0x127   : > { %5092 = vmatmul.msk.f32.gmra.mxu1 %vm607_vm2, %v5964_v60  ;;  %v1201_v5 = vsel %vm1200_vm5, %v1193_v10, %v1197_v47  ;;  %v1203_v53 = vsel %vm1200_vm5, %v5984_v15, %v1193_v10  ;;  %v6103_v19 = vpop.permute.xlu2 %1641  ;;  %v1206_v9 = vsel %vm1200_vm5, %v1187_v13, %v1191_v59  ;;  %v1208_v20 = vsel %vm1200_vm5, %v5897_v43, %v1187_v13  ;;  %v5139_v60 = vld [vmem:[%s8677_s4 + $0x5] ss:$8 sm:$0xf] }
 0x128   : > { %v1237_v11 = vmul.f32 %v1225_v52, %v1203_v53  ;;  %v1238_v22 = vmul.f32 %v1226_v40, %v1201_v5  ;;  %v1241_v39 = vmul.f32 %v1223_v6, %v1208_v20  ;;  %v1242_v42 = vmul.f32 %v1224_v7, %v1206_v9  ;;  %2370 = vrot.lane.b32.xlu2 %v5621_v35, %s5470_s22  ;;  %v5161_v5 = vld [vmem:[%s8677_s4 + $0x6] ss:$8 sm:$0xf] }
 0x129   : > { %v1205_v43 = vsel %vm1200_vm5, %v6003_v23, %v5984_v15  ;;  %v6124_v54 = vor.u32 %v5140_v21, %v5139_v60  ;;  %v1428_v47 = vperm.slane %v6078_v4, 1  ;;  %v1447_v15 = vmul.f32 %v1429_v14, %v5593_v27  ;;  %v5162_v53 = vld [vmem:[%s8677_s4 + $0x6] ss:$8 sm:$0x30] }
 0x12a   : > { %5103 = vmatpush.msk.msrb.mxu0 %vm614_vm1, %v1241_v39  ;;  %5106 = vmatpush.msk.msrb.mxu1 %vm614_vm1, %v1242_v42  ;;  %v1236_v48 = vmul.f32 %v1224_v7, %v1205_v43  ;;  %v1448_v23 = vmul.f32 %v1430_v18, %v5584_v24  ;;  %v1441_v27 = vmul.f32 %v1429_v14, %v5588_v26 }
 0x12b   : > { %1376 = vmatpush.msrb.mxu2 %v1237_v11  ;;  %1399 = vmatpush.msrb.mxu3 %v1238_v22  ;;  %v1670_v50 = vperm.slane %v6124_v54, 0  ;;  %v1671_v51 = vperm.slane %v6124_v54, 1  ;;  %v1442_v24 = vmul.f32 %v1430_v18, %v5597_v29  ;;  %v1446_v55 = vmul.f32 %v1428_v47, %v5586_v25 }
 0x12c   : > { %5110 = vmatmul.msk.f32.vlgmr.msrb.gmra.mxu2 %vm607_vm2, %v6011_v16  ;;  %5113 = vmatmul.msk.f32.vlgmr.msrb.gmra.mxu3 %vm607_vm2, %v6011_v16  ;;  %v1440_v17 = vmul.f32 %v1428_v47, %v5595_v28  ;;  %v1450_v59 = vmul.f32 %v1432_v57, %v5606_v32  ;;  %v1674_v2 = vperm.slane %v6124_v54, 4  ;;  %v1675_v58 = vperm.slane %v6124_v54, 5 }
 0x12d   : > { %2360 = vrot.lane.b32.xlu0 %v5586_v25, %s5470_s22  ;;  %1330 = vmatpush.msrb.mxu0 %v1235_v36  ;;  %v1431_v25 = vperm.slane %v6078_v4, 4  ;;  %v1672_v9 = vperm.slane %v6124_v54, 2  ;;  %v1673_v20 = vperm.slane %v6124_v54, 3  ;;  %v6258_v41 = vor.u32 %v5162_v53, %v5161_v5 }
 0x12e   : > { %2356 = vrot.lane.b32.xlu1 %v5602_v30, %s5470_s22  ;;  %1353 = vmatpush.msrb.mxu1 %v1236_v48  ;;  %v6139_v49 = vpop.permute.xlu0 %1627 }
 0x12f   : > { %5104 = vmatmul.msk.f32.vlgmr.msrb.gmra.mxu0 %vm607_vm2, %v6011_v16  ;;  %5107 = vmatmul.msk.f32.vlgmr.msrb.gmra.mxu1 %vm607_vm2, %v6011_v16  ;;  %v6153_v46 = vpop.permute.xlu2 %1637  ;;  %v1449_v52 = vmul.f32 %v1431_v25, %v5619_v34 }
 0x130   : > { %v1632_v56 = vpop.permute.xlu1 %1631  ;;  %5125 = vmatpush.msk.msra.mxu2 %vm614_vm1, %v1447_v15  ;;  %5128 = vmatpush.msk.msra.mxu3 %vm614_vm1, %v1448_v23  ;;  %v1652_v22 = vsel %vm1649_vm6, %v6153_v46, %v6103_v19  ;;  %v1654_v39 = vsel %vm1649_vm6, %v6062_v61, %v6153_v46  ;;  %v1915_v15 = vperm.slane %v6258_v41, 2  ;;  %v1916_v23 = vperm.slane %v6258_v41, 3 }
 0x131   : > { %v1657_v26 = vsel %vm1649_vm6, %v1632_v56, %v6031_v44  ;;  %v1659_v29 = vsel %vm1649_vm6, %v6139_v49, %v1632_v56  ;;  %2358 = vrot.lane.b32.xlu2 %v5595_v28, %s5470_s22  ;;  %5119 = vmatpush.msk.msra.mxu0 %vm614_vm1, %v1445_v12  ;;  %v1443_v28 = vmul.f32 %v1431_v25, %v5621_v35 }
 0x132   : > { %v1688_v30 = vmul.f32 %v1670_v50, %v1659_v29  ;;  %v1689_v16 = vmul.f32 %v1671_v51, %v1657_v26  ;;  %1536 = vmatpush.msra.mxu2 %v1441_v27  ;;  %1559 = vmatpush.msra.mxu3 %v1442_v24  ;;  %v1684_v47 = vmul.f32 %v1672_v9, %v1654_v39  ;;  %v5138_v26 = vld [vmem:[%s8678_s5 + $0x58] sm:$0x3f] }
 0x133   : > { %5122 = vmatpush.msk.msra.mxu1 %vm614_vm1, %v1446_v55  ;;  %1490 = vmatpush.msra.mxu0 %v1439_v38  ;;  %v1685_v48 = vmul.f32 %v1673_v20, %v1652_v22 }
 0x134   : > { %5141 = vmatpush.msk.msrb.mxu2 %vm614_vm1, %v1688_v30  ;;  %5114 = vmatmul.msk.f32.gmra.mxu3 %vm607_vm2, %v6044_v1 }
 0x135   : > { %5111 = vmatmul.msk.f32.gmra.mxu2 %vm607_vm2, %v6044_v1  ;;  %2354 = vrot.lane.b32.xlu0 %v5604_v31, %s5470_s22 }
 0x136   : > { %2376 = vrot.lane.b32.xlu1 %v5606_v32, %s5470_s22  ;;  %v1626_v40 = vpop.permute.xlu0 %1625  ;;  %5144 = vmatpush.msk.msrb.mxu3 %vm614_vm1, %v1689_v16  ;;  %v6194_v32 = vld [vmem:[%s8678_s5 + $0x40] sm:$0xff] }
 0x137   : > { %5105 = vmatmul.msk.f32.gmra.mxu0 %vm607_vm2, %v6044_v1  ;;  %5108 = vmatmul.msk.f32.gmra.mxu1 %vm607_vm2, %v6044_v1  ;;  %v6201_v63 = vpop.permute.xlu2 %1886 }
 0x138   : > { %v1630_v37 = vpop.permute.xlu1 %1629  ;;  %1513 = vmatpush.msra.mxu1 %v1440_v17  ;;  %5131 = vmatpush.msk.msrb.mxu0 %vm614_vm1, %v1449_v52 }
 0x139   : > { %v1656_v31 = vsel %vm1649_vm6, %v1630_v37, %v6062_v61  ;;  %v1658_v34 = vsel %vm1649_vm6, %v1626_v40, %v1630_v37  ;;  %2374 = vrot.lane.b32.xlu2 %v5611_v33, %s5470_s22  ;;  %v1914_v37 = vperm.slane %v6258_v41, 1  ;;  %s5483_s22 = smov 106  }
 0x13a   : > { %v1682_v35 = vmul.f32 %v1670_v50, %v1658_v34  ;;  %v1683_v1 = vmul.f32 %v1671_v51, %v1656_v31  ;;  %5134 = vmatpush.msk.msrb.mxu1 %vm614_vm1, %v1450_v59  ;;  %1582 = vmatpush.msrb.mxu0 %v1443_v28  ;;  %v1913_v31 = vperm.slane %v6258_v41, 0 }
 0x13c   : > { %1733 = vmatpush.msrb.mxu2 %v1682_v35  ;;  %5129 = vmatmul.msk.f32.vlgmr.msra.gmra.mxu3 %vm607_vm2, %v6194_v32  ;;  %v5184_v35 = vld [vmem:[%s8677_s4 + $0x7] ss:$8 sm:$0x30] }
 0x13d   : > { %5126 = vmatmul.msk.f32.vlgmr.msra.gmra.mxu2 %vm607_vm2, %v6194_v32  ;;  %1756 = vmatpush.msrb.mxu3 %v1683_v1 }
 0x13e   : > { %v1644_v0 = vpop.permute.xlu0 %1643  ;;  %1605 = vmatpush.msrb.mxu1 %v1444_v62 }
 0x13f   : > { %5120 = vmatmul.msk.f32.vlgmr.msra.gmra.mxu0 %vm607_vm2, %v6194_v32  ;;  %5123 = vmatmul.msk.f32.vlgmr.msra.gmra.mxu1 %vm607_vm2, %v6194_v32  ;;  %v6223_v10 = vpop.permute.xlu2 %1884 }
 0x140   : > { %v1648_v33 = vpop.permute.xlu1 %1647 }
 0x141   : > { %v1651_v3 = vsel %vm1649_vm6, %v1644_v0, %v1648_v33  ;;  %v1661_v4 = vsel %vm1649_vm6, %v1648_v33, %v6139_v49  ;;  %v6279_v24 = vpop.f32.mrf.mxu2 }
 0x142   : > { %v1692_v6 = vmul.f32 %v1674_v2, %v1651_v3  ;;  %v1693_v7 = vmul.f32 %v1675_v58, %v1661_v4  ;;  %v6277_v51 = vpop.f32.mrf.mxu1 }
 0x144   : > { %5153 = vmatpush.msk.msra.mxu2 %vm614_vm1, %v1692_v6  ;;  %5156 = vmatpush.msk.msra.mxu3 %vm614_vm1, %v1693_v7 }
 0x145   : > { %5127 = vmatmul.msk.f32.gmra.mxu2 %vm607_vm2, %v5116_v8  ;;  %5130 = vmatmul.msk.f32.gmra.mxu3 %vm607_vm2, %v5116_v8 }
 0x146   : > { %v1646_v13 = vpop.permute.xlu0 %1645 }
 0x147   : > { %5121 = vmatmul.msk.f32.gmra.mxu0 %vm607_vm2, %v5116_v8  ;;  %5124 = vmatmul.msk.f32.gmra.mxu1 %vm607_vm2, %v5116_v8  ;;  %v1650_v14 = vsel %vm1649_vm6, %v6103_v19, %v1646_v13  ;;  %v1660_v18 = vsel %vm1649_vm6, %v1646_v13, %v1626_v40  ;;  %v5137_v19 = vld [vmem:[%s8678_s5 + $0x50] sm:$0xff]  ;;  %v6269_v49 = vpop.permute.xlu2 %1872 }
 0x148   : > { %v1686_v60 = vmul.f32 %v1674_v2, %v1650_v14  ;;  %v1687_v21 = vmul.f32 %v1675_v58, %v1660_v18  ;;  %v1640_v11 = vpop.permute.xlu1 %1639  ;;  %v6271_v50 = vpop.f32.mrf.mxu0 }
 0x149   : > { %v1653_v42 = vsel %vm1649_vm6, %v1640_v11, %v1644_v0  ;;  %v1655_v43 = vsel %vm1649_vm6, %v6031_v44, %v1640_v11  ;;  %v6264_v44 = vpop.f32.mrf.mxu3  ;;  %v6306_v28 = vpop.f32.mrf.mxu2  ;;  %v5159_v11 = vld [vmem:[%s8678_s5 + $0x60] sm:$0xff] }
 0x14a   : > { %v1690_v54 = vmul.f32 %v1672_v9, %v1655_v43  ;;  %v1691_v36 = vmul.f32 %v1673_v20, %v1653_v42  ;;  %1825 = vmatpush.msra.mxu2 %v1686_v60  ;;  %1848 = vmatpush.msra.mxu3 %v1687_v21  ;;  %v6304_v52 = vpop.f32.mrf.mxu1 }
 0x14c   : > { %5147 = vmatpush.msk.msra.mxu0 %vm614_vm1, %v1690_v54  ;;  %5150 = vmatpush.msk.msra.mxu1 %vm614_vm1, %v1691_v36 }
 0x14d   : > { %5142 = vmatmul.msk.f32.vlgmr.msrb.gmra.mxu2 %vm607_vm2, %v5137_v19  ;;  %5145 = vmatmul.msk.f32.vlgmr.msrb.gmra.mxu3 %vm607_vm2, %v5137_v19 }
 0x14e   : > { %1779 = vmatpush.msra.mxu0 %v1684_v47  ;;  %1802 = vmatpush.msra.mxu1 %v1685_v48  ;;  %v1879_v61 = vpop.permute.xlu0 %1878 }
 0x14f   : > { %5132 = vmatmul.msk.f32.vlgmr.msrb.gmra.mxu0 %vm607_vm2, %v6194_v32  ;;  %5135 = vmatmul.msk.f32.vlgmr.msrb.gmra.mxu1 %vm607_vm2, %v6194_v32  ;;  %v2118_v16 = vpop.permute.xlu2 %2117  ;;  %v5183_v32 = vld [vmem:[%s8677_s4 + $0x7] ss:$8 sm:$0xf] }
 0x150   : > { %v1883_v27 = vpop.permute.xlu1 %1882  ;;  %v6297_v57 = vpop.f32.mrf.mxu0  ;;  %v6332_v4 = vor.u32 %v5184_v35, %v5183_v32 }
 0x151   : > { %v1896_v12 = vsel %vm1892_vm7, %v1883_v27, %v6201_v63  ;;  %v1898_v55 = vsel %vm1892_vm7, %v1879_v61, %v1883_v27  ;;  %v6295_v25 = vpop.f32.mrf.mxu3 }
 0x152   : > { %v1933_v56 = vmul.f32 %v1915_v15, %v1898_v55  ;;  %v1934_v46 = vmul.f32 %v1916_v23, %v1896_v12  ;;  %v2156_v18 = vperm.slane %v6332_v4, 0  ;;  %v2157_v43 = vperm.slane %v6332_v4, 1 }
 0x154   : > { %5169 = vmatpush.msk.msrb.mxu2 %vm614_vm1, %v1933_v56  ;;  %5172 = vmatpush.msk.msrb.mxu3 %vm614_vm1, %v1934_v46  ;;  %v1917_v46 = vperm.slane %v6258_v41, 4 }
 0x155   : > { %5143 = vmatmul.msk.f32.gmra.mxu2 %vm607_vm2, %v5138_v26  ;;  %5146 = vmatmul.msk.f32.gmra.mxu3 %vm607_vm2, %v5138_v26 }
 0x156   : > { %v1877_v29 = vpop.permute.xlu0 %1876 }
 0x157   : > { %5133 = vmatmul.msk.f32.gmra.mxu0 %vm607_vm2, %v5116_v8  ;;  %5136 = vmatmul.msk.f32.gmra.mxu1 %vm607_vm2, %v5116_v8  ;;  %v1899_v0 = vsel %vm1892_vm7, %v6269_v49, %v1877_v29  ;;  %v2116_v6 = vpop.permute.xlu2 %2115 }
 0x158   : > { %v1881_v30 = vpop.permute.xlu1 %1880  ;;  %v1926_v8 = vmul.f32 %v1914_v37, %v1899_v0 }
 0x159   : > { %v1895_v38 = vsel %vm1892_vm7, %v1881_v30, %v6223_v10  ;;  %v1897_v17 = vsel %vm1892_vm7, %v1877_v29, %v1881_v30  ;;  %v6330_v33 = vpop.f32.mrf.mxu3 }
 0x15a   : > { %v1927_v40 = vmul.f32 %v1915_v15, %v1897_v17  ;;  %v1928_v59 = vmul.f32 %v1916_v23, %v1895_v38  ;;  %v1918_v38 = vperm.slane %v6258_v41, 5 }
 0x15c   : > { %2022 = vmatpush.msrb.mxu2 %v1927_v40  ;;  %2045 = vmatpush.msrb.mxu3 %v1928_v59  ;;  %v6334_v7 = vpop.f32.mrf.mxu0  ;;  %v6337_v13 = vpop.f32.mrf.mxu1 }
 0x15d   : > { %5154 = vmatmul.msk.f32.vlgmr.msra.gmra.mxu2 %vm607_vm2, %v5137_v19  ;;  %5157 = vmatmul.msk.f32.vlgmr.msra.gmra.mxu3 %vm607_vm2, %v5137_v19 }
 0x15f   : > { %5148 = vmatmul.msk.f32.vlgmr.msra.gmra.mxu0 %vm607_vm2, %v5137_v19  ;;  %5151 = vmatmul.msk.f32.vlgmr.msra.gmra.mxu1 %vm607_vm2, %v5137_v19  ;;  %v1875_v34 = vpop.permute.xlu0 %1874  ;;  %v6340_v14 = vpop.f32.mrf.mxu2 }
 0x160   : > { %v1900_v1 = vsel %vm1892_vm7, %v1875_v34, %v1879_v61  ;;  %v6322_v62 = vpop.permute.xlu1 %1870  ;;  %v1889_v39 = vpop.permute.xlu2 %1888 }
 0x161   : > { %v1932_v2 = vmul.f32 %v1914_v37, %v1900_v1  ;;  %v1902_v58 = vsel %vm1892_vm7, %v6322_v62, %v1875_v34  ;;  %v6359_v22 = vpop.f32.mrf.mxu3  ;;  %v2161_v1 = vperm.slane %v6332_v4, 5 }
 0x162   : > { %v1931_v3 = vmul.f32 %v1913_v31, %v1902_v58 }
 0x163   : > { %5166 = vmatpush.msk.msrb.mxu1 %vm614_vm1, %v1932_v2 }
 0x164   : > { %5163 = vmatpush.msk.msrb.mxu0 %vm614_vm1, %v1931_v3  ;;  %v6362_v42 = vpop.f32.mrf.mxu0  ;;  %v6367_v54 = vpop.f32.mrf.mxu1 }
 0x165   : > { %5155 = vmatmul.msk.f32.gmra.mxu2 %vm607_vm2, %v5138_v26  ;;  %5158 = vmatmul.msk.f32.gmra.mxu3 %vm607_vm2, %v5138_v26 }
 0x166   : > { %1999 = vmatpush.msrb.mxu1 %v1926_v8 }
 0x167   : > { %5149 = vmatmul.msk.f32.gmra.mxu0 %vm607_vm2, %v5138_v26  ;;  %5152 = vmatmul.msk.f32.gmra.mxu1 %vm607_vm2, %v5138_v26  ;;  %v1869_v5 = vpop.permute.xlu0 %1868  ;;  %v6369_v36 = vpop.f32.mrf.mxu2 }
 0x168   : > { %v1901_v53 = vsel %vm1892_vm7, %v1869_v5, %v6269_v49  ;;  %v6351_v9 = vpop.permute.xlu1 %2113  ;;  %v5160_v49 = vld [vmem:[%s8678_s5 + $0x68] sm:$0x3f]  ;;  %v6387_v27 = vpop.permute.xlu2 %2127  ;;  %v1903_v37 = vsel %vm1892_vm7, %v1889_v39, %v1869_v5 }
 0x169   : > { %v1925_v20 = vmul.f32 %v1913_v31, %v1901_v53  ;;  %v2145_v60 = vsel %vm2135_vm8, %v6351_v9, %v2118_v16  ;;  %v1930_v35 = vmul.f32 %v1918_v38, %v1903_v37 }
 0x16a   : > { %v2174_v21 = vmul.f32 %v2156_v18, %v2145_v60 }
 0x16b   : > { %1976 = vmatpush.msrb.mxu0 %v1925_v20  ;;  %v5182_v20 = vld [vmem:[%s8678_s5 + $0x78] sm:$0x3f] }
 0x16c   : > { %5185 = vmatpush.msk.msra.mxu2 %vm614_vm1, %v2174_v21  ;;  %v6393_v55 = vpop.f32.mrf.mxu0 }
 0x16d   : > { %5170 = vmatmul.msk.f32.vlgmr.msrb.gmra.mxu2 %vm607_vm2, %v5159_v11  ;;  %5173 = vmatmul.msk.f32.vlgmr.msrb.gmra.mxu3 %vm607_vm2, %v5159_v11  ;;  %v6398_v26 = vpop.f32.mrf.mxu1 }
 0x16f   : > { %5164 = vmatmul.msk.f32.vlgmr.msrb.gmra.mxu0 %vm607_vm2, %v5159_v11  ;;  %5167 = vmatmul.msk.f32.vlgmr.msrb.gmra.mxu1 %vm607_vm2, %v5159_v11  ;;  %v6373_v19 = vpop.permute.xlu0 %2121  ;;  %v6391_v12 = vpop.f32.mrf.mxu3 }
 0x170   : > { %v2143_v47 = vsel %vm2135_vm8, %v2118_v16, %v6373_v19  ;;  %v6378_v48 = vpop.permute.xlu1 %2111  ;;  %v1893_v16 = vsel %vm1892_vm7, %v6223_v10, %v1889_v39  ;;  %v6406_v17 = vpop.f32.mrf.mxu2  ;;  %v6419_v10 = vld [vmem:[%s8678_s5 + $0x70] sm:$0xff] }
 0x171   : > { %v2175_v61 = vmul.f32 %v2157_v43, %v2143_v47  ;;  %v2144_v15 = vsel %vm2135_vm8, %v6378_v48, %v2116_v6  ;;  %v1929_v32 = vmul.f32 %v1917_v46, %v1893_v16  ;;  %v5206_v39 = vld [vmem:[%s8677_s4 + $0x30] ss:$8 sm:$0x30]  ;;  %v2158_v47 = vperm.slane %v6332_v4, 2 }
 0x172   : > { %v2168_v23 = vmul.f32 %v2156_v18, %v2144_v15 }
 0x173   : > { %5188 = vmatpush.msk.msra.mxu3 %vm614_vm1, %v2175_v61 }
 0x174   : > { %2219 = vmatpush.msra.mxu2 %v2168_v23  ;;  %v6433_v3 = vpop.f32.mrf.mxu0 }
 0x175   : > { %5171 = vmatmul.msk.f32.gmra.mxu2 %vm607_vm2, %v5160_v49  ;;  %5174 = vmatmul.msk.f32.gmra.mxu3 %vm607_vm2, %v5160_v49  ;;  %v6440_v18 = vpop.f32.mrf.mxu1 }
 0x177   : > { %5165 = vmatmul.msk.f32.gmra.mxu0 %vm607_vm2, %v5160_v49  ;;  %5168 = vmatmul.msk.f32.gmra.mxu1 %vm607_vm2, %v5160_v49  ;;  %v2120_v56 = vpop.permute.xlu0 %2119  ;;  %v6430_v2 = vpop.f32.mrf.mxu3 }
 0x178   : > { %v2142_v29 = vsel %vm2135_vm8, %v2116_v6, %v2120_v56  ;;  %v1891_v30 = vpop.permute.xlu1 %1890  ;;  %v6445_v60 = vpop.f32.mrf.mxu2 }
 0x179   : > { %v2169_v40 = vmul.f32 %v2157_v43, %v2142_v29  ;;  %v1894_v59 = vsel %vm1892_vm7, %v6201_v63, %v1891_v30  ;;  %v1904_v31 = vsel %vm1892_vm7, %v1891_v30, %v6322_v62  ;;  %v2160_v63 = vperm.slane %v6332_v4, 4  ;;  %v2124_v62 = vpop.permute.xlu2 %2123 }
 0x17a   : > { %v1935_v34 = vmul.f32 %v1917_v46, %v1894_v59  ;;  %v1936_v41 = vmul.f32 %v1918_v38, %v1904_v31  ;;  %v2159_v43 = vperm.slane %v6332_v4, 3  ;;  %v2138_v46 = vsel %vm2135_vm8, %v2124_v62, %v6387_v27 }
 0x17b   : > { %2242 = vmatpush.msra.mxu3 %v2169_v40  ;;  %vm2908_vm7 = vcmask 1045508  }
 0x17c   : > { %5175 = vmatpush.msk.msra.mxu0 %vm614_vm1, %v1935_v34  ;;  %5178 = vmatpush.msk.msra.mxu1 %vm614_vm1, %v1936_v41  ;;  %v2171_v31 = vmul.f32 %v2159_v43, %v2138_v46 }
 0x17d   : > { %5186 = vmatmul.msk.f32.vlgmr.msra.gmra.mxu2 %vm607_vm2, %v6419_v10  ;;  %5189 = vmatmul.msk.f32.vlgmr.msra.gmra.mxu3 %vm607_vm2, %v6419_v10 }
 0x17e   : > { %2068 = vmatpush.msra.mxu0 %v1929_v32  ;;  %2091 = vmatpush.msra.mxu1 %v1930_v35 }
 0x17f   : > { %5176 = vmatmul.msk.f32.vlgmr.msra.gmra.mxu0 %vm607_vm2, %v5159_v11  ;;  %v2130_v0 = vpop.permute.xlu0 %2129  ;;  %5179 = vmatmul.msk.f32.vlgmr.msra.gmra.mxu1 %vm607_vm2, %v5159_v11  ;;  %v5205_v11 = vld [vmem:[%s8677_s4 + $0x30] ss:$8 sm:$0xf]  ;;  %v6478_v38 = vpop.f32.mrf.mxu3 }
 0x180   : > { %v2134_v58 = vpop.permute.xlu1 %2133  ;;  %v6488_v41 = vpop.f32.mrf.mxu2 }
 0x181   : > { %v2137_v6 = vsel %vm2135_vm8, %v2130_v0, %v2134_v58  ;;  %v2147_v8 = vsel %vm2135_vm8, %v2134_v58, %v6351_v9  ;;  %v6451_v21 = vpop.permute.xlu2 %2372 }
 0x182   : > { %v2178_v5 = vmul.f32 %v2160_v63, %v2137_v6  ;;  %v2179_v53 = vmul.f32 %v2161_v1, %v2147_v8 }
 0x184   : > { %5197 = vmatpush.msk.msrb.mxu2 %vm614_vm1, %v2178_v5  ;;  %5200 = vmatpush.msk.msrb.mxu3 %vm614_vm1, %v2179_v53  ;;  %v6480_v40 = vpop.f32.mrf.mxu1 }
 0x185   : > { %5187 = vmatmul.msk.f32.gmra.mxu2 %vm607_vm2, %v5182_v20  ;;  %5190 = vmatmul.msk.f32.gmra.mxu3 %vm607_vm2, %v5182_v20 }
 0x187   : > { %5177 = vmatmul.msk.f32.gmra.mxu0 %vm607_vm2, %v5160_v49  ;;  %v2132_v9 = vpop.permute.xlu0 %2131  ;;  %5180 = vmatmul.msk.f32.gmra.mxu1 %vm607_vm2, %v5160_v49  ;;  %v2140_v49 = vsel %vm2135_vm8, %v2120_v56, %v2124_v62  ;;  %v6511_v8 = vpop.f32.mrf.mxu3 }
 0x188   : > { %v2136_v61 = vsel %vm2135_vm8, %v6387_v27, %v2132_v9  ;;  %v2146_v15 = vsel %vm2135_vm8, %v2132_v9, %v6378_v48  ;;  %v2126_v23 = vpop.permute.xlu1 %2125  ;;  %v6474_v16 = vpop.f32.mrf.mxu0  ;;  %v6485_v27 = vor.u32 %v5206_v39, %v5205_v11  ;;  %v2170_v34 = vmul.f32 %v2158_v47, %v2140_v49 }
 0x189   : > { %v2172_v29 = vmul.f32 %v2160_v63, %v2136_v61  ;;  %v2173_v30 = vmul.f32 %v2161_v1, %v2146_v15  ;;  %v2139_v4 = vsel %vm2135_vm8, %v2126_v23, %v2130_v0  ;;  %v2141_v48 = vsel %vm2135_vm8, %v6373_v19, %v2126_v23  ;;  %v6502_v63 = vpop.permute.xlu2 %2370  ;;  %v6531_v61 = vld [vmem:[%s8678_s5 + $0x80] sm:$0xff] }
 0x18a   : > { %v2177_v59 = vmul.f32 %v2159_v43, %v2139_v4  ;;  %v2176_v37 = vmul.f32 %v2158_v47, %v2141_v48  ;;  %v2401_v19 = vperm.slane %v6485_v27, 2  ;;  %v2402_v56 = vperm.slane %v6485_v27, 3 }
 0x18b   : > { %2311 = vmatpush.msrb.mxu2 %v2172_v29  ;;  %2334 = vmatpush.msrb.mxu3 %v2173_v30  ;;  %v2399_v29 = vperm.slane %v6485_v27, 0  ;;  %v2400_v30 = vperm.slane %v6485_v27, 1  ;;  %vm2906_vm8 = vcmask 1041408  }
 0x18c   : > { %5194 = vmatpush.msk.msrb.mxu1 %vm614_vm1, %v2177_v59  ;;  %5191 = vmatpush.msk.msrb.mxu0 %vm614_vm1, %v2176_v37  ;;  %v6513_v5 = vpop.f32.mrf.mxu1 }
 0x18d   : > { %5198 = vmatmul.msk.f32.vlgmr.msrb.gmra.mxu2 %vm607_vm2, %v6419_v10  ;;  %5201 = vmatmul.msk.f32.vlgmr.msrb.gmra.mxu3 %vm607_vm2, %v6419_v10 }
 0x18e   : > { %2288 = vmatpush.msrb.mxu1 %v2171_v31  ;;  %2265 = vmatpush.msrb.mxu0 %v2170_v34 }
 0x18f   : > { %v2365_v32 = vpop.permute.xlu0 %2364  ;;  %5192 = vmatmul.msk.f32.vlgmr.msrb.gmra.mxu0 %vm607_vm2, %v6419_v10  ;;  %5195 = vmatmul.msk.f32.vlgmr.msrb.gmra.mxu1 %vm607_vm2, %v6419_v10  ;;  %v6519_v10 = vpop.f32.mrf.mxu2 }
 0x190   : > { %v2369_v35 = vpop.permute.xlu1 %2368  ;;  %v6509_v6 = vpop.f32.mrf.mxu0 }
 0x191   : > { %v2382_v1 = vsel %vm2378_vm9, %v2369_v35, %v6451_v21  ;;  %v2384_v62 = vsel %vm2378_vm9, %v2365_v32, %v2369_v35  ;;  %v2359_v15 = vpop.permute.xlu2 %2358 }
 0x192   : > { %v2419_v0 = vmul.f32 %v2401_v19, %v2384_v62  ;;  %v2420_v58 = vmul.f32 %v2402_v56, %v2382_v1 }
 0x194   : > { %5213 = vmatpush.msk.msra.mxu2 %vm614_vm1, %v2419_v0  ;;  %5216 = vmatpush.msk.msra.mxu3 %vm614_vm1, %v2420_v58  ;;  %v2404_v58 = vperm.slane %v6485_v27, 5 }
 0x195   : > { %5199 = vmatmul.msk.f32.gmra.mxu2 %vm607_vm2, %v5182_v20  ;;  %5202 = vmatmul.msk.f32.gmra.mxu3 %vm607_vm2, %v5182_v20 }
 0x196   : > { %v6535_v46 = vpop.f32.mrf.mxu3 }
 0x197   : > { %v2363_v53 = vpop.permute.xlu0 %2362  ;;  %5193 = vmatmul.msk.f32.gmra.mxu0 %vm607_vm2, %v5182_v20  ;;  %5196 = vmatmul.msk.f32.gmra.mxu1 %vm607_vm2, %v5182_v20 }
 0x198   : > { %v2367_v9 = vpop.permute.xlu1 %2366  ;;  %v2385_v48 = vsel %vm2378_vm9, %v2359_v15, %v2363_v53 }
 0x199   : > { %v2381_v11 = vsel %vm2378_vm9, %v2367_v9, %v6502_v63  ;;  %v2383_v39 = vsel %vm2378_vm9, %v2363_v53, %v2367_v9  ;;  %v2412_v35 = vmul.f32 %v2400_v30, %v2385_v48 }
 0x19a   : > { %v2413_v43 = vmul.f32 %v2401_v19, %v2383_v39  ;;  %v2414_v47 = vmul.f32 %v2402_v56, %v2381_v11  ;;  %v5204_v56 = vld [vmem:[%s8678_s5 + $0x88] sm:$0x3f]  ;;  %v2403_v11 = vperm.slane %v6485_v27, 4 }
 0x19b   : > { %v6533_v23 = vpop.f32.mrf.mxu0 }
 0x19c   : > { %v6537_v20 = vpop.f32.mrf.mxu1  ;;  %2508 = vmatpush.msra.mxu2 %v2413_v43  ;;  %2531 = vmatpush.msra.mxu3 %v2414_v47 }
 0x19d   : > { %5214 = vmatmul.msk.f32.vlgmr.msra.gmra.mxu2 %vm607_vm2, %v6531_v61  ;;  %5217 = vmatmul.msk.f32.vlgmr.msra.gmra.mxu3 %vm607_vm2, %v6531_v61 }
 0x19e   : > { %v6563_v0 = vpop.f32.mrf.mxu3 }
 0x19f   : > { %v2361_v4 = vpop.permute.xlu0 %2360  ;;  %v6545_v49 = vpop.f32.mrf.mxu2 }
 0x1a0   : > { %v2386_v59 = vsel %vm2378_vm9, %v2361_v4, %v2365_v32  ;;  %v2357_v37 = vpop.permute.xlu1 %2356  ;;  %v2375_v32 = vpop.permute.xlu2 %2374 }
 0x1a1   : > { %v2418_v31 = vmul.f32 %v2400_v30, %v2386_v59  ;;  %v2388_v34 = vsel %vm2378_vm9, %v2357_v37, %v2361_v4  ;;  %v2379_v59 = vsel %vm2378_vm9, %v6502_v63, %v2375_v32 }
 0x1a2   : > { %v2417_v19 = vmul.f32 %v2399_v29, %v2388_v34 }
 0x1a3   : > { %v6556_v1 = vpop.f32.mrf.mxu0  ;;  %5210 = vmatpush.msk.msra.mxu1 %vm614_vm1, %v2418_v31 }
 0x1a4   : > { %v6559_v62 = vpop.f32.mrf.mxu1  ;;  %5207 = vmatpush.msk.msra.mxu0 %vm614_vm1, %v2417_v19 }
 0x1a5   : > { %5215 = vmatmul.msk.f32.gmra.mxu2 %vm607_vm2, %v5204_v56  ;;  %2485 = vmatpush.msra.mxu1 %v2412_v35 }
 0x1a6   : > { %5218 = vmatmul.msk.f32.gmra.mxu3 %vm607_vm2, %v5204_v56  ;;  %5211 = vmatmul.msk.f32.vlgmr.msra.gmra.mxu1 %vm607_vm2, %v6531_v61 }
 0x1a7   : > { %v2355_v53 = vpop.permute.xlu0 %2354  ;;  %v6569_v9 = vpop.f32.mrf.mxu2 }
 0x1a8   : > { %v2387_v39 = vsel %vm2378_vm9, %v2355_v53, %v2359_v15  ;;  %v2377_v43 = vpop.permute.xlu1 %2376  ;;  %v2389_v47 = vsel %vm2378_vm9, %v2375_v32, %v2355_v53 }
 0x1a9   : > { %v2411_v30 = vmul.f32 %v2399_v29, %v2387_v39  ;;  %v2380_v4 = vsel %vm2378_vm9, %v6451_v21, %v2377_v43  ;;  %v2390_v48 = vsel %vm2378_vm9, %v2377_v43, %v2357_v37  ;;  %v2416_v15 = vmul.f32 %v2404_v58, %v2389_v47 }
 0x1aa   : > { %v2421_v27 = vmul.f32 %v2403_v11, %v2380_v4  ;;  %v2422_v31 = vmul.f32 %v2404_v58, %v2390_v48  ;;  %v2415_v21 = vmul.f32 %v2403_v11, %v2379_v59  ;;  %v813_v48 = vadd.f32 %v6340_v14, %v6271_v50 }
 0x1ab   : > { %2462 = vmatpush.msra.mxu0 %v2411_v30  ;;  %v836_v59 = vadd.f32 %v6330_v33, %v6277_v51  ;;  %v839_v50 = vadd.f32 %v6359_v22, %v6304_v52  ;;  %v859_v22 = vadd.f32 %v6393_v55, %v6279_v24  ;;  %vm2910_vm9 = vcmask 1043456  }
 0x1ac   : > { %v6584_v34 = vpop.f32.mrf.mxu0  ;;  %v6586_v19 = vpop.f32.mrf.mxu1  ;;  %5222 = vmatpush.msk.msrb.mxu1 %vm614_vm1, %v2422_v31  ;;  %5208 = vmatmul.msk.f32.vlgmr.msra.gmra.mxu0 %vm607_vm2, %v6531_v61 }
 0x1ad   : > { %5219 = vmatpush.msk.msrb.mxu0 %vm614_vm1, %v2421_v27  ;;  %v1164_v27 = vadd.f32 %v6474_v16, %v813_v48  ;;  %v5471_v16 = vmov 1   ;;  %v1166_v24 = vadd.f32 %v6488_v41, %v859_v22 }
 0x1ae   : > { %2577 = vmatpush.msrb.mxu1 %v2416_v15  ;;  %5340 = vset.pattern.permute.xlu1 %v5471_v16 }
 0x1af   : > { %5212 = vmatmul.msk.f32.gmra.mxu1 %vm607_vm2, %v5204_v56  ;;  %2554 = vmatpush.msrb.mxu0 %v2415_v21  ;;  %v6593_v45 = vpop.f32.mrf.mxu2  ;;  %v6595_v63 = vpop.f32.mrf.mxu3  ;;  %v1409_v48 = vadd.f32 %v6584_v34, %v1166_v24 }
 0x1b4   : > { %v6597_v29 = vpop.f32.mrf.mxu0  ;;  %v6599_v37 = vpop.f32.mrf.mxu1  ;;  %5209 = vmatmul.msk.f32.gmra.mxu0 %vm607_vm2, %v5204_v56 }
 0x1b7   : > { %5223 = vmatmul.msk.f32.vlgmr.msrb.gmra.mxu1 %vm607_vm2, %v6531_v61  ;;  %v6604_v35 = vpop.f32.mrf.mxu3 }
 0x1b8   : > { %8691 = vst [vmem:[#allocation4_spill] sm:$0xff] %v6604_v35  ;;  %v6606_v32 = vpop.f32.mrf.mxu2 }
 0x1b9   : > { %8692 = vst [vmem:[#allocation5_spill] sm:$0xff] %v6606_v32 }
 0x1bc   : > { %v1492_v58 = vpop.f32.mrf.mxu0  ;;  %v1515_v53 = vpop.f32.mrf.mxu1  ;;  %5220 = vmatmul.msk.f32.vlgmr.msrb.gmra.mxu0 %vm607_vm2, %v6531_v61  ;;  %v1165_v61 = vadd.f32 %v6480_v40, %v836_v59 }
 0x1be   : > { %v1408_v21 = vadd.f32 %v6535_v46, %v1165_v61  ;;  %v5472_v46 = vmov 0  }
 0x1bf   : > { %5224 = vmatmul.msk.f32.gmra.mxu1 %vm607_vm2, %v5204_v56  ;;  %v1561_v11 = vpop.f32.mrf.mxu3  ;;  %5341 = vset.pattern.permute.xlu2 %v5472_v46  ;;  %v8696_v22 = vld [vmem:[#allocation4_spill] sm:$0xff] }
 0x1c0   : > { %v1538_v39 = vpop.f32.mrf.mxu2  ;;  %v1614_v32 = vadd.f32 %v1515_v53, %v1408_v21  ;;  %5339 = vset.pattern.permute.xlu0 %v5472_v46 }
 0x1c4   : > { %v1495_v43 = vpop.f32.mrf.mxu0  ;;  %v1518_v47 = vpop.f32.mrf.mxu1  ;;  %5221 = vmatmul.msk.f32.gmra.mxu0 %vm607_vm2, %v5204_v56  ;;  %v1407_v56 = vadd.f32 %v6545_v49, %v1164_v27  ;;  %v1171_v49 = vadd.f32 %v6513_v5, %v839_v50  ;;  %v6653_v5 = vld [vmem:[%s8680_s7] sm:$0xff] }
 0x1c5   : > { %2863 = vperm.xlu1 %5340, %v6653_v5   ;;  %2842 = vperm.xlu0 %5339, %v6653_v5  }
 0x1c6   : > { %v1613_v35 = vadd.f32 %v1492_v58, %v1407_v56 }
 0x1c8   : > { %v6612_v30 = vpop.f32.mrf.mxu2  ;;  %v6614_v4 = vpop.f32.mrf.mxu3 }
 0x1c9   : > { %8693 = vst [vmem:[#allocation6_spill] sm:$0xff] %v6614_v4  ;;  %v816_v4 = vadd.f32 %v6369_v36, %v6297_v57  ;;  %v882_v36 = vadd.f32 %v6398_v26, %v6264_v44 }
 0x1cb   : > { %v1170_v58 = vadd.f32 %v6509_v6, %v816_v4  ;;  %v2917_v6 = vld [vmem:[%s8679_s6] sm:$0xf]  ;;  %v1167_v44 = vadd.f32 %v6478_v38, %v882_v36 }
 0x1cc   : > { %v1584_v31 = vpop.f32.mrf.mxu0  ;;  %v1607_v15 = vpop.f32.mrf.mxu1  ;;  %2920 = vperm.xlu2 %5341, %v2917_v6  }
 0x1cd   : > { %v1410_v59 = vadd.f32 %v6586_v19, %v1167_v44  ;;  %2950 = vperm.xlu1 %5340, %v2917_v6  }
 0x1cf   : > { %v1616_v27 = vadd.f32 %v1561_v11, %v1410_v59 }
 0x1d0   : > { %v1735_v14 = vpop.f32.mrf.mxu2  ;;  %v1758_v51 = vpop.f32.mrf.mxu3 }
 0x1d1   : > { %v6628_v33 = vadd.f32 %v1735_v14, %v1613_v35  ;;  %v6630_v40 = vadd.f32 %v1758_v51, %v1614_v32  ;;  %v1414_v35 = vadd.f32 %v6563_v0, %v1171_v49  ;;  %v1413_v32 = vadd.f32 %v6569_v9, %v1170_v58 }
 0x1d2   : > { %v905_v0 = vadd.f32 %v6406_v17, %v6334_v7  ;;  %v928_v9 = vadd.f32 %v6391_v12, %v6337_v13  ;;  %v862_v7 = vadd.f32 %v6433_v3, %v6306_v28  ;;  %v885_v13 = vadd.f32 %v6440_v18, %v6295_v25  ;;  %v2983_v28 = vld [vmem:[%s8680_s7] sm:$0xf] }
 0x1d3   : > { %v1619_v55 = vadd.f32 %v1495_v43, %v1413_v32  ;;  %v1620_v26 = vadd.f32 %v1518_v47, %v1414_v35  ;;  %v1615_v47 = vadd.f32 %v1538_v39, %v1409_v48  ;;  %v2622_v35 = vld [vmem:[%s8680_s7 + $0x8] sm:$0x3f] }
 0x1d4   : > { %v6637_v57 = vpop.f32.mrf.mxu0  ;;  %v6639_v52 = vpop.f32.mrf.mxu1  ;;  %v1168_v38 = vadd.f32 %v6533_v23, %v905_v0  ;;  %v1169_v43 = vadd.f32 %v6537_v20, %v928_v9  ;;  %v1173_v23 = vadd.f32 %v6511_v8, %v885_v13  ;;  %v5473_v20 = vmov 2  }
 0x1d5   : > { %5342 = vset.pattern.permute.xlu2 %v5473_v20  ;;  %v1172_v25 = vadd.f32 %v6519_v10, %v862_v7  ;;  %5343 = vset.pattern.permute.xlu0 %v5473_v20  ;;  %v5475_v9 = vmov 4  }
 0x1d6   : > { %v1411_v12 = vadd.f32 %v6593_v45, %v1168_v38  ;;  %v1412_v19 = vadd.f32 %v6595_v63, %v1169_v43  ;;  %2986 = vperm.xlu2 %5342, %v2983_v28   ;;  %v908_v45 = vadd.f32 %v6445_v60, %v6362_v42  ;;  %v931_v63 = vadd.f32 %v6430_v2, %v6367_v54  ;;  %v8694_v42 = vld [vmem:[#allocation6_spill] sm:$0xff]  ;;  %v8695_v2 = vld [vmem:[#allocation5_spill] sm:$0xff] }
 0x1d7   : > { %v1415_v39 = vadd.f32 %v6597_v29, %v1172_v25  ;;  %v1416_v50 = vadd.f32 %v6599_v37, %v1173_v23 }
 0x1d8   : > { %v1738_v53 = vpop.f32.mrf.mxu2  ;;  %v1761_v4 = vpop.f32.mrf.mxu3  ;;  %v1617_v3 = vadd.f32 %v1584_v31, %v1411_v12  ;;  %v1618_v18 = vadd.f32 %v1607_v15, %v1412_v19  ;;  %v1174_v10 = vadd.f32 %v6556_v1, %v908_v45  ;;  %v1175_v31 = vadd.f32 %v6559_v62, %v931_v63 }
 0x1d9   : > { %v6665_v61 = vadd.f32 %v1738_v53, %v1619_v55  ;;  %v6667_v41 = vadd.f32 %v1761_v4, %v1620_v26  ;;  %v1621_v15 = vadd.f32 %v6612_v30, %v1415_v39  ;;  %v1622_v60 = vadd.f32 %v8694_v42, %v1416_v50  ;;  %v3012_v26 = vld [vmem:[%s8679_s6] sm:$0xff] }
 0x1da   : > { %v1417_v58 = vadd.f32 %v8695_v2, %v1174_v10  ;;  %v1418_v29 = vadd.f32 %v8696_v22, %v1175_v31  ;;  %v5474_v55 = vmov 3   ;;  %3015 = vperm.xlu0 %5343, %v3012_v26   ;;  %v5476_v53 = vmov 5  }
 0x1db   : > { %5344 = vset.pattern.permute.xlu1 %v5474_v55 }
 0x1dc   : > { %v1781_v17 = vpop.f32.mrf.mxu0  ;;  %v1804_v34 = vpop.f32.mrf.mxu1  ;;  %v1623_v1 = vadd.f32 %v6637_v57, %v1417_v58  ;;  %v1624_v62 = vadd.f32 %v6639_v52, %v1418_v29  ;;  %3031 = vperm.xlu1 %5344, %v3012_v26  }
 0x1dd   : > { %v6677_v21 = vadd.f32 %v1781_v17, %v1615_v47  ;;  %v6679_v56 = vadd.f32 %v1804_v34, %v1616_v27 }
 0x1de   : > { %5345 = vset.pattern.permute.xlu2 %v5472_v46 }
 0x1df   : > { %2847 = vperm.xlu2 %5345, %v2622_v35  }
 0x1e0   : > { %v1827_v8 = vpop.f32.mrf.mxu2  ;;  %v1850_v11 = vpop.f32.mrf.mxu3 }
 0x1e1   : > { %v6692_v14 = vadd.f32 %v1827_v8, %v1617_v3  ;;  %v6694_v51 = vadd.f32 %v1850_v11, %v1618_v18  ;;  %v5477_v18 = vmov 14.0  }
 0x1e2   : > { %5348 = vset.pattern.permute.xlu0 %v5476_v53  ;;  %5360 = vrcp.f32 %v5477_v18 }
 0x1e3   : > { %3075 = vperm.xlu0 %5348, %v3012_v26  }
 0x1e4   : > { %v1784_v49 = vpop.f32.mrf.mxu0  ;;  %v1807_v54 = vpop.f32.mrf.mxu1  ;;  %5346 = vset.pattern.permute.xlu1 %v5475_v9 }
 0x1e5   : > { %v1864_v36 = vadd.f32 %v1784_v49, %v1621_v15  ;;  %v6702_v37 = vadd.f32 %v1807_v54, %v1622_v60  ;;  %3053 = vperm.xlu1 %5346, %v3012_v26  }
 0x1e7   : > { %5347 = vset.pattern.permute.xlu2 %v5471_v16 }
 0x1e8   : > { %v1830_v30 = vpop.f32.mrf.mxu2  ;;  %v1853_v32 = vpop.f32.mrf.mxu3  ;;  %2867 = vperm.xlu2 %5347, %v2622_v35  }
 0x1e9   : > { %v6710_v6 = vadd.f32 %v1830_v30, %v1623_v1  ;;  %v6712_v24 = vadd.f32 %v1853_v32, %v1624_v62  ;;  %v6746_v50 = vpop.eup %5360 }
 0x1ea   : > { %vm2676_vm10 = vweird.f32 %v6746_v50 }
 0x1ec   : > { %v2001_v44 = vpop.f32.mrf.mxu1  ;;  %v6717_v0 = vpop.f32.mrf.mxu0 }
 0x1ed   : > { %5349 = vset.pattern.permute.xlu1 %v5474_v55  ;;  %v2100_v60 = vadd.f32 %v2001_v44, %v6630_v40  ;;  %v2099_v55 = vadd.f32 %v6717_v0, %v6628_v33 }
 0x1ee   : > { %3099 = vperm.xlu1 %5349, %v6653_v5  }
 0x1f0   : > { %v2024_v57 = vpop.f32.mrf.mxu2  ;;  %v2047_v46 = vpop.f32.mrf.mxu3  ;;  %3146 = vrot.lane.b32.xlu2 %v3012_v26, %s5467_s24  ;;  %s6751_s24 = scalar_lea.vmem [#allocation3], %s5581_s13  ;;  %s6922_s13 = smul.u32 6, %s5021_s30 }
 0x1f1   : > { %5351 = vset.pattern.permute.xlu2 %v5476_v53  ;;  %v2101_v8 = vadd.f32 %v2024_v57, %v6677_v21  ;;  %v2102_v11 = vadd.f32 %v2047_v46, %v6679_v56  ;;  %v2605_v21 = vld [vmem:[%s6751_s24 + $0x40] sm:$0x3f]  ;;  %v2599_v58 = vld [vmem:[%s6751_s24 + $0x10] sm:$0xff]  ;;  %v2600_v62 = vld [vmem:[%s6751_s24 + $0x18] sm:$0xff] }
 0x1f2   : > { %v2598_v53 = vld [vmem:[%s6751_s24 + $0x8] sm:$0xff]  ;;  %p438_p8 = scmp.lt.s32.totalorder %s6922_s13, 11 }
 0x1f4   : > { %v2004_v52 = vpop.f32.mrf.mxu1  ;;  %v6720_v59 = vpop.f32.mrf.mxu0  ;;  %s8820_s13 = smov (!%p438_p8, %s6922_s13), 11 }
 0x1f5   : > { %v2106_v56 = vadd.f32 %v2004_v52, %v6667_v41  ;;  %v2604_v52 = vld [vmem:[%s6751_s24 + $0x38] sm:$0x3f]  ;;  %s5029_s29 = sshll.u32 %s8820_s13, 1  ;;  %s5028_s10 = sshll.u32 %s8820_s13, 3 }
 0x1f6   : > { %5350 = vset.pattern.permute.xlu1 %v5475_v9  ;;  %s6982_s15 = scalar_lea.vmem %s8674_s1, %s5029_s29  ;;  %s7153_s29 = scalar_lea.vmem %s8673_s0, %s5028_s10 }
 0x1f7   : > { %3143 = vperm.xlu1 %5350, %v6653_v5  }
 0x1f8   : > { %v2027_v4 = vpop.f32.mrf.mxu2  ;;  %v2050_v48 = vpop.f32.mrf.mxu3  ;;  %3278 = vperm.xlu2 %5351, %v6653_v5  }
 0x1f9   : > { %v2107_v39 = vadd.f32 %v2027_v4, %v1864_v36  ;;  %v2108_v10 = vadd.f32 %v2050_v48, %v6702_v37  ;;  %v2672_v36 = vmul.f32 14.0, %v6746_v50  ;;  %v2606_v37 = vld [vmem:[%s6751_s24 + $0x48] sm:$0x3f] }
 0x1fb   : > { %v2673_v48 = vsub.f32 1.0, %v2672_v36 }
 0x1fc   : > { %v6723_v38 = vpop.f32.mrf.mxu1  ;;  %v6729_v47 = vpop.f32.mrf.mxu0 }
 0x200   : > { %v6725_v43 = vpop.f32.mrf.mxu2  ;;  %v2244_v16 = vpop.f32.mrf.mxu3 }
 0x201   : > { %v2343_v1 = vadd.f32 %v2244_v16, %v2100_v60 }
 0x204   : > { %v6731_v27 = vpop.f32.mrf.mxu1  ;;  %v6734_v12 = vpop.f32.mrf.mxu0 }
 0x208   : > { %v2224_v7 = vpop.f32.mrf.mxu2  ;;  %v2247_v13 = vpop.f32.mrf.mxu3 }
 0x209   : > { %v2349_v32 = vadd.f32 %v2247_v13, %v2106_v56  ;;  %v2105_v13 = vadd.f32 %v6720_v59, %v6665_v61 }
 0x20c   : > { %v2290_v34 = vpop.f32.mrf.mxu1  ;;  %v2267_v23 = vpop.f32.mrf.mxu0 }
 0x20d   : > { %v2344_v31 = vadd.f32 %v2267_v23, %v2101_v8  ;;  %v2345_v15 = vadd.f32 %v2290_v34, %v2102_v11  ;;  %v2342_v34 = vadd.f32 %v6725_v43, %v2099_v55  ;;  %v2603_v11 = vld [vmem:[%s6751_s24 + $0x30] sm:$0x3f]  ;;  %v2103_v55 = vadd.f32 %v6729_v47, %v6692_v14 }
 0x210   : > { %v6736_v17 = vpop.f32.mrf.mxu2  ;;  %v6738_v19 = vpop.f32.mrf.mxu3 }
 0x214   : > { %v2293_v25 = vpop.f32.mrf.mxu1  ;;  %v2270_v45 = vpop.f32.mrf.mxu0 }
 0x215   : > { %v2350_v42 = vadd.f32 %v2270_v45, %v2107_v39  ;;  %v2351_v49 = vadd.f32 %v2293_v25, %v2108_v10  ;;  %v2597_v10 = vld [vmem:[%s6751_s24] sm:$0xff] }
 0x218   : > { %v6740_v20 = vpop.f32.mrf.mxu2  ;;  %v6742_v28 = vpop.f32.mrf.mxu3 }
 0x220   : > { %v2510_v3 = vpop.f32.mrf.mxu2  ;;  %v2533_v63 = vpop.f32.mrf.mxu3 }
 0x221   : > { %v2587_v54 = vadd.f32 %v2510_v3, %v2344_v31  ;;  %v2588_v22 = vadd.f32 %v2533_v63, %v2345_v15  ;;  %v2348_v3 = vadd.f32 %v2224_v7, %v2105_v13  ;;  %v2674_v63 = vmul.f32 %v6746_v50, %v2673_v48 }
 0x223   : > { %v2487_v5 = vpop.f32.mrf.mxu1  ;;  %v6763_v41 = vadd.f32 %v2599_v58, %v2587_v54  ;;  %v6768_v9 = vadd.f32 %v2600_v62, %v2588_v22  ;;  %v2104_v54 = vadd.f32 %v6723_v38, %v6694_v51  ;;  %v2110_v38 = vadd.f32 %v6731_v27, %v6712_v24  ;;  %v2602_v27 = vld [vmem:[%s6751_s24 + $0x28] sm:$0xff] }
 0x224   : > { %v2586_v26 = vadd.f32 %v2487_v5, %v2343_v1 }
 0x226   : > { %v6782_v18 = vadd.f32 %v2598_v53, %v2586_v26  ;;  %v2353_v53 = vadd.f32 %v6742_v28, %v2110_v38 }
 0x228   : > { %v2513_v2 = vpop.f32.mrf.mxu2 }
 0x229   : > { %v2593_v29 = vadd.f32 %v2513_v2, %v2350_v42  ;;  %v2536_v40 = vpop.f32.mrf.mxu3  ;;  %v2464_v35 = vpop.f32.mrf.mxu0  ;;  %v2675_v2 = vadd.f32 %v6746_v50, %v2674_v63 }
 0x22a   : > { %v2594_v30 = vadd.f32 %v2536_v40, %v2351_v49  ;;  %v2585_v61 = vadd.f32 %v2464_v35, %v2342_v34 }
 0x22b   : > { %v6759_v44 = vadd.f32 %v2605_v21, %v2593_v29  ;;  %v6805_v1 = vsel %vm2676_vm10, %v6746_v50, %v2675_v2  ;;  %v2346_v50 = vadd.f32 %v6736_v17, %v2103_v55 }
 0x22c   : > { %v6765_v57 = vadd.f32 %v2606_v37, %v2594_v30  ;;  %v2490_v46 = vpop.f32.mrf.mxu1  ;;  %v6795_v56 = vadd.f32 %v2597_v10, %v2585_v61  ;;  %v2347_v37 = vadd.f32 %v6738_v19, %v2104_v54  ;;  %v2109_v19 = vadd.f32 %v6734_v12, %v6710_v6 }
 0x22d   : > { %v2639_v4 = vsel %vm614_vm1, %v6759_v44, 0.0  ;;  %v2592_v16 = vadd.f32 %v2490_v46, %v2349_v32 }
 0x22e   : > { %v2640_v33 = vadd.f32 %v2639_v4, %v6763_v41  ;;  %v2647_v0 = vsel %vm614_vm1, %v6765_v57, 0.0  ;;  %v2352_v14 = vadd.f32 %v6740_v20, %v2109_v19 }
 0x22f   : > { %v2648_v23 = vadd.f32 %v2647_v0, %v6768_v9  ;;  %v6780_v25 = vadd.f32 %v2604_v52, %v2592_v16 }
 0x230   : > { %v2641_v45 = vrot.slane %v2640_v33, 4 }
 0x231   : > { %v2649_v5 = vrot.slane %v2648_v23, 4  ;;  %v2631_v59 = vsel %vm614_vm1, %v6780_v25, 0.0  ;;  %v2467_v8 = vpop.f32.mrf.mxu0 }
 0x232   : > { %v2642_v39 = vadd.f32 %v2641_v45, %v2640_v33  ;;  %v2632_v43 = vadd.f32 %v2631_v59, %v6782_v18  ;;  %v2591_v31 = vadd.f32 %v2467_v8, %v2348_v3  ;;  %v2608_v33 = vld [vmem:[%s6751_s24 + $0x58] sm:$0x3f] }
 0x233   : > { %v2650_v15 = vadd.f32 %v2649_v5, %v2648_v23 }
 0x234   : > { %v2643_v42 = vrot.slane %v2642_v39, 2  ;;  %v2633_v7 = vrot.slane %v2632_v43, 4  ;;  %v6790_v60 = vadd.f32 %v2603_v11, %v2591_v31  ;;  %v2579_v49 = vpop.f32.mrf.mxu1  ;;  %v2607_v31 = vld [vmem:[%s6751_s24 + $0x50] sm:$0x3f] }
 0x235   : > { %v2651_v21 = vrot.slane %v2650_v15, 2  ;;  %v2590_v52 = vadd.f32 %v2579_v49, %v2347_v37 }
 0x236   : > { %v2644_v58 = vadd.f32 %v2643_v42, %v2642_v39  ;;  %v2634_v22 = vadd.f32 %v2633_v7, %v2632_v43  ;;  %v2623_v29 = vsel %vm614_vm1, %v6790_v60, 0.0 }
 0x237   : > { %v2652_v36 = vadd.f32 %v2651_v21, %v2650_v15  ;;  %v2624_v40 = vadd.f32 %v2623_v29, %v6795_v56  ;;  %v6824_v23 = vadd.f32 %v2602_v27, %v2590_v52 }
 0x238   : > { %v2645_v35 = vrot.slane %v2644_v58, 1  ;;  %v2635_v51 = vrot.slane %v2634_v22, 2 }
 0x239   : > { %v2653_v62 = vrot.slane %v2652_v36, 1  ;;  %v2625_v30 = vrot.slane %v2624_v40, 4  ;;  %v2556_v32 = vpop.f32.mrf.mxu0 }
 0x23a   : > { %v2646_v26 = vadd.f32 %v2645_v35, %v2644_v58  ;;  %v2636_v46 = vadd.f32 %v2635_v51, %v2634_v22  ;;  %v2589_v5 = vadd.f32 %v2556_v32, %v2346_v50  ;;  %v2601_v22 = vld [vmem:[%s6751_s24 + $0x20] sm:$0xff]  ;;  %s455_s24 = scalar_lea.vmem %s8681_s8, %s5028_s10 }
 0x23b   : > { %v2654_v4 = vadd.f32 %v2653_v62, %v2652_v36  ;;  %v2626_v24 = vadd.f32 %v2625_v30, %v2624_v40 }
 0x23c   : > { %v2680_v48 = vmul.f32 %v6805_v1, %v2646_v26  ;;  %v2637_v16 = vrot.slane %v2636_v46, 1  ;;  %v2582_v13 = vpop.f32.mrf.mxu1  ;;  %v2613_v32 = vadd.f32 %v2601_v22, %v2589_v5 }
 0x23d   : > { %v2681_v47 = vmul.f32 %v6805_v1, %v2654_v4  ;;  %v2627_v0 = vrot.slane %v2626_v24, 2  ;;  %v2596_v34 = vadd.f32 %v2582_v13, %v2353_v53 }
 0x23e   : > { %v6819_v6 = vsub.f32 %v6763_v41, %v2680_v48  ;;  %v6822_v12 = vsub.f32 %v6759_v44, %v2680_v48  ;;  %v2638_v28 = vadd.f32 %v2637_v16, %v2636_v46  ;;  %v6877_v48 = vpop.permute.xlu2 %2920 }
 0x23f   : > { %v6827_v17 = vsub.f32 %v6768_v9, %v2681_v47  ;;  %v6830_v3 = vsub.f32 %v6765_v57, %v2681_v47  ;;  %v2628_v20 = vadd.f32 %v2627_v0, %v2626_v24  ;;  %v6832_v45 = vadd.f32 %v2608_v33, %v2596_v34 }
 0x240   : > { %v2698_v41 = vmul.f32 %v6819_v6, %v6819_v6  ;;  %v2704_v44 = vmul.f32 %v6822_v12, %v6822_v12  ;;  %v2679_v63 = vmul.f32 %v6805_v1, %v2638_v28 }
 0x241   : > { %v2699_v9 = vmul.f32 %v6827_v17, %v6827_v17  ;;  %v2705_v57 = vmul.f32 %v6830_v3, %v6830_v3  ;;  %v2629_v61 = vrot.slane %v2628_v20, 1  ;;  %v2663_v59 = vsel %vm614_vm1, %v6832_v45, 0.0  ;;  %v2559_v8 = vpop.f32.mrf.mxu0 }
 0x242   : > { %v2724_v11 = vsel %vm614_vm1, %v2704_v44, 0.0  ;;  %v6847_v39 = vsub.f32 %v6782_v18, %v2679_v63  ;;  %v6850_v10 = vsub.f32 %v6780_v25, %v2679_v63  ;;  %v2664_v43 = vadd.f32 %v2663_v59, %v6824_v23 }
 0x243   : > { %v2725_v15 = vadd.f32 %v2724_v11, %v2698_v41  ;;  %v2732_v42 = vsel %vm614_vm1, %v2705_v57, 0.0  ;;  %v2630_v7 = vadd.f32 %v2629_v61, %v2628_v20  ;;  %v2595_v49 = vadd.f32 %v2559_v8, %v2352_v14 }
 0x244   : > { %v2733_v54 = vadd.f32 %v2732_v42, %v2699_v9  ;;  %v2697_v2 = vmul.f32 %v6847_v39, %v6847_v39  ;;  %v2703_v21 = vmul.f32 %v6850_v10, %v6850_v10  ;;  %v2665_v18 = vrot.slane %v2664_v43, 4 }
 0x245   : > { %v2726_v58 = vrot.slane %v2725_v15, 4  ;;  %v2678_v25 = vmul.f32 %v6805_v1, %v2630_v7  ;;  %v6861_v29 = vadd.f32 %v2607_v31, %v2595_v49 }
 0x246   : > { %v2734_v36 = vrot.slane %v2733_v54, 4  ;;  %v2716_v40 = vsel %vm614_vm1, %v2703_v21, 0.0  ;;  %v2666_v37 = vadd.f32 %v2665_v18, %v2664_v43 }
 0x247   : > { %v2727_v35 = vadd.f32 %v2726_v58, %v2725_v15  ;;  %v2717_v51 = vadd.f32 %v2716_v40, %v2697_v2  ;;  %v6865_v38 = vsub.f32 %v6795_v56, %v2678_v25  ;;  %v6868_v62 = vsub.f32 %v6790_v60, %v2678_v25 }
 0x248   : > { %v2735_v30 = vadd.f32 %v2734_v36, %v2733_v54  ;;  %v2667_v55 = vrot.slane %v2666_v37, 2  ;;  %v2655_v26 = vsel %vm614_vm1, %v6861_v29, 0.0 }
 0x249   : > { %v2728_v46 = vrot.slane %v2727_v35, 2  ;;  %v2718_v52 = vrot.slane %v2717_v51, 4  ;;  %v2696_v19 = vmul.f32 %v6865_v38, %v6865_v38  ;;  %v2702_v53 = vmul.f32 %v6868_v62, %v6868_v62 }
 0x24a   : > { %v2736_v4 = vrot.slane %v2735_v30, 2  ;;  %v2668_v56 = vadd.f32 %v2667_v55, %v2666_v37  ;;  %v2656_v24 = vadd.f32 %v2655_v26, %v2613_v32 }
 0x24b   : > { %v2729_v27 = vadd.f32 %v2728_v46, %v2727_v35  ;;  %v2719_v60 = vadd.f32 %v2718_v52, %v2717_v51  ;;  %v2708_v50 = vsel %vm614_vm1, %v2702_v53, 0.0 }
 0x24c   : > { %v2737_v16 = vadd.f32 %v2736_v4, %v2735_v30  ;;  %v2709_v13 = vadd.f32 %v2708_v50, %v2696_v19  ;;  %v2669_v33 = vrot.slane %v2668_v56, 1  ;;  %v2657_v14 = vrot.slane %v2656_v24, 4 }
 0x24d   : > { %v2730_v47 = vrot.slane %v2729_v27, 1  ;;  %v2720_v0 = vrot.slane %v2719_v60, 2 }
 0x24e   : > { %v2738_v34 = vrot.slane %v2737_v16, 1  ;;  %v2710_v28 = vrot.slane %v2709_v13, 4  ;;  %v2670_v20 = vadd.f32 %v2669_v33, %v2668_v56  ;;  %v2658_v41 = vadd.f32 %v2657_v14, %v2656_v24 }
 0x24f   : > { %v2731_v44 = vadd.f32 %v2730_v47, %v2729_v27  ;;  %v2721_v63 = vadd.f32 %v2720_v0, %v2719_v60 }
 0x250   : > { %v2739_v5 = vadd.f32 %v2738_v34, %v2737_v16  ;;  %v2711_v9 = vadd.f32 %v2710_v28, %v2709_v13  ;;  %v2683_v57 = vmul.f32 %v6805_v1, %v2670_v20  ;;  %v2659_v61 = vrot.slane %v2658_v41, 2 }
 0x251   : > { %v2758_v59 = vmul.f32 %v2731_v44, %v6805_v1  ;;  %v2722_v8 = vrot.slane %v2721_v63, 1 }
 0x252   : > { %v2759_v11 = vmul.f32 %v2739_v5, %v6805_v1  ;;  %v2712_v43 = vrot.slane %v2711_v9, 2  ;;  %v6883_v31 = vsub.f32 %v6824_v23, %v2683_v57  ;;  %v6886_v15 = vsub.f32 %v6832_v45, %v2683_v57  ;;  %v6893_v23 = vpop.permute.xlu2 %2986 }
 0x253   : > { %v2764_v42 = vadd.f32 1e-06, %v2758_v59  ;;  %v2723_v7 = vadd.f32 %v2722_v8, %v2721_v63  ;;  %v2660_v49 = vadd.f32 %v2659_v61, %v2658_v41 }
 0x254   : > { %v2765_v54 = vadd.f32 1e-06, %v2759_v11  ;;  %v2713_v2 = vadd.f32 %v2712_v43, %v2711_v9  ;;  %v2701_v21 = vmul.f32 %v6883_v31, %v6883_v31  ;;  %v2707_v18 = vmul.f32 %v6886_v15, %v6886_v15 }
 0x255   : > { %5362 = vrsqrt.f32 %v2764_v42  ;;  %v2757_v58 = vmul.f32 %v2723_v7, %v6805_v1  ;;  %v2661_v25 = vrot.slane %v2660_v49, 1  ;;  %vm2794_vm13 = vweird.f32 %v2764_v42 }
 0x256   : > { %5364 = vrsqrt.f32 %v2765_v54  ;;  %v2714_v45 = vrot.slane %v2713_v2, 1  ;;  %v2748_v22 = vsel %vm614_vm1, %v2707_v18, 0.0  ;;  %vm2804_vm14 = vweird.f32 %v2765_v54 }
 0x257   : > { %v6896_v36 = vadd.f32 1e-06, %v2757_v58  ;;  %v2749_v40 = vadd.f32 %v2748_v22, %v2701_v21  ;;  %v2662_v37 = vadd.f32 %v2661_v25, %v2660_v49 }
 0x258   : > { %v2715_v35 = vadd.f32 %v2714_v45, %v2713_v2 }
 0x259   : > { %5366 = vrsqrt.f32 %v6896_v36  ;;  %v2750_v51 = vrot.slane %v2749_v40, 4  ;;  %v2682_v30 = vmul.f32 %v6805_v1, %v2662_v37  ;;  %vm2784_vm0 = vweird.f32 %v6896_v36 }
 0x25a   : > { %v2756_v55 = vmul.f32 %v2715_v35, %v6805_v1 }
 0x25b   : > { %v5363_v26 = vpop.eup %5362  ;;  %v2751_v46 = vadd.f32 %v2750_v51, %v2749_v40  ;;  %v6901_v52 = vsub.f32 %v2613_v32, %v2682_v30  ;;  %v6904_v19 = vsub.f32 %v6861_v29, %v2682_v30  ;;  %v6913_v29 = vpop.permute.xlu2 %2847 }
 0x25c   : > { %v5365_v53 = vpop.eup %5364  ;;  %v2789_v4 = vmul.f32 %v5363_v26, %v2764_v42  ;;  %v6906_v56 = vadd.f32 1e-06, %v2756_v55  ;;  %vm2795_vm11 = vweird.f32 %v5363_v26 }
 0x25d   : > { %v2799_v24 = vmul.f32 %v5365_v53, %v2765_v54  ;;  %v2752_v27 = vrot.slane %v2751_v46, 2  ;;  %v2700_v60 = vmul.f32 %v6901_v52, %v6901_v52  ;;  %v2706_v16 = vmul.f32 %v6904_v19, %v6904_v19  ;;  %vm2796_vm15 = vmor %vm2794_vm13, %vm2795_vm11  ;;  %v6925_v54 = vpop.permute.xlu0 %2842 }
 0x25e   : > { %v2790_v50 = vmul.f32 %v5363_v26, %v2789_v4  ;;  %5368 = vrsqrt.f32 %v6906_v56  ;;  %vm2805_vm12 = vweird.f32 %v5365_v53  ;;  %vm2774_vm5 = vweird.f32 %v6906_v56 }
 0x25f   : > { %v5367_v32 = vpop.eup %5366  ;;  %v2800_v13 = vmul.f32 %v5365_v53, %v2799_v24  ;;  %v2753_v33 = vadd.f32 %v2752_v27, %v2751_v46  ;;  %v2740_v0 = vsel %vm614_vm1, %v2706_v16, 0.0  ;;  %vm2806_vm1 = vmor %vm2804_vm14, %vm2805_vm12  ;;  %v6944_v46 = vpop.permute.xlu1 %2863 }
 0x260   : > { %v2791_v14 = vmul.f32 0.5, %v2790_v50  ;;  %v2779_v47 = vmul.f32 %v5367_v32, %v6896_v36  ;;  %v2741_v20 = vadd.f32 %v2740_v0, %v2700_v60  ;;  %vm2785_vm2 = vweird.f32 %v5367_v32 }
 0x261   : > { %v2801_v34 = vmul.f32 0.5, %v2800_v13  ;;  %v2754_v28 = vrot.slane %v2753_v33, 1  ;;  %vm2786_vm3 = vmor %vm2784_vm0, %vm2785_vm2  ;;  %vm3148_vm0 = vcmask 64512  }
 0x262   : > { %v2792_v41 = vsub.f32 1.5, %v2791_v14  ;;  %v2780_v44 = vmul.f32 %v5367_v32, %v2779_v47  ;;  %v2742_v9 = vrot.slane %v2741_v20, 4 }
 0x263   : > { %v2802_v63 = vsub.f32 1.5, %v2801_v34  ;;  %v2755_v5 = vadd.f32 %v2754_v28, %v2753_v33 }
 0x264   : > { %v5369_v57 = vpop.eup %5368  ;;  %v2793_v61 = vmul.f32 %v5363_v26, %v2792_v41  ;;  %v2781_v59 = vmul.f32 0.5, %v2780_v44  ;;  %v2743_v42 = vadd.f32 %v2742_v9, %v2741_v20 }
 0x265   : > { %v2803_v8 = vmul.f32 %v5365_v53, %v2802_v63  ;;  %v2769_v11 = vmul.f32 %v5369_v57, %v6906_v56  ;;  %v2761_v43 = vmul.f32 %v2755_v5, %v6805_v1  ;;  %vm2775_vm4 = vweird.f32 %v5369_v57 }
 0x266   : > { %v2797_v7 = vsel %vm2796_vm15, %v5363_v26, %v2793_v61  ;;  %v2782_v49 = vsub.f32 1.5, %v2781_v59  ;;  %v2744_v35 = vrot.slane %v2743_v42, 2  ;;  %vm2776_vm6 = vmor %vm2774_vm5, %vm2775_vm4 }
 0x267   : > { %v2830_v2 = vmul.f32 %v2797_v7, %v6819_v6  ;;  %v2836_v21 = vmul.f32 %v2797_v7, %v6822_v12  ;;  %v2807_v18 = vsel %vm2806_vm1, %v5365_v53, %v2803_v8  ;;  %v2770_v58 = vmul.f32 %v5369_v57, %v2769_v11  ;;  %v6938_v12 = vpop.permute.xlu2 %2867 }
 0x268   : > { %v2831_v25 = vmul.f32 %v2807_v18, %v6827_v17  ;;  %v2837_v45 = vmul.f32 %v2807_v18, %v6830_v3  ;;  %v2783_v22 = vmul.f32 %v5367_v32, %v2782_v49  ;;  %v6931_v40 = vadd.f32 1e-06, %v2761_v43 }
 0x269   : > { %v2771_v37 = vmul.f32 0.5, %v2770_v58  ;;  %v2858_v51 = vmul.f32 %v6913_v29, %v2836_v21  ;;  %v2852_v6 = vmul.f32 %v6925_v54, %v2830_v2  ;;  %v2745_v26 = vadd.f32 %v2744_v35, %v2743_v42 }
 0x26a   : > { %v2787_v30 = vsel %vm2786_vm3, %v5367_v32, %v2783_v22  ;;  %5370 = vrsqrt.f32 %v6931_v40  ;;  %v2859_v17 = vmul.f32 %v6913_v29, %v2837_v45  ;;  %v2853_v53 = vmul.f32 %v6925_v54, %v2831_v25  ;;  %v2894_v45 = vld [vmem:[%s6982_s15] sm:$0xff] }
 0x26b   : > { %v2829_v3 = vmul.f32 %v2787_v30, %v6847_v39  ;;  %v2835_v36 = vmul.f32 %v2787_v30, %v6850_v10  ;;  %v2772_v55 = vsub.f32 1.5, %v2771_v37  ;;  %v2872_v4 = vadd.f32 %v6944_v46, %v2852_v6 }
 0x26c   : > { %v2878_v24 = vadd.f32 %v6938_v12, %v2858_v51  ;;  %v2746_v60 = vrot.slane %v2745_v26, 1  ;;  %v2873_v10 = vadd.f32 %v6944_v46, %v2853_v53  ;;  %v2879_v16 = vadd.f32 %v6938_v12, %v2859_v17 }
 0x26d   : > { %v2773_v27 = vmul.f32 %v5369_v57, %v2772_v55  ;;  %v2857_v50 = vmul.f32 %v6913_v29, %v2835_v36  ;;  %v2851_v39 = vmul.f32 %v6925_v54, %v2829_v3  ;;  %v6959_v56 = vmul.f32 0.33333334, %v2872_v4 }
 0x26e   : > { %v2747_v13 = vadd.f32 %v2746_v60, %v2745_v26  ;;  %v6966_v28 = vmul.f32 0.33333334, %v2873_v10  ;;  %v2890_v5 = vmul.f32 0.33333334, %v2878_v24  ;;  %v2891_v61 = vmul.f32 0.33333334, %v2879_v16 }
 0x26f   : > { %v2777_v32 = vsel %vm2776_vm6, %v5369_v57, %v2773_v27  ;;  %v2871_v33 = vadd.f32 %v6944_v46, %v2851_v39  ;;  %v2877_v14 = vadd.f32 %v6938_v12, %v2857_v50  ;;  %v2903_v20 = vrot.slane %v6959_v56, 4 }
 0x270   : > { %v5371_v47 = vpop.eup %5370  ;;  %v2828_v0 = vmul.f32 %v2777_v32, %v6865_v38  ;;  %v2834_v34 = vmul.f32 %v2777_v32, %v6868_v62  ;;  %v2760_v44 = vmul.f32 %v2747_v13, %v6805_v1  ;;  %v2904_v38 = vrot.slane %v6966_v28, 2 }
 0x271   : > { %v2819_v41 = vmul.f32 %v5371_v47, %v6931_v40  ;;  %v6972_v63 = vmul.f32 0.33333334, %v2871_v33  ;;  %v2889_v43 = vmul.f32 0.33333334, %v2877_v14  ;;  %v3120_v42 = vrot.slane %v2890_v5, 6 }
 0x272   : > { %v2856_v9 = vmul.f32 %v6913_v29, %v2834_v34  ;;  %v2850_v57 = vmul.f32 %v6925_v54, %v2828_v0  ;;  %v6977_v59 = vadd.f32 1e-06, %v2760_v44  ;;  %v2909_v8 = vsel %vm2908_vm7, %v2903_v20, %v2904_v38 }
 0x273   : > { %v2820_v62 = vmul.f32 %v5371_v47, %v2819_v41  ;;  %v2902_v49 = vrot.slane %v6972_v63, 6  ;;  %v3117_v18 = vrot.slane %v2889_v43, 6  ;;  %v3123_v58 = vrot.slane %v2891_v61, 6 }
 0x274   : > { %v2870_v1 = vadd.f32 %v6944_v46, %v2850_v57  ;;  %v2876_v11 = vadd.f32 %v6938_v12, %v2856_v9  ;;  %5372 = vrsqrt.f32 %v6977_v59  ;;  %vm2825_vm10 = vweird.f32 %v5371_v47 }
 0x275   : > { %v2821_v7 = vmul.f32 0.5, %v2820_v62  ;;  %v3119_v22 = vrot.slane %v6959_v56, 6  ;;  %v3122_v37 = vrot.slane %v6966_v28, 6  ;;  %vm2824_vm11 = vweird.f32 %v6931_v40 }
 0x276   : > { %v6991_v2 = vmul.f32 0.33333334, %v2870_v1  ;;  %v2888_v21 = vmul.f32 0.33333334, %v2876_v11  ;;  %v7002_v3 = vsel %vm2906_vm8, %v2902_v49, %v3117_v18  ;;  %vm2826_vm12 = vmor %vm2824_vm11, %vm2825_vm10  ;;  %vm2814_vm13 = vweird.f32 %v6977_v59 }
 0x277   : > { %v2822_v25 = vsub.f32 1.5, %v2821_v7  ;;  %v7005_v36 = vsel %vm2906_vm8, %v3119_v22, %v3120_v42  ;;  %v7011_v40 = vsel %vm2906_vm8, %v3122_v37, %v3123_v58 }
 0x278   : > { %v2907_v35 = vsel %vm2906_vm8, %v6991_v2, %v2902_v49  ;;  %v3115_v51 = vrot.slane %v2888_v21, 6  ;;  %v3114_v6 = vrot.slane %v6991_v2, 6 }
 0x279   : > { %v2823_v30 = vmul.f32 %v5371_v47, %v2822_v25  ;;  %v2911_v17 = vsel %vm2910_vm9, %v2907_v35, %v2909_v8  ;;  %v7025_v8 = vpop.permute.xlu1 %2950 }
 0x27a   : > { %v2915_v55 = vmul.f32 %v2911_v17, %v2894_v45  ;;  %v7008_v26 = vsel %vm2906_vm8, %v3114_v6, %v3115_v51  ;;  %v5373_v53 = vpop.eup %5372 }
 0x27b   : > { %v2827_v4 = vsel %vm2826_vm12, %v5371_v47, %v2823_v30  ;;  %v2809_v60 = vmul.f32 %v5373_v53, %v6977_v59  ;;  %vm2815_vm14 = vweird.f32 %v5373_v53  ;;  %v2997_v59 = vrot.slane %v6959_v56, 2 }
 0x27c   : > { %v2833_v24 = vmul.f32 %v2827_v4, %v6883_v31  ;;  %v2839_v27 = vmul.f32 %v2827_v4, %v6886_v15  ;;  %v2925_v50 = vperm.slane %v2915_v55, 0  ;;  %v2926_v39 = vperm.slane %v2915_v55, 2  ;;  %vm2816_vm15 = vmor %vm2814_vm13, %vm2815_vm14 }
 0x27d   : > { %v2927_v10 = vperm.slane %v2915_v55, 4  ;;  %v2928_v16 = vperm.slane %v2915_v55, 6  ;;  %v2810_v32 = vmul.f32 %v5373_v53, %v2809_v60  ;;  %v2953_v14 = vperm.slane %v2915_v55, 1 }
 0x27e   : > { %v2861_v13 = vmul.f32 %v6913_v29, %v2839_v27  ;;  %v2855_v33 = vmul.f32 %v6925_v54, %v2833_v24  ;;  %v2937_v0 = vperm.slane %v2925_v50, 0  ;;  %v2938_v34 = vperm.slane %v2926_v39, 0 }
 0x27f   : > { %v2939_v20 = vperm.slane %v2927_v10, 0  ;;  %v2940_v47 = vperm.slane %v2928_v16, 0  ;;  %v2811_v41 = vmul.f32 0.5, %v2810_v32  ;;  %v2954_v44 = vperm.slane %v2915_v55, 3 }
 0x280   : > { %v2875_v31 = vadd.f32 %v6944_v46, %v2855_v33  ;;  %v2881_v15 = vadd.f32 %v6938_v12, %v2861_v13  ;;  %v2943_v5 = vmul.f32 %v2937_v0, %v6877_v48  ;;  %v2944_v9 = vmul.f32 %v2938_v34, %v6877_v48 }
 0x281   : > { %v2812_v57 = vsub.f32 1.5, %v2811_v41  ;;  %v2955_v1 = vperm.slane %v2915_v55, 5  ;;  %v2945_v11 = vmul.f32 %v2939_v20, %v6877_v48  ;;  %v2956_v43 = vperm.slane %v2915_v55, 7  ;;  %v7053_v13 = vpop.permute.xlu1 %3031 }
 0x282   : > { %v7023_v61 = vmul.f32 0.33333334, %v2875_v31  ;;  %v2893_v62 = vmul.f32 0.33333334, %v2881_v15  ;;  %v2965_v7 = vperm.slane %v2953_v14, 1  ;;  %v2966_v49 = vperm.slane %v2954_v44, 1 }
 0x283   : > { %v2813_v42 = vmul.f32 %v5373_v53, %v2812_v57  ;;  %v2946_v58 = vmul.f32 %v2940_v47, %v6877_v48  ;;  %v2967_v25 = vperm.slane %v2955_v1, 1  ;;  %v2968_v45 = vperm.slane %v2956_v43, 1  ;;  %v7073_v47 = vpop.permute.xlu0 %3015 }
 0x284   : > { %v2905_v21 = vrot.slane %v7023_v61, 6  ;;  %v3128_v18 = vrot.slane %v2893_v62, 6  ;;  %v2971_v22 = vmul.f32 %v2965_v7, %v7025_v8  ;;  %v2972_v37 = vmul.f32 %v2966_v49, %v7025_v8 }
 0x285   : > { %v2817_v35 = vsel %vm2816_vm15, %v5373_v53, %v2813_v42  ;;  %v2973_v17 = vmul.f32 %v2967_v25, %v7025_v8  ;;  %v2974_v55 = vmul.f32 %v2968_v45, %v7025_v8  ;;  %v2995_v39 = vrot.slane %v6991_v2, 2 }
 0x286   : > { %v7036_v51 = vsel %vm2906_vm8, %v2905_v21, %v3128_v18  ;;  %v2832_v6 = vmul.f32 %v2817_v35, %v6901_v52  ;;  %v2838_v30 = vmul.f32 %v2817_v35, %v6904_v19  ;;  %v2977_v4 = vadd.f32 %v2971_v22, %v2943_v5 }
 0x287   : > { %v2978_v24 = vadd.f32 %v2972_v37, %v2944_v9  ;;  %v2979_v60 = vadd.f32 %v2973_v17, %v2945_v11  ;;  %v2980_v50 = vadd.f32 %v2974_v55, %v2946_v58  ;;  %v2996_v52 = vrot.slane %v6972_v63, 2  ;;  %v2895_v63 = vld [vmem:[%s6982_s15 + $0x8] sm:$0xf]  ;;  %v3488_v58 = vld [vmem:[%s8679_s6] sm:$0xff] }
 0x288   : > { %v2860_v27 = vmul.f32 %v6913_v29, %v2838_v30  ;;  %v2854_v53 = vmul.f32 %v6925_v54, %v2832_v6  ;;  %v2989_v19 = vadd.f32 %v6893_v23, %v2977_v4  ;;  %v2999_v54 = vrot.slane %v7023_v61, 2  ;;  %3520 = vrot.lane.b32.xlu2 %v3488_v58, %s5478_s17 }
 0x289   : > { %v2990_v10 = vadd.f32 %v6893_v23, %v2978_v24  ;;  %v2991_v32 = vadd.f32 %v6893_v23, %v2979_v60  ;;  %v2992_v29 = vadd.f32 %v6893_v23, %v2980_v50 }
 0x28a   : > { %v2874_v16 = vadd.f32 %v6944_v46, %v2854_v53  ;;  %v2880_v56 = vadd.f32 %v6938_v12, %v2860_v27  ;;  %v7056_v33 = vmul.f32 %v2995_v39, %v2989_v19  ;;  %v3054_v27 = vpop.permute.xlu1 %3053 }
 0x28b   : > { %v7058_v2 = vmul.f32 %v2996_v52, %v2990_v10  ;;  %v7065_v46 = vmul.f32 %v2997_v59, %v2991_v32  ;;  %v7069_v12 = vmul.f32 %v2992_v29, %v2904_v38  ;;  %v3076_v29 = vpop.permute.xlu0 %3075 }
 0x28c   : > { %v7061_v14 = vmul.f32 0.33333334, %v2874_v16  ;;  %v7063_v0 = vmul.f32 0.33333334, %v2880_v56  ;;  %v3034_v34 = vperm.slane %v7056_v33, 1  ;;  %v3018_v41 = vperm.slane %v7056_v33, 0 }
 0x28d   : > { %v3035_v20 = vperm.slane %v7058_v2, 1  ;;  %v3019_v31 = vperm.slane %v7058_v2, 0  ;;  %v3036_v28 = vperm.slane %v7065_v46, 1  ;;  %v3037_v9 = vperm.slane %v7069_v12, 1 }
 0x28e   : > { %v2912_v15 = vsel %vm2906_vm8, %v7061_v14, %v2905_v21  ;;  %v2998_v44 = vrot.slane %v7061_v14, 2  ;;  %v3126_v5 = vrot.slane %v7063_v0, 6  ;;  %v3040_v57 = vmul.f32 %v3034_v34, %v7053_v13 }
 0x28f   : > { %v2916_v38 = vmul.f32 %v2912_v15, %v2895_v63  ;;  %v3041_v62 = vmul.f32 %v3035_v20, %v7053_v13  ;;  %v3042_v1 = vmul.f32 %v3036_v28, %v7053_v13  ;;  %v3020_v11 = vperm.slane %v7065_v46, 0 }
 0x290   : > { %v3021_v43 = vperm.slane %v7069_v12, 0  ;;  %v3024_v7 = vmul.f32 %v3018_v41, %v7073_v47  ;;  %v3043_v25 = vmul.f32 %v3037_v9, %v7053_v13  ;;  %v3025_v45 = vmul.f32 %v3019_v31, %v7073_v47 }
 0x291   : > { %v2929_v49 = vperm.slane %v2916_v38, 0  ;;  %v2930_v42 = vperm.slane %v2916_v38, 2  ;;  %v2957_v21 = vperm.slane %v2916_v38, 1  ;;  %v2958_v18 = vperm.slane %v2916_v38, 3 }
 0x292   : > { %v3026_v22 = vmul.f32 %v3020_v11, %v7073_v47  ;;  %v3027_v37 = vmul.f32 %v3021_v43, %v7073_v47  ;;  %v3046_v55 = vadd.f32 %v3040_v57, %v3024_v7  ;;  %v3047_v59 = vadd.f32 %v3041_v62, %v3025_v45 }
 0x293   : > { %v2941_v35 = vperm.slane %v2929_v49, 0  ;;  %v2942_v6 = vperm.slane %v2930_v42, 0  ;;  %v2969_v30 = vperm.slane %v2957_v21, 1  ;;  %v2970_v17 = vperm.slane %v2958_v18, 1 }
 0x294   : > { %v3048_v4 = vadd.f32 %v3042_v1, %v3026_v22  ;;  %v3049_v24 = vadd.f32 %v3043_v25, %v3027_v37  ;;  %v3056_v52 = vperm.slane %v7056_v33, 2  ;;  %v3057_v19 = vperm.slane %v7058_v2, 2 }
 0x295   : > { %v2947_v53 = vmul.f32 %v2941_v35, %v6877_v48  ;;  %v2948_v60 = vmul.f32 %v2942_v6, %v6877_v48  ;;  %v2975_v50 = vmul.f32 %v2969_v30, %v7025_v8  ;;  %v2976_v39 = vmul.f32 %v2970_v17, %v7025_v8  ;;  %v3490_v48 = vld [vmem:[%s8679_s6 + $0x10] sm:$0xff]  ;;  %v3100_v35 = vpop.permute.xlu1 %3099 }
 0x296   : > { %v3058_v10 = vperm.slane %v7065_v46, 2  ;;  %v3059_v16 = vperm.slane %v7069_v12, 2  ;;  %v3078_v63 = vperm.slane %v7056_v33, 3  ;;  %v3079_v34 = vperm.slane %v7058_v2, 3  ;;  %3524 = vrot.lane.b32.xlu2 %v3490_v48, %s5478_s17 }
 0x297   : > { %v2981_v56 = vadd.f32 %v2975_v50, %v2947_v53  ;;  %v2982_v32 = vadd.f32 %v2976_v39, %v2948_v60  ;;  %v3062_v8 = vmul.f32 %v3056_v52, %v3054_v27  ;;  %v3063_v20 = vmul.f32 %v3057_v19, %v3054_v27  ;;  %v3147_v19 = vpop.permute.xlu2 %3146 }
 0x298   : > { %v3064_v41 = vmul.f32 %v3058_v10, %v3054_v27  ;;  %v3065_v31 = vmul.f32 %v3059_v16, %v3054_v27  ;;  %v3080_v38 = vperm.slane %v7065_v46, 3  ;;  %v3081_v9 = vperm.slane %v7069_v12, 3 }
 0x299   : > { %v2993_v15 = vadd.f32 %v6893_v23, %v2981_v56  ;;  %v2994_v28 = vadd.f32 %v6893_v23, %v2982_v32  ;;  %v3084_v57 = vmul.f32 %v3078_v63, %v3076_v29  ;;  %v3085_v33 = vmul.f32 %v3079_v34, %v3076_v29  ;;  %v5436_v63 = vld [vmem:[%s8680_s7] sm:$0xff] }
 0x29a   : > { %v3068_v62 = vadd.f32 %v3062_v8, %v3046_v55  ;;  %v3069_v2 = vadd.f32 %v3063_v20, %v3047_v59  ;;  %v3086_v43 = vmul.f32 %v3080_v38, %v3076_v29  ;;  %v3087_v7 = vmul.f32 %v3081_v9, %v3076_v29 }
 0x29b   : > { %v3010_v1 = vmul.f32 %v2998_v44, %v2993_v15  ;;  %v3011_v11 = vmul.f32 %v2999_v54, %v2994_v28  ;;  %v3070_v23 = vadd.f32 %v3064_v41, %v3048_v4  ;;  %v3071_v21 = vadd.f32 %v3065_v31, %v3049_v24  ;;  %v3491_v41 = vld [vmem:[%s8679_s6 + $0x18] sm:$0xff] }
 0x29c   : > { %v3090_v49 = vadd.f32 %v3084_v57, %v3068_v62  ;;  %v3091_v42 = vadd.f32 %v3085_v33, %v3069_v2  ;;  %v3125_v52 = vrot.slane %v7061_v14, 6 }
 0x29d   : > { %v3038_v46 = vperm.slane %v3010_v1, 1  ;;  %v3039_v18 = vperm.slane %v3011_v11, 1  ;;  %v3022_v12 = vperm.slane %v3010_v1, 0  ;;  %v3023_v58 = vperm.slane %v3011_v11, 0  ;;  %v3144_v31 = vpop.permute.xlu1 %3143 }
 0x29e   : > { %v3060_v25 = vperm.slane %v3010_v1, 2  ;;  %v3061_v45 = vperm.slane %v3011_v11, 2  ;;  %v3082_v22 = vperm.slane %v3010_v1, 3  ;;  %v3083_v37 = vperm.slane %v3011_v11, 3  ;;  %v3271_v1 = vld [vmem:[%s7153_s29] sm:$0xff]  ;;  %v3272_v11 = vld [vmem:[%s7153_s29 + $0x8] sm:$0xff] }
 0x29f   : > { %v3044_v44 = vmul.f32 %v3038_v46, %v7053_v13  ;;  %v3045_v61 = vmul.f32 %v3039_v18, %v7053_v13  ;;  %v3028_v54 = vmul.f32 %v3022_v12, %v7073_v47  ;;  %v3029_v6 = vmul.f32 %v3023_v58, %v7073_v47  ;;  %v3279_v15 = vpop.permute.xlu2 %3278 }
 0x2a0   : > { %v3066_v30 = vmul.f32 %v3060_v25, %v3054_v27  ;;  %v3067_v17 = vmul.f32 %v3061_v45, %v3054_v27  ;;  %v3088_v55 = vmul.f32 %v3082_v22, %v3076_v29  ;;  %v3089_v59 = vmul.f32 %v3083_v37, %v3076_v29 }
 0x2a1   : > { %v3050_v4 = vadd.f32 %v3044_v44, %v3028_v54  ;;  %v3051_v24 = vadd.f32 %v3045_v61, %v3029_v6  ;;  %v3102_v53 = vadd.f32 %v3100_v35, %v3090_v49  ;;  %v3103_v60 = vadd.f32 %v3100_v35, %v3091_v42 }
 0x2a2   : > { %v3092_v50 = vadd.f32 %v3086_v43, %v3070_v23  ;;  %v3093_v39 = vadd.f32 %v3087_v7, %v3071_v21  ;;  %v5479_v47 = vmov 6   ;;  %v3127_v29 = vsel %vm2906_vm8, %v3125_v52, %v3126_v5  ;;  %v3275_v23 = vld [vmem:[%s7153_s29 + $0x20] sm:$0xff]  ;;  %v3276_v21 = vld [vmem:[%s7153_s29 + $0x28] sm:$0xff] }
 0x2a3   : > { %v3136_v10 = vmul.f32 %v7008_v26, %v3102_v53  ;;  %v3137_v13 = vmul.f32 %v7002_v3, %v3103_v60  ;;  %v3072_v16 = vadd.f32 %v3066_v30, %v3050_v4  ;;  %v3073_v56 = vadd.f32 %v3067_v17, %v3051_v24  ;;  %5352 = vset.pattern.permute.xlu0 %v5479_v47  ;;  %v3273_v24 = vld [vmem:[%s7153_s29 + $0x10] sm:$0xff]  ;;  %v3274_v53 = vld [vmem:[%s7153_s29 + $0x18] sm:$0xff] }
 0x2a4   : > { %v3104_v27 = vadd.f32 %v3100_v35, %v3092_v50  ;;  %v3105_v32 = vadd.f32 %v3100_v35, %v3093_v39  ;;  %3469 = vperm.xlu0 %5352, %v5436_v63   ;;  %v5480_v5 = vmov 7  }
 0x2a5   : > { %3166 = vmatpush.msrb.mxu2 %v3136_v10  ;;  %3186 = vmatpush.msrb.mxu3 %v3137_v13  ;;  %v3094_v26 = vadd.f32 %v3088_v55, %v3072_v16  ;;  %v3095_v14 = vadd.f32 %v3089_v59, %v3073_v56 }
 0x2a6   : > { %5225 = vmatmul.msk.f32.vlgmr.msrb.gmra.mxu2 %vm3148_vm0, %v3147_v19  ;;  %5226 = vmatmul.msk.f32.vlgmr.msrb.gmra.mxu3 %vm3148_vm0, %v3147_v19  ;;  %v3138_v3 = vmul.f32 %v7005_v36, %v3104_v27  ;;  %v3139_v34 = vmul.f32 %v7011_v40, %v3105_v32  ;;  %v3489_v36 = vld [vmem:[%s8679_s6 + $0x8] sm:$0xff]  ;;  %v5481_v40 = vmov 8.0  }
 0x2a7   : > { %v3106_v0 = vadd.f32 %v3100_v35, %v3094_v26  ;;  %v3107_v48 = vadd.f32 %v3100_v35, %v3095_v14  ;;  %5353 = vset.pattern.permute.xlu1 %v5480_v5  ;;  %5374 = vrcp.f32 %v5481_v40 }
 0x2a8   : > { %3206 = vmatpush.msra.mxu2 %v3138_v3  ;;  %3226 = vmatpush.msra.mxu3 %v3139_v34 }
 0x2a9   : > { %v3140_v8 = vmul.f32 %v3127_v29, %v3106_v0  ;;  %v3141_v20 = vmul.f32 %v7036_v51, %v3107_v48  ;;  %3479 = vperm.xlu1 %5353, %v5436_v63  }
 0x2ab   : > { %3246 = vmatpush.msra.mxu0 %v3140_v8  ;;  %3266 = vmatpush.msra.mxu1 %v3141_v20 }
 0x2ac   : > { %5229 = vmatmul.msk.f32.vlgmr.msra.gmra.mxu0 %vm3148_vm0, %v3147_v19  ;;  %5230 = vmatmul.msk.f32.vlgmr.msra.gmra.mxu1 %vm3148_vm0, %v3147_v19 }
 0x2ad   : > { %3526 = vrot.lane.b32.xlu0 %v3491_v41, %s5478_s17  ;;  %v5375_v51 = vpop.eup %5374 }
 0x2ae   : > { %5227 = vmatmul.msk.f32.vlgmr.msra.gmra.mxu2 %vm3148_vm0, %v3147_v19  ;;  %5228 = vmatmul.msk.f32.vlgmr.msra.gmra.mxu3 %vm3148_vm0, %v3147_v19  ;;  %v3330_v9 = vmul.f32 8.0, %v5375_v51  ;;  %vm3334_vm1 = vweird.f32 %v5375_v51 }
 0x2b0   : > { %v3331_v46 = vsub.f32 1.0, %v3330_v9 }
 0x2b1   : > { %3522 = vrot.lane.b32.xlu1 %v3489_v36, %s5478_s17 }
 0x2b2   : > { %v3332_v61 = vmul.f32 %v5375_v51, %v3331_v46 }
 0x2b4   : > { %v3333_v13 = vadd.f32 %v5375_v51, %v3332_v61 }
 0x2b6   : > { %v7183_v48 = vsel %vm3334_vm1, %v5375_v51, %v3333_v13 }
 0x329   : > { %v3168_v28 = vpop.f32.mrf.mxu2  ;;  %v3188_v38 = vpop.f32.mrf.mxu3 }
 0x32a   : > { %v3169_v57 = vadd.f32 %v3168_v28, %v3144_v31  ;;  %v3189_v33 = vadd.f32 %v3188_v38, %v3144_v31  ;;  %v3248_v62 = vpop.f32.mrf.mxu0  ;;  %v3268_v2 = vpop.f32.mrf.mxu1 }
 0x32b   : > { %v3249_v43 = vadd.f32 %v3248_v62, %v3144_v31  ;;  %v3269_v7 = vadd.f32 %v3268_v2, %v3144_v31 }
 0x32c   : > { %v3281_v49 = vmul.f32 %v3279_v15, %v3169_v57  ;;  %v3282_v42 = vmul.f32 %v3279_v15, %v3189_v33 }
 0x32d   : > { %v3285_v18 = vmul.f32 %v3279_v15, %v3249_v43  ;;  %v3286_v12 = vmul.f32 %v3279_v15, %v3269_v7 }
 0x32e   : > { %v7159_v58 = vadd.f32 %v3281_v49, %v3271_v1  ;;  %v7161_v25 = vadd.f32 %v3282_v42, %v3272_v11 }
 0x32f   : > { %v7163_v45 = vadd.f32 %v3285_v18, %v3275_v23  ;;  %v7165_v22 = vadd.f32 %v3286_v12, %v3276_v21 }
 0x330   : > { %8697 = vst [vmem:[#allocation6_spill] sm:$0xff] %v7159_v58  ;;  %v3293_v37 = vrot.slane %v7159_v58, 4  ;;  %v3299_v35 = vrot.slane %v7161_v25, 4 }
 0x331   : > { %8698 = vst [vmem:[#allocation5_spill] sm:$0xff] %v7161_v25  ;;  %v3208_v44 = vpop.f32.mrf.mxu2  ;;  %v3228_v54 = vpop.f32.mrf.mxu3  ;;  %v3317_v6 = vrot.slane %v7163_v45, 4  ;;  %v3323_v30 = vrot.slane %v7165_v22, 4 }
 0x332   : > { %8699 = vst [vmem:[#allocation4_spill] sm:$0xff] %v7163_v45  ;;  %v3209_v17 = vadd.f32 %v3208_v44, %v3144_v31  ;;  %v3229_v55 = vadd.f32 %v3228_v54, %v3144_v31  ;;  %v3294_v59 = vadd.f32 %v3293_v37, %v7159_v58  ;;  %v3300_v4 = vadd.f32 %v3299_v35, %v7161_v25 }
 0x333   : > { %8700 = vst [vmem:[#allocation7_spill] sm:$0xff] %v7165_v22  ;;  %v3318_v60 = vadd.f32 %v3317_v6, %v7163_v45  ;;  %v3324_v50 = vadd.f32 %v3323_v30, %v7165_v22 }
 0x334   : > { %v3283_v39 = vmul.f32 %v3279_v15, %v3209_v17  ;;  %v3284_v52 = vmul.f32 %v3279_v15, %v3229_v55  ;;  %v3295_v19 = vrot.slane %v3294_v59, 2  ;;  %v3301_v10 = vrot.slane %v3300_v4, 2 }
 0x335   : > { %v3319_v16 = vrot.slane %v3318_v60, 2  ;;  %v3325_v56 = vrot.slane %v3324_v50, 2 }
 0x336   : > { %v7177_v47 = vadd.f32 %v3283_v39, %v3273_v24  ;;  %v7179_v27 = vadd.f32 %v3284_v52, %v3274_v53  ;;  %v3296_v32 = vadd.f32 %v3295_v19, %v3294_v59  ;;  %v3302_v29 = vadd.f32 %v3301_v10, %v3300_v4 }
 0x337   : > { %v3320_v63 = vadd.f32 %v3319_v16, %v3318_v60  ;;  %v3326_v26 = vadd.f32 %v3325_v56, %v3324_v50 }
 0x338   : > { %8701 = vst [vmem:[#allocation8_spill] sm:$0xff] %v7177_v47  ;;  %v3305_v14 = vrot.slane %v7177_v47, 4  ;;  %v3311_v3 = vrot.slane %v7179_v27, 4  ;;  %v3297_v34 = vrot.slane %v3296_v32, 1  ;;  %v3303_v0 = vrot.slane %v3302_v29, 1 }
 0x339   : > { %8702 = vst [vmem:[#allocation9_spill] sm:$0xff] %v7179_v27  ;;  %v3321_v5 = vrot.slane %v3320_v63, 1  ;;  %v3327_v8 = vrot.slane %v3326_v26, 1 }
 0x33a   : > { %v3306_v20 = vadd.f32 %v3305_v14, %v7177_v47  ;;  %v3312_v41 = vadd.f32 %v3311_v3, %v7179_v27  ;;  %v3298_v36 = vadd.f32 %v3297_v34, %v3296_v32  ;;  %v3304_v40 = vadd.f32 %v3303_v0, %v3302_v29 }
 0x33b   : > { %v3322_v31 = vadd.f32 %v3321_v5, %v3320_v63  ;;  %v3328_v15 = vadd.f32 %v3327_v8, %v3326_v26 }
 0x33c   : > { %v3307_v28 = vrot.slane %v3306_v20, 2  ;;  %v3313_v38 = vrot.slane %v3312_v41, 2  ;;  %v3336_v9 = vmul.f32 %v7183_v48, %v3298_v36  ;;  %v3337_v57 = vmul.f32 %v7183_v48, %v3304_v40 }
 0x33d   : > { %v3340_v33 = vmul.f32 %v7183_v48, %v3322_v31  ;;  %v3341_v51 = vmul.f32 %v7183_v48, %v3328_v15 }
 0x33e   : > { %v3308_v62 = vadd.f32 %v3307_v28, %v3306_v20  ;;  %v3314_v2 = vadd.f32 %v3313_v38, %v3312_v41  ;;  %v7192_v1 = vsub.f32 %v7159_v58, %v3336_v9  ;;  %v7195_v11 = vsub.f32 %v7161_v25, %v3337_v57 }
 0x33f   : > { %v7198_v43 = vsub.f32 %v7163_v45, %v3340_v33  ;;  %v7201_v7 = vsub.f32 %v7165_v22, %v3341_v51 }
 0x340   : > { %v3309_v49 = vrot.slane %v3308_v62, 1  ;;  %v3315_v42 = vrot.slane %v3314_v2, 1  ;;  %v3348_v23 = vmul.f32 %v7192_v1, %v7192_v1  ;;  %v3349_v21 = vmul.f32 %v7195_v11, %v7195_v11 }
 0x341   : > { %v3352_v46 = vmul.f32 %v7198_v43, %v7198_v43  ;;  %v3353_v18 = vmul.f32 %v7201_v7, %v7201_v7 }
 0x342   : > { %v3310_v12 = vadd.f32 %v3309_v49, %v3308_v62  ;;  %v3316_v37 = vadd.f32 %v3315_v42, %v3314_v2  ;;  %v3354_v35 = vrot.slane %v3348_v23, 4  ;;  %v3360_v44 = vrot.slane %v3349_v21, 4 }
 0x343   : > { %v3378_v61 = vrot.slane %v3352_v46, 4  ;;  %v3384_v54 = vrot.slane %v3353_v18, 4 }
 0x344   : > { %v3338_v6 = vmul.f32 %v7183_v48, %v3310_v12  ;;  %v3339_v30 = vmul.f32 %v7183_v48, %v3316_v37  ;;  %v3355_v17 = vadd.f32 %v3354_v35, %v3348_v23  ;;  %v3361_v55 = vadd.f32 %v3360_v44, %v3349_v21  ;;  %v3495_v12 = vld [vmem:[%s8680_s7 + $0x18] sm:$0xff] }
 0x345   : > { %v3379_v59 = vadd.f32 %v3378_v61, %v3352_v46  ;;  %v3385_v4 = vadd.f32 %v3384_v54, %v3353_v18  ;;  %v5482_v18 = vmov 8  }
 0x346   : > { %v7214_v24 = vsub.f32 %v7177_v47, %v3338_v6  ;;  %v7217_v53 = vsub.f32 %v7179_v27, %v3339_v30  ;;  %v3356_v60 = vrot.slane %v3355_v17, 2  ;;  %v3362_v50 = vrot.slane %v3361_v55, 2  ;;  %5354 = vset.pattern.permute.xlu1 %v5482_v18  ;;  %5356 = vset.pattern.permute.xlu0 %v5482_v18 }
 0x347   : > { %v3380_v39 = vrot.slane %v3379_v59, 2  ;;  %v3386_v52 = vrot.slane %v3385_v4, 2  ;;  %5355 = vset.pattern.permute.xlu2 %v5482_v18  ;;  %3513 = vperm.xlu1 %5354, %v3495_v12  }
 0x348   : > { %v3350_v19 = vmul.f32 %v7214_v24, %v7214_v24  ;;  %v3351_v10 = vmul.f32 %v7217_v53, %v7217_v53  ;;  %v3357_v13 = vadd.f32 %v3356_v60, %v3355_v17  ;;  %v3363_v16 = vadd.f32 %v3362_v50, %v3361_v55 }
 0x349   : > { %v3381_v56 = vadd.f32 %v3380_v39, %v3379_v59  ;;  %v3387_v32 = vadd.f32 %v3386_v52, %v3385_v4 }
 0x34a   : > { %v3366_v29 = vrot.slane %v3350_v19, 4  ;;  %v3372_v63 = vrot.slane %v3351_v10, 4  ;;  %v3358_v26 = vrot.slane %v3357_v13, 1  ;;  %v3364_v14 = vrot.slane %v3363_v16, 1 }
 0x34b   : > { %v3382_v3 = vrot.slane %v3381_v56, 1  ;;  %v3388_v34 = vrot.slane %v3387_v32, 1 }
 0x34c   : > { %v3367_v0 = vadd.f32 %v3366_v29, %v3350_v19  ;;  %v3373_v5 = vadd.f32 %v3372_v63, %v3351_v10  ;;  %v3359_v8 = vadd.f32 %v3358_v26, %v3357_v13  ;;  %v3365_v20 = vadd.f32 %v3364_v14, %v3363_v16  ;;  %v3492_v19 = vld [vmem:[%s8680_s7] sm:$0xff] }
 0x34d   : > { %v3383_v41 = vadd.f32 %v3382_v3, %v3381_v56  ;;  %v3389_v36 = vadd.f32 %v3388_v34, %v3387_v32 }
 0x34e   : > { %v3368_v40 = vrot.slane %v3367_v0, 2  ;;  %v3374_v31 = vrot.slane %v3373_v5, 2  ;;  %v3390_v15 = vmul.f32 %v3359_v8, %v7183_v48  ;;  %v3391_v28 = vmul.f32 %v3365_v20, %v7183_v48  ;;  %v3470_v20 = vpop.permute.xlu0 %3469 }
 0x34f   : > { %v3394_v38 = vmul.f32 %v3383_v41, %v7183_v48  ;;  %v3395_v9 = vmul.f32 %v3389_v36, %v7183_v48  ;;  %3498 = vperm.xlu1 %5354, %v3492_v19  }
 0x350   : > { %v3369_v57 = vadd.f32 %v3368_v40, %v3367_v0  ;;  %v3375_v33 = vadd.f32 %v3374_v31, %v3373_v5  ;;  %v3396_v51 = vadd.f32 1e-06, %v3390_v15  ;;  %v3397_v62 = vadd.f32 1e-06, %v3391_v28 }
 0x351   : > { %v7227_v2 = vadd.f32 1e-06, %v3394_v38  ;;  %v7229_v49 = vadd.f32 1e-06, %v3395_v9  ;;  %v3480_v9 = vpop.permute.xlu1 %3479 }
 0x352   : > { %v3370_v42 = vrot.slane %v3369_v57, 1  ;;  %v3376_v23 = vrot.slane %v3375_v33, 1  ;;  %5376 = vrsqrt.f32 %v3396_v51  ;;  %vm3408_vm2 = vweird.f32 %v3396_v51 }
 0x353   : > { %5378 = vrsqrt.f32 %v3397_v62  ;;  %vm3418_vm4 = vweird.f32 %v3397_v62  ;;  %vm3448_vm6 = vweird.f32 %v7227_v2  ;;  %vm3458_vm11 = vweird.f32 %v7229_v49 }
 0x354   : > { %v3371_v21 = vadd.f32 %v3370_v42, %v3369_v57  ;;  %v3377_v46 = vadd.f32 %v3376_v23, %v3375_v33  ;;  %5380 = vrsqrt.f32 %v7227_v2 }
 0x355   : > { %5382 = vrsqrt.f32 %v7229_v49 }
 0x356   : > { %v3392_v37 = vmul.f32 %v3371_v21, %v7183_v48  ;;  %v3393_v35 = vmul.f32 %v3377_v46, %v7183_v48 }
 0x358   : > { %v5377_v44 = vpop.eup %5376  ;;  %v7238_v61 = vadd.f32 1e-06, %v3392_v37  ;;  %v7240_v54 = vadd.f32 1e-06, %v3393_v35 }
 0x359   : > { %v5379_v6 = vpop.eup %5378  ;;  %v3403_v30 = vmul.f32 %v5377_v44, %v3396_v51  ;;  %vm3409_vm3 = vweird.f32 %v5377_v44 }
 0x35a   : > { %v5381_v17 = vpop.eup %5380  ;;  %v3413_v55 = vmul.f32 %v5379_v6, %v3397_v62  ;;  %5384 = vrsqrt.f32 %v7238_v61  ;;  %vm3419_vm5 = vweird.f32 %v5379_v6  ;;  %vm3410_vm8 = vmor %vm3408_vm2, %vm3409_vm3  ;;  %v3493_v62 = vld [vmem:[%s8680_s7 + $0x8] sm:$0xff]  ;;  %vm3428_vm1 = vweird.f32 %v7238_v61 }
 0x35b   : > { %v5383_v59 = vpop.eup %5382  ;;  %v3404_v4 = vmul.f32 %v5377_v44, %v3403_v30  ;;  %5386 = vrsqrt.f32 %v7240_v54  ;;  %v3443_v60 = vmul.f32 %v5381_v17, %v7227_v2  ;;  %vm3449_vm7 = vweird.f32 %v5381_v17  ;;  %vm3420_vm10 = vmor %vm3418_vm4, %vm3419_vm5  ;;  %3503 = vperm.xlu0 %5356, %v3493_v62  }
 0x35c   : > { %v3414_v50 = vmul.f32 %v5379_v6, %v3413_v55  ;;  %v3453_v48 = vmul.f32 %v5383_v59, %v7229_v49  ;;  %vm3459_vm9 = vweird.f32 %v5383_v59  ;;  %vm3450_vm12 = vmor %vm3448_vm6, %vm3449_vm7  ;;  %vm3438_vm3 = vweird.f32 %v7240_v54 }
 0x35d   : > { %v3405_v39 = vmul.f32 0.5, %v3404_v4  ;;  %v3444_v52 = vmul.f32 %v5381_v17, %v3443_v60  ;;  %vm3460_vm13 = vmor %vm3458_vm11, %vm3459_vm9 }
 0x35e   : > { %v3415_v10 = vmul.f32 0.5, %v3414_v50  ;;  %v3454_v13 = vmul.f32 %v5383_v59, %v3453_v48  ;;  %v3523_v50 = vpop.permute.xlu1 %3522 }
 0x35f   : > { %v3406_v16 = vsub.f32 1.5, %v3405_v39  ;;  %v3445_v56 = vmul.f32 0.5, %v3444_v52  ;;  %v3494_v39 = vld [vmem:[%s8680_s7 + $0x10] sm:$0xff]  ;;  %v5437_v52 = vld [vmem:[%s8679_s6] sm:$0xff] }
 0x360   : > { %v5385_v32 = vpop.eup %5384  ;;  %v3416_v29 = vsub.f32 1.5, %v3415_v10  ;;  %v3455_v63 = vmul.f32 0.5, %v3454_v13  ;;  %3508 = vperm.xlu2 %5355, %v3494_v39  }
 0x361   : > { %v5387_v26 = vpop.eup %5386  ;;  %v3407_v14 = vmul.f32 %v5377_v44, %v3406_v16  ;;  %v3423_v3 = vmul.f32 %v5385_v32, %v7238_v61  ;;  %v3446_v34 = vsub.f32 1.5, %v3445_v56  ;;  %vm3429_vm14 = vweird.f32 %v5385_v32 }
 0x362   : > { %v3417_v0 = vmul.f32 %v5379_v6, %v3416_v29  ;;  %v3433_v5 = vmul.f32 %v5387_v26, %v7240_v54  ;;  %v3456_v8 = vsub.f32 1.5, %v3455_v63  ;;  %vm3439_vm15 = vweird.f32 %v5387_v26  ;;  %vm3430_vm2 = vmor %vm3428_vm1, %vm3429_vm14 }
 0x363   : > { %v3411_v41 = vsel %vm3410_vm8, %v5377_v44, %v3407_v14  ;;  %v3424_v36 = vmul.f32 %v5385_v32, %v3423_v3  ;;  %v3447_v40 = vmul.f32 %v5381_v17, %v3446_v34  ;;  %vm3440_vm4 = vmor %vm3438_vm3, %vm3439_vm15 }
 0x364   : > { %v3462_v31 = vmul.f32 %v3411_v41, %v7192_v1  ;;  %v3421_v15 = vsel %vm3420_vm10, %v5379_v6, %v3417_v0  ;;  %v3434_v28 = vmul.f32 %v5387_v26, %v3433_v5  ;;  %v3457_v38 = vmul.f32 %v5383_v59, %v3456_v8 }
 0x365   : > { %v3463_v57 = vmul.f32 %v3421_v15, %v7195_v11  ;;  %v3425_v33 = vmul.f32 0.5, %v3424_v36  ;;  %v3451_v51 = vsel %vm3450_vm12, %v5381_v17, %v3447_v40  ;;  %v3521_v11 = vpop.permute.xlu2 %3520 }
 0x366   : > { %v3472_v49 = vmul.f32 %v3470_v20, %v3462_v31  ;;  %v3435_v1 = vmul.f32 0.5, %v3434_v28  ;;  %v3466_v42 = vmul.f32 %v3451_v51, %v7198_v43  ;;  %v3461_v23 = vsel %vm3460_vm13, %v5383_v59, %v3457_v38 }
 0x367   : > { %v3473_v2 = vmul.f32 %v3470_v20, %v3463_v57  ;;  %v3426_v21 = vsub.f32 1.5, %v3425_v33  ;;  %v3467_v46 = vmul.f32 %v3461_v23, %v7201_v7 }
 0x368   : > { %v3482_v18 = vadd.f32 %v3480_v9, %v3472_v49  ;;  %v3436_v12 = vsub.f32 1.5, %v3435_v1  ;;  %v3476_v37 = vmul.f32 %v3470_v20, %v3466_v42  ;;  %4770 = vrot.lane.b32.xlu2 %v5437_v52, %s5483_s22 }
 0x369   : > { %v3483_v35 = vadd.f32 %v3480_v9, %v3473_v2  ;;  %v3427_v44 = vmul.f32 %v5385_v32, %v3426_v21  ;;  %v3477_v6 = vmul.f32 %v3470_v20, %v3467_v46 }
 0x36a   : > { %3551 = vmatpush.msrb.mxu2 %v3482_v18  ;;  %v3437_v43 = vmul.f32 %v5387_v26, %v3436_v12  ;;  %v3486_v30 = vadd.f32 %v3480_v9, %v3476_v37 }
 0x36b   : > { %3580 = vmatpush.msrb.mxu3 %v3483_v35  ;;  %5231 = vmatmul.msk.f32.vlgmr.msrb.gmra.mxu2 %vm3148_vm0, %v3521_v11  ;;  %v3431_v7 = vsel %vm3430_vm2, %v5385_v32, %v3427_v44  ;;  %v3487_v17 = vadd.f32 %v3480_v9, %v3477_v6 }
 0x36c   : > { %5235 = vmatmul.msk.f32.vlgmr.msrb.gmra.mxu3 %vm3148_vm0, %v3521_v11  ;;  %v3464_v55 = vmul.f32 %v3431_v7, %v7214_v24  ;;  %v3441_v59 = vsel %vm3440_vm4, %v5387_v26, %v3437_v43  ;;  %3667 = vmatpush.msra.mxu2 %v3486_v30 }
 0x36d   : > { %v3465_v61 = vmul.f32 %v3441_v59, %v7217_v53  ;;  %3696 = vmatpush.msra.mxu3 %v3487_v17  ;;  %v3525_v24 = vpop.permute.xlu2 %3524  ;;  %v3527_v53 = vpop.permute.xlu0 %3526 }
 0x36e   : > { %v3474_v4 = vmul.f32 %v3470_v20, %v3464_v55 }
 0x36f   : > { %v3475_v60 = vmul.f32 %v3470_v20, %v3465_v61 }
 0x370   : > { %v3484_v54 = vadd.f32 %v3480_v9, %v3474_v4 }
 0x371   : > { %v3485_v48 = vadd.f32 %v3480_v9, %v3475_v60 }
 0x372   : > { %3609 = vmatpush.msrb.mxu0 %v3484_v54 }
 0x373   : > { %3638 = vmatpush.msrb.mxu1 %v3485_v48  ;;  %5232 = vmatmul.msk.f32.gmra.mxu2 %vm3148_vm0, %v3523_v50 }
 0x374   : > { %5236 = vmatmul.msk.f32.gmra.mxu3 %vm3148_vm0, %v3523_v50  ;;  %5239 = vmatmul.msk.f32.vlgmr.msrb.gmra.mxu0 %vm3148_vm0, %v3521_v11 }
 0x375   : > { %5243 = vmatmul.msk.f32.vlgmr.msrb.gmra.mxu1 %vm3148_vm0, %v3521_v11 }
 0x37b   : > { %5233 = vmatmul.msk.f32.gmra.mxu2 %vm3148_vm0, %v3525_v24 }
 0x37c   : > { %5237 = vmatmul.msk.f32.gmra.mxu3 %vm3148_vm0, %v3525_v24  ;;  %5240 = vmatmul.msk.f32.gmra.mxu0 %vm3148_vm0, %v3523_v50 }
 0x37d   : > { %5244 = vmatmul.msk.f32.gmra.mxu1 %vm3148_vm0, %v3523_v50 }
 0x383   : > { %5234 = vmatmul.msk.f32.gmra.mxu2 %vm3148_vm0, %v3527_v53 }
 0x384   : > { %5238 = vmatmul.msk.f32.gmra.mxu3 %vm3148_vm0, %v3527_v53  ;;  %5241 = vmatmul.msk.f32.gmra.mxu0 %vm3148_vm0, %v3525_v24 }
 0x385   : > { %5245 = vmatmul.msk.f32.gmra.mxu1 %vm3148_vm0, %v3525_v24 }
 0x38b   : > { %5247 = vmatmul.msk.f32.vlgmr.msra.gmra.mxu2 %vm3148_vm0, %v3521_v11 }
 0x38c   : > { %5242 = vmatmul.msk.f32.gmra.mxu0 %vm3148_vm0, %v3527_v53  ;;  %5251 = vmatmul.msk.f32.vlgmr.msra.gmra.mxu3 %vm3148_vm0, %v3521_v11 }
 0x38d   : > { %5246 = vmatmul.msk.f32.gmra.mxu1 %vm3148_vm0, %v3527_v53 }
 0x393   : > { %5248 = vmatmul.msk.f32.gmra.mxu2 %vm3148_vm0, %v3523_v50 }
 0x394   : > { %5252 = vmatmul.msk.f32.gmra.mxu3 %vm3148_vm0, %v3523_v50 }
 0x39b   : > { %5249 = vmatmul.msk.f32.gmra.mxu2 %vm3148_vm0, %v3525_v24 }
 0x39c   : > { %5253 = vmatmul.msk.f32.gmra.mxu3 %vm3148_vm0, %v3525_v24 }
 0x3a3   : > { %5250 = vmatmul.msk.f32.gmra.mxu2 %vm3148_vm0, %v3527_v53 }
 0x3a4   : > { %5254 = vmatmul.msk.f32.gmra.mxu3 %vm3148_vm0, %v3527_v53 }
 0x3b9   : > { %v7301_v19 = vpop.permute.xlu1 %3513 }
 0x3c1   : > { %v7303_v10 = vpop.permute.xlu1 %3498 }
 0x3ee   : > { %v3553_v13 = vpop.f32.mrf.mxu2 }
 0x3ef   : > { %v7306_v16 = vadd.f32 %v3553_v13, %v7303_v10  ;;  %v3582_v56 = vpop.f32.mrf.mxu3 }
 0x3f0   : > { %v7309_v32 = vadd.f32 %v3582_v56, %v7303_v10 }
 0x3f1   : > { %v7312_v29 = vmul.f32 0.70710677, %v7306_v16  ;;  %v3611_v63 = vpop.f32.mrf.mxu0 }
 0x3f2   : > { %v7315_v26 = vmul.f32 0.70710677, %v7309_v32  ;;  %v7318_v14 = vadd.f32 %v3611_v63, %v7303_v10  ;;  %v3640_v3 = vpop.f32.mrf.mxu1  ;;  %v7367_v63 = vpop.permute.xlu0 %3503 }
 0x3f3   : > { %v3758_v34 = vmul.f32 %v7312_v29, %v7312_v29  ;;  %v7323_v0 = vadd.f32 %v3640_v3, %v7303_v10 }
 0x3f4   : > { %v3798_v5 = vmul.f32 %v7315_v26, %v7315_v26  ;;  %v7328_v8 = vmul.f32 0.70710677, %v7318_v14 }
 0x3f5   : > { %v7330_v20 = vmin.f32 %v3758_v34, 16.0  ;;  %v7333_v41 = vmul.f32 0.70710677, %v7323_v0 }
 0x3f6   : > { %v7335_v36 = vmin.f32 %v3798_v5, 16.0  ;;  %v3838_v40 = vmul.f32 %v7328_v8, %v7328_v8  ;;  %v3556_v3 = vpop.f32.mrf.mxu2 }
 0x3f7   : > { %v3760_v31 = vmul.f32 2.1237322e-06, %v7330_v20  ;;  %v3771_v15 = vmul.f32 3.8918573e-05, %v7330_v20  ;;  %v3878_v28 = vmul.f32 %v7333_v41, %v7333_v41 }
 0x3f8   : > { %v3800_v38 = vmul.f32 2.1237322e-06, %v7335_v36  ;;  %v3811_v9 = vmul.f32 3.8918573e-05, %v7335_v36  ;;  %v7345_v57 = vmin.f32 %v3838_v40, 16.0 }
 0x3f9   : > { %v3772_v33 = vadd.f32 0.001143296, %v3771_v15  ;;  %v7347_v51 = vmin.f32 %v3878_v28, 16.0  ;;  %v3761_v49 = vadd.f32 0.00028619796, %v3760_v31  ;;  %v3585_v15 = vpop.f32.mrf.mxu3 }
 0x3fa   : > { %v3812_v62 = vadd.f32 0.001143296, %v3811_v9  ;;  %v3851_v42 = vmul.f32 3.8918573e-05, %v7345_v57  ;;  %v3801_v23 = vadd.f32 0.00028619796, %v3800_v38  ;;  %v3557_v38 = vadd.f32 %v3556_v3, %v7367_v63 }
 0x3fb   : > { %v3773_v1 = vmul.f32 %v3772_v33, %v7330_v20  ;;  %v3891_v21 = vmul.f32 3.8918573e-05, %v7347_v51  ;;  %v3840_v12 = vmul.f32 2.1237322e-06, %v7345_v57  ;;  %v3762_v37 = vmul.f32 %v3761_v49, %v7330_v20 }
 0x3fc   : > { %v3813_v2 = vmul.f32 %v3812_v62, %v7335_v36  ;;  %v3852_v11 = vadd.f32 0.001143296, %v3851_v42  ;;  %v3802_v43 = vmul.f32 %v3801_v23, %v7335_v36  ;;  %v3880_v30 = vmul.f32 2.1237322e-06, %v7347_v51 }
 0x3fd   : > { %v3774_v46 = vadd.f32 0.014752088, %v3773_v1  ;;  %v3892_v44 = vadd.f32 0.001143296, %v3891_v21  ;;  %v3841_v55 = vadd.f32 0.00028619796, %v3840_v12  ;;  %v7374_v42 = vadd.f32 %v3585_v15, %v7367_v63 }
 0x3fe   : > { %v3814_v18 = vadd.f32 0.014752088, %v3813_v2  ;;  %v3853_v35 = vmul.f32 %v3852_v11, %v7345_v57  ;;  %v3763_v61 = vadd.f32 0.0036580483, %v3762_v37  ;;  %v3803_v60 = vadd.f32 0.0036580483, %v3802_v43  ;;  %v3614_v43 = vpop.f32.mrf.mxu0  ;;  %v3559_v45 = vpop.f32.mrf.mxu2 }
 0x3ff   : > { %v3775_v6 = vmul.f32 %v3774_v46, %v7330_v20  ;;  %v3893_v59 = vmul.f32 %v3892_v44, %v7347_v51  ;;  %v3881_v50 = vadd.f32 0.00028619796, %v3880_v30  ;;  %v3842_v24 = vmul.f32 %v3841_v55, %v7345_v57 }
 0x400   : > { %v3815_v7 = vmul.f32 %v3814_v18, %v7335_v36  ;;  %v3854_v17 = vadd.f32 0.014752088, %v3853_v35  ;;  %v3764_v39 = vmul.f32 %v3763_v61, %v7330_v20  ;;  %v3804_v13 = vmul.f32 %v3803_v60, %v7335_v36 }
 0x401   : > { %v3776_v4 = vadd.f32 0.112945676, %v3775_v6  ;;  %v3894_v53 = vadd.f32 0.014752088, %v3893_v59  ;;  %v3882_v56 = vmul.f32 %v3881_v50, %v7347_v51  ;;  %v3843_v40 = vadd.f32 0.0036580483, %v3842_v24 }
 0x402   : > { %v3816_v54 = vadd.f32 0.112945676, %v3815_v7  ;;  %v3855_v48 = vmul.f32 %v3854_v17, %v7345_v57  ;;  %v3765_v28 = vadd.f32 0.05243302, %v3764_v39  ;;  %v3805_v33 = vadd.f32 0.05243302, %v3804_v13 }
 0x403   : > { %v3777_v52 = vmul.f32 %v3776_v4, %v7330_v20  ;;  %v3895_v31 = vmul.f32 %v3894_v53, %v7347_v51  ;;  %v3883_v62 = vadd.f32 0.0036580483, %v3882_v56  ;;  %v3844_v23 = vmul.f32 %v3843_v40, %v7345_v57 }
 0x404   : > { %v3817_v34 = vmul.f32 %v3816_v54, %v7335_v36  ;;  %v3856_v5 = vadd.f32 0.112945676, %v3855_v48  ;;  %v3766_v21 = vmul.f32 %v3765_v28, %v7330_v20  ;;  %v7378_v46 = vmul.f32 0.70710677, %v3557_v38 }
 0x405   : > { %v3778_v9 = vadd.f32 0.4994258, %v3777_v52  ;;  %v3896_v2 = vadd.f32 0.112945676, %v3895_v31  ;;  %v3806_v18 = vmul.f32 %v3805_v33, %v7335_v36  ;;  %v3884_v12 = vmul.f32 %v3883_v62, %v7347_v51 }
 0x406   : > { %v3818_v49 = vadd.f32 0.4994258, %v3817_v34  ;;  %v3857_v1 = vmul.f32 %v3856_v5, %v7345_v57  ;;  %v3998_v44 = vmul.f32 %v7378_v46, %v7378_v46  ;;  %v7387_v6 = vmul.f32 0.70710677, %v7374_v42 }
 0x407   : > { %v3779_v11 = vmul.f32 %v3778_v9, %v7330_v20  ;;  %v3845_v30 = vadd.f32 0.05243302, %v3844_v23  ;;  %v3897_v7 = vmul.f32 %v3896_v2, %v7347_v51  ;;  %v3767_v17 = vadd.f32 0.18741608, %v3766_v21 }
 0x408   : > { %v3819_v37 = vmul.f32 %v3818_v49, %v7335_v36  ;;  %v3858_v35 = vadd.f32 0.4994258, %v3857_v1  ;;  %v3807_v59 = vadd.f32 0.18741608, %v3806_v18  ;;  %v7392_v61 = vmin.f32 %v3998_v44, 16.0 }
 0x409   : > { %v7390_v55 = vadd.f32 1.0, %v3779_v11  ;;  %v7395_v4 = vadd.f32 %v3614_v43, %v7367_v63  ;;  %v3885_v54 = vadd.f32 0.05243302, %v3884_v12  ;;  %v4038_v48 = vmul.f32 %v7387_v6, %v7387_v6 }
 0x40a   : > { %v7397_v60 = vadd.f32 1.0, %v3819_v37  ;;  %v3859_v50 = vmul.f32 %v3858_v35, %v7345_v57  ;;  %v3846_v24 = vmul.f32 %v3845_v30, %v7345_v57  ;;  %v3898_v53 = vadd.f32 0.4994258, %v3897_v7  ;;  %v3643_v37 = vpop.f32.mrf.mxu1 }
 0x40b   : > { %v3768_v39 = vmul.f32 %v3767_v17, %v7330_v20  ;;  %v4011_v52 = vmul.f32 3.8918573e-05, %v7392_v61  ;;  %v7406_v13 = vmul.f32 0.5, %v7306_v16  ;;  %5388 = vrcp.f32 %v7390_v55 }
 0x40c   : > { %v7409_v56 = vmin.f32 %v4038_v48, 16.0  ;;  %v7412_v3 = vmul.f32 0.70710677, %v7395_v4  ;;  %v3808_v34 = vmul.f32 %v3807_v59, %v7335_v36  ;;  %5390 = vrcp.f32 %v7397_v60 }
 0x40d   : > { %8703 = vst [vmem:[#allocation10_spill] sm:$0xff] %v7406_v13  ;;  %v7416_v5 = vadd.f32 1.0, %v3859_v50  ;;  %v3886_v20 = vmul.f32 %v3885_v54, %v7347_v51  ;;  %v3847_v40 = vadd.f32 0.18741608, %v3846_v24  ;;  %v3899_v31 = vmul.f32 %v3898_v53, %v7347_v51 }
 0x40e   : > { %v4000_v16 = vmul.f32 2.1237322e-06, %v7392_v61  ;;  %v4012_v15 = vadd.f32 0.001143296, %v4011_v52  ;;  %v3769_v28 = vadd.f32 1.1283791, %v3768_v39  ;;  %v4078_v23 = vmul.f32 %v7412_v3, %v7412_v3 }
 0x40f   : > { %v7422_v9 = vmul.f32 0.5, %v7309_v32  ;;  %v7425_v33 = vmul.f32 0.5, %v7318_v14  ;;  %v4051_v36 = vmul.f32 3.8918573e-05, %v7409_v56  ;;  %v7429_v62 = vmul.f32 0.5, %v7323_v0 }
 0x410   : > { %v4013_v49 = vmul.f32 %v4012_v15, %v7392_v61  ;;  %v4040_v1 = vmul.f32 2.1237322e-06, %v7409_v56  ;;  %v3809_v2 = vadd.f32 1.1283791, %v3808_v34  ;;  %5392 = vrcp.f32 %v7416_v5 }
 0x411   : > { %8704 = vst [vmem:[#allocation11_spill] sm:$0xff] %v7422_v9  ;;  %v3887_v32 = vadd.f32 0.18741608, %v3886_v20  ;;  %v7436_v21 = vmul.f32 0.5, %v3557_v38  ;;  %v7438_v14 = vpop.eup %5388  ;;  %v3848_v11 = vmul.f32 %v3847_v40, %v7345_v57  ;;  %v7441_v18 = vadd.f32 1.0, %v3899_v31 }
 0x412   : > { %8705 = vst [vmem:[#allocation12_spill] sm:$0xff] %v7425_v33  ;;  %v4001_v0 = vadd.f32 0.00028619796, %v4000_v16  ;;  %v4014_v12 = vadd.f32 0.014752088, %v4013_v49  ;;  %v7443_v35 = vpop.eup %5390  ;;  %v7446_v44 = vmul.f32 %v3769_v28, %v7312_v29  ;;  %v3792_v30 = vand.u32 2147483648, %v7390_v55 }
 0x413   : > { %8706 = vst [vmem:[#allocation13_spill] sm:$0xff] %v7429_v62  ;;  %v3790_v43 = vand.u32 2147483647, %v7390_v55  ;;  %v4052_v38 = vadd.f32 0.001143296, %v4051_v36  ;;  %v3832_v7 = vand.u32 2147483648, %v7397_v60  ;;  %v3782_v50 = vmul.f32 %v7438_v14, %v7390_v55 }
 0x414   : > { %v4015_v17 = vmul.f32 %v4014_v12, %v7392_v61  ;;  %v4041_v57 = vadd.f32 0.00028619796, %v4040_v1  ;;  %v7452_v59 = vmin.f32 %v4078_v23, 16.0  ;;  %v3888_v54 = vmul.f32 %v3887_v32, %v7347_v51 }
 0x415   : > { %v4053_v29 = vmul.f32 %v4052_v38, %v7409_v56  ;;  %v7459_v48 = vadd.f32 %v3643_v37, %v7367_v63  ;;  %v3822_v24 = vmul.f32 %v7443_v35, %v7397_v60  ;;  %v3830_v53 = vand.u32 2147483647, %v7397_v60 }
 0x416   : > { %5394 = vrcp.f32 %v7441_v18  ;;  %v4002_v39 = vmul.f32 %v4001_v0, %v7392_v61  ;;  %v7466_v52 = vpop.eup %5392  ;;  %v7468_v34 = vor.u32 1.1754944e-38, %v3792_v30  ;;  %v7471_v51 = vmul.f32 %v3809_v2, %v7315_v26 }
 0x417   : > { %v3849_v20 = vadd.f32 1.1283791, %v3848_v11  ;;  %v4054_v40 = vadd.f32 0.014752088, %v4053_v29  ;;  %v7473_v31 = vor.u32 1.1754944e-38, %v3832_v7  ;;  %v4042_v15 = vmul.f32 %v4041_v57, %v7409_v56 }
 0x418   : > { %v4016_v16 = vadd.f32 0.112945676, %v4015_v17  ;;  %v4091_v28 = vmul.f32 3.8918573e-05, %v7452_v59  ;;  %v3783_v36 = vsub.f32 1.0, %v3782_v50  ;;  %v3823_v32 = vsub.f32 1.0, %v3822_v24 }
 0x419   : > { %v3889_v49 = vadd.f32 1.1283791, %v3888_v54  ;;  %v4055_v1 = vmul.f32 %v4054_v40, %v7409_v56  ;;  %v7479_v23 = vmul.f32 0.70710677, %v7459_v48  ;;  %v3862_v26 = vmul.f32 %v7466_v52, %v7416_v5 }
 0x41a   : > { %v4003_v2 = vadd.f32 0.0036580483, %v4002_v39  ;;  %v7484_v11 = vmul.f32 0.5, %v7374_v42  ;;  %vm3786_vm0 = vweird.f32 %v7390_v55  ;;  %v7488_v0 = vmul.f32 %v3849_v20, %v7328_v8 }
 0x41b   : > { %v4056_v12 = vadd.f32 0.112945676, %v4055_v1  ;;  %v4080_v37 = vmul.f32 2.1237322e-06, %v7452_v59  ;;  %v4092_v30 = vadd.f32 0.001143296, %v4091_v28  ;;  %vm3826_vm5 = vweird.f32 %v7397_v60 }
 0x41c   : > { %v7491_v38 = vpop.eup %5394  ;;  %v4017_v7 = vmul.f32 %v4016_v16, %v7392_v61  ;;  %v4043_v17 = vadd.f32 0.0036580483, %v4042_v15  ;;  %v7496_v57 = vmul.f32 0.5, %v7395_v4  ;;  %v4118_v42 = vmul.f32 %v7479_v23, %v7479_v23 }
 0x41d   : > { %v3784_v8 = vmul.f32 %v7438_v14, %v3783_v36  ;;  %v3872_v50 = vand.u32 2147483648, %v7416_v5  ;;  %v4057_v54 = vmul.f32 %v4056_v12, %v7409_v56  ;;  %v4093_v29 = vmul.f32 %v4092_v30, %v7452_v59 }
 0x41e   : > { %8707 = vst [vmem:[#allocation14_spill] sm:$0xff] %v7496_v57  ;;  %vm3787_vm6 = vweird.f32 %v7438_v14  ;;  %v3824_v24 = vmul.f32 %v7443_v35, %v3823_v32  ;;  %v3863_v39 = vsub.f32 1.0, %v3862_v26  ;;  %v7506_v20 = vmin.f32 %v4118_v42, 16.0 }
 0x41f   : > { %v3902_v4 = vmul.f32 %v7491_v38, %v7441_v18  ;;  %v4004_v40 = vmul.f32 %v4003_v2, %v7392_v61  ;;  %v4081_v16 = vadd.f32 0.00028619796, %v4080_v37  ;;  %v4094_v15 = vadd.f32 0.014752088, %v4093_v29  ;;  %vm7541_vm11 = vmor %vm3786_vm0, %vm3787_vm6 }
 0x420   : > { %vm7511_vm7 = vcmp.eq.f32.partialorder %v3790_v43, 8.507059e+37  ;;  %vm3827_vm8 = vweird.f32 %v7443_v35  ;;  %v3870_v36 = vand.u32 2147483647, %v7416_v5  ;;  %v4018_v1 = vadd.f32 0.4994258, %v4017_v7 }
 0x421   : > { %v4044_v32 = vmul.f32 %v4043_v17, %v7409_v56  ;;  %v3785_v26 = vadd.f32 %v7438_v14, %v3784_v8  ;;  %vm7519_vm9 = vcmp.eq.f32.partialorder %v3830_v53, 8.507059e+37  ;;  %vm3866_vm10 = vweird.f32 %v7416_v5  ;;  %v7533_v53 = vpop.permute.xlu2 %3508  ;;  %vm7553_vm12 = vmor %vm3826_vm5, %vm3827_vm8 }
 0x422   : > { %v7524_v2 = vor.u32 1.1754944e-38, %v3872_v50  ;;  %v7527_v43 = vmul.f32 %v3889_v49, %v7333_v41  ;;  %v4058_v37 = vadd.f32 0.4994258, %v4057_v54  ;;  %v3825_v30 = vadd.f32 %v7443_v35, %v3824_v24  ;;  %v3588_v41 = vpop.f32.mrf.mxu3 }
 0x423   : > { %v3910_v7 = vand.u32 2147483647, %v7441_v18  ;;  %v4095_v17 = vmul.f32 %v4094_v15, %v7452_v59  ;;  %v4131_v42 = vmul.f32 3.8918573e-05, %v7506_v20  ;;  %v3864_v8 = vmul.f32 %v7466_v52, %v3863_v39 }
 0x424   : > { %v3903_v29 = vsub.f32 1.0, %v3902_v4  ;;  %v4005_v22 = vadd.f32 0.05243302, %v4004_v40  ;;  %v4082_v50 = vmul.f32 %v4081_v16, %v7452_v59  ;;  %v4019_v54 = vmul.f32 %v4018_v1, %v7392_v61 }
 0x425   : > { %v4045_v24 = vadd.f32 0.05243302, %v4044_v32  ;;  %v4096_v15 = vadd.f32 0.112945676, %v4095_v17  ;;  %v4132_v27 = vadd.f32 0.001143296, %v4131_v42  ;;  %v3789_v39 = vsel %vm7541_vm11, %v7438_v14, %v3785_v26 }
 0x426   : > { %vm3867_vm13 = vweird.f32 %v7466_v52  ;;  %v3912_v55 = vand.u32 2147483648, %v7441_v18  ;;  %v4059_v40 = vmul.f32 %v4058_v37, %v7409_v56  ;;  %v3829_v16 = vsel %vm7553_vm12, %v7443_v35, %v3825_v30 }
 0x427   : > { %vm7563_vm14 = vcmp.eq.f32.partialorder %v3870_v36, 8.507059e+37  ;;  %vm3906_vm15 = vweird.f32 %v7441_v18  ;;  %v4097_v60 = vmul.f32 %v4096_v15, %v7452_v59  ;;  %v7570_v1 = vadd.f32 %v3559_v45, %v7533_v53  ;;  %vm7595_vm1 = vmor %vm3866_vm10, %vm3867_vm13 }
 0x428   : > { %v7573_v32 = vadd.f32 %v3588_v41, %v7533_v53  ;;  %v3865_v26 = vadd.f32 %v7466_v52, %v3864_v8  ;;  %v3904_v37 = vmul.f32 %v7491_v38, %v3903_v29  ;;  %v4006_v35 = vmul.f32 %v4005_v22, %v7392_v61 }
 0x429   : > { %v4133_v36 = vmul.f32 %v4132_v27, %v7506_v20  ;;  %v7579_v30 = vadd.f32 1.0, %v4019_v54  ;;  %v4046_v17 = vmul.f32 %v4045_v24, %v7409_v56  ;;  %v4083_v42 = vadd.f32 0.0036580483, %v4082_v50 }
 0x42a   : > { %v4120_v49 = vmul.f32 2.1237322e-06, %v7506_v20  ;;  %v3794_v45 = vsel %vm7511_vm7, %v7468_v34, %v3789_v39  ;;  %v7586_v41 = vadd.f32 1.0, %v4059_v40  ;;  %v4098_v8 = vadd.f32 0.4994258, %v4097_v60 }
 0x42b   : > { %v4134_v15 = vadd.f32 0.014752088, %v4133_v36  ;;  %v3834_v22 = vsel %vm7519_vm9, %v7473_v31, %v3829_v16  ;;  %vm3907_vm2 = vweird.f32 %v7491_v38  ;;  %v7601_v34 = vmul.f32 0.70710677, %v7570_v1  ;;  %v3617_v36 = vpop.f32.mrf.mxu0 }
 0x42c   : > { %v7604_v28 = vmul.f32 0.70710677, %v7573_v32  ;;  %v3869_v31 = vsel %vm7595_vm1, %v7466_v52, %v3865_v26  ;;  %v3905_v12 = vadd.f32 %v7491_v38, %v3904_v37  ;;  %v4007_v29 = vadd.f32 0.18741608, %v4006_v35  ;;  %vm7636_vm4 = vmor %vm3906_vm15, %vm3907_vm2 }
 0x42d   : > { %v4135_v5 = vmul.f32 %v4134_v15, %v7506_v20  ;;  %5396 = vrcp.f32 %v7579_v30  ;;  %v4047_v50 = vadd.f32 0.18741608, %v4046_v17  ;;  %v4084_v54 = vmul.f32 %v4083_v42, %v7452_v59 }
 0x42e   : > { %v4238_v24 = vmul.f32 %v7601_v34, %v7601_v34  ;;  %5398 = vrcp.f32 %v7586_v41  ;;  %v4099_v39 = vmul.f32 %v4098_v8, %v7452_v59  ;;  %v4121_v4 = vadd.f32 0.00028619796, %v4120_v49 }
 0x42f   : > { %v4136_v40 = vadd.f32 0.112945676, %v4135_v5  ;;  %v7618_v52 = vmul.f32 %v3794_v45, %v7446_v44  ;;  %vm7620_vm3 = vcmp.eq.f32.partialorder %v3910_v7, 8.507059e+37  ;;  %v3913_v60 = vor.u32 1.1754944e-38, %v3912_v55 }
 0x430   : > { %v4278_v26 = vmul.f32 %v7604_v28, %v7604_v28  ;;  %v7627_v37 = vmul.f32 %v3834_v22, %v7471_v51  ;;  %v3874_v35 = vsel %vm7563_vm14, %v7524_v2, %v3869_v31  ;;  %v4008_v7 = vmul.f32 %v4007_v29, %v7392_v61 }
 0x431   : > { %v4137_v55 = vmul.f32 %v4136_v40, %v7506_v20  ;;  %v3909_v51 = vsel %vm7636_vm4, %v7491_v38, %v3905_v12  ;;  %v4048_v14 = vmul.f32 %v4047_v50, %v7409_v56  ;;  %v4085_v2 = vadd.f32 0.05243302, %v4084_v54 }
 0x432   : > { %8722 = vst [vmem:[#allocation15_spill] sm:$0xff] %v7627_v37  ;;  %v7646_v17 = vmin.f32 %v4238_v24, 16.0  ;;  %v7648_v42 = vadd.f32 1.0, %v4099_v39  ;;  %v7651_v18 = vmul.f32 0.5, %v7459_v48  ;;  %v4122_v49 = vmul.f32 %v4121_v4, %v7506_v20 }
 0x433   : > { %v4138_v61 = vadd.f32 0.4994258, %v4137_v55  ;;  %v7654_v45 = vpop.eup %5396  ;;  %v7658_v38 = vmin.f32 %v4278_v26, 16.0  ;;  %v7661_v56 = vadd.f32 %v3617_v36, %v7533_v53  ;;  %v7666_v27 = vmul.f32 %v3874_v35, %v7488_v0 }
 0x434   : > { %8725 = vst [vmem:[#allocation16_spill] sm:$0xff] %v7651_v18  ;;  %v4240_v8 = vmul.f32 2.1237322e-06, %v7646_v17  ;;  %v4251_v15 = vmul.f32 3.8918573e-05, %v7646_v17  ;;  %v7663_v22 = vpop.eup %5398  ;;  %v3914_v48 = vsel %vm7620_vm3, %v3913_v60, %v3909_v51  ;;  %v4032_v12 = vand.u32 2147483648, %v7579_v30 }
 0x435   : > { %8726 = vst [vmem:[#allocation17_spill] sm:$0xff] %v7666_v27  ;;  %v4009_v31 = vadd.f32 1.1283791, %v4008_v7  ;;  %v4049_v29 = vadd.f32 1.1283791, %v4048_v14  ;;  %v4086_v5 = vmul.f32 %v4085_v2, %v7452_v59  ;;  %v4022_v24 = vmul.f32 %v7654_v45, %v7579_v30  ;;  %v3646_v2 = vpop.f32.mrf.mxu1 }
 0x436   : > { %v4241_v50 = vadd.f32 0.00028619796, %v4240_v8  ;;  %v4252_v54 = vadd.f32 0.001143296, %v4251_v15  ;;  %5400 = vrcp.f32 %v7648_v42  ;;  %v4123_v39 = vadd.f32 0.0036580483, %v4122_v49 }
 0x437   : > { %v4139_v0 = vmul.f32 %v4138_v61, %v7506_v20  ;;  %v4062_v4 = vmul.f32 %v7663_v22, %v7586_v41  ;;  %v4280_v16 = vmul.f32 2.1237322e-06, %v7658_v38  ;;  %v7681_v60 = vmul.f32 0.70710677, %v7661_v56 }
 0x438   : > { %v4253_v40 = vmul.f32 %v4252_v54, %v7646_v17  ;;  %v7684_v26 = vmul.f32 %v3914_v48, %v7527_v43  ;;  %v7687_v35 = vmul.f32 %v4009_v31, %v7378_v46  ;;  %v4242_v44 = vmul.f32 %v4241_v50, %v7646_v17 }
 0x439   : > { %v4291_v7 = vmul.f32 3.8918573e-05, %v7658_v38  ;;  %v4030_v55 = vand.u32 2147483647, %v7579_v30  ;;  %v7692_v36 = vor.u32 1.1754944e-38, %v4032_v12  ;;  %v7695_v51 = vmul.f32 %v4049_v29, %v7387_v6 }
 0x43a   : > { %8727 = vst [vmem:[#allocation18_spill] sm:$0xff] %v7684_v26  ;;  %v4087_v14 = vadd.f32 0.18741608, %v4086_v5  ;;  %v4023_v49 = vsub.f32 1.0, %v4022_v24  ;;  %v4124_v43 = vmul.f32 %v4123_v39, %v7506_v20  ;;  %v7698_v61 = vadd.f32 1.0, %v4139_v0 }
 0x43b   : > { %v4254_v46 = vadd.f32 0.014752088, %v4253_v40  ;;  %v4063_v8 = vsub.f32 1.0, %v4062_v4  ;;  %v4281_v15 = vadd.f32 0.00028619796, %v4280_v16  ;;  %v4318_v31 = vmul.f32 %v7681_v60, %v7681_v60 }
 0x43c   : > { %v4292_v48 = vadd.f32 0.001143296, %v4291_v7  ;;  %v7702_v50 = vpop.eup %5400  ;;  %vm4026_vm0 = vweird.f32 %v7579_v30  ;;  %v4070_v6 = vand.u32 2147483647, %v7586_v41  ;;  %v4243_v12 = vadd.f32 0.0036580483, %v4242_v44 }
 0x43d   : > { %v4255_v29 = vmul.f32 %v4254_v46, %v7646_v17  ;;  %v7708_v5 = vadd.f32 %v3646_v2, %v7533_v53  ;;  %vm4066_vm5 = vweird.f32 %v7586_v41  ;;  %v4072_v54 = vand.u32 2147483648, %v7586_v41 }
 0x43e   : > { %v4088_v24 = vmul.f32 %v4087_v14, %v7452_v59  ;;  %v4293_v39 = vmul.f32 %v4292_v48, %v7658_v38  ;;  %v7714_v0 = vmin.f32 %v4318_v31, 16.0  ;;  %v4024_v4 = vmul.f32 %v7654_v45, %v4023_v49 }
 0x43f   : > { %v4125_v40 = vadd.f32 0.05243302, %v4124_v43  ;;  %5402 = vrcp.f32 %v7698_v61  ;;  %v4256_v16 = vadd.f32 0.112945676, %v4255_v29  ;;  %v4064_v44 = vmul.f32 %v7663_v22, %v4063_v8 }
 0x440   : > { %v4102_v7 = vmul.f32 %v7702_v50, %v7648_v42  ;;  %v4282_v2 = vmul.f32 %v4281_v15, %v7658_v38  ;;  %v4331_v46 = vmul.f32 3.8918573e-05, %v7714_v0  ;;  %vm4027_vm6 = vweird.f32 %v7654_v45 }
 0x441   : > { %v4244_v59 = vmul.f32 %v4243_v12, %v7646_v17  ;;  %v4294_v14 = vadd.f32 0.014752088, %v4293_v39  ;;  %v7726_v49 = vmul.f32 0.70710677, %v7708_v5  ;;  %vm7728_vm7 = vcmp.eq.f32.partialorder %v4030_v55, 8.507059e+37  ;;  %vm7754_vm10 = vmor %vm4026_vm0, %vm4027_vm6 }
 0x442   : > { %vm7732_vm8 = vcmp.eq.f32.partialorder %v4070_v6, 8.507059e+37  ;;  %v4073_v48 = vor.u32 1.1754944e-38, %v4072_v54  ;;  %v4089_v15 = vadd.f32 1.1283791, %v4088_v24  ;;  %v4257_v31 = vmul.f32 %v4256_v16, %v7646_v17 }
 0x443   : > { %v4025_v29 = vadd.f32 %v7654_v45, %v4024_v4  ;;  %v4126_v12 = vmul.f32 %v4125_v40, %v7506_v20  ;;  %v7740_v39 = vmul.f32 0.5, %v7570_v1  ;;  %v4332_v47 = vadd.f32 0.001143296, %v4331_v46 }
 0x444   : > { %v4065_v55 = vadd.f32 %v7663_v22, %v4064_v44  ;;  %vm4067_vm9 = vweird.f32 %v7663_v22  ;;  %v4103_v6 = vsub.f32 1.0, %v4102_v7  ;;  %v4283_v25 = vadd.f32 0.0036580483, %v4282_v2 }
 0x445   : > { %v7744_v58 = vpop.eup %5402  ;;  %v4245_v54 = vadd.f32 0.05243302, %v4244_v59  ;;  %v4295_v24 = vmul.f32 %v4294_v14, %v7658_v38  ;;  %v4320_v16 = vmul.f32 2.1237322e-06, %v7714_v0  ;;  %v4358_v4 = vmul.f32 %v7726_v49, %v7726_v49  ;;  %vm7770_vm11 = vmor %vm4066_vm5, %vm4067_vm9 }
 0x446   : > { %v7759_v40 = vmul.f32 %v4089_v15, %v7412_v3  ;;  %v4258_v44 = vadd.f32 0.4994258, %v4257_v31  ;;  %v7762_v7 = vmul.f32 0.5, %v7573_v32  ;;  %v4333_v2 = vmul.f32 %v4332_v47, %v7714_v0 }
 0x447   : > { %v4029_v46 = vsel %vm7754_vm10, %v7654_v45, %v4025_v29  ;;  %v4110_v59 = vand.u32 2147483647, %v7648_v42  ;;  %v4127_v3 = vadd.f32 0.18741608, %v4126_v12  ;;  %v7776_v14 = vmul.f32 0.5, %v7661_v56 }
 0x448   : > { %v4069_v47 = vsel %vm7770_vm11, %v7663_v22, %v4065_v55  ;;  %v4104_v32 = vmul.f32 %v7702_v50, %v4103_v6  ;;  %v4142_v45 = vmul.f32 %v7744_v58, %v7698_v61  ;;  %v4284_v41 = vmul.f32 %v4283_v25, %v7658_v38 }
 0x449   : > { %8736 = vst [vmem:[#allocation19_spill] sm:$0xff] %v7776_v14  ;;  %v4246_v15 = vmul.f32 %v4245_v54, %v7646_v17  ;;  %v4296_v31 = vadd.f32 0.112945676, %v4295_v24  ;;  %v4321_v29 = vadd.f32 0.00028619796, %v4320_v16  ;;  %v7786_v1 = vmin.f32 %v4358_v4, 16.0 }
 0x44a   : > { %vm4106_vm12 = vweird.f32 %v7648_v42  ;;  %v4112_v56 = vand.u32 2147483648, %v7648_v42  ;;  %v4259_v12 = vmul.f32 %v4258_v44, %v7646_v17  ;;  %v4334_v22 = vadd.f32 0.014752088, %v4333_v2  ;;  %v3562_v44 = vpop.f32.mrf.mxu2 }
 0x44b   : > { %v4034_v55 = vsel %vm7728_vm7, %v7692_v36, %v4029_v46  ;;  %v4074_v25 = vsel %vm7732_vm8, %v4073_v48, %v4069_v47  ;;  %vm7796_vm13 = vcmp.eq.f32.partialorder %v4110_v59, 8.507059e+37  ;;  %v4128_v54 = vmul.f32 %v4127_v3, %v7506_v20 }
 0x44c   : > { %v4105_v24 = vadd.f32 %v7702_v50, %v4104_v32  ;;  %vm4107_vm14 = vweird.f32 %v7702_v50  ;;  %v4143_v16 = vsub.f32 1.0, %v4142_v45  ;;  %v4285_v4 = vadd.f32 0.05243302, %v4284_v41 }
 0x44d   : > { %v4247_v2 = vadd.f32 0.18741608, %v4246_v15  ;;  %v4297_v43 = vmul.f32 %v4296_v31, %v7658_v38  ;;  %v4322_v36 = vmul.f32 %v4321_v29, %v7714_v0  ;;  %v4371_v8 = vmul.f32 3.8918573e-05, %v7786_v1  ;;  %vm7818_vm15 = vmor %vm4106_vm12, %vm4107_vm14  ;;  %v3591_v31 = vpop.f32.mrf.mxu3 }
 0x44e   : > { %v7807_v48 = vmul.f32 %v4034_v55, %v7687_v35  ;;  %v7809_v46 = vadd.f32 1.0, %v4259_v12  ;;  %v4335_v20 = vmul.f32 %v4334_v22, %v7714_v0  ;;  %v4360_v30 = vmul.f32 2.1237322e-06, %v7786_v1 }
 0x44f   : > { %v7814_v59 = vmul.f32 %v4074_v25, %v7695_v51  ;;  %v4113_v47 = vor.u32 1.1754944e-38, %v4112_v56  ;;  %v4129_v32 = vadd.f32 1.1283791, %v4128_v54  ;;  %v7823_v35 = vadd.f32 %v3562_v44, %v7301_v19 }
 0x450   : > { %v4109_v45 = vsel %vm7818_vm15, %v7702_v50, %v4105_v24  ;;  %v4144_v41 = vmul.f32 %v7744_v58, %v4143_v16  ;;  %v4286_v51 = vmul.f32 %v4285_v4, %v7658_v38  ;;  %v4372_v15 = vadd.f32 0.001143296, %v4371_v8 }
 0x451   : > { %v4150_v42 = vand.u32 2147483647, %v7698_v61  ;;  %v4248_v29 = vmul.f32 %v4247_v2, %v7646_v17  ;;  %v4298_v12 = vadd.f32 0.4994258, %v4297_v43  ;;  %v4323_v56 = vadd.f32 0.0036580483, %v4322_v36 }
 0x452   : > { %5404 = vrcp.f32 %v7809_v46  ;;  %v4336_v22 = vadd.f32 0.112945676, %v4335_v20  ;;  %v4361_v55 = vadd.f32 0.00028619796, %v4360_v30  ;;  %v4373_v25 = vmul.f32 %v4372_v15, %v7786_v1 }
 0x453   : > { %v4114_v50 = vsel %vm7796_vm13, %v4113_v47, %v4109_v45  ;;  %v4152_v54 = vand.u32 2147483648, %v7698_v61  ;;  %v7838_v24 = vmul.f32 0.70710677, %v7823_v35  ;;  %v7841_v16 = vadd.f32 %v3591_v31, %v7301_v19 }
 0x454   : > { %v4145_v17 = vadd.f32 %v7744_v58, %v4144_v41  ;;  %vm4147_vm1 = vweird.f32 %v7744_v58  ;;  %v4287_v4 = vadd.f32 0.18741608, %v4286_v51  ;;  %v4374_v44 = vadd.f32 0.014752088, %v4373_v25 }
 0x455   : > { %v4299_v2 = vmul.f32 %v4298_v12, %v7658_v38  ;;  %v4324_v43 = vmul.f32 %v4323_v56, %v7714_v0  ;;  %v4478_v6 = vmul.f32 %v7838_v24, %v7838_v24  ;;  %v7850_v36 = vmul.f32 0.70710677, %v7841_v16 }
 0x456   : > { %v4130_v8 = vmul.f32 %v4129_v32, %v7479_v23  ;;  %v4249_v20 = vadd.f32 1.1283791, %v4248_v29  ;;  %v4337_v30 = vmul.f32 %v4336_v22, %v7714_v0  ;;  %v4362_v3 = vmul.f32 %v4361_v55, %v7786_v1 }
 0x457   : > { %vm4146_vm2 = vweird.f32 %v7698_v61  ;;  %vm7856_vm3 = vcmp.eq.f32.partialorder %v4150_v42, 8.507059e+37  ;;  %v4153_v45 = vor.u32 1.1754944e-38, %v4152_v54  ;;  %v7861_v41 = vmul.f32 0.5, %v7708_v5 }
 0x458   : > { %v7863_v51 = vpop.eup %5404  ;;  %v7866_v15 = vmul.f32 %v4114_v50, %v7759_v40  ;;  %vm7870_vm4 = vmor %vm4146_vm2, %vm4147_vm1  ;;  %v4288_v61 = vmul.f32 %v4287_v4, %v7658_v38  ;;  %v4375_v32 = vmul.f32 %v4374_v44, %v7786_v1  ;;  %v7876_v31 = vmin.f32 %v4478_v6, 16.0  ;;  %v3620_v6 = vpop.f32.mrf.mxu0 }
 0x459   : > { %8743 = vst [vmem:[#allocation20_spill] sm:$0xff] %v7861_v41  ;;  %v4149_v5 = vsel %vm7870_vm4, %v7744_v58, %v4145_v17  ;;  %v7881_v42 = vadd.f32 1.0, %v4299_v2  ;;  %v4325_v40 = vadd.f32 0.05243302, %v4324_v43  ;;  %v4518_v29 = vmul.f32 %v7850_v36, %v7850_v36 }
 0x45a   : > { %8744 = vst [vmem:[#allocation21_spill] sm:$0xff] %v7866_v15  ;;  %v7886_v12 = vmul.f32 %v4249_v20, %v7601_v34  ;;  %v4338_v56 = vadd.f32 0.4994258, %v4337_v30  ;;  %v4363_v22 = vadd.f32 0.0036580483, %v4362_v3  ;;  %v4262_v55 = vmul.f32 %v7863_v51, %v7809_v46 }
 0x45b   : > { %v4376_v38 = vadd.f32 0.112945676, %v4375_v32  ;;  %v4480_v25 = vmul.f32 2.1237322e-06, %v7876_v31  ;;  %v4491_v50 = vmul.f32 3.8918573e-05, %v7876_v31  ;;  %v4154_v54 = vsel %vm7856_vm3, %v4153_v45, %v4149_v5 }
 0x45c   : > { %v7892_v58 = vmin.f32 %v4518_v29, 16.0  ;;  %v4270_v17 = vand.u32 2147483647, %v7809_v46  ;;  %v4272_v34 = vand.u32 2147483648, %v7809_v46  ;;  %v4289_v44 = vadd.f32 1.1283791, %v4288_v61 }
 0x45d   : > { %v4377_v4 = vmul.f32 %v4376_v38, %v7786_v1  ;;  %5406 = vrcp.f32 %v7881_v42  ;;  %v4481_v2 = vadd.f32 0.00028619796, %v4480_v25  ;;  %v4492_v43 = vadd.f32 0.001143296, %v4491_v50 }
 0x45e   : > { %v4326_v20 = vmul.f32 %v4325_v40, %v7714_v0  ;;  %v4339_v30 = vmul.f32 %v4338_v56, %v7714_v0  ;;  %v4520_v47 = vmul.f32 2.1237322e-06, %v7892_v58  ;;  %v4263_v45 = vsub.f32 1.0, %v4262_v55 }
 0x45f   : > { %v4378_v3 = vadd.f32 0.4994258, %v4377_v4  ;;  %v4364_v23 = vmul.f32 %v4363_v22, %v7786_v1  ;;  %v4482_v32 = vmul.f32 %v4481_v2, %v7876_v31  ;;  %v4493_v5 = vmul.f32 %v4492_v43, %v7876_v31 }
 0x460   : > { %v4521_v29 = vadd.f32 0.00028619796, %v4520_v47  ;;  %v4531_v38 = vmul.f32 3.8918573e-05, %v7892_v58  ;;  %v7909_v25 = vadd.f32 %v3620_v6, %v7301_v19  ;;  %v7911_v40 = vmul.f32 %v4154_v54, %v4130_v8 }
 0x461   : > { %v4379_v61 = vmul.f32 %v4378_v3, %v7786_v1  ;;  %v7913_v56 = vor.u32 1.1754944e-38, %v4272_v34  ;;  %v4483_v50 = vadd.f32 0.0036580483, %v4482_v32  ;;  %v4494_v55 = vadd.f32 0.014752088, %v4493_v5  ;;  %v3649_v3 = vpop.f32.mrf.mxu1 }
 0x462   : > { %8747 = vst [vmem:[#allocation22_spill] sm:$0xff] %v7911_v40  ;;  %vm4266_vm0 = vweird.f32 %v7809_v46  ;;  %v7917_v22 = vmul.f32 %v4289_v44, %v7604_v28  ;;  %v7919_v4 = vadd.f32 1.0, %v4339_v30  ;;  %v4522_v2 = vmul.f32 %v4521_v29, %v7892_v58 }
 0x463   : > { %v4532_v43 = vadd.f32 0.001143296, %v4531_v38  ;;  %v7922_v47 = vpop.eup %5406  ;;  %v4327_v6 = vadd.f32 0.18741608, %v4326_v20  ;;  %v7924_v8 = vadd.f32 1.0, %v4379_v61  ;;  %v4484_v54 = vmul.f32 %v4483_v50, %v7876_v31 }
 0x464   : > { %v4495_v34 = vmul.f32 %v4494_v55, %v7876_v31  ;;  %v4264_v32 = vmul.f32 %v7863_v51, %v4263_v45  ;;  %v4365_v44 = vadd.f32 0.05243302, %v4364_v23  ;;  %v7931_v30 = vmul.f32 0.70710677, %v7909_v25 }
 0x465   : > { %v4312_v5 = vand.u32 2147483648, %v7881_v42  ;;  %v4523_v38 = vadd.f32 0.0036580483, %v4522_v2  ;;  %v7935_v20 = vadd.f32 %v3649_v3, %v7301_v19  ;;  %vm4267_vm5 = vweird.f32 %v7863_v51 }
 0x466   : > { %v4496_v29 = vadd.f32 0.112945676, %v4495_v34  ;;  %v4302_v61 = vmul.f32 %v7922_v47, %v7881_v42  ;;  %5408 = vrcp.f32 %v7919_v4  ;;  %v4533_v45 = vmul.f32 %v4532_v43, %v7892_v58  ;;  %vm7969_vm7 = vmor %vm4266_vm0, %vm4267_vm5 }
 0x467   : > { %vm7942_vm6 = vcmp.eq.f32.partialorder %v4270_v17, 8.507059e+37  ;;  %v4328_v50 = vmul.f32 %v4327_v6, %v7714_v0  ;;  %5410 = vrcp.f32 %v7924_v8  ;;  %v4485_v55 = vadd.f32 0.05243302, %v4484_v54 }
 0x468   : > { %v4497_v2 = vmul.f32 %v4496_v29, %v7876_v31  ;;  %v4265_v3 = vadd.f32 %v7863_v51, %v4264_v32  ;;  %v4366_v34 = vmul.f32 %v4365_v44, %v7786_v1  ;;  %v4534_v28 = vadd.f32 0.014752088, %v4533_v45 }
 0x469   : > { %v4558_v62 = vmul.f32 %v7931_v30, %v7931_v30  ;;  %v7953_v43 = vor.u32 1.1754944e-38, %v4312_v5  ;;  %v4524_v33 = vmul.f32 %v4523_v38, %v7892_v58  ;;  %v7957_v0 = vmul.f32 0.70710677, %v7935_v20 }
 0x46a   : > { %v4498_v17 = vadd.f32 0.4994258, %v4497_v2  ;;  %v4303_v6 = vsub.f32 1.0, %v4302_v61  ;;  %v7960_v54 = vmul.f32 0.5, %v7823_v35  ;;  %v4535_v32 = vmul.f32 %v4534_v28, %v7892_v58 }
 0x46b   : > { %v7963_v29 = vmin.f32 %v4558_v62, 16.0  ;;  %v4329_v5 = vadd.f32 1.1283791, %v4328_v50  ;;  %v4486_v38 = vmul.f32 %v4485_v55, %v7876_v31  ;;  %v7976_v35 = vmul.f32 0.5, %v7841_v16 }
 0x46c   : > { %v4499_v61 = vmul.f32 %v4498_v17, %v7876_v31  ;;  %v7978_v45 = vpop.eup %5408  ;;  %v4269_v62 = vsel %vm7969_vm7, %v7863_v51, %v4265_v3  ;;  %vm4306_vm8 = vweird.f32 %v7881_v42  ;;  %v4367_v46 = vadd.f32 0.18741608, %v4366_v34 }
 0x46d   : > { %v4536_v28 = vadd.f32 0.112945676, %v4535_v32  ;;  %v4571_v2 = vmul.f32 3.8918573e-05, %v7963_v29  ;;  %v7985_v50 = vpop.eup %5410  ;;  %v4525_v17 = vadd.f32 0.05243302, %v4524_v33  ;;  %v4598_v18 = vmul.f32 %v7957_v0, %v7957_v0 }
 0x46e   : > { %v7987_v55 = vadd.f32 1.0, %v4499_v61  ;;  %v4560_v16 = vmul.f32 2.1237322e-06, %v7963_v29  ;;  %v4304_v26 = vmul.f32 %v7922_v47, %v4303_v6  ;;  %vm4307_vm9 = vweird.f32 %v7922_v47 }
 0x46f   : > { %v4537_v51 = vmul.f32 %v4536_v28, %v7892_v58  ;;  %v4572_v3 = vadd.f32 0.001143296, %v4571_v2  ;;  %v4342_v34 = vmul.f32 %v7978_v45, %v7919_v4  ;;  %v4352_v32 = vand.u32 2147483648, %v7919_v4  ;;  %vm8031_vm10 = vmor %vm4306_vm8, %vm4307_vm9 }
 0x470   : > { %v4487_v44 = vadd.f32 0.18741608, %v4486_v38  ;;  %5412 = vrcp.f32 %v7987_v55  ;;  %v4274_v33 = vsel %vm7942_vm6, %v7913_v56, %v4269_v62  ;;  %v4368_v61 = vmul.f32 %v4367_v46, %v7786_v1 }
 0x471   : > { %v4382_v6 = vmul.f32 %v7985_v50, %v7924_v8  ;;  %v4538_v57 = vadd.f32 0.4994258, %v4537_v51  ;;  %v4526_v28 = vmul.f32 %v4525_v17, %v7892_v58  ;;  %v4561_v2 = vadd.f32 0.00028619796, %v4560_v16  ;;  %v3669_v16 = vpop.f32.mrf.mxu2 }
 0x472   : > { %v4573_v41 = vmul.f32 %v4572_v3, %v7963_v29  ;;  %v8007_v27 = vmin.f32 %v4598_v18, 16.0  ;;  %v8010_v38 = vadd.f32 %v7922_v47, %v4304_v26  ;;  %v8013_v40 = vmul.f32 %v4329_v5, %v7681_v60  ;;  %v3698_v60 = vpop.f32.mrf.mxu3 }
 0x473   : > { %v4539_v1 = vmul.f32 %v4538_v57, %v7892_v58  ;;  %v4343_v23 = vsub.f32 1.0, %v4342_v34  ;;  %v8017_v62 = vor.u32 1.1754944e-38, %v4352_v32  ;;  %v4488_v46 = vmul.f32 %v4487_v44, %v7876_v31 }
 0x474   : > { %v4574_v17 = vadd.f32 0.014752088, %v4573_v41  ;;  %v8021_v18 = vmul.f32 %v4274_v33, %v7886_v12  ;;  %v8023_v51 = vadd.f32 1.1283791, %v4368_v61  ;;  %v4383_v26 = vsub.f32 1.0, %v4382_v6 }
 0x475   : > { %v8025_v3 = vadd.f32 1.0, %v4539_v1  ;;  %v4527_v41 = vadd.f32 0.18741608, %v4526_v28  ;;  %v4562_v31 = vmul.f32 %v4561_v2, %v7963_v29  ;;  %v4611_v34 = vmul.f32 3.8918573e-05, %v8007_v27 }
 0x476   : > { %v5413_v5 = vpop.eup %5412  ;;  %v4575_v12 = vmul.f32 %v4574_v17, %v7963_v29  ;;  %v8045_v33 = vadd.f32 %v3669_v16, %v7303_v10  ;;  %v8048_v61 = vmul.f32 %v7978_v45, %v4343_v23  ;;  %v4489_v6 = vadd.f32 1.1283791, %v4488_v46 }
 0x477   : > { %v4502_v44 = vmul.f32 %v5413_v5, %v7987_v55  ;;  %5414 = vrcp.f32 %v8025_v3  ;;  %v4600_v28 = vmul.f32 2.1237322e-06, %v8007_v27  ;;  %v8052_v2 = vadd.f32 %v3698_v60, %v7303_v10 }
 0x478   : > { %v8055_v1 = vmul.f32 %v7985_v50, %v4383_v26  ;;  %v4510_v32 = vand.u32 2147483647, %v7987_v55  ;;  %v4576_v56 = vadd.f32 0.112945676, %v4575_v12  ;;  %v4512_v14 = vand.u32 2147483648, %v7987_v55 }
 0x479   : > { %8754 = vst [vmem:[#allocation23_spill] sm:$0xff] %v8052_v2  ;;  %v4503_v17 = vsub.f32 1.0, %v4502_v44  ;;  %v4528_v16 = vmul.f32 %v4527_v41, %v7892_v58  ;;  %v4563_v9 = vadd.f32 0.0036580483, %v4562_v31  ;;  %v4612_v23 = vadd.f32 0.001143296, %v4611_v34 }
 0x47a   : > { %vm4507_vm11 = vweird.f32 %v5413_v5  ;;  %v4577_v46 = vmul.f32 %v4576_v56, %v7963_v29  ;;  %v8062_v10 = vmul.f32 0.70710677, %v8045_v33  ;;  %v4490_v26 = vmul.f32 %v4489_v6, %v7838_v24 }
 0x47b   : > { %v4504_v15 = vmul.f32 %v5413_v5, %v4503_v17  ;;  %vm4506_vm12 = vweird.f32 %v7987_v55  ;;  %v4601_v60 = vadd.f32 0.00028619796, %v4600_v28  ;;  %v4613_v12 = vmul.f32 %v4612_v23, %v8007_v27 }
 0x47c   : > { %vm4511_vm13 = vcmp.eq.f32.partialorder %v4510_v32, 8.507059e+37  ;;  %v4578_v58 = vadd.f32 0.4994258, %v4577_v46  ;;  %v3918_v41 = vmul.f32 %v8062_v10, %v8062_v10  ;;  %vm4508_vm14 = vmor %vm4506_vm12, %vm4507_vm11  ;;  %v4513_v31 = vor.u32 1.1754944e-38, %v4512_v14 }
 0x47d   : > { %v5415_v44 = vpop.eup %5414  ;;  %v4505_v37 = vadd.f32 %v5413_v5, %v4504_v15  ;;  %v4529_v56 = vadd.f32 1.1283791, %v4528_v16  ;;  %v4614_v17 = vadd.f32 0.014752088, %v4613_v12  ;;  %v4564_v24 = vmul.f32 %v4563_v9, %v7963_v29 }
 0x47e   : > { %v4542_v34 = vmul.f32 %v5415_v44, %v8025_v3  ;;  %v4579_v55 = vmul.f32 %v4578_v58, %v7963_v29  ;;  %v8072_v6 = vmin.f32 %v3918_v41, 16.0  ;;  %v4602_v32 = vmul.f32 %v4601_v60, %v8007_v27 }
 0x47f   : > { %v4509_v13 = vsel %vm4508_vm14, %v5413_v5, %v4505_v37  ;;  %v4615_v23 = vmul.f32 %v4614_v17, %v8007_v27  ;;  %vm4347_vm15 = vweird.f32 %v7978_v45  ;;  %v4550_v16 = vand.u32 2147483647, %v8025_v3 }
 0x480   : > { %v4514_v28 = vsel %vm4511_vm13, %v4513_v31, %v4509_v13  ;;  %v4543_v15 = vsub.f32 1.0, %v4542_v34  ;;  %v4552_v46 = vand.u32 2147483648, %v8025_v3  ;;  %v8079_v37 = vadd.f32 1.0, %v4579_v55 }
 0x481   : > { %v4515_v14 = vmul.f32 %v4514_v28, %v4490_v26  ;;  %vm4547_vm1 = vweird.f32 %v5415_v44  ;;  %v4616_v5 = vadd.f32 0.112945676, %v4615_v23  ;;  %v3931_v12 = vmul.f32 3.8918573e-05, %v8072_v6  ;;  %v3672_v26 = vpop.f32.mrf.mxu2 }
 0x482   : > { %v4544_v9 = vmul.f32 %v5415_v44, %v4543_v15  ;;  %vm4346_vm2 = vweird.f32 %v7919_v4  ;;  %v4530_v60 = vmul.f32 %v4529_v56, %v7850_v36  ;;  %vm4546_vm3 = vweird.f32 %v8025_v3 }
 0x483   : > { %v5273_v13 = vclamps-f32 %v4515_v14, 1.0  ;;  %v4565_v58 = vadd.f32 0.05243302, %v4564_v24  ;;  %v4603_v31 = vadd.f32 0.0036580483, %v4602_v32  ;;  %v4617_v34 = vmul.f32 %v4616_v5, %v8007_v27  ;;  %vm4548_vm4 = vmor %vm4546_vm3, %vm4547_vm1 }
 0x484   : > { %v4545_v41 = vadd.f32 %v5415_v44, %v4544_v9  ;;  %v8087_v17 = vmul.f32 0.70710677, %v8052_v2  ;;  %v4553_v28 = vor.u32 1.1754944e-38, %v4552_v46  ;;  %5416 = vrcp.f32 %v8079_v37  ;;  %vm8134_vm8 = vmor %vm4346_vm2, %vm4347_vm15 }
 0x485   : > { %v4736_v55 = vadd.f32 1.0, %v5273_v13  ;;  %v3932_v15 = vadd.f32 0.001143296, %v3931_v12  ;;  %v8755_v23 = vand.u32 2147483647, %v7881_v42  ;;  %vm4551_vm5 = vcmp.eq.f32.partialorder %v4550_v16, 8.507059e+37 }
 0x486   : > { %v4549_v3 = vsel %vm4548_vm4, %v5415_v44, %v4545_v41  ;;  %v4618_v56 = vadd.f32 0.4994258, %v4617_v34  ;;  %v8097_v24 = vadd.f32 %v3672_v26, %v7367_v63  ;;  %v3920_v46 = vmul.f32 2.1237322e-06, %v8072_v6 }
 0x487   : > { %vm8092_vm0 = vcmp.eq.f32.partialorder %v8755_v23, 8.507059e+37  ;;  %v4760_v32 = vmul.f32 %v4736_v55, %v7960_v54  ;;  %v4554_v14 = vsel %vm4551_vm5, %v4553_v28, %v4549_v3  ;;  %v3933_v9 = vmul.f32 %v3932_v15, %v8072_v6 }
 0x488   : > { %v8758_v5 = vand.u32 2147483647, %v7919_v4  ;;  %v4555_v12 = vmul.f32 %v4554_v14, %v4530_v60  ;;  %v4566_v44 = vmul.f32 %v4565_v58, %v7963_v29  ;;  %v4619_v16 = vmul.f32 %v4618_v56, %v8007_v27 }
 0x489   : > { %v3958_v13 = vmul.f32 %v8087_v17, %v8087_v17  ;;  %v4345_v54 = vadd.f32 %v7978_v45, %v8048_v61  ;;  %v4370_v26 = vmul.f32 %v8023_v51, %v7726_v49  ;;  %vm4387_vm7 = vweird.f32 %v7985_v50  ;;  %4787 = vmatpush.msra.mxu0 %v4760_v32 }
 0x48a   : > { %vm8104_vm6 = vcmp.eq.f32.partialorder %v8758_v5, 8.507059e+37  ;;  %v3934_v41 = vadd.f32 0.014752088, %v3933_v9  ;;  %v4385_v60 = vadd.f32 %v7985_v50, %v8055_v1  ;;  %v5274_v34 = vclamps-f32 %v4555_v12, 1.0  ;;  %v8122_v28 = vpop.eup %5416 }
 0x48b   : > { %v4604_v58 = vmul.f32 %v4603_v31, %v8007_v27  ;;  %v8120_v55 = vadd.f32 1.0, %v4619_v16  ;;  %v3921_v15 = vadd.f32 0.00028619796, %v3920_v46  ;;  %v8125_v23 = vmin.f32 %v3958_v13, 16.0 }
 0x48c   : > { %v3935_v61 = vmul.f32 %v3934_v41, %v8072_v6  ;;  %v8128_v49 = vmul.f32 0.70710677, %v8097_v24  ;;  %vm4386_vm9 = vweird.f32 %v7924_v8  ;;  %v4737_v1 = vadd.f32 1.0, %v5274_v34 }
 0x48d   : > { %v4567_v31 = vadd.f32 0.18741608, %v4566_v44  ;;  %5418 = vrcp.f32 %v8120_v55  ;;  %v4349_v3 = vsel %vm8134_vm8, %v7978_v45, %v4345_v54  ;;  %v4390_v56 = vand.u32 2147483647, %v7924_v8  ;;  %vm8149_vm11 = vmor %vm4386_vm9, %vm4387_vm7 }
 0x48e   : > { %v4392_v32 = vand.u32 2147483648, %v7924_v8  ;;  %v4158_v4 = vmul.f32 %v8128_v49, %v8128_v49  ;;  %v4761_v46 = vmul.f32 %v4737_v1, %v7976_v35  ;;  %v4582_v9 = vmul.f32 %v8122_v28, %v8079_v37 }
 0x48f   : > { %v4605_v5 = vadd.f32 0.05243302, %v4604_v58  ;;  %v3936_v45 = vadd.f32 0.112945676, %v3935_v61  ;;  %v8765_v8 = vsel %vm8031_vm10, %v7922_v47, %v8010_v38  ;;  %v4389_v44 = vsel %vm8149_vm11, %v7985_v50, %v4385_v60 }
 0x490   : > { %v4314_v12 = vsel %vm8092_vm0, %v7953_v43, %v8765_v8  ;;  %v3922_v35 = vmul.f32 %v3921_v15, %v8072_v6  ;;  %v3971_v16 = vmul.f32 3.8918573e-05, %v8125_v23  ;;  %v4568_v13 = vmul.f32 %v4567_v31, %v7963_v29  ;;  %4807 = vmatpush.msra.mxu1 %v4761_v46 }
 0x491   : > { %v3937_v54 = vmul.f32 %v3936_v45, %v8072_v6  ;;  %v3960_v57 = vmul.f32 2.1237322e-06, %v8125_v23  ;;  %v8172_v41 = vmin.f32 %v4158_v4, 16.0  ;;  %v4354_v47 = vsel %vm8104_vm6, %v8017_v62, %v4349_v3  ;;  %v3701_v4 = vpop.f32.mrf.mxu3 }
 0x492   : > { %vm4391_vm10 = vcmp.eq.f32.partialorder %v4390_v56, 8.507059e+37  ;;  %v4393_v43 = vor.u32 1.1754944e-38, %v4392_v32  ;;  %v3972_v50 = vadd.f32 0.001143296, %v3971_v16  ;;  %v4583_v36 = vsub.f32 1.0, %v4582_v9 }
 0x493   : > { %v8177_v38 = vpop.eup %5418  ;;  %v4606_v60 = vmul.f32 %v4605_v5, %v8007_v27  ;;  %v3938_v29 = vadd.f32 0.4994258, %v3937_v54  ;;  %v4160_v34 = vmul.f32 2.1237322e-06, %v8172_v41  ;;  %v8182_v58 = vmul.f32 %v4314_v12, %v7917_v22 }
 0x494   : > { %v4394_v15 = vsel %vm4391_vm10, %v4393_v43, %v4389_v44  ;;  %v4622_v61 = vmul.f32 %v8177_v38, %v8120_v55  ;;  %v3923_v42 = vadd.f32 0.0036580483, %v3922_v35  ;;  %v4569_v62 = vadd.f32 1.1283791, %v4568_v13 }
 0x495   : > { %v3939_v51 = vmul.f32 %v3938_v29, %v8072_v6  ;;  %v3961_v1 = vadd.f32 0.00028619796, %v3960_v57  ;;  %v3973_v31 = vmul.f32 %v3972_v50, %v8125_v23  ;;  %v8189_v3 = vmul.f32 %v4354_v47, %v8013_v40 }
 0x496   : > { %v8192_v56 = vmul.f32 0.5, %v7909_v25  ;;  %v8195_v22 = vmul.f32 0.5, %v7935_v20  ;;  %v4161_v32 = vadd.f32 0.00028619796, %v4160_v34  ;;  %v8197_v14 = vmul.f32 %v4394_v15, %v4370_v26  ;;  %v3675_v25 = vpop.f32.mrf.mxu2 }
 0x497   : > { %v4584_v46 = vmul.f32 %v8122_v28, %v4583_v36  ;;  %v4607_v9 = vadd.f32 0.18741608, %v4606_v60  ;;  %v3974_v5 = vadd.f32 0.014752088, %v3973_v31  ;;  %v4623_v45 = vsub.f32 1.0, %v4622_v61 }
 0x498   : > { %v3924_v8 = vmul.f32 %v3923_v42, %v8072_v6  ;;  %v8201_v12 = vadd.f32 1.0, %v3939_v51  ;;  %v4171_v40 = vmul.f32 3.8918573e-05, %v8172_v41  ;;  %v4570_v44 = vmul.f32 %v4569_v62, %v7931_v30 }
 0x499   : > { %vm4586_vm12 = vweird.f32 %v8079_v37  ;;  %v3962_v20 = vmul.f32 %v3961_v1, %v8125_v23  ;;  %v8208_v26 = vadd.f32 %v3701_v4, %v7367_v63  ;;  %v4590_v35 = vand.u32 2147483647, %v8079_v37  ;;  %v3704_v15 = vpop.f32.mrf.mxu3 }
 0x49a   : > { %v4592_v16 = vand.u32 2147483648, %v8079_v37  ;;  %v3975_v13 = vmul.f32 %v3974_v5, %v8125_v23  ;;  %v4162_v54 = vmul.f32 %v4161_v32, %v8172_v41  ;;  %v4585_v57 = vadd.f32 %v8122_v28, %v4584_v46 }
 0x49b   : > { %8766 = vst [vmem:[#allocation24_spill] sm:$0xff] %v8208_v26  ;;  %vm4587_vm13 = vweird.f32 %v8122_v28  ;;  %v4172_v30 = vadd.f32 0.001143296, %v4171_v40  ;;  %v8217_v47 = vadd.f32 %v3675_v25, %v7533_v53  ;;  %v4624_v43 = vmul.f32 %v8177_v38, %v4623_v45 }
 0x49c   : > { %v3925_v63 = vadd.f32 0.05243302, %v3924_v8  ;;  %5420 = vrcp.f32 %v8201_v12  ;;  %v3976_v50 = vadd.f32 0.112945676, %v3975_v13  ;;  %v4608_v36 = vmul.f32 %v4607_v9, %v8007_v27  ;;  %vm8228_vm14 = vmor %vm4586_vm12, %vm4587_vm13 }
 0x49d   : > { %v3963_v60 = vadd.f32 0.0036580483, %v3962_v20  ;;  %v4173_v29 = vmul.f32 %v4172_v30, %v8172_v41  ;;  %v8224_v34 = vmul.f32 0.70710677, %v8208_v26  ;;  %vm8232_vm15 = vcmp.eq.f32.partialorder %v4590_v35, 8.507059e+37 }
 0x49e   : > { %v4593_v42 = vor.u32 1.1754944e-38, %v4592_v16  ;;  %v3977_v62 = vmul.f32 %v3976_v50, %v8125_v23  ;;  %v4163_v27 = vadd.f32 0.0036580483, %v4162_v54  ;;  %v4589_v51 = vsel %vm8228_vm14, %v8122_v28, %v4585_v57 }
 0x49f   : > { %v4174_v1 = vadd.f32 0.014752088, %v4173_v29  ;;  %v4198_v37 = vmul.f32 %v8224_v34, %v8224_v34  ;;  %v8243_v31 = vmul.f32 0.70710677, %v8217_v47  ;;  %v4625_v32 = vadd.f32 %v8177_v38, %v4624_v43 }
 0x4a0   : > { %vm4627_vm1 = vweird.f32 %v8177_v38  ;;  %v4632_v4 = vand.u32 2147483648, %v8120_v55  ;;  %v3926_v46 = vmul.f32 %v3925_v63, %v8072_v6  ;;  %vm4626_vm2 = vweird.f32 %v8120_v55 }
 0x4a1   : > { %v3964_v9 = vmul.f32 %v3963_v60, %v8125_v23  ;;  %v4175_v28 = vmul.f32 %v4174_v1, %v8172_v41  ;;  %v8252_v5 = vmin.f32 %v4198_v37, 16.0  ;;  %v4594_v8 = vsel %vm8232_vm15, %v4593_v42, %v4589_v51  ;;  %vm8260_vm3 = vmor %vm4626_vm2, %vm4627_vm1 }
 0x4a2   : > { %v8254_v45 = vpop.eup %5420  ;;  %v4630_v40 = vand.u32 2147483647, %v8120_v55  ;;  %v3978_v25 = vadd.f32 0.4994258, %v3977_v62  ;;  %v4164_v20 = vmul.f32 %v4163_v27, %v8172_v41  ;;  %v4609_v35 = vadd.f32 1.1283791, %v4608_v36 }
 0x4a3   : > { %v4176_v13 = vadd.f32 0.112945676, %v4175_v28  ;;  %v4200_v54 = vmul.f32 2.1237322e-06, %v8252_v5  ;;  %v4398_v57 = vmul.f32 %v8243_v31, %v8243_v31  ;;  %v4629_v30 = vsel %vm8260_vm3, %v8177_v38, %v4625_v32 }
 0x4a4   : > { %v4633_v43 = vor.u32 1.1754944e-38, %v4632_v4  ;;  %v3927_v55 = vadd.f32 0.18741608, %v3926_v46  ;;  %v4211_v63 = vmul.f32 3.8918573e-05, %v8252_v5  ;;  %v4595_v50 = vmul.f32 %v4594_v8, %v4570_v44 }
 0x4a5   : > { %v3942_v36 = vmul.f32 %v8254_v45, %v8201_v12  ;;  %v3965_v60 = vadd.f32 0.05243302, %v3964_v9  ;;  %v4177_v29 = vmul.f32 %v4176_v13, %v8172_v41  ;;  %vm4631_vm4 = vcmp.eq.f32.partialorder %v4630_v40, 8.507059e+37 }
 0x4a6   : > { %v3979_v61 = vmul.f32 %v3978_v25, %v8125_v23  ;;  %v4165_v42 = vadd.f32 0.05243302, %v4164_v20  ;;  %v4212_v62 = vadd.f32 0.001143296, %v4211_v63  ;;  %v4634_v27 = vsel %vm4631_vm4, %v4633_v43, %v4629_v30 }
 0x4a7   : > { %v8276_v38 = vmul.f32 0.5, %v8045_v33  ;;  %v4201_v51 = vadd.f32 0.00028619796, %v4200_v54  ;;  %v8278_v1 = vmin.f32 %v4398_v57, 16.0  ;;  %v4610_v44 = vmul.f32 %v4609_v35, %v7957_v0 }
 0x4a8   : > { %v3928_v37 = vmul.f32 %v3927_v55, %v8072_v6  ;;  %v4178_v32 = vadd.f32 0.4994258, %v4177_v29  ;;  %v8283_v4 = vadd.f32 %v3704_v15, %v7533_v53  ;;  %v5275_v46 = vclamps-f32 %v4595_v50, 1.0 }
 0x4a9   : > { %v3943_v9 = vsub.f32 1.0, %v3942_v36  ;;  %v3966_v28 = vmul.f32 %v3965_v60, %v8125_v23  ;;  %v4213_v8 = vmul.f32 %v4212_v62, %v8252_v5  ;;  %v4635_v40 = vmul.f32 %v4634_v27, %v4610_v44 }
 0x4aa   : > { %v8287_v33 = vadd.f32 1.0, %v3979_v61  ;;  %v4166_v25 = vmul.f32 %v4165_v42, %v8172_v41  ;;  %v4179_v20 = vmul.f32 %v4178_v32, %v8172_v41  ;;  %v4202_v0 = vmul.f32 %v4201_v51, %v8252_v5 }
 0x4ab   : > { %v4214_v6 = vadd.f32 0.014752088, %v4213_v8  ;;  %v4400_v35 = vmul.f32 2.1237322e-06, %v8278_v1  ;;  %v4411_v53 = vmul.f32 3.8918573e-05, %v8278_v1  ;;  %v3944_v30 = vmul.f32 %v8254_v45, %v3943_v9 }
 0x4ac   : > { %v3929_v16 = vadd.f32 1.1283791, %v3928_v37  ;;  %v8295_v13 = vmul.f32 0.5, %v8097_v24  ;;  %v8297_v54 = vadd.f32 1.0, %v4179_v20  ;;  %v8300_v57 = vmul.f32 0.70710677, %v8283_v4  ;;  %v3678_v37 = vpop.f32.mrf.mxu2 }
 0x4ad   : > { %v4215_v43 = vmul.f32 %v4214_v6, %v8252_v5  ;;  %v4401_v55 = vadd.f32 0.00028619796, %v4400_v35  ;;  %v4412_v63 = vadd.f32 0.001143296, %v4411_v53  ;;  %v4738_v50 = vadd.f32 1.0, %v5275_v46 }
 0x4ae   : > { %v3967_v36 = vadd.f32 0.18741608, %v3966_v28  ;;  %5422 = vrcp.f32 %v8287_v33  ;;  %v8306_v60 = vmul.f32 0.5, %v8217_v47  ;;  %v5276_v24 = vclamps-f32 %v4635_v40, 1.0 }
 0x4af   : > { %v4167_v29 = vadd.f32 0.18741608, %v4166_v25  ;;  %v4203_v15 = vadd.f32 0.0036580483, %v4202_v0  ;;  %v4402_v61 = vmul.f32 %v4401_v55, %v8278_v1  ;;  %5424 = vrcp.f32 %v8297_v54 }
 0x4b0   : > { %v4216_v42 = vadd.f32 0.112945676, %v4215_v43  ;;  %v4413_v62 = vmul.f32 %v4412_v63, %v8278_v1  ;;  %v4438_v27 = vmul.f32 %v8300_v57, %v8300_v57  ;;  %v3945_v51 = vadd.f32 %v8254_v45, %v3944_v30 }
 0x4b1   : > { %vm3947_vm0 = vweird.f32 %v8254_v45  ;;  %v3950_v47 = vand.u32 2147483647, %v8201_v12  ;;  %v4403_v44 = vadd.f32 0.0036580483, %v4402_v61  ;;  %v3952_v32 = vand.u32 2147483648, %v8201_v12 }
 0x4b2   : > { %v4217_v46 = vmul.f32 %v4216_v42, %v8252_v5  ;;  %v4414_v9 = vadd.f32 0.014752088, %v4413_v62  ;;  %v8318_v28 = vmin.f32 %v4438_v27, 16.0  ;;  %v4739_v8 = vadd.f32 1.0, %v5276_v24 }
 0x4b3   : > { %vm3946_vm5 = vweird.f32 %v8201_v12  ;;  %v3968_v40 = vmul.f32 %v3967_v36, %v8125_v23  ;;  %v4204_v25 = vmul.f32 %v4203_v15, %v8252_v5  ;;  %v3930_v0 = vmul.f32 %v3929_v16, %v8062_v10 }
 0x4b4   : > { %v8323_v20 = vpop.eup %5422  ;;  %vm8326_vm6 = vmor %vm3946_vm5, %vm3947_vm0  ;;  %v4168_v35 = vmul.f32 %v4167_v29, %v8172_v41  ;;  %v4415_v53 = vmul.f32 %v4414_v9, %v8278_v1  ;;  %v3679_v30 = vadd.f32 %v3678_v37, %v7301_v19  ;;  %v8334_v12 = vmul.f32 %v4738_v50, %v8192_v56 }
 0x4b5   : > { %v3949_v23 = vsel %vm8326_vm6, %v8254_v45, %v3945_v51  ;;  %v4404_v43 = vmul.f32 %v4403_v44, %v8278_v1  ;;  %v4440_v10 = vmul.f32 2.1237322e-06, %v8318_v28  ;;  %v8341_v16 = vpop.eup %5424  ;;  %vm3951_vm7 = vcmp.eq.f32.partialorder %v3950_v47, 8.507059e+37  ;;  %v3707_v45 = vpop.f32.mrf.mxu3 }
 0x4b6   : > { %v3953_v55 = vor.u32 1.1754944e-38, %v3952_v32  ;;  %v4218_v41 = vadd.f32 0.4994258, %v4217_v46  ;;  %v4416_v63 = vadd.f32 0.112945676, %v4415_v53  ;;  %v8344_v36 = vmul.f32 %v4739_v8, %v8195_v22 }
 0x4b7   : > { %v8346_v24 = vadd.f32 1.1283791, %v3968_v40  ;;  %v3982_v56 = vmul.f32 %v8323_v20, %v8287_v33  ;;  %v4205_v50 = vadd.f32 0.05243302, %v4204_v25  ;;  %v4169_v15 = vadd.f32 1.1283791, %v4168_v35 }
 0x4b8   : > { %v3954_v29 = vsel %vm3951_vm7, %v3953_v55, %v3949_v23  ;;  %v4417_v61 = vmul.f32 %v4416_v63, %v8278_v1  ;;  %v8351_v42 = vmul.f32 0.70710677, %v3679_v30  ;;  %v4182_v62 = vmul.f32 %v8341_v16, %v8297_v54 }
 0x4b9   : > { %v4405_v27 = vadd.f32 0.05243302, %v4404_v43  ;;  %v4441_v51 = vadd.f32 0.00028619796, %v4440_v10  ;;  %v4451_v22 = vmul.f32 3.8918573e-05, %v8318_v28  ;;  %v4219_v37 = vmul.f32 %v4218_v41, %v8252_v5 }
 0x4ba   : > { %v8360_v32 = vadd.f32 %v3707_v45, %v7301_v19  ;;  %v8362_v46 = vmul.f32 %v3954_v29, %v3930_v0  ;;  %v3983_v9 = vsub.f32 1.0, %v3982_v56  ;;  %v4206_v8 = vmul.f32 %v4205_v50, %v8252_v5 }
 0x4bb   : > { %v4418_v40 = vadd.f32 0.4994258, %v4417_v61  ;;  %v8366_v25 = vmul.f32 %v4169_v15, %v8128_v49  ;;  %v4452_v6 = vadd.f32 0.001143296, %v4451_v22  ;;  %v8368_v35 = vmul.f32 0.5, %v3679_v30 }
 0x4bc   : > { %v4638_v53 = vmul.f32 %v8351_v42, %v8351_v42  ;;  %v4183_v23 = vsub.f32 1.0, %v4182_v62  ;;  %v4406_v43 = vmul.f32 %v4405_v27, %v8278_v1  ;;  %v4442_v0 = vmul.f32 %v4441_v51, %v8318_v28 }
 0x4bd   : > { %v4419_v19 = vmul.f32 %v4418_v40, %v8278_v1  ;;  %v8375_v10 = vadd.f32 1.0, %v4219_v37  ;;  %v4453_v55 = vmul.f32 %v4452_v6, %v8318_v28  ;;  %v8381_v49 = vmul.f32 0.70710677, %v8360_v32 }
 0x4be   : > { %v8378_v41 = vmin.f32 %v4638_v53, 16.0  ;;  %v3984_v30 = vmul.f32 %v8323_v20, %v3983_v9  ;;  %v4192_v63 = vand.u32 2147483648, %v8297_v54  ;;  %v4207_v56 = vadd.f32 0.18741608, %v4206_v8 }
 0x4bf   : > { %v8385_v50 = vadd.f32 1.0, %v4419_v19  ;;  %v4454_v45 = vadd.f32 0.014752088, %v4453_v55  ;;  %v4678_v61 = vmul.f32 %v8381_v49, %v8381_v49  ;;  %vm4186_vm8 = vweird.f32 %v8297_v54 }
 0x4c0   : > { %v4640_v29 = vmul.f32 2.1237322e-06, %v8378_v41  ;;  %v4651_v15 = vmul.f32 3.8918573e-05, %v8378_v41  ;;  %v4190_v62 = vand.u32 2147483647, %v8297_v54  ;;  %v4184_v51 = vmul.f32 %v8341_v16, %v4183_v23 }
 0x4c1   : > { %5426 = vrcp.f32 %v8385_v50  ;;  %v4443_v27 = vadd.f32 0.0036580483, %v4442_v0  ;;  %v4407_v22 = vadd.f32 0.18741608, %v4406_v43  ;;  %v4455_v37 = vmul.f32 %v4454_v45, %v8318_v28 }
 0x4c2   : > { %5428 = vrcp.f32 %v8375_v10  ;;  %v4193_v9 = vor.u32 1.1754944e-38, %v4192_v63  ;;  %v4641_v8 = vadd.f32 0.00028619796, %v4640_v29  ;;  %v4652_v40 = vadd.f32 0.001143296, %v4651_v15 }
 0x4c3   : > { %v8397_v6 = vmin.f32 %v4678_v61, 16.0  ;;  %v8400_v53 = vadd.f32 %v8323_v20, %v3984_v30  ;;  %vm4187_vm9 = vweird.f32 %v8341_v16  ;;  %v8404_v19 = vmul.f32 %v4207_v56, %v8252_v5 }
 0x4c4   : > { %v4456_v0 = vadd.f32 0.112945676, %v4455_v37  ;;  %v4444_v23 = vmul.f32 %v4443_v27, %v8318_v28  ;;  %v4642_v43 = vmul.f32 %v4641_v8, %v8378_v41  ;;  %v4653_v55 = vmul.f32 %v4652_v40, %v8378_v41  ;;  %vm8431_vm10 = vmor %vm4186_vm8, %vm4187_vm9 }
 0x4c5   : > { %v4680_v63 = vmul.f32 2.1237322e-06, %v8397_v6  ;;  %v4185_v45 = vadd.f32 %v8341_v16, %v4184_v51  ;;  %vm8416_vm11 = vcmp.eq.f32.partialorder %v4190_v62, 8.507059e+37  ;;  %v4408_v56 = vmul.f32 %v4407_v22, %v8278_v1 }
 0x4c6   : > { %v4457_v15 = vmul.f32 %v4456_v0, %v8318_v28  ;;  %v4643_v27 = vadd.f32 0.0036580483, %v4642_v43  ;;  %v4654_v37 = vadd.f32 0.014752088, %v4653_v55  ;;  %v4691_v47 = vmul.f32 3.8918573e-05, %v8397_v6 }
 0x4c7   : > { %v8414_v61 = vpop.eup %5426  ;;  %v4681_v8 = vadd.f32 0.00028619796, %v4680_v63  ;;  %v5267_v0 = vclamps-f32 %v8021_v18, 1.0  ;;  %v4445_v1 = vadd.f32 0.05243302, %v4444_v23  ;;  %v4189_v63 = vsel %vm8431_vm10, %v8341_v16, %v4185_v45 }
 0x4c8   : > { %v8421_v40 = vpop.eup %5428  ;;  %v4422_v51 = vmul.f32 %v8414_v61, %v8385_v50  ;;  %v4458_v44 = vadd.f32 0.4994258, %v4457_v15  ;;  %v4644_v22 = vmul.f32 %v4643_v27, %v8378_v41  ;;  %v4655_v43 = vmul.f32 %v4654_v37, %v8378_v41 }
 0x4c9   : > { %v4682_v55 = vmul.f32 %v4681_v8, %v8397_v6  ;;  %v4432_v15 = vand.u32 2147483648, %v8385_v50  ;;  %v4222_v30 = vmul.f32 %v8421_v40, %v8375_v10  ;;  %v4692_v8 = vadd.f32 0.001143296, %v4691_v47 }
 0x4ca   : > { %v4423_v18 = vsub.f32 1.0, %v4422_v51  ;;  %v4459_v54 = vmul.f32 %v4458_v44, %v8318_v28  ;;  %v4645_v29 = vadd.f32 0.05243302, %v4644_v22  ;;  %v4656_v23 = vadd.f32 0.112945676, %v4655_v43 }
 0x4cb   : > { %v4683_v2 = vadd.f32 0.0036580483, %v4682_v55  ;;  %v4730_v26 = vadd.f32 1.0, %v5267_v0  ;;  %vm4427_vm12 = vweird.f32 %v8414_v61  ;;  %v4446_v16 = vmul.f32 %v4445_v1, %v8318_v28 }
 0x4cc   : > { %v4424_v27 = vmul.f32 %v8414_v61, %v4423_v18  ;;  %v8446_v37 = vadd.f32 1.0, %v4459_v54  ;;  %v4646_v45 = vmul.f32 %v4645_v29, %v8378_v41  ;;  %v4657_v44 = vmul.f32 %v4656_v23, %v8378_v41 }
 0x4cd   : > { %v4684_v62 = vmul.f32 %v4683_v2, %v8397_v6  ;;  %v5268_v22 = vclamps-f32 %v8182_v58, 1.0  ;;  %v4223_v43 = vsub.f32 1.0, %v4222_v30  ;;  %v4409_v55 = vadd.f32 1.1283791, %v4408_v56 }
 0x4ce   : > { %v4425_v51 = vadd.f32 %v8414_v61, %v4424_v27  ;;  %5430 = vrcp.f32 %v8446_v37  ;;  %v4658_v47 = vadd.f32 0.4994258, %v4657_v44  ;;  %v4693_v0 = vmul.f32 %v4692_v8, %v8397_v6 }
 0x4cf   : > { %v4194_v1 = vsel %vm8416_vm11, %v4193_v9, %v4189_v63  ;;  %vm4426_vm13 = vweird.f32 %v8385_v50  ;;  %v4430_v29 = vand.u32 2147483647, %v8385_v50  ;;  %v4754_v18 = vmul.f32 %v4730_v26, %v7740_v39 }
 0x4d0   : > { %vm8464_vm14 = vmor %vm4426_vm13, %vm4427_vm12  ;;  %v4433_v58 = vor.u32 1.1754944e-38, %v4432_v15  ;;  %v4447_v30 = vadd.f32 0.18741608, %v4446_v16  ;;  %v4647_v56 = vadd.f32 0.18741608, %v4646_v45  ;;  %v4659_v54 = vmul.f32 %v4658_v47, %v8378_v41 }
 0x4d1   : > { %v4429_v9 = vsel %vm8464_vm14, %v8414_v61, %v4425_v51  ;;  %v4685_v5 = vadd.f32 0.05243302, %v4684_v62  ;;  %v4694_v63 = vadd.f32 0.014752088, %v4693_v0  ;;  %4788 = vmatpush.msra.mxu0 %v4754_v18  ;;  %v4731_v50 = vadd.f32 1.0, %v5268_v22 }
 0x4d2   : > { %v4224_v39 = vmul.f32 %v8421_v40, %v4223_v43  ;;  %v8473_v26 = vadd.f32 1.0, %v4659_v54  ;;  %v5261_v23 = vclamps-f32 %v7807_v48, 1.0  ;;  %v5262_v15 = vclamps-f32 %v7814_v59, 1.0 }
 0x4d3   : > { %vm4431_vm15 = vcmp.eq.f32.partialorder %v4430_v29, 8.507059e+37  ;;  %v4695_v8 = vmul.f32 %v4694_v63, %v8397_v6  ;;  %v4755_v16 = vmul.f32 %v4731_v50, %v7762_v7  ;;  %v5255_v61 = vclamps-f32 %v7618_v52, 1.0  ;;  %v8514_v63 = vpop.permute.xlu2 %4770 }
 0x4d4   : > { %v8477_v27 = vpop.eup %5430  ;;  %v8483_v45 = vmul.f32 %v4194_v1, %v8366_v25  ;;  %v4434_v44 = vsel %vm4431_vm15, %v4433_v58, %v4429_v9  ;;  %5432 = vrcp.f32 %v8473_v26  ;;  %v4410_v48 = vmul.f32 %v4409_v55, %v8243_v31  ;;  %v8781_v58 = vld [vmem:[#allocation10_spill] sm:$0xff] }
 0x4d5   : > { %v4462_v51 = vmul.f32 %v8477_v27, %v8446_v37  ;;  %v8490_v59 = vmul.f32 %v4447_v30, %v8318_v28  ;;  %v4648_v62 = vmul.f32 %v4647_v56, %v8378_v41  ;;  %v4686_v7 = vmul.f32 %v4685_v5, %v8397_v6  ;;  %4808 = vmatpush.msra.mxu1 %v4755_v16  ;;  %v8782_v56 = vld [vmem:[#allocation15_spill] sm:$0xff] }
 0x4d6   : > { %vm3987_vm1 = vweird.f32 %v8323_v20  ;;  %v8496_v52 = vadd.f32 %v8421_v40, %v4224_v39  ;;  %v4696_v25 = vadd.f32 0.112945676, %v4695_v8  ;;  %v4724_v22 = vadd.f32 1.0, %v5261_v23  ;;  %v8783_v23 = vld [vmem:[#allocation21_spill] sm:$0xff] }
 0x4d7   : > { %v4725_v43 = vadd.f32 1.0, %v5262_v15  ;;  %v8498_v47 = vmul.f32 %v4434_v44, %v4410_v48  ;;  %v4470_v31 = vand.u32 2147483647, %v8446_v37  ;;  %v4472_v28 = vand.u32 2147483648, %v8446_v37 }
 0x4d8   : > { %v4718_v55 = vadd.f32 1.0, %v5255_v61  ;;  %vm3986_vm2 = vweird.f32 %v8287_v33  ;;  %vm4227_vm3 = vweird.f32 %v8421_v40  ;;  %v4463_v41 = vsub.f32 1.0, %v4462_v51 }
 0x4d9   : > { %v4697_v0 = vmul.f32 %v4696_v25, %v8397_v6  ;;  %v4748_v1 = vmul.f32 %v4724_v22, %v7436_v21  ;;  %v4749_v29 = vmul.f32 %v4725_v43, %v7484_v11  ;;  %v4649_v18 = vadd.f32 1.1283791, %v4648_v62  ;;  %v8785_v22 = vld [vmem:[#allocation19_spill] sm:$0xff]  ;;  %vm8549_vm9 = vmor %vm3986_vm2, %vm3987_vm1 }
 0x4da   : > { %v8507_v2 = vadd.f32 0.18741608, %v4686_v7  ;;  %v4742_v30 = vmul.f32 %v4718_v55, %v8781_v58  ;;  %v5256_v54 = vclamps-f32 %v8782_v56, 1.0  ;;  %v8511_v9 = vpop.eup %5432  ;;  %vm4226_vm4 = vweird.f32 %v8375_v10  ;;  %v8789_v56 = vld [vmem:[#allocation14_spill] sm:$0xff] }
 0x4db   : > { %v4698_v5 = vadd.f32 0.4994258, %v4697_v0  ;;  %4789 = vmatpush.msra.mxu0 %v4748_v1  ;;  %4809 = vmatpush.msra.mxu1 %v4749_v29  ;;  %vm4772_vm0 = vcmask 261120   ;;  %v5269_v21 = vclamps-f32 %v8189_v3, 1.0  ;;  %v5270_v11 = vclamps-f32 %v8197_v14, 1.0  ;;  %v8784_v14 = vld [vmem:[#allocation11_spill] sm:$0xff]  ;;  %vm8569_vm12 = vmor %vm4226_vm4, %vm4227_vm3 }
 0x4dc   : > { %vm4466_vm5 = vweird.f32 %v8446_v37  ;;  %vm4467_vm6 = vweird.f32 %v8477_v27  ;;  %v4662_v50 = vmul.f32 %v8511_v9, %v8473_v26  ;;  %v4719_v39 = vadd.f32 1.0, %v5256_v54  ;;  %v8787_v1 = vld [vmem:[#allocation17_spill] sm:$0xff] }
 0x4dd   : > { %v5263_v15 = vclamps-f32 %v8783_v23, 1.0  ;;  %v4464_v8 = vmul.f32 %v8477_v27, %v4463_v41  ;;  %v4699_v16 = vmul.f32 %v4698_v5, %v8397_v6  ;;  %4790 = vmatpush.msra.mxu0 %v4742_v30  ;;  %v4732_v61 = vadd.f32 1.0, %v5269_v21  ;;  %v8786_v41 = vld [vmem:[#allocation22_spill] sm:$0xff]  ;;  %vm8590_vm13 = vmor %vm4466_vm5, %vm4467_vm6 }
 0x4de   : > { %v4733_v44 = vadd.f32 1.0, %v5270_v11  ;;  %v4663_v3 = vsub.f32 1.0, %v4662_v50  ;;  %vm4666_vm7 = vweird.f32 %v8473_v26  ;;  %v4743_v51 = vmul.f32 %v4719_v39, %v8784_v14  ;;  %5279 = vmatmul.msk.f32.vlgmr.msra.gmra.mxu0 %vm4772_vm0, %v8514_v63  ;;  %v8792_v39 = vld [vmem:[#allocation18_spill] sm:$0xff] }
 0x4df   : > { %v4726_v48 = vadd.f32 1.0, %v5263_v15  ;;  %v4670_v62 = vand.u32 2147483647, %v8473_v26  ;;  %v4672_v7 = vand.u32 2147483648, %v8473_v26  ;;  %v8531_v25 = vadd.f32 1.0, %v4699_v16  ;;  %4827 = vmatpush.msrb.mxu0 %v8334_v12  ;;  %v8788_v12 = vld [vmem:[#allocation20_spill] sm:$0xff] }
 0x4e0   : > { %v4756_v43 = vmul.f32 %v4732_v61, %v8785_v22  ;;  %v4664_v55 = vmul.f32 %v8511_v9, %v4663_v3  ;;  %vm4667_vm8 = vweird.f32 %v8511_v9  ;;  %4810 = vmatpush.msra.mxu1 %v4743_v51  ;;  %v5264_v0 = vclamps-f32 %v8786_v41, 1.0  ;;  %v8797_v26 = vld [vmem:[#allocation16_spill] sm:$0xff] }
 0x4e1   : > { %v5257_v29 = vclamps-f32 %v8787_v1, 1.0  ;;  %v4465_v58 = vadd.f32 %v8477_v27, %v4464_v8  ;;  %5434 = vrcp.f32 %v8531_v25  ;;  %5280 = vmatmul.msk.f32.vlgmr.msra.gmra.mxu1 %vm4772_vm0, %v8514_v63  ;;  %v4757_v30 = vmul.f32 %v4733_v44, %v8788_v12  ;;  %vm8561_vm11 = vmor %vm4666_vm7, %vm4667_vm8  ;;  %v8798_v61 = vld [vmem:[#allocation12_spill] sm:$0xff] }
 0x4e2   : > { %4828 = vmatpush.msrb.mxu0 %v4756_v43  ;;  %v4750_v54 = vmul.f32 %v4726_v48, %v8789_v56  ;;  %v4665_v21 = vadd.f32 %v8511_v9, %v4664_v55  ;;  %4847 = vmatpush.msrb.mxu1 %v8344_v36  ;;  %v4727_v11 = vadd.f32 1.0, %v5264_v0  ;;  %v5258_v23 = vclamps-f32 %v8792_v39, 1.0  ;;  %v8804_v43 = vld [vmem:[#allocation13_spill] sm:$0xff] }
 0x4e3   : > { %v4720_v50 = vadd.f32 1.0, %v5257_v29  ;;  %v4650_v15 = vmul.f32 %v4649_v18, %v8351_v42  ;;  %vm4671_vm10 = vcmp.eq.f32.partialorder %v4670_v62, 8.507059e+37  ;;  %v4673_v16 = vor.u32 1.1754944e-38, %v4672_v7  ;;  %v5438_v7 = vld [vmem:[%s8680_s7] sm:$0xff] }
 0x4e4   : > { %4829 = vmatpush.msrb.mxu0 %v4750_v54  ;;  %v4669_v42 = vsel %vm8561_vm11, %v8511_v9, %v4665_v21  ;;  %4848 = vmatpush.msrb.mxu1 %v4757_v30  ;;  %v4751_v18 = vmul.f32 %v4727_v11, %v8797_v26  ;;  %v4721_v3 = vadd.f32 1.0, %v5258_v23  ;;  %v5484_v14 = vmov 9  }
 0x4e5   : > { %v4744_v44 = vmul.f32 %v4720_v50, %v8798_v61  ;;  %5357 = vset.pattern.permute.xlu1 %v5484_v14  ;;  %v3989_v51 = vsel %vm8549_vm9, %v8323_v20, %v8400_v53  ;;  %v4229_v48 = vsel %vm8569_vm12, %v8421_v40, %v8496_v52  ;;  %v4674_v62 = vsel %vm4671_vm10, %v4673_v16, %v4669_v42 }
 0x4e6   : > { %4767 = vperm.xlu1 %5357, %v5438_v7   ;;  %v5271_v20 = vclamps-f32 %v8498_v47, 1.0  ;;  %v8801_v53 = vand.u32 2147483647, %v8375_v10  ;;  %v4469_v52 = vsel %vm8590_vm13, %v8477_v27, %v4465_v58  ;;  %v4675_v22 = vmul.f32 %v4674_v62, %v4650_v15  ;;  %4849 = vmatpush.msrb.mxu1 %v4751_v18 }
 0x4e7   : > { %4830 = vmatpush.msrb.mxu0 %v4744_v44  ;;  %v4745_v55 = vmul.f32 %v4721_v3, %v8804_v43  ;;  %v5435_v41 = vpop.eup %5434  ;;  %v8805_v0 = vand.u32 2147483648, %v8375_v10  ;;  %v4449_v47 = vadd.f32 1.1283791, %v8490_v59  ;;  %v4473_v29 = vor.u32 1.1754944e-38, %v4472_v28 }
 0x4e8   : > { %vm8600_vm14 = vcmp.eq.f32.partialorder %v8801_v53, 8.507059e+37  ;;  %v4688_v12 = vmul.f32 %v8507_v2, %v8397_v6  ;;  %5281 = vmatmul.msk.f32.vlgmr.msrb.gmra.mxu0 %vm4772_vm0, %v8514_v63  ;;  %vm4471_vm15 = vcmp.eq.f32.partialorder %v4470_v31, 8.507059e+37  ;;  %v5277_v27 = vclamps-f32 %v4675_v22, 1.0 }
 0x4e9   : > { %v4233_v1 = vor.u32 1.1754944e-38, %v8805_v0  ;;  %v4702_v58 = vmul.f32 %v5435_v41, %v8531_v25  ;;  %4850 = vmatpush.msrb.mxu1 %v4745_v55  ;;  %v5265_v10 = vclamps-f32 %v8483_v45, 1.0  ;;  %v4209_v59 = vadd.f32 1.1283791, %v8404_v19 }
 0x4ea   : > { %v4474_v30 = vsel %vm4471_vm15, %v4473_v29, %v4469_v52  ;;  %5282 = vmatmul.msk.f32.vlgmr.msrb.gmra.mxu1 %vm4772_vm0, %v8514_v63  ;;  %v4734_v6 = vadd.f32 1.0, %v5271_v20  ;;  %v4740_v2 = vadd.f32 1.0, %v5277_v27  ;;  %v5259_v37 = vclamps-f32 %v8362_v46, 1.0  ;;  %v8808_v20 = vld [vmem:[#allocation24_spill] sm:$0xff]  ;;  %v8809_v52 = vld [vmem:[#allocation23_spill] sm:$0xff] }
 0x4eb   : > { %v4234_v28 = vsel %vm8600_vm14, %v4233_v1, %v4229_v48  ;;  %v4703_v56 = vsub.f32 1.0, %v4702_v58  ;;  %v4450_v31 = vmul.f32 %v4449_v47, %v8300_v57  ;;  %v4689_v54 = vadd.f32 1.1283791, %v4688_v12  ;;  %v8810_v12 = vld [vmem:[#allocation6_spill] sm:$0xff] }
 0x4ec   : > { %v4710_v5 = vand.u32 2147483647, %v8531_v25  ;;  %v4712_v45 = vand.u32 2147483648, %v8531_v25  ;;  %v5485_v19 = vmov 10   ;;  %v4764_v21 = vmul.f32 %v4740_v2, %v8368_v35 }
 0x4ed   : > { %5358 = vset.pattern.permute.xlu2 %v5485_v19  ;;  %5359 = vset.pattern.permute.xlu0 %v5485_v19  ;;  %v4704_v11 = vmul.f32 %v5435_v41, %v4703_v56  ;;  %vm4707_vm1 = vweird.f32 %v5435_v41  ;;  %v4728_v50 = vadd.f32 1.0, %v5265_v10  ;;  %v8806_v39 = vand.u32 2147483647, %v8287_v33  ;;  %v8811_v10 = vld [vmem:[#allocation5_spill] sm:$0xff]  ;;  %v8812_v56 = vld [vmem:[#allocation8_spill] sm:$0xff] }
 0x4ee   : > { %4896 = vperm.xlu2 %5358, %v5438_v7   ;;  %v8807_v46 = vand.u32 2147483648, %v8287_v33  ;;  %v4210_v23 = vmul.f32 %v4209_v59, %v8224_v34  ;;  %v4475_v15 = vmul.f32 %v4474_v30, %v4450_v31  ;;  %vm4706_vm3 = vweird.f32 %v8531_v25  ;;  %4867 = vmatpush.msra.mxu0 %v4764_v21 }
 0x4ef   : > { %vm3991_vm2 = vcmp.eq.f32.partialorder %v8806_v39, 8.507059e+37  ;;  %v4705_v8 = vadd.f32 %v5435_v41, %v4704_v11  ;;  %v4758_v16 = vmul.f32 %v4734_v6, %v8306_v60  ;;  %v4722_v35 = vadd.f32 1.0, %v5259_v37  ;;  %vm4708_vm4 = vmor %vm4706_vm3, %vm4707_vm1  ;;  %v8814_v11 = vld [vmem:[#allocation4_spill] sm:$0xff] }
 0x4f0   : > { %v3993_v57 = vor.u32 1.1754944e-38, %v8807_v46  ;;  %v3970_v36 = vmul.f32 %v8346_v24, %v8087_v17  ;;  %v4235_v26 = vmul.f32 %v4234_v28, %v4210_v23  ;;  %v4713_v18 = vor.u32 1.1754944e-38, %v4712_v45  ;;  %v8815_v23 = vld [vmem:[#allocation7_spill] sm:$0xff] }
 0x4f1   : > { %v4690_v33 = vmul.f32 %v4689_v54, %v8381_v49  ;;  %v4709_v61 = vsel %vm4708_vm4, %v5435_v41, %v4705_v8  ;;  %vm4711_vm5 = vcmp.eq.f32.partialorder %v4710_v5, 8.507059e+37  ;;  %4868 = vmatpush.msra.mxu0 %v4758_v16  ;;  %v4752_v34 = vmul.f32 %v4728_v50, %v8295_v13  ;;  %v8813_v54 = vld [vmem:[#allocation9_spill] sm:$0xff] }
 0x4f2   : > { %v3994_v42 = vsel %vm3991_vm2, %v3993_v57, %v3989_v51  ;;  %v4714_v25 = vsel %vm4711_vm5, %v4713_v18, %v4709_v61  ;;  %v5272_v60 = vclamps-f32 %v4475_v15, 1.0  ;;  %v4746_v14 = vmul.f32 %v4722_v35, %v8276_v38 }
 0x4f3   : > { %v3995_v44 = vmul.f32 %v3994_v42, %v3970_v36  ;;  %v4715_v3 = vmul.f32 %v4714_v25, %v4690_v33  ;;  %4869 = vmatpush.msra.mxu0 %v4752_v34  ;;  %v5266_v24 = vclamps-f32 %v4235_v26, 1.0  ;;  %v3733_v49 = vmul.f32 0.5, %v8360_v32 }
 0x4f4   : > { %v4735_v48 = vadd.f32 1.0, %v5272_v60  ;;  %v3727_v13 = vmul.f32 0.5, %v8283_v4  ;;  %v3721_v53 = vmul.f32 0.5, %v8808_v20  ;;  %v3715_v22 = vmul.f32 0.5, %v8809_v52 }
 0x4f5   : > { %v5278_v17 = vclamps-f32 %v4715_v3, 1.0  ;;  %4870 = vmatpush.msra.mxu0 %v4746_v14  ;;  %v5260_v9 = vclamps-f32 %v3995_v44, 1.0  ;;  %v4729_v7 = vadd.f32 1.0, %v5266_v24 }
 0x4f6   : > { %5283 = vmatmul.msk.f32.vlgmr.msra.gmra.mxu0 %vm4772_vm0, %v8514_v63  ;;  %v4759_v40 = vmul.f32 %v4735_v48, %v3727_v13 }
 0x4f7   : > { %v4741_v51 = vadd.f32 1.0, %v5278_v17  ;;  %v4723_v38 = vadd.f32 1.0, %v5260_v9  ;;  %v4753_v43 = vmul.f32 %v4729_v7, %v3721_v53 }
 0x4f9   : > { %v4765_v62 = vmul.f32 %v4741_v51, %v3733_v49  ;;  %v4747_v55 = vmul.f32 %v4723_v38, %v3715_v22 }
 0x4fb   : > { %4887 = vmatpush.msra.mxu1 %v4765_v62 }
 0x4fd   : > { %4888 = vmatpush.msra.mxu1 %v4759_v40 }
 0x4ff   : > { %4889 = vmatpush.msra.mxu1 %v4753_v43 }
 0x501   : > { %4890 = vmatpush.msra.mxu1 %v4747_v55 }
 0x502   : > { %5284 = vmatmul.msk.f32.vlgmr.msra.gmra.mxu1 %vm4772_vm0, %v8514_v63 }
 0x548   : > { %v4897_v41 = vpop.permute.xlu2 %4896 }
 0x558   : > { %v4768_v32 = vpop.permute.xlu1 %4767 }
 0x55b   : > { %v4792_v4 = vpop.f32.mrf.mxu0 }
 0x55c   : > { %v4793_v0 = vadd.f32 %v4792_v4, %v4768_v32 }
 0x55e   : > { %v4812_v1 = vpop.f32.mrf.mxu1  ;;  %v4899_v47 = vmul.f32 %v4897_v41, %v4793_v0 }
 0x55f   : > { %v4813_v29 = vadd.f32 %v4812_v1, %v4768_v32 }
 0x560   : > { %v4905_v27 = vadd.f32 %v4899_v47, %v8810_v12 }
 0x561   : > { %v4900_v58 = vmul.f32 %v4897_v41, %v4813_v29 }
 0x562   : > { %4911 = vst [vmem:[%s455_s24] sm:$0xff] %v4905_v27 }
 0x563   : > { %v4906_v59 = vadd.f32 %v4900_v58, %v8811_v10 }
 0x565   : > { %v4832_v28 = vpop.f32.mrf.mxu0  ;;  %4912 = vst [vmem:[%s455_s24 + $0x8] sm:$0xff] %v4906_v59 }
 0x566   : > { %v4833_v63 = vadd.f32 %v4832_v28, %v4768_v32 }
 0x567   : > { %v4852_v30 = vpop.f32.mrf.mxu1 }
 0x568   : > { %v4901_v6 = vmul.f32 %v4897_v41, %v4833_v63  ;;  %v4853_v2 = vadd.f32 %v4852_v30, %v4768_v32 }
 0x56a   : > { %v4907_v37 = vadd.f32 %v4901_v6, %v8812_v56  ;;  %v4902_v31 = vmul.f32 %v4897_v41, %v4853_v2 }
 0x56c   : > { %4913 = vst [vmem:[%s455_s24 + $0x10] sm:$0xff] %v4907_v37  ;;  %v4908_v5 = vadd.f32 %v4902_v31, %v8813_v54 }
 0x56e   : > { %4914 = vst [vmem:[%s455_s24 + $0x18] sm:$0xff] %v4908_v5 }
 0x573   : > { %v4872_v45 = vpop.f32.mrf.mxu0 }
 0x574   : > { %v4873_v19 = vadd.f32 %v4872_v45, %v4768_v32 }
 0x576   : > { %v4903_v21 = vmul.f32 %v4897_v41, %v4873_v19 }
 0x578   : > { %v4909_v50 = vadd.f32 %v4903_v21, %v8814_v11 }
 0x57a   : > { %4915 = vst [vmem:[%s455_s24 + $0x20] sm:$0xff] %v4909_v50 }
 0x57f   : > { %v4892_v39 = vpop.f32.mrf.mxu1 }
 0x580   : > { %v4893_v46 = vadd.f32 %v4892_v39, %v4768_v32 }
 0x582   : > { %v4904_v57 = vmul.f32 %v4897_v41, %v4893_v46 }
 0x584   : > { %v4910_v15 = vadd.f32 %v4904_v57, %v8815_v23 }
 0x586   : > { %4916 = vst [vmem:[%s455_s24 + $0x28] sm:$0xff] %v4910_v15 }
 0x587 PF: > { %p15_p9 = scmp.ge.s32.totalorder %s5548_s9, 4   ;;  %s8816_s27 = smov %s5457_s28 }
 0x588   : > { %s8817_s28 = smov %s5557_s12  ;;  %s8818_s29 = smov %s5548_s9 }
 0x589   :  { %17 = sbr.rel (!%p15_p9) target bundleno = 2 (0x2), region = 163 }

</bundles_post_ra>
